<compile_context>
chip_gen: v5e
topology: v5e:2x2
jax: 0.10.0
libtpu: 0.0.40
codegen_flags: <defaults>
</compile_context>

<pallas_src>
import functools
import numpy as np
import jax
import jax.numpy as jnp
from jax.experimental import pallas as pl
from jax.experimental.pallas import tpu as pltpu

LOG2 = float(np.log(2.0))
VMEM_LIMIT = 48 * 1024 * 1024


# ----------------------------------------------------------------------------
# In-kernel math helpers
# ----------------------------------------------------------------------------
def _shifted_softplus(x):
    return jnp.maximum(x, 0.0) + jnp.log(1.0 + jnp.exp(-jnp.abs(x))) - LOG2


def _layer_norm(x, g, b):
    mu = jnp.mean(x, axis=-1, keepdims=True)
    xc = x - mu
    var = jnp.mean(xc * xc, axis=-1, keepdims=True)
    return xc * jax.lax.rsqrt(var + 1e-5) * g + b


def _bf16_dot(a, w):
    # bf16 operands, f32 accumulation on the MXU.
    return jnp.dot(a.astype(jnp.bfloat16), w.astype(jnp.bfloat16),
                   preferred_element_type=jnp.float32)


def _f32_dot(a, w):
    return jnp.dot(a, w, preferred_element_type=jnp.float32)


# ----------------------------------------------------------------------------
# Fused Pallas kernels (all row-tiled over the leading dimension)
# ----------------------------------------------------------------------------
def _ln_qkv_kernel(x_ref, g_ref, b_ref, w_ref, o_ref):
    # LayerNorm -> concatenated grouped Q|K|V projection (bf16 out).
    y = _layer_norm(x_ref[...], g_ref[...], b_ref[...])
    o_ref[...] = _bf16_dot(y, w_ref[...]).astype(o_ref.dtype)


def _ln_proj_y_kernel(x_ref, g_ref, b_ref, w_ref, y_ref, q_ref):
    # LayerNorm -> W_Q; also emits the normalized activations (both bf16 out).
    y = _layer_norm(x_ref[...], g_ref[...], b_ref[...])
    y_ref[...] = y.astype(y_ref.dtype)
    q_ref[...] = _bf16_dot(y, w_ref[...]).astype(q_ref.dtype)


def _mlp2_kernel(x_ref, w0_ref, b0_ref, w1_ref, b1_ref, o_ref, *, act):
    # Fused 2-layer MLP (T_x, T_a): x -> act(x@w0+b0) -> @w1+b1.
    h = _bf16_dot(x_ref[...], w0_ref[...]) + b0_ref[...]
    h = jnp.maximum(h, 0.0) if act == "relu" else _shifted_softplus(h)
    o_ref[...] = _bf16_dot(h, w1_ref[...]) + b1_ref[...]


def _edge_mlp_kernel(e_ref, w0_ref, b0_ref, w1_ref, b1_ref, o_ref):
    # Fused weight_k_net | weight_v_net: shared first matmul + merged block-diag
    # second matmul; single lane-denser (E, kd+hd) bf16 output slab.
    h = _shifted_softplus(_bf16_dot(e_ref[...], w0_ref[...]) + b0_ref[...])
    o_ref[...] = (_bf16_dot(h, w1_ref[...]) + b1_ref[...]).astype(o_ref.dtype)


def _edge_attn_kernel(kcol_ref, vcol_ref, qrow_ref, wkv_ref, tilek_ref, tilev_ref,
                      bdkl_ref, bkl_ref, bdvl_ref, bvl_ref, selk_ref,
                      msg_ref, qk_ref):
    # Per-edge: scale keys/values by edge weights (head-tiled via exact bf16 0/1
    # selectors), per-head linear (block-diag), per-head q.k logits.
    wkv = wkv_ref[...]
    wk_t = _bf16_dot(wkv, tilek_ref[...])                    # tile W_k across heads
    wv_t = _bf16_dot(wkv, tilev_ref[...])                    # tile W_v across heads
    keys = _bf16_dot(wk_t * kcol_ref[...], bdkl_ref[...]) + bkl_ref[...]
    qk_ref[...] = _bf16_dot(qrow_ref[...] * keys, selk_ref[...])
    msg_ref[...] = (_bf16_dot(wv_t * vcol_ref[...], bdvl_ref[...])
                    + bvl_ref[...]).astype(msg_ref.dtype)


def _node_out_kernel(aggr_ref, x_ref, g_ref, b_ref, w_ref, bias_ref, o_ref):
    # residual + LayerNorm + ShiftedSoftplus + out_transform + residual (f32).
    xn = aggr_ref[...] + x_ref[...]
    y = _layer_norm(xn, g_ref[...], b_ref[...])
    o_ref[...] = _bf16_dot(_shifted_softplus(y), w_ref[...]) + bias_ref[...] + xn


def _res_edge_kernel(he_ref, ycol_ref, qrow_ref, wek_ref, wyk_ref, wev_ref, wyv_ref,
                     sel_ref, v_ref, lg_ref):
    # ResidueAttention per-edge: K/V from [h_E, h_V[col]] (row-split weights, no
    # concat), per-head attention logits.  V in bf16, logits in f32.
    he = he_ref[...]
    yc = ycol_ref[...]
    k = _bf16_dot(he, wek_ref[...]) + _bf16_dot(yc, wyk_ref[...])
    v_ref[...] = (_bf16_dot(he, wev_ref[...]) + _bf16_dot(yc, wyv_ref[...])
                  ).astype(v_ref.dtype)
    lg_ref[...] = _bf16_dot(qrow_ref[...] * k, sel_ref[...])


def _trans_tail_kernel(aggr_ref, hv_ref, wo_ref, g_ref, b_ref, wi_ref, bi_ref,
                       wo2_ref, bo2_ref, o_ref):
    # ssp -> W_O -> residual -> LN -> FFN(relu) -> residual, all fused (f32).
    upd = _bf16_dot(_shifted_softplus(aggr_ref[...]), wo_ref[...])
    h1 = hv_ref[...] + upd
    y = _layer_norm(h1, g_ref[...], b_ref[...])
    f = jnp.maximum(_bf16_dot(y, wi_ref[...]) + bi_ref[...], 0.0)
    o_ref[...] = h1 + _bf16_dot(f, wo2_ref[...]) + bo2_ref[...]


def _resfeat_kernel(r_ref, sumh_ref, emb_ref, selr_ref, selsig_ref, mu_ref, inv_ref,
                    wr_ref, ws_ref, wh_ref, bias_ref, o_ref):
    # AAEmbedding.soft_forward + RBF transform + W_v projection, fused (f32 math).
    aa = _f32_dot(r_ref[...], emb_ref[...])                      # (m, 6)
    aexp = _f32_dot(aa, selr_ref[...])                           # (m, n_rbf)
    rbf = jnp.exp(-jnp.square((aexp - mu_ref[...]) * inv_ref[...]))
    z = _f32_dot(aa, selsig_ref[...]) * 6.0 - 3.0                # (m, 3)
    sig = 1.0 / (1.0 + jnp.exp(-z))
    o_ref[...] = (_bf16_dot(rbf, wr_ref[...]) + _f32_dot(sig, ws_ref[...])
                  + _bf16_dot(sumh_ref[...], wh_ref[...]) + bias_ref[...])


def _linear_kernel(x_ref, w_ref, b_ref, o_ref):
    o_ref[...] = (_bf16_dot(x_ref[...], w_ref[...]) + b_ref[...]).astype(o_ref.dtype)


# ----------------------------------------------------------------------------
# Generic row-tiled pallas_call wrapper (no host pad/slice, partial last block)
# ----------------------------------------------------------------------------
def _cdiv(a, b):
    return (a + b - 1) // b


def _round_up(x, m):
    return ((x + m - 1) // m) * m


def _row_call(kernel, row_inputs, const_inputs, out_defs, tile_cap=2048):
    """Row-tiled pallas_call.

    row_inputs: (M, D_i) arrays tiled over M (dtype preserved, incl. bf16).
    const_inputs: weights/biases passed as full-array VMEM blocks (dtype preserved).
    out_defs: list of (width, dtype) for the outputs (shape (M, width)).
    """
    M = row_inputs[0].shape[0]
    if M <= 16:
        tile_m = M                                   # single full-array block
    else:
        # >=2 blocks (uses both v7x TensorCores); multiple of 16 covers bf16 tiling.
        tile_m = min(tile_cap, _round_up(_cdiv(M, 2), 16))
    grid = (_cdiv(M, tile_m),)

    args, in_specs = [], []
    for a in row_inputs:
        a = jnp.asarray(a)
        in_specs.append(pl.BlockSpec((tile_m, a.shape[1]), lambda i: (i, 0)))
        args.append(a)
    for c in const_inputs:
        c = jnp.asarray(c)
        if c.ndim == 1:
            c = c.reshape(1, -1)
        in_specs.append(pl.BlockSpec(c.shape, lambda i: (0, 0)))
        args.append(c)

    out_shape = tuple(jax.ShapeDtypeStruct((M, d), dt) for d, dt in out_defs)
    out_specs = tuple(pl.BlockSpec((tile_m, d), lambda i: (i, 0)) for d, _ in out_defs)

    return pl.pallas_call(
        kernel,
        grid=grid,
        in_specs=in_specs,
        out_specs=out_specs,
        out_shape=out_shape,
        compiler_params=pltpu.CompilerParams(
            dimension_semantics=("parallel",),
            vmem_limit_bytes=VMEM_LIMIT),
    )(*args)


# ----------------------------------------------------------------------------
# Plain-JAX glue (data-dependent gather/scatter, graph construction)
# TODO(synk): scatter-softmax + weighted segment-sum aggregation and the per-edge
#             row/col gathers stay in XLA; fusing them (sorted edges + scalar
#             prefetch segment offsets / DMA gather) is the next big bandwidth win.
# ----------------------------------------------------------------------------
def scatter_sum(src, index, num_segments):
    return jax.ops.segment_sum(src, index, num_segments=num_segments)


def scatter_mean(src, index, num_segments):
    s = jax.ops.segment_sum(src, index, num_segments=num_segments)
    c = jax.ops.segment_sum(jnp.ones((src.shape[0],), jnp.float32), index,
                            num_segments=num_segments)
    c = jnp.maximum(c, 1.0).reshape((num_segments,) + (1,) * (src.ndim - 1))
    return s / c


def scatter_softmax(logits, index, num_segments):
    m = jax.ops.segment_max(logits, index, num_segments=num_segments)
    m = jnp.where(jnp.isfinite(m), m, 0.0)
    e = jnp.exp(logits - m[index])
    s = jax.ops.segment_sum(e, index, num_segments=num_segments)
    return e / (s[index] + 1e-16)


def knn_graph(pos, k, batch):
    # flow='target_to_source': edge_index[0] = center, edge_index[1] = neighbor
    # TODO(synk): dense O(N^2) distance + top_k; replace with a tiled Pallas
    #             distance/top-k kernel at realistic protein sizes.
    N = pos.shape[0]
    d2 = jnp.sum((pos[:, None, :] - pos[None, :, :]) ** 2, axis=-1)
    mask = (batch[:, None] != batch[None, :]) | jnp.eye(N, dtype=bool)
    d2 = jnp.where(mask, jnp.inf, d2)
    _, idx = jax.lax.top_k(-d2, k)
    row = jnp.repeat(jnp.arange(N, dtype=jnp.int32), k)
    col = idx.reshape(-1).astype(jnp.int32)
    return jnp.stack([row, col])


def gaussian_smearing(d, stop, num_g, start=0.0):
    offset = jnp.linspace(start, stop, num_g)
    coeff = -0.5 / float((stop - start) / (num_g - 1)) ** 2
    return jnp.exp(coeff * (d[..., None] - offset) ** 2)


# ----------------------------------------------------------------------------
# AAEmbedding tables
# ----------------------------------------------------------------------------
def build_aa_embedding():
    hydropathy = {'#': 0, 'I': 4.5, 'V': 4.2, 'L': 3.8, 'F': 2.8, 'C': 2.5, 'M': 1.9,
                  'A': 1.8, 'W': -0.9, 'G': -0.4, 'T': -0.7, 'S': -0.8, 'Y': -1.3,
                  'P': -1.6, 'H': -3.2, 'N': -3.5, 'D': -3.5, 'Q': -3.5, 'E': -3.5,
                  'K': -3.9, 'R': -4.5}
    volume = {'#': 0, 'G': 60.1, 'A': 88.6, 'S': 89.0, 'C': 108.5, 'D': 111.1,
              'P': 112.7, 'N': 114.1, 'T': 116.1, 'E': 138.4, 'V': 140.0, 'Q': 143.8,
              'H': 153.2, 'M': 162.9, 'I': 166.7, 'L': 166.7, 'K': 168.6, 'R': 173.4,
              'F': 189.9, 'Y': 193.6, 'W': 227.8}
    charge = {**{'R': 1, 'K': 1, 'D': -1, 'E': -1, 'H': 0.1},
              **{x: 0 for x in 'ABCFGIJLMNOPQSTUVWXYZ#'}}
    polarity = {**{x: 1 for x in 'RNDQEHKSTY'}, **{x: 0 for x in 'ACGILMFPWV#'}}
    acceptor = {**{x: 1 for x in 'DENQHSTY'}, **{x: 0 for x in 'RKWACGILMFPV#'}}
    donor = {**{x: 1 for x in 'RKWNQHSTY'}, **{x: 0 for x in 'DEACGILMFPV#'}}
    ALPHABET = ['#', 'A', 'R', 'N', 'D', 'C', 'Q', 'E', 'G', 'H', 'I',
                'L', 'K', 'M', 'F', 'P', 'S', 'T', 'W', 'Y', 'V']
    rows = [[hydropathy[aa], volume[aa] / 100, charge[aa],
             polarity[aa], acceptor[aa], donor[aa]] for aa in ALPHABET]
    return jnp.asarray(np.array(rows, np.float32))


def _rbf_tables():
    specs = [(-4.5, 4.5, 0.1), (0.0, 2.2, 0.1), (-1.0, 1.0, 0.25)]
    mus, invs, cols = [], [], []
    for c, (lo, hi, st) in enumerate(specs):
        n = int((hi - lo) / st)
        mus.append(np.linspace(lo, hi, n))
        invs.append(np.full(n, 1.0 / st))
        cols.append(np.full(n, c, dtype=np.int64))
    mu = np.concatenate(mus).astype(np.float32)
    inv = np.concatenate(invs).astype(np.float32)
    col = np.concatenate(cols)
    sel_rbf = np.zeros((6, mu.size), np.float32)
    sel_rbf[col, np.arange(mu.size)] = 1.0
    sel_sig = np.zeros((6, 3), np.float32)
    sel_sig[np.arange(3) + 3, np.arange(3)] = 1.0
    return sel_rbf, sel_sig, mu, inv


SEL_RBF, SEL_SIG, RBF_MU, RBF_INV = _rbf_tables()
N_RBF = int(RBF_MU.size)
AA_RBF_DIM = N_RBF + 3


# ----------------------------------------------------------------------------
# Model blocks (each fused chain = one pallas_call)
# ----------------------------------------------------------------------------
def attention_interaction_block(p, consts, x, edge_index, edge_attr, num_heads, key_ch):
    N, H = x.shape
    row, col = edge_index[0], edge_index[1]
    E = row.shape[0]
    hd = H // num_heads
    kd = key_ch // num_heads

    # [fused] LayerNorm + concatenated Q|K|V grouped projections (bf16 out).
    (qkv,) = _row_call(_ln_qkv_kernel, [x],
                       [p['ln_att_g'], p['ln_att_b'], p['qkv_w']],
                       [(2 * key_ch + H, jnp.bfloat16)])

    # [fused] weight_k_net | weight_v_net merged 2-layer edge MLP (bf16 slab).
    (wkv,) = _row_call(_edge_mlp_kernel, [edge_attr],
                       [p['em_w0'], p['em_b0'], p['em_w1'], p['em_b1']],
                       [(kd + hd, jnp.bfloat16)])

    # TODO(synk): per-edge row/col gathers stay in XLA (bf16 halves their HBM
    #             traffic); a scalar-prefetch/DMA gather kernel would remove them.
    q_row = jnp.take(qkv[:, :key_ch], row, axis=0)
    k_col = jnp.take(qkv[:, key_ch:2 * key_ch], col, axis=0)
    v_col = jnp.take(qkv[:, 2 * key_ch:], col, axis=0)

    # [fused] per-edge scale -> per-head linear -> q.k logits and value messages.
    msg, qk = _row_call(_edge_attn_kernel, [k_col, v_col, q_row, wkv],
                        [consts['tile_kv_k'], consts['tile_kv_v'],
                         p['bd_kl'], p['bkl'], p['bd_vl'], p['bvl'], consts['selk']],
                        [(H, jnp.bfloat16), (num_heads, jnp.float32)])

    alpha = scatter_softmax(qk, row, N)
    aggr = scatter_sum(alpha[:, :, None] * msg.reshape(E, num_heads, hd), row, N)
    aggr = aggr.reshape(N, H)

    # [fused] residual + LN + ssp + out_transform + residual (f32).
    (out,) = _row_call(_node_out_kernel, [aggr, x],
                       [p['ln_ffn_g'], p['ln_ffn_b'], p['out_w'], p['out_b']],
                       [(H, jnp.float32)])
    return out


def transformer_layer(p, consts, h_V, h_E, edge_index, num_heads=4):
    N, H = h_V.shape
    row, col = edge_index[0], edge_index[1]
    E = row.shape[0]
    d = H // num_heads

    # [fused] LN1 + W_Q (also emits normalized y for the col-gathered K/V input).
    y, Q = _row_call(_ln_proj_y_kernel, [h_V],
                     [p['ln1_g'], p['ln1_b'], p['WQ']],
                     [(H, jnp.bfloat16), (H, jnp.bfloat16)])
    y_col = jnp.take(y, col, axis=0)
    q_row = jnp.take(Q, row, axis=0)

    # [fused] K/V projections + per-head attention logits per edge.
    V, logits = _row_call(_res_edge_kernel, [h_E, y_col, q_row],
                          [p['WE_k'], p['WY_k'], p['WE_v'], p['WY_v'], consts['selh']],
                          [(H, jnp.bfloat16), (num_heads, jnp.float32)])

    # NOTE: the reference scales alpha AFTER the softmax; kept as-is.
    alpha = scatter_softmax(logits, row, N) / np.sqrt(d)
    aggr = scatter_sum(alpha[:, :, None] * V.reshape(E, num_heads, d), row, N)
    aggr = aggr.reshape(N, H)

    # [fused] ssp + W_O + residual + LN2 + FFN + residual (dropout = eval identity).
    (out,) = _row_call(_trans_tail_kernel, [aggr, h_V],
                       [p['WO'], p['ln2_g'], p['ln2_b'],
                        p['ffn_in_w'], p['ffn_in_b'], p['ffn_out_w'], p['ffn_out_b']],
                       [(H, jnp.float32)])
    return out


# ----------------------------------------------------------------------------
# HierEncoder forward: host prep (data-dependent shapes) + one jitted core
# ----------------------------------------------------------------------------
@functools.partial(jax.jit, static_argnames=(
    'hidden', 'edge_ch', 'key_ch', 'heads', 'k', 'cutoff', 'feat_dim',
    'k_eff', 'n_lig_b', 'backbone', 'mask'))
def _forward_core(params, consts, node_attr, pos, batch_ctx, batch, pred_res_type,
                  prot_idx, lig_idx, new_row, new_col, external_index, *,
                  hidden, edge_ch, key_ch, heads, k, cutoff, feat_dim,
                  k_eff, n_lig_b, backbone, mask):
    H, Ec = hidden, edge_ch

    amino = batch['amino_acid']
    if mask:
        amino = jnp.where(batch['random_mask_residue'], 0, amino)
    R = jax.nn.one_hot(amino, 21, dtype=jnp.float32)

    atom2residue = batch['atom2residue']
    edit_atom = batch['protein_edit_atom']
    edit_residue = batch['protein_edit_residue']
    if backbone:
        atom2residue = batch['atom2residue_backbone']
        edit_atom = batch['protein_edit_atom_backbone']
        pred_full = jnp.zeros((R.shape[0], 20), jnp.float32).at[
            batch['edit_residue_idx']].set(pred_res_type)
        R = jnp.where(edit_residue[:, None],
                      jnp.concatenate([R[:, :1], pred_full], axis=-1), R)
        R = R.at[:, 0].set(0.0)

    # atom-level graph
    edge_index = knn_graph(pos, k, batch_ctx)
    row, col = edge_index[0], edge_index[1]
    edge_length = jnp.linalg.norm(pos[row] - pos[col], axis=1)
    edge_attr = gaussian_smearing(edge_length, cutoff, Ec)

    h = node_attr
    for p in params['interactions']:
        h = attention_interaction_block(p, consts, h, edge_index, edge_attr,
                                        heads, key_ch)

    h_lig_atoms = jnp.take(h, lig_idx, axis=0)
    h_ligand_coarse = scatter_sum(h_lig_atoms, batch['ligand_atom_batch'], n_lig_b)
    pos_ligand_coarse = scatter_sum(batch['ligand_pos'], batch['ligand_atom_batch'],
                                    n_lig_b)

    residue_pos = batch['residue_pos']
    residue_batch = batch['amino_acid_batch']
    N_res = residue_pos.shape[0]

    # residue-level graph (KNN + RBF edge features; edit<->coarse-ligand edges use
    # host-precomputed new_row/new_col).
    # TODO(synk): ProteinFeatures was not provided; stand-in: residue KNN graph +
    #             RBF distance features (feature_dim) and residue<->ligand edges.
    re_idx = knn_graph(residue_pos, k_eff, residue_batch)
    rrow, rcol = re_idx[0], re_idx[1]
    rdist = jnp.linalg.norm(residue_pos[rrow] - residue_pos[rcol], axis=-1)
    E_feat = gaussian_smearing(rdist, 20.0, feat_dim)
    n_edit = new_row.shape[0] // 2
    edit_idx = new_row[:n_edit]
    rb = new_col[:n_edit] - N_res
    d_new = jnp.linalg.norm(jnp.take(residue_pos, edit_idx, axis=0)
                            - jnp.take(pos_ligand_coarse, rb, axis=0), axis=-1)
    d_new = jnp.concatenate([d_new, d_new])
    E_new = gaussian_smearing(d_new, 20.0, feat_dim)
    edge_index_new = jnp.stack([new_row, new_col])

    h_protein = jnp.take(h, prot_idx, axis=0)
    sum_h = scatter_sum(h_protein, atom2residue, N_res)

    # [fused] AAEmbedding.soft_forward + RBF transform + W_v projection.
    (h_res,) = _row_call(_resfeat_kernel, [R, sum_h],
                         [consts['aa_emb'], consts['sel_rbf'], consts['sel_sig'],
                          consts['rbf_mu'], consts['rbf_inv'],
                          params['Wv_rbf'], params['Wv_sig'], params['Wv_h'],
                          params['Wv_b']],
                         [(H, jnp.float32)])
    h_res = jnp.concatenate([h_res, h_ligand_coarse], axis=0)

    edge_index_combined = jnp.concatenate([re_idx, edge_index_new], axis=1)
    E_all = jnp.concatenate([E_feat, E_new], axis=0)
    (h_E,) = _row_call(_linear_kernel, [E_all],
                       [params['W_e_w'], params['W_e_b']], [(H, jnp.bfloat16)])

    for p in params['res_layers']:
        h_res = transformer_layer(p, consts, h_res, h_E, edge_index_combined, 4)

    h_res = h_res[:N_res]
    n_res_edges = re_idx.shape[1]
    h_E_res = h_E[:n_res_edges].astype(jnp.float32)
    mij = jnp.concatenate([jnp.take(h_res, rrow, axis=0),
                           jnp.take(h_res, rcol, axis=0), h_E_res], axis=-1)

    # backbone branch (backbone=True path only)
    protein_pos = jnp.take(pos, prot_idx, axis=0)
    ligand_pos = jnp.take(pos, lig_idx, axis=0)
    # data constructed so each residue has exactly 4 contiguous backbone atoms
    X_bb = protein_pos.reshape(N_res, 4, 3)

    # [fused] T_x 2-layer MLP.
    (Tx,) = _row_call(functools.partial(_mlp2_kernel, act="relu"),
                      [mij], [params['Tx0_w'], params['Tx0_b'],
                              params['Tx1_w'], params['Tx1_b']],
                      [(14, jnp.float32)])
    xij = X_bb[rrow] - X_bb[rcol]
    dij = jnp.linalg.norm(xij, axis=-1) + 1e-6
    fij = jnp.maximum(Tx[:, :4], 3.8 - dij)
    xij = xij / dij[..., None] * fij[..., None]
    f_res = scatter_mean(xij, rrow, N_res)
    X_bb = X_bb + jnp.clip(f_res, -5.0, 5.0) * edit_residue[:, None, None]
    for _ in range(2):
        xij = X_bb[rrow] - X_bb[rcol]
        dij = jnp.linalg.norm(xij, axis=-1) + 1e-6
        fij = jnp.maximum(3.8 - dij, 0.0)
        xij = xij / dij[..., None] * fij[..., None]
        f_res = scatter_mean(xij, rrow, N_res)
        X_bb = X_bb + jnp.clip(f_res, -5.0, 5.0) * edit_residue[:, None, None]

    protein_pos = jnp.where(edit_atom[:, None], X_bb.reshape(-1, 3), protein_pos)

    ext0, ext1 = external_index[0], external_index[1]
    diff = jnp.take(protein_pos, ext0, axis=0) - jnp.take(ligand_pos, ext1, axis=0)
    dij = jnp.linalg.norm(diff, axis=1) + 1e-6
    mij2 = jnp.concatenate([jnp.take(h_protein, ext0, axis=0),
                            jnp.take(h_lig_atoms, ext1, axis=0),
                            gaussian_smearing(dij, cutoff, Ec)], axis=-1)
    # [fused] T_a 2-layer MLP.
    (Ta,) = _row_call(functools.partial(_mlp2_kernel, act="relu"),
                      [mij2], [params['Ta0_w'], params['Ta0_b'],
                               params['Ta1_w'], params['Ta1_b']],
                      [(1, jnp.float32)])
    fij = jnp.maximum(Ta[:, 0], 1.5 - dij)
    xij = diff / dij[:, None] * fij[:, None]
    f_atom = scatter_mean(xij, ext0, protein_pos.shape[0])
    protein_pos = protein_pos + f_atom
    f_lig = scatter_mean(xij, ext1, ligand_pos.shape[0])
    ligand_pos = ligand_pos - f_lig * 0.05
    return h, h_res, protein_pos, ligand_pos


def hier_encoder_forward(params, consts, cfg, node_attr, pos, batch_ctx, batch,
                         pred_res_type, mask_protein_np, external_index,
                         backbone=True, mask=True):
    # Host prep: everything whose SHAPE depends on data values (np.nonzero /
    # np.bincount); the rest runs inside one jitted graph.
    mask_protein_np = np.asarray(mask_protein_np)
    prot_idx = jnp.asarray(np.nonzero(mask_protein_np)[0].astype(np.int32))
    lig_idx = jnp.asarray(np.nonzero(~mask_protein_np)[0].astype(np.int32))

    residue_batch_np = np.asarray(batch['amino_acid_batch'])
    edit_residue_np = np.asarray(batch['protein_edit_residue'])
    N_res = residue_batch_np.shape[0]
    n_lig_b = int(np.asarray(batch['ligand_atom_batch']).max()) + 1
    counts = np.bincount(residue_batch_np)
    k_eff = int(min(cfg['top_k'], counts.min() - 1))
    edit_idx_np = np.nonzero(edit_residue_np)[0].astype(np.int32)
    rb = residue_batch_np[edit_idx_np]
    lig_node = (N_res + rb).astype(np.int32)
    new_row = jnp.asarray(np.concatenate([edit_idx_np, lig_node]).astype(np.int32))
    new_col = jnp.asarray(np.concatenate([lig_node, edit_idx_np]).astype(np.int32))

    return _forward_core(
        params, consts, node_attr, pos, batch_ctx, batch, pred_res_type,
        prot_idx, lig_idx, new_row, new_col, jnp.asarray(external_index),
        hidden=cfg['hidden'], edge_ch=cfg['edge'], key_ch=cfg['key'],
        heads=cfg['heads'], k=cfg['k'], cutoff=float(cfg['cutoff']),
        feat_dim=cfg['feat_dim'], k_eff=k_eff, n_lig_b=n_lig_b,
        backbone=backbone, mask=mask)


# ----------------------------------------------------------------------------
# Constants shared by all blocks (head tiling / per-head-sum selectors, RBF tables)
# ----------------------------------------------------------------------------
def build_consts(cfg):
    H, Kc, heads = cfg['hidden'], cfg['key'], cfg['heads']
    kd, hd = Kc // heads, H // heads
    # head-tiling selectors for the merged [W_k | W_v] edge-weight slab (exact 0/1).
    tile_kv_k = np.zeros((kd + hd, Kc), np.float32)
    tile_kv_v = np.zeros((kd + hd, H), np.float32)
    for g in range(heads):
        tile_kv_k[np.arange(kd), g * kd + np.arange(kd)] = 1.0
        tile_kv_v[kd + np.arange(hd), g * hd + np.arange(hd)] = 1.0
    selk = np.zeros((Kc, heads), np.float32)
    selk[np.arange(Kc), np.arange(Kc) // kd] = 1.0
    d_res = H // 4
    selh = np.zeros((H, 4), np.float32)
    selh[np.arange(H), np.arange(H) // d_res] = 1.0
    return dict(
        tile_kv_k=jnp.asarray(tile_kv_k, jnp.bfloat16),
        tile_kv_v=jnp.asarray(tile_kv_v, jnp.bfloat16),
        selk=jnp.asarray(selk, jnp.bfloat16), selh=jnp.asarray(selh, jnp.bfloat16),
        aa_emb=build_aa_embedding(),
        sel_rbf=jnp.asarray(SEL_RBF), sel_sig=jnp.asarray(SEL_SIG),
        rbf_mu=jnp.asarray(RBF_MU), rbf_inv=jnp.asarray(RBF_INV))


# ----------------------------------------------------------------------------
# Deterministic parameter init (matmul weights stored pre-cast to bf16)
# ----------------------------------------------------------------------------
def init_params(key, cfg):
    H, Ec, Kc, heads = cfg['hidden'], cfg['edge'], cfg['key'], cfg['heads']
    kd, hd = Kc // heads, H // heads
    keys = jax.random.split(key, 512)
    it = iter(range(512))

    def nk(): return keys[next(it)]

    def rand(kin, kout):
        return np.asarray(jax.random.normal(nk(), (kin, kout), jnp.float32)) / np.sqrt(kin)

    def bf16(x): return jnp.asarray(x, jnp.bfloat16)

    def f32(x): return jnp.asarray(x, jnp.float32)

    def block_w(ipg, opg):  # grouped Conv1d(k=1) as block-diagonal matmul
        blocks = np.asarray(jax.random.normal(nk(), (heads, ipg, opg),
                                              jnp.float32)) / np.sqrt(ipg)
        W = np.zeros((heads * ipg, heads * opg), np.float32)
        for g in range(heads):
            W[g * ipg:(g + 1) * ipg, g * opg:(g + 1) * opg] = blocks[g]
        return W

    def blockdiag_rep(w, n):
        w = np.asarray(w)
        kk, m = w.shape
        W = np.zeros((n * kk, n * m), np.float32)
        for g in range(n):
            W[g * kk:(g + 1) * kk, g * m:(g + 1) * m] = w
        return W

    params = {'interactions': [], 'res_layers': []}
    for _ in range(cfg['num_interactions']):
        wkn0_w, wkn1_w = rand(Ec, kd), rand(kd, kd)
        wvn0_w, wvn1_w = rand(Ec, hd), rand(hd, hd)
        wkl_w, wvl_w = rand(kd, kd), rand(hd, hd)
        qkv_w = np.concatenate([block_w(H // heads, kd), block_w(H // heads, kd),
                                block_w(H // heads, hd)], axis=1)  # [Q | K | V]
        em_w1 = np.zeros((kd + hd, kd + hd), np.float32)
        em_w1[:kd, :kd] = wkn1_w
        em_w1[kd:, kd:] = wvn1_w
        params['interactions'].append(dict(
            ln_att_g=f32(np.ones(H)), ln_att_b=f32(np.zeros(H)),
            ln_ffn_g=f32(np.ones(H)), ln_ffn_b=f32(np.zeros(H)),
            qkv_w=bf16(qkv_w),
            em_w0=bf16(np.concatenate([wkn0_w, wvn0_w], axis=1)),
            em_b0=f32(np.zeros(kd + hd)),
            em_w1=bf16(em_w1), em_b1=f32(np.zeros(kd + hd)),
            bd_kl=bf16(blockdiag_rep(wkl_w, heads)), bkl=f32(np.zeros(heads * kd)),
            bd_vl=bf16(blockdiag_rep(wvl_w, heads)), bvl=f32(np.zeros(heads * hd)),
            out_w=bf16(rand(H, H)), out_b=f32(np.zeros(H))))

    for _ in range(2):
        WK = rand(2 * H, H)
        WV = rand(2 * H, H)
        params['res_layers'].append(dict(
            ln1_g=f32(np.ones(H)), ln1_b=f32(np.zeros(H)),
            ln2_g=f32(np.ones(H)), ln2_b=f32(np.zeros(H)),
            WQ=bf16(rand(H, H)),
            WE_k=bf16(WK[:H]), WY_k=bf16(WK[H:]),
            WE_v=bf16(WV[:H]), WY_v=bf16(WV[H:]),
            WO=bf16(rand(H, H)),
            ffn_in_w=bf16(rand(H, H)), ffn_in_b=f32(np.zeros(H)),
            ffn_out_w=bf16(rand(H, H)), ffn_out_b=f32(np.zeros(H))))

    Wv_full = rand(AA_RBF_DIM + H, H)
    params['Wv_rbf'] = bf16(Wv_full[:N_RBF])
    params['Wv_sig'] = f32(Wv_full[N_RBF:AA_RBF_DIM])
    params['Wv_h'] = bf16(Wv_full[AA_RBF_DIM:])
    params['Wv_b'] = f32(np.zeros(H))
    params['W_e_w'] = bf16(rand(cfg['feat_dim'], H))
    params['W_e_b'] = f32(np.zeros(H))
    params['Ta0_w'] = bf16(rand(2 * H + Ec, H)); params['Ta0_b'] = f32(np.zeros(H))
    params['Ta1_w'] = bf16(rand(H, 1)); params['Ta1_b'] = f32(np.zeros(1))
    params['Tx0_w'] = bf16(rand(3 * H, H)); params['Tx0_b'] = f32(np.zeros(H))
    params['Tx1_w'] = bf16(rand(H, 14)); params['Tx1_b'] = f32(np.zeros(14))
    return params


# ----------------------------------------------------------------------------
if __name__ == "__main__":
    cfg = dict(hidden=32, edge=16, key=32, heads=4, num_interactions=2,
               k=8, cutoff=10.0, top_k=8, feat_dim=16)
    key = jax.random.PRNGKey(0)
    k_param, k_data = jax.random.split(key)
    params = init_params(k_param, cfg)
    consts = build_consts(cfg)

    # synthetic batch: 2 graphs, 6 residues each, 4 backbone atoms per residue,
    # 5 ligand atoms per graph
    B, n_res_pb, atoms_per_res, n_lig_pb = 2, 6, 4, 5
    N_res = B * n_res_pb
    n_prot = N_res * atoms_per_res
    n_lig = B * n_lig_pb
    N_atoms = n_prot + n_lig
    H = cfg['hidden']

    dk = jax.random.split(k_data, 8)
    node_attr = jax.random.normal(dk[0], (N_atoms, H), jnp.float32)
    pos = jax.random.normal(dk[1], (N_atoms, 3), jnp.float32) * 3.0

    residue_batch_np = np.repeat(np.arange(B), n_res_pb).astype(np.int32)
    atom2res_np = np.repeat(np.arange(N_res), atoms_per_res).astype(np.int32)
    prot_batch = residue_batch_np[atom2res_np]
    lig_batch = np.repeat(np.arange(B), n_lig_pb).astype(np.int32)
    batch_ctx = jnp.asarray(np.concatenate([prot_batch, lig_batch]).astype(np.int32))
    mask_protein_np = np.concatenate([np.ones(n_prot, bool), np.zeros(n_lig, bool)])

    amino = np.asarray(jax.random.randint(dk[2], (N_res,), 1, 21), np.int32)
    edit_res_np = np.zeros(N_res, bool); edit_res_np[[1, 2, 7, 8]] = True
    edit_idx_np = np.nonzero(edit_res_np)[0].astype(np.int32)
    edit_atom_np = edit_res_np[atom2res_np]

    ligand_pos = pos[n_prot:]
    residue_pos = pos[:n_prot].reshape(N_res, atoms_per_res, 3).mean(axis=1)
    pred_res_type = jax.nn.softmax(
        jax.random.normal(dk[3], (edit_idx_np.size, 20), jnp.float32), axis=-1)

    E_ext = 20
    ext0 = np.asarray(jax.random.randint(dk[4], (E_ext,), 0, n_prot), np.int32)
    ext1 = np.asarray(jax.random.randint(dk[5], (E_ext,), 0, n_lig), np.int32)
    external_index = jnp.asarray(np.stack([ext0, ext1]))

    batch = dict(
        res_idx=jnp.arange(N_res, dtype=jnp.int32),
        amino_acid=jnp.asarray(amino),
        amino_acid_batch=jnp.asarray(residue_batch_np),
        atom2residue=jnp.asarray(atom2res_np),
        atom2residue_backbone=jnp.asarray(atom2res_np),
        protein_edit_residue=jnp.asarray(edit_res_np),
        protein_edit_atom=jnp.asarray(edit_atom_np),
        protein_edit_atom_backbone=jnp.asarray(edit_atom_np),
        random_mask_residue=jnp.asarray(edit_res_np),
        ligand_atom_batch=jnp.asarray(lig_batch),
        ligand_pos=ligand_pos,
        residue_pos=residue_pos,
        edit_residue_idx=jnp.asarray(edit_idx_np),
    )

    h, h_res, protein_pos, ligand_pos_out = hier_encoder_forward(
        params, consts, cfg, node_attr, pos, batch_ctx, batch, pred_res_type,
        mask_protein_np, external_index, backbone=True, mask=True)
    jax.block_until_ready((h, h_res, protein_pos, ligand_pos_out))

    assert h.shape == (N_atoms, H) and h_res.shape == (N_res, H)
    assert protein_pos.shape == (n_prot, 3) and ligand_pos_out.shape == (n_lig, 3)
    for t in (h, h_res, protein_pos, ligand_pos_out):
        assert np.isfinite(np.asarray(t)).all()
    print("KERNEL_OK")
</pallas_src>

<mosaic_0001>
module attributes {stable_mosaic.version = 11 : i64} {
  func.func @_ln_qkv_kernel(%arg0: i32, %arg1: memref<32x32xf32, #tpu.memory_space<vmem>>, %arg2: memref<1x32xf32, #tpu.memory_space<vmem>>, %arg3: memref<1x32xf32, #tpu.memory_space<vmem>>, %arg4: memref<32x96xbf16, #tpu.memory_space<vmem>>, %arg5: memref<32x96xbf16, #tpu.memory_space<vmem>>) attributes {dimension_semantics = [#tpu.dimension_semantics<parallel>], iteration_bounds = array<i64: 2>, scalar_prefetch = 0 : i64, scratch_operands = 0 : i64, tpu.core_type = #tpu.core_type<tc>, window_params = [{transform_indices = @transform_0, window_bounds = array<i64: 32, 32>}, {pipeline_mode = #tpu.pipeline_mode<synchronous>, transform_indices = @transform_1, window_bounds = array<i64: 1, 32>}, {pipeline_mode = #tpu.pipeline_mode<synchronous>, transform_indices = @transform_2, window_bounds = array<i64: 1, 32>}, {pipeline_mode = #tpu.pipeline_mode<synchronous>, transform_indices = @transform_3, window_bounds = array<i64: 32, 96>}, {transform_indices = @transform_4, window_bounds = array<i64: 32, 96>}]} {
    %c0 = arith.constant 0 : index
    %c0_0 = arith.constant 0 : index
    %0 = vector.load %arg1[%c0, %c0_0] : memref<32x32xf32, #tpu.memory_space<vmem>>, vector<32x32xf32>
    %c0_1 = arith.constant 0 : index
    %c0_2 = arith.constant 0 : index
    %1 = vector.load %arg2[%c0_1, %c0_2] : memref<1x32xf32, #tpu.memory_space<vmem>>, vector<1x32xf32>
    %c0_3 = arith.constant 0 : index
    %c0_4 = arith.constant 0 : index
    %2 = vector.load %arg3[%c0_3, %c0_4] : memref<1x32xf32, #tpu.memory_space<vmem>>, vector<1x32xf32>
    %cst = arith.constant dense<0.000000e+00> : vector<32xf32>
    %3 = vector.multi_reduction <add>, %0, %cst [1] : vector<32x32xf32> to vector<32xf32>
    %4 = vector.shape_cast %3 : vector<32xf32> to vector<32x1xf32>
    %cst_5 = arith.constant 3.200000e+01 : f32
    %5 = vector.broadcast %cst_5 : f32 to vector<32x1xf32>
    %6 = arith.divf %4, %5 : vector<32x1xf32>
    %7 = vector.broadcast %6 : vector<32x1xf32> to vector<32x32xf32>
    %8 = arith.subf %0, %7 : vector<32x32xf32>
    %9 = arith.mulf %8, %8 : vector<32x32xf32>
    %cst_6 = arith.constant dense<0.000000e+00> : vector<32xf32>
    %10 = vector.multi_reduction <add>, %9, %cst_6 [1] : vector<32x32xf32> to vector<32xf32>
    %11 = vector.shape_cast %10 : vector<32xf32> to vector<32x1xf32>
    %cst_7 = arith.constant 3.200000e+01 : f32
    %12 = vector.broadcast %cst_7 : f32 to vector<32x1xf32>
    %13 = arith.divf %11, %12 : vector<32x1xf32>
    %cst_8 = arith.constant 9.99999974E-6 : f32
    %14 = vector.broadcast %cst_8 : f32 to vector<32x1xf32>
    %15 = arith.addf %13, %14 : vector<32x1xf32>
    %16 = math.rsqrt %15 : vector<32x1xf32>
    %17 = vector.broadcast %16 : vector<32x1xf32> to vector<32x32xf32>
    %18 = arith.mulf %8, %17 : vector<32x32xf32>
    %19 = vector.broadcast %1 : vector<1x32xf32> to vector<32x32xf32>
    %20 = arith.mulf %18, %19 : vector<32x32xf32>
    %21 = vector.broadcast %2 : vector<1x32xf32> to vector<32x32xf32>
    %22 = arith.addf %20, %21 : vector<32x32xf32>
    %c0_9 = arith.constant 0 : index
    %c0_10 = arith.constant 0 : index
    %23 = vector.load %arg4[%c0_9, %c0_10] : memref<32x96xbf16, #tpu.memory_space<vmem>>, vector<32x96xbf16>
    %24 = arith.truncf %22 : vector<32x32xf32> to vector<32x32xbf16>
    %cst_11 = arith.constant dense<0.000000e+00> : vector<32x96xf32>
    %25 = tpu.matmul %24, %23, %cst_11 {dimension_numbers = #tpu.dot_dimension_numbers<[1], [0], [0], [1], [0, 0, 1, 1], [], []>} : vector<32x32xbf16>, vector<32x96xbf16>, vector<32x96xf32> -> vector<32x96xf32>
    %26 = arith.truncf %25 : vector<32x96xf32> to vector<32x96xbf16>
    %c0_12 = arith.constant 0 : index
    %c0_13 = arith.constant 0 : index
    %27 = vector.load %arg5[%c0_12, %c0_13] : memref<32x96xbf16, #tpu.memory_space<vmem>>, vector<32x96xbf16>
    tpu.vector_store %arg5[%c0_12, %c0_13], %26 {strides = array<i32>} : memref<32x96xbf16, #tpu.memory_space<vmem>>, vector<32x96xbf16>,
    return
  }
  func.func @transform_0(%arg0: i32) -> (i32, i32) {
    %c0_i32 = arith.constant 0 : i32
    %c0_i32_0 = arith.constant 0 : i32
    return %arg0, %c0_i32 : i32, i32
  }
  func.func @transform_1(%arg0: i32) -> (i32, i32) {
    %c0_i32 = arith.constant 0 : i32
    %c0_i32_0 = arith.constant 0 : i32
    %c0_i32_1 = arith.constant 0 : i32
    return %c0_i32, %c0_i32_0 : i32, i32
  }
  func.func @transform_2(%arg0: i32) -> (i32, i32) {
    %c0_i32 = arith.constant 0 : i32
    %c0_i32_0 = arith.constant 0 : i32
    %c0_i32_1 = arith.constant 0 : i32
    return %c0_i32, %c0_i32_0 : i32, i32
  }
  func.func @transform_3(%arg0: i32) -> (i32, i32) {
    %c0_i32 = arith.constant 0 : i32
    %c0_i32_0 = arith.constant 0 : i32
    %c0_i32_1 = arith.constant 0 : i32
    return %c0_i32, %c0_i32_0 : i32, i32
  }
  func.func @transform_4(%arg0: i32) -> (i32, i32) {
    %c0_i32 = arith.constant 0 : i32
    %c0_i32_0 = arith.constant 0 : i32
    return %arg0, %c0_i32 : i32, i32
  }
}

module attributes {stable_mosaic.version = 11 : i64} {
  func.func @_edge_mlp_kernel(%arg0: i32, %arg1: memref<240x16xf32, #tpu.memory_space<vmem>>, %arg2: memref<16x16xbf16, #tpu.memory_space<vmem>>, %arg3: memref<1x16xf32, #tpu.memory_space<vmem>>, %arg4: memref<16x16xbf16, #tpu.memory_space<vmem>>, %arg5: memref<1x16xf32, #tpu.memory_space<vmem>>, %arg6: memref<240x16xbf16, #tpu.memory_space<vmem>>) attributes {dimension_semantics = [#tpu.dimension_semantics<parallel>], iteration_bounds = array<i64: 2>, scalar_prefetch = 0 : i64, scratch_operands = 0 : i64, tpu.core_type = #tpu.core_type<tc>, window_params = [{transform_indices = @transform_0, window_bounds = array<i64: 240, 16>}, {pipeline_mode = #tpu.pipeline_mode<synchronous>, transform_indices = @transform_1, window_bounds = array<i64: 16, 16>}, {pipeline_mode = #tpu.pipeline_mode<synchronous>, transform_indices = @transform_2, window_bounds = array<i64: 1, 16>}, {pipeline_mode = #tpu.pipeline_mode<synchronous>, transform_indices = @transform_3, window_bounds = array<i64: 16, 16>}, {pipeline_mode = #tpu.pipeline_mode<synchronous>, transform_indices = @transform_4, window_bounds = array<i64: 1, 16>}, {transform_indices = @transform_5, window_bounds = array<i64: 240, 16>}]} {
    %c0 = arith.constant 0 : index
    %c0_0 = arith.constant 0 : index
    %0 = vector.load %arg1[%c0, %c0_0] : memref<240x16xf32, #tpu.memory_space<vmem>>, vector<240x16xf32>
    %c0_1 = arith.constant 0 : index
    %c0_2 = arith.constant 0 : index
    %1 = vector.load %arg2[%c0_1, %c0_2] : memref<16x16xbf16, #tpu.memory_space<vmem>>, vector<16x16xbf16>
    %2 = arith.truncf %0 : vector<240x16xf32> to vector<240x16xbf16>
    %cst = arith.constant dense<0.000000e+00> : vector<240x16xf32>
    %3 = tpu.matmul %2, %1, %cst {dimension_numbers = #tpu.dot_dimension_numbers<[1], [0], [0], [1], [0, 0, 1, 1], [], []>} : vector<240x16xbf16>, vector<16x16xbf16>, vector<240x16xf32> -> vector<240x16xf32>
    %c0_3 = arith.constant 0 : index
    %c0_4 = arith.constant 0 : index
    %4 = vector.load %arg3[%c0_3, %c0_4] : memref<1x16xf32, #tpu.memory_space<vmem>>, vector<1x16xf32>
    %5 = vector.broadcast %4 : vector<1x16xf32> to vector<240x16xf32>
    %6 = arith.addf %3, %5 : vector<240x16xf32>
    %cst_5 = arith.constant 0.000000e+00 : f32
    %7 = vector.broadcast %cst_5 : f32 to vector<240x16xf32>
    %8 = arith.maximumf %6, %7 : vector<240x16xf32>
    %9 = math.absf %6 : vector<240x16xf32>
    %cst_6 = arith.constant 0.000000e+00 : f32
    %10 = vector.broadcast %cst_6 : f32 to vector<240x16xf32>
    %11 = arith.subf %10, %9 : vector<240x16xf32>
    %12 = math.exp %11 : vector<240x16xf32>
    %cst_7 = arith.constant 1.000000e+00 : f32
    %13 = vector.broadcast %cst_7 : f32 to vector<240x16xf32>
    %14 = arith.addf %13, %12 : vector<240x16xf32>
    %15 = math.log %14 : vector<240x16xf32>
    %16 = arith.addf %8, %15 : vector<240x16xf32>
    %cst_8 = arith.constant 0.693147182 : f32
    %17 = vector.broadcast %cst_8 : f32 to vector<240x16xf32>
    %18 = arith.subf %16, %17 : vector<240x16xf32>
    %c0_9 = arith.constant 0 : index
    %c0_10 = arith.constant 0 : index
    %19 = vector.load %arg4[%c0_9, %c0_10] : memref<16x16xbf16, #tpu.memory_space<vmem>>, vector<16x16xbf16>
    %20 = arith.truncf %18 : vector<240x16xf32> to vector<240x16xbf16>
    %cst_11 = arith.constant dense<0.000000e+00> : vector<240x16xf32>
    %21 = tpu.matmul %20, %19, %cst_11 {dimension_numbers = #tpu.dot_dimension_numbers<[1], [0], [0], [1], [0, 0, 1, 1], [], []>} : vector<240x16xbf16>, vector<16x16xbf16>, vector<240x16xf32> -> vector<240x16xf32>
    %c0_12 = arith.constant 0 : index
    %c0_13 = arith.constant 0 : index
    %22 = vector.load %arg5[%c0_12, %c0_13] : memref<1x16xf32, #tpu.memory_space<vmem>>, vector<1x16xf32>
    %23 = vector.broadcast %22 : vector<1x16xf32> to vector<240x16xf32>
    %24 = arith.addf %21, %23 : vector<240x16xf32>
    %25 = arith.truncf %24 : vector<240x16xf32> to vector<240x16xbf16>
    %c0_14 = arith.constant 0 : index
    %c0_15 = arith.constant 0 : index
    %26 = vector.load %arg6[%c0_14, %c0_15] : memref<240x16xbf16, #tpu.memory_space<vmem>>, vector<240x16xbf16>
    tpu.vector_store %arg6[%c0_14, %c0_15], %25 {strides = array<i32>} : memref<240x16xbf16, #tpu.memory_space<vmem>>, vector<240x16xbf16>,
    return
  }
  func.func @transform_0(%arg0: i32) -> (i32, i32) {
    %c0_i32 = arith.constant 0 : i32
    %c0_i32_0 = arith.constant 0 : i32
    return %arg0, %c0_i32 : i32, i32
  }
  func.func @transform_1(%arg0: i32) -> (i32, i32) {
    %c0_i32 = arith.constant 0 : i32
    %c0_i32_0 = arith.constant 0 : i32
    %c0_i32_1 = arith.constant 0 : i32
    return %c0_i32, %c0_i32_0 : i32, i32
  }
  func.func @transform_2(%arg0: i32) -> (i32, i32) {
    %c0_i32 = arith.constant 0 : i32
    %c0_i32_0 = arith.constant 0 : i32
    %c0_i32_1 = arith.constant 0 : i32
    return %c0_i32, %c0_i32_0 : i32, i32
  }
  func.func @transform_3(%arg0: i32) -> (i32, i32) {
    %c0_i32 = arith.constant 0 : i32
    %c0_i32_0 = arith.constant 0 : i32
    %c0_i32_1 = arith.constant 0 : i32
    return %c0_i32, %c0_i32_0 : i32, i32
  }
  func.func @transform_4(%arg0: i32) -> (i32, i32) {
    %c0_i32 = arith.constant 0 : i32
    %c0_i32_0 = arith.constant 0 : i32
    %c0_i32_1 = arith.constant 0 : i32
    return %c0_i32, %c0_i32_0 : i32, i32
  }
  func.func @transform_5(%arg0: i32) -> (i32, i32) {
    %c0_i32 = arith.constant 0 : i32
    %c0_i32_0 = arith.constant 0 : i32
    return %arg0, %c0_i32 : i32, i32
  }
}

module attributes {stable_mosaic.version = 11 : i64} {
  func.func @_edge_attn_kernel(%arg0: i32, %arg1: memref<240x32xbf16, #tpu.memory_space<vmem>>, %arg2: memref<240x32xbf16, #tpu.memory_space<vmem>>, %arg3: memref<240x32xbf16, #tpu.memory_space<vmem>>, %arg4: memref<240x16xbf16, #tpu.memory_space<vmem>>, %arg5: memref<16x32xbf16, #tpu.memory_space<vmem>>, %arg6: memref<16x32xbf16, #tpu.memory_space<vmem>>, %arg7: memref<32x32xbf16, #tpu.memory_space<vmem>>, %arg8: memref<1x32xf32, #tpu.memory_space<vmem>>, %arg9: memref<32x32xbf16, #tpu.memory_space<vmem>>, %arg10: memref<1x32xf32, #tpu.memory_space<vmem>>, %arg11: memref<32x4xbf16, #tpu.memory_space<vmem>>, %arg12: memref<240x32xbf16, #tpu.memory_space<vmem>>, %arg13: memref<240x4xf32, #tpu.memory_space<vmem>>) attributes {dimension_semantics = [#tpu.dimension_semantics<parallel>], iteration_bounds = array<i64: 2>, scalar_prefetch = 0 : i64, scratch_operands = 0 : i64, tpu.core_type = #tpu.core_type<tc>, window_params = [{transform_indices = @transform_0, window_bounds = array<i64: 240, 32>}, {transform_indices = @transform_1, window_bounds = array<i64: 240, 32>}, {transform_indices = @transform_2, window_bounds = array<i64: 240, 32>}, {transform_indices = @transform_3, window_bounds = array<i64: 240, 16>}, {pipeline_mode = #tpu.pipeline_mode<synchronous>, transform_indices = @transform_4, window_bounds = array<i64: 16, 32>}, {pipeline_mode = #tpu.pipeline_mode<synchronous>, transform_indices = @transform_5, window_bounds = array<i64: 16, 32>}, {pipeline_mode = #tpu.pipeline_mode<synchronous>, transform_indices = @transform_6, window_bounds = array<i64: 32, 32>}, {pipeline_mode = #tpu.pipeline_mode<synchronous>, transform_indices = @transform_7, window_bounds = array<i64: 1, 32>}, {pipeline_mode = #tpu.pipeline_mode<synchronous>, transform_indices = @transform_8, window_bounds = array<i64: 32, 32>}, {pipeline_mode = #tpu.pipeline_mode<synchronous>, transform_indices = @transform_9, window_bounds = array<i64: 1, 32>}, {pipeline_mode = #tpu.pipeline_mode<synchronous>, transform_indices = @transform_10, window_bounds = array<i64: 32, 4>}, {transform_indices = @transform_11, window_bounds = array<i64: 240, 32>}, {transform_indices = @transform_12, window_bounds = array<i64: 240, 4>}]} {
    %c0 = arith.constant 0 : index
    %c0_0 = arith.constant 0 : index
    %0 = vector.load %arg4[%c0, %c0_0] : memref<240x16xbf16, #tpu.memory_space<vmem>>, vector<240x16xbf16>
    %c0_1 = arith.constant 0 : index
    %c0_2 = arith.constant 0 : index
    %1 = vector.load %arg5[%c0_1, %c0_2] : memref<16x32xbf16, #tpu.memory_space<vmem>>, vector<16x32xbf16>
    %cst = arith.constant dense<0.000000e+00> : vector<240x32xf32>
    %2 = tpu.matmul %0, %1, %cst {dimension_numbers = #tpu.dot_dimension_numbers<[1], [0], [0], [1], [0, 0, 1, 1], [], []>} : vector<240x16xbf16>, vector<16x32xbf16>, vector<240x32xf32> -> vector<240x32xf32>
    %c0_3 = arith.constant 0 : index
    %c0_4 = arith.constant 0 : index
    %3 = vector.load %arg6[%c0_3, %c0_4] : memref<16x32xbf16, #tpu.memory_space<vmem>>, vector<16x32xbf16>
    %cst_5 = arith.constant dense<0.000000e+00> : vector<240x32xf32>
    %4 = tpu.matmul %0, %3, %cst_5 {dimension_numbers = #tpu.dot_dimension_numbers<[1], [0], [0], [1], [0, 0, 1, 1], [], []>} : vector<240x16xbf16>, vector<16x32xbf16>, vector<240x32xf32> -> vector<240x32xf32>
    %c0_6 = arith.constant 0 : index
    %c0_7 = arith.constant 0 : index
    %5 = vector.load %arg1[%c0_6, %c0_7] : memref<240x32xbf16, #tpu.memory_space<vmem>>, vector<240x32xbf16>
    %6 = arith.extf %5 : vector<240x32xbf16> to vector<240x32xf32>
    %7 = arith.mulf %2, %6 : vector<240x32xf32>
    %c0_8 = arith.constant 0 : index
    %c0_9 = arith.constant 0 : index
    %8 = vector.load %arg7[%c0_8, %c0_9] : memref<32x32xbf16, #tpu.memory_space<vmem>>, vector<32x32xbf16>
    %9 = arith.truncf %7 : vector<240x32xf32> to vector<240x32xbf16>
    %cst_10 = arith.constant dense<0.000000e+00> : vector<240x32xf32>
    %10 = tpu.matmul %9, %8, %cst_10 {dimension_numbers = #tpu.dot_dimension_numbers<[1], [0], [0], [1], [0, 0, 1, 1], [], []>} : vector<240x32xbf16>, vector<32x32xbf16>, vector<240x32xf32> -> vector<240x32xf32>
    %c0_11 = arith.constant 0 : index
    %c0_12 = arith.constant 0 : index
    %11 = vector.load %arg8[%c0_11, %c0_12] : memref<1x32xf32, #tpu.memory_space<vmem>>, vector<1x32xf32>
    %12 = vector.broadcast %11 : vector<1x32xf32> to vector<240x32xf32>
    %13 = arith.addf %10, %12 : vector<240x32xf32>
    %c0_13 = arith.constant 0 : index
    %c0_14 = arith.constant 0 : index
    %14 = vector.load %arg3[%c0_13, %c0_14] : memref<240x32xbf16, #tpu.memory_space<vmem>>, vector<240x32xbf16>
    %15 = arith.extf %14 : vector<240x32xbf16> to vector<240x32xf32>
    %16 = arith.mulf %15, %13 : vector<240x32xf32>
    %c0_15 = arith.constant 0 : index
    %c0_16 = arith.constant 0 : index
    %17 = vector.load %arg11[%c0_15, %c0_16] : memref<32x4xbf16, #tpu.memory_space<vmem>>, vector<32x4xbf16>
    %18 = arith.truncf %16 : vector<240x32xf32> to vector<240x32xbf16>
    %cst_17 = arith.constant dense<0.000000e+00> : vector<240x4xf32>
    %19 = tpu.matmul %18, %17, %cst_17 {dimension_numbers = #tpu.dot_dimension_numbers<[1], [0], [0], [1], [0, 0, 1, 1], [], []>} : vector<240x32xbf16>, vector<32x4xbf16>, vector<240x4xf32> -> vector<240x4xf32>
    %c0_18 = arith.constant 0 : index
    %c0_19 = arith.constant 0 : index
    %20 = vector.load %arg13[%c0_18, %c0_19] : memref<240x4xf32, #tpu.memory_space<vmem>>, vector<240x4xf32>
    tpu.vector_store %arg13[%c0_18, %c0_19], %19 {strides = array<i32>} : memref<240x4xf32, #tpu.memory_space<vmem>>, vector<240x4xf32>,
    %c0_20 = arith.constant 0 : index
    %c0_21 = arith.constant 0 : index
    %21 = vector.load %arg2[%c0_20, %c0_21] : memref<240x32xbf16, #tpu.memory_space<vmem>>, vector<240x32xbf16>
    %22 = arith.extf %21 : vector<240x32xbf16> to vector<240x32xf32>
    %23 = arith.mulf %4, %22 : vector<240x32xf32>
    %c0_22 = arith.constant 0 : index
    %c0_23 = arith.constant 0 : index
    %24 = vector.load %arg9[%c0_22, %c0_23] : memref<32x32xbf16, #tpu.memory_space<vmem>>, vector<32x32xbf16>
    %25 = arith.truncf %23 : vector<240x32xf32> to vector<240x32xbf16>
    %cst_24 = arith.constant dense<0.000000e+00> : vector<240x32xf32>
    %26 = tpu.matmul %25, %24, %cst_24 {dimension_numbers = #tpu.dot_dimension_numbers<[1], [0], [0], [1], [0, 0, 1, 1], [], []>} : vector<240x32xbf16>, vector<32x32xbf16>, vector<240x32xf32> -> vector<240x32xf32>
    %c0_25 = arith.constant 0 : index
    %c0_26 = arith.constant 0 : index
    %27 = vector.load %arg10[%c0_25, %c0_26] : memref<1x32xf32, #tpu.memory_space<vmem>>, vector<1x32xf32>
    %28 = vector.broadcast %27 : vector<1x32xf32> to vector<240x32xf32>
    %29 = arith.addf %26, %28 : vector<240x32xf32>
    %30 = arith.truncf %29 : vector<240x32xf32> to vector<240x32xbf16>
    %c0_27 = arith.constant 0 : index
    %c0_28 = arith.constant 0 : index
    %31 = vector.load %arg12[%c0_27, %c0_28] : memref<240x32xbf16, #tpu.memory_space<vmem>>, vector<240x32xbf16>
    tpu.vector_store %arg12[%c0_27, %c0_28], %30 {strides = array<i32>} : memref<240x32xbf16, #tpu.memory_space<vmem>>, vector<240x32xbf16>,
    return
  }
  func.func @transform_0(%arg0: i32) -> (i32, i32) {
    %c0_i32 = arith.constant 0 : i32
    %c0_i32_0 = arith.constant 0 : i32
    return %arg0, %c0_i32 : i32, i32
  }
  func.func @transform_1(%arg0: i32) -> (i32, i32) {
    %c0_i32 = arith.constant 0 : i32
    %c0_i32_0 = arith.constant 0 : i32
    return %arg0, %c0_i32 : i32, i32
  }
  func.func @transform_2(%arg0: i32) -> (i32, i32) {
    %c0_i32 = arith.constant 0 : i32
    %c0_i32_0 = arith.constant 0 : i32
    return %arg0, %c0_i32 : i32, i32
  }
  func.func @transform_3(%arg0: i32) -> (i32, i32) {
    %c0_i32 = arith.constant 0 : i32
    %c0_i32_0 = arith.constant 0 : i32
    return %arg0, %c0_i32 : i32, i32
  }
  func.func @transform_4(%arg0: i32) -> (i32, i32) {
    %c0_i32 = arith.constant 0 : i32
    %c0_i32_0 = arith.constant 0 : i32
    %c0_i32_1 = arith.constant 0 : i32
    return %c0_i32, %c0_i32_0 : i32, i32
  }
  func.func @transform_5(%arg0: i32) -> (i32, i32) {
    %c0_i32 = arith.constant 0 : i32
    %c0_i32_0 = arith.constant 0 : i32
    %c0_i32_1 = arith.constant 0 : i32
    return %c0_i32, %c0_i32_0 : i32, i32
  }
  func.func @transform_6(%arg0: i32) -> (i32, i32) {
    %c0_i32 = arith.constant 0 : i32
    %c0_i32_0 = arith.constant 0 : i32
    %c0_i32_1 = arith.constant 0 : i32
    return %c0_i32, %c0_i32_0 : i32, i32
  }
  func.func @transform_7(%arg0: i32) -> (i32, i32) {
    %c0_i32 = arith.constant 0 : i32
    %c0_i32_0 = arith.constant 0 : i32
    %c0_i32_1 = arith.constant 0 : i32
    return %c0_i32, %c0_i32_0 : i32, i32
  }
  func.func @transform_8(%arg0: i32) -> (i32, i32) {
    %c0_i32 = arith.constant 0 : i32
    %c0_i32_0 = arith.constant 0 : i32
    %c0_i32_1 = arith.constant 0 : i32
    return %c0_i32, %c0_i32_0 : i32, i32
  }
  func.func @transform_9(%arg0: i32) -> (i32, i32) {
    %c0_i32 = arith.constant 0 : i32
    %c0_i32_0 = arith.constant 0 : i32
    %c0_i32_1 = arith.constant 0 : i32
    return %c0_i32, %c0_i32_0 : i32, i32
  }
  func.func @transform_10(%arg0: i32) -> (i32, i32) {
    %c0_i32 = arith.constant 0 : i32
    %c0_i32_0 = arith.constant 0 : i32
    %c0_i32_1 = arith.constant 0 : i32
    return %c0_i32, %c0_i32_0 : i32, i32
  }
  func.func @transform_11(%arg0: i32) -> (i32, i32) {
    %c0_i32 = arith.constant 0 : i32
    %c0_i32_0 = arith.constant 0 : i32
    return %arg0, %c0_i32 : i32, i32
  }
  func.func @transform_12(%arg0: i32) -> (i32, i32) {
    %c0_i32 = arith.constant 0 : i32
    %c0_i32_0 = arith.constant 0 : i32
    return %arg0, %c0_i32 : i32, i32
  }
}

module attributes {stable_mosaic.version = 11 : i64} {
  func.func @_node_out_kernel(%arg0: i32, %arg1: memref<32x32xf32, #tpu.memory_space<vmem>>, %arg2: memref<32x32xf32, #tpu.memory_space<vmem>>, %arg3: memref<1x32xf32, #tpu.memory_space<vmem>>, %arg4: memref<1x32xf32, #tpu.memory_space<vmem>>, %arg5: memref<32x32xbf16, #tpu.memory_space<vmem>>, %arg6: memref<1x32xf32, #tpu.memory_space<vmem>>, %arg7: memref<32x32xf32, #tpu.memory_space<vmem>>) attributes {dimension_semantics = [#tpu.dimension_semantics<parallel>], iteration_bounds = array<i64: 2>, scalar_prefetch = 0 : i64, scratch_operands = 0 : i64, tpu.core_type = #tpu.core_type<tc>, window_params = [{transform_indices = @transform_0, window_bounds = array<i64: 32, 32>}, {transform_indices = @transform_1, window_bounds = array<i64: 32, 32>}, {pipeline_mode = #tpu.pipeline_mode<synchronous>, transform_indices = @transform_2, window_bounds = array<i64: 1, 32>}, {pipeline_mode = #tpu.pipeline_mode<synchronous>, transform_indices = @transform_3, window_bounds = array<i64: 1, 32>}, {pipeline_mode = #tpu.pipeline_mode<synchronous>, transform_indices = @transform_4, window_bounds = array<i64: 32, 32>}, {pipeline_mode = #tpu.pipeline_mode<synchronous>, transform_indices = @transform_5, window_bounds = array<i64: 1, 32>}, {transform_indices = @transform_6, window_bounds = array<i64: 32, 32>}]} {
    %c0 = arith.constant 0 : index
    %c0_0 = arith.constant 0 : index
    %0 = vector.load %arg1[%c0, %c0_0] : memref<32x32xf32, #tpu.memory_space<vmem>>, vector<32x32xf32>
    %c0_1 = arith.constant 0 : index
    %c0_2 = arith.constant 0 : index
    %1 = vector.load %arg2[%c0_1, %c0_2] : memref<32x32xf32, #tpu.memory_space<vmem>>, vector<32x32xf32>
    %2 = arith.addf %0, %1 : vector<32x32xf32>
    %c0_3 = arith.constant 0 : index
    %c0_4 = arith.constant 0 : index
    %3 = vector.load %arg3[%c0_3, %c0_4] : memref<1x32xf32, #tpu.memory_space<vmem>>, vector<1x32xf32>
    %c0_5 = arith.constant 0 : index
    %c0_6 = arith.constant 0 : index
    %4 = vector.load %arg4[%c0_5, %c0_6] : memref<1x32xf32, #tpu.memory_space<vmem>>, vector<1x32xf32>
    %cst = arith.constant dense<0.000000e+00> : vector<32xf32>
    %5 = vector.multi_reduction <add>, %2, %cst [1] : vector<32x32xf32> to vector<32xf32>
    %6 = vector.shape_cast %5 : vector<32xf32> to vector<32x1xf32>
    %cst_7 = arith.constant 3.200000e+01 : f32
    %7 = vector.broadcast %cst_7 : f32 to vector<32x1xf32>
    %8 = arith.divf %6, %7 : vector<32x1xf32>
    %9 = vector.broadcast %8 : vector<32x1xf32> to vector<32x32xf32>
    %10 = arith.subf %2, %9 : vector<32x32xf32>
    %11 = arith.mulf %10, %10 : vector<32x32xf32>
    %cst_8 = arith.constant dense<0.000000e+00> : vector<32xf32>
    %12 = vector.multi_reduction <add>, %11, %cst_8 [1] : vector<32x32xf32> to vector<32xf32>
    %13 = vector.shape_cast %12 : vector<32xf32> to vector<32x1xf32>
    %cst_9 = arith.constant 3.200000e+01 : f32
    %14 = vector.broadcast %cst_9 : f32 to vector<32x1xf32>
    %15 = arith.divf %13, %14 : vector<32x1xf32>
    %cst_10 = arith.constant 9.99999974E-6 : f32
    %16 = vector.broadcast %cst_10 : f32 to vector<32x1xf32>
    %17 = arith.addf %15, %16 : vector<32x1xf32>
    %18 = math.rsqrt %17 : vector<32x1xf32>
    %19 = vector.broadcast %18 : vector<32x1xf32> to vector<32x32xf32>
    %20 = arith.mulf %10, %19 : vector<32x32xf32>
    %21 = vector.broadcast %3 : vector<1x32xf32> to vector<32x32xf32>
    %22 = arith.mulf %20, %21 : vector<32x32xf32>
    %23 = vector.broadcast %4 : vector<1x32xf32> to vector<32x32xf32>
    %24 = arith.addf %22, %23 : vector<32x32xf32>
    %cst_11 = arith.constant 0.000000e+00 : f32
    %25 = vector.broadcast %cst_11 : f32 to vector<32x32xf32>
    %26 = arith.maximumf %24, %25 : vector<32x32xf32>
    %27 = math.absf %24 : vector<32x32xf32>
    %cst_12 = arith.constant 0.000000e+00 : f32
    %28 = vector.broadcast %cst_12 : f32 to vector<32x32xf32>
    %29 = arith.subf %28, %27 : vector<32x32xf32>
    %30 = math.exp %29 : vector<32x32xf32>
    %cst_13 = arith.constant 1.000000e+00 : f32
    %31 = vector.broadcast %cst_13 : f32 to vector<32x32xf32>
    %32 = arith.addf %31, %30 : vector<32x32xf32>
    %33 = math.log %32 : vector<32x32xf32>
    %34 = arith.addf %26, %33 : vector<32x32xf32>
    %cst_14 = arith.constant 0.693147182 : f32
    %35 = vector.broadcast %cst_14 : f32 to vector<32x32xf32>
    %36 = arith.subf %34, %35 : vector<32x32xf32>
    %c0_15 = arith.constant 0 : index
    %c0_16 = arith.constant 0 : index
    %37 = vector.load %arg5[%c0_15, %c0_16] : memref<32x32xbf16, #tpu.memory_space<vmem>>, vector<32x32xbf16>
    %38 = arith.truncf %36 : vector<32x32xf32> to vector<32x32xbf16>
    %cst_17 = arith.constant dense<0.000000e+00> : vector<32x32xf32>
    %39 = tpu.matmul %38, %37, %cst_17 {dimension_numbers = #tpu.dot_dimension_numbers<[1], [0], [0], [1], [0, 0, 1, 1], [], []>} : vector<32x32xbf16>, vector<32x32xbf16>, vector<32x32xf32> -> vector<32x32xf32>
    %c0_18 = arith.constant 0 : index
    %c0_19 = arith.constant 0 : index
    %40 = vector.load %arg6[%c0_18, %c0_19] : memref<1x32xf32, #tpu.memory_space<vmem>>, vector<1x32xf32>
    %41 = vector.broadcast %40 : vector<1x32xf32> to vector<32x32xf32>
    %42 = arith.addf %39, %41 : vector<32x32xf32>
    %43 = arith.addf %42, %2 : vector<32x32xf32>
    %c0_20 = arith.constant 0 : index
    %c0_21 = arith.constant 0 : index
    %44 = vector.load %arg7[%c0_20, %c0_21] : memref<32x32xf32, #tpu.memory_space<vmem>>, vector<32x32xf32>
    tpu.vector_store %arg7[%c0_20, %c0_21], %43 {strides = array<i32>} : memref<32x32xf32, #tpu.memory_space<vmem>>, vector<32x32xf32>,
    return
  }
  func.func @transform_0(%arg0: i32) -> (i32, i32) {
    %c0_i32 = arith.constant 0 : i32
    %c0_i32_0 = arith.constant 0 : i32
    return %arg0, %c0_i32 : i32, i32
  }
  func.func @transform_1(%arg0: i32) -> (i32, i32) {
    %c0_i32 = arith.constant 0 : i32
    %c0_i32_0 = arith.constant 0 : i32
    return %arg0, %c0_i32 : i32, i32
  }
  func.func @transform_2(%arg0: i32) -> (i32, i32) {
    %c0_i32 = arith.constant 0 : i32
    %c0_i32_0 = arith.constant 0 : i32
    %c0_i32_1 = arith.constant 0 : i32
    return %c0_i32, %c0_i32_0 : i32, i32
  }
  func.func @transform_3(%arg0: i32) -> (i32, i32) {
    %c0_i32 = arith.constant 0 : i32
    %c0_i32_0 = arith.constant 0 : i32
    %c0_i32_1 = arith.constant 0 : i32
    return %c0_i32, %c0_i32_0 : i32, i32
  }
  func.func @transform_4(%arg0: i32) -> (i32, i32) {
    %c0_i32 = arith.constant 0 : i32
    %c0_i32_0 = arith.constant 0 : i32
    %c0_i32_1 = arith.constant 0 : i32
    return %c0_i32, %c0_i32_0 : i32, i32
  }
  func.func @transform_5(%arg0: i32) -> (i32, i32) {
    %c0_i32 = arith.constant 0 : i32
    %c0_i32_0 = arith.constant 0 : i32
    %c0_i32_1 = arith.constant 0 : i32
    return %c0_i32, %c0_i32_0 : i32, i32
  }
  func.func @transform_6(%arg0: i32) -> (i32, i32) {
    %c0_i32 = arith.constant 0 : i32
    %c0_i32_0 = arith.constant 0 : i32
    return %arg0, %c0_i32 : i32, i32
  }
}

module attributes {stable_mosaic.version = 11 : i64} {
  func.func @_ln_proj_y_kernel(%arg0: i32, %arg1: memref<14x32xf32, #tpu.memory_space<vmem>>, %arg2: memref<1x32xf32, #tpu.memory_space<vmem>>, %arg3: memref<1x32xf32, #tpu.memory_space<vmem>>, %arg4: memref<32x32xbf16, #tpu.memory_space<vmem>>, %arg5: memref<14x32xbf16, #tpu.memory_space<vmem>>, %arg6: memref<14x32xbf16, #tpu.memory_space<vmem>>) attributes {dimension_semantics = [#tpu.dimension_semantics<parallel>], iteration_bounds = array<i64: 1>, scalar_prefetch = 0 : i64, scratch_operands = 0 : i64, tpu.core_type = #tpu.core_type<tc>, window_params = [{transform_indices = @transform_0, window_bounds = array<i64: 14, 32>}, {pipeline_mode = #tpu.pipeline_mode<synchronous>, transform_indices = @transform_1, window_bounds = array<i64: 1, 32>}, {pipeline_mode = #tpu.pipeline_mode<synchronous>, transform_indices = @transform_2, window_bounds = array<i64: 1, 32>}, {pipeline_mode = #tpu.pipeline_mode<synchronous>, transform_indices = @transform_3, window_bounds = array<i64: 32, 32>}, {transform_indices = @transform_4, window_bounds = array<i64: 14, 32>}, {transform_indices = @transform_5, window_bounds = array<i64: 14, 32>}]} {
    %c0 = arith.constant 0 : index
    %c0_0 = arith.constant 0 : index
    %0 = vector.load %arg1[%c0, %c0_0] : memref<14x32xf32, #tpu.memory_space<vmem>>, vector<14x32xf32>
    %c0_1 = arith.constant 0 : index
    %c0_2 = arith.constant 0 : index
    %1 = vector.load %arg2[%c0_1, %c0_2] : memref<1x32xf32, #tpu.memory_space<vmem>>, vector<1x32xf32>
    %c0_3 = arith.constant 0 : index
    %c0_4 = arith.constant 0 : index
    %2 = vector.load %arg3[%c0_3, %c0_4] : memref<1x32xf32, #tpu.memory_space<vmem>>, vector<1x32xf32>
    %cst = arith.constant dense<0.000000e+00> : vector<14xf32>
    %3 = vector.multi_reduction <add>, %0, %cst [1] : vector<14x32xf32> to vector<14xf32>
    %4 = vector.shape_cast %3 : vector<14xf32> to vector<14x1xf32>
    %cst_5 = arith.constant 3.200000e+01 : f32
    %5 = vector.broadcast %cst_5 : f32 to vector<14x1xf32>
    %6 = arith.divf %4, %5 : vector<14x1xf32>
    %7 = vector.broadcast %6 : vector<14x1xf32> to vector<14x32xf32>
    %8 = arith.subf %0, %7 : vector<14x32xf32>
    %9 = arith.mulf %8, %8 : vector<14x32xf32>
    %cst_6 = arith.constant dense<0.000000e+00> : vector<14xf32>
    %10 = vector.multi_reduction <add>, %9, %cst_6 [1] : vector<14x32xf32> to vector<14xf32>
    %11 = vector.shape_cast %10 : vector<14xf32> to vector<14x1xf32>
    %cst_7 = arith.constant 3.200000e+01 : f32
    %12 = vector.broadcast %cst_7 : f32 to vector<14x1xf32>
    %13 = arith.divf %11, %12 : vector<14x1xf32>
    %cst_8 = arith.constant 9.99999974E-6 : f32
    %14 = vector.broadcast %cst_8 : f32 to vector<14x1xf32>
    %15 = arith.addf %13, %14 : vector<14x1xf32>
    %16 = math.rsqrt %15 : vector<14x1xf32>
    %17 = vector.broadcast %16 : vector<14x1xf32> to vector<14x32xf32>
    %18 = arith.mulf %8, %17 : vector<14x32xf32>
    %19 = vector.broadcast %1 : vector<1x32xf32> to vector<14x32xf32>
    %20 = arith.mulf %18, %19 : vector<14x32xf32>
    %21 = vector.broadcast %2 : vector<1x32xf32> to vector<14x32xf32>
    %22 = arith.addf %20, %21 : vector<14x32xf32>
    %23 = arith.truncf %22 : vector<14x32xf32> to vector<14x32xbf16>
    %c0_9 = arith.constant 0 : index
    %c0_10 = arith.constant 0 : index
    %24 = vector.load %arg5[%c0_9, %c0_10] : memref<14x32xbf16, #tpu.memory_space<vmem>>, vector<14x32xbf16>
    tpu.vector_store %arg5[%c0_9, %c0_10], %23 {strides = array<i32>} : memref<14x32xbf16, #tpu.memory_space<vmem>>, vector<14x32xbf16>,
    %c0_11 = arith.constant 0 : index
    %c0_12 = arith.constant 0 : index
    %25 = vector.load %arg4[%c0_11, %c0_12] : memref<32x32xbf16, #tpu.memory_space<vmem>>, vector<32x32xbf16>
    %26 = arith.truncf %22 : vector<14x32xf32> to vector<14x32xbf16>
    %cst_13 = arith.constant dense<0.000000e+00> : vector<14x32xf32>
    %27 = tpu.matmul %26, %25, %cst_13 {dimension_numbers = #tpu.dot_dimension_numbers<[1], [0], [0], [1], [0, 0, 1, 1], [], []>} : vector<14x32xbf16>, vector<32x32xbf16>, vector<14x32xf32> -> vector<14x32xf32>
    %28 = arith.truncf %27 : vector<14x32xf32> to vector<14x32xbf16>
    %c0_14 = arith.constant 0 : index
    %c0_15 = arith.constant 0 : index
    %29 = vector.load %arg6[%c0_14, %c0_15] : memref<14x32xbf16, #tpu.memory_space<vmem>>, vector<14x32xbf16>
    tpu.vector_store %arg6[%c0_14, %c0_15], %28 {strides = array<i32>} : memref<14x32xbf16, #tpu.memory_space<vmem>>, vector<14x32xbf16>,
    return
  }
  func.func @transform_0(%arg0: i32) -> (i32, i32) {
    %c0_i32 = arith.constant 0 : i32
    %c0_i32_0 = arith.constant 0 : i32
    return %arg0, %c0_i32 : i32, i32
  }
  func.func @transform_1(%arg0: i32) -> (i32, i32) {
    %c0_i32 = arith.constant 0 : i32
    %c0_i32_0 = arith.constant 0 : i32
    %c0_i32_1 = arith.constant 0 : i32
    return %c0_i32, %c0_i32_0 : i32, i32
  }
  func.func @transform_2(%arg0: i32) -> (i32, i32) {
    %c0_i32 = arith.constant 0 : i32
    %c0_i32_0 = arith.constant 0 : i32
    %c0_i32_1 = arith.constant 0 : i32
    return %c0_i32, %c0_i32_0 : i32, i32
  }
  func.func @transform_3(%arg0: i32) -> (i32, i32) {
    %c0_i32 = arith.constant 0 : i32
    %c0_i32_0 = arith.constant 0 : i32
    %c0_i32_1 = arith.constant 0 : i32
    return %c0_i32, %c0_i32_0 : i32, i32
  }
  func.func @transform_4(%arg0: i32) -> (i32, i32) {
    %c0_i32 = arith.constant 0 : i32
    %c0_i32_0 = arith.constant 0 : i32
    return %arg0, %c0_i32 : i32, i32
  }
  func.func @transform_5(%arg0: i32) -> (i32, i32) {
    %c0_i32 = arith.constant 0 : i32
    %c0_i32_0 = arith.constant 0 : i32
    return %arg0, %c0_i32 : i32, i32
  }
}

module attributes {stable_mosaic.version = 11 : i64} {
  func.func @_resfeat_kernel(%arg0: i32, %arg1: memref<12x21xf32, #tpu.memory_space<vmem>>, %arg2: memref<12x32xf32, #tpu.memory_space<vmem>>, %arg3: memref<21x6xf32, #tpu.memory_space<vmem>>, %arg4: memref<6x120xf32, #tpu.memory_space<vmem>>, %arg5: memref<6x3xf32, #tpu.memory_space<vmem>>, %arg6: memref<1x120xf32, #tpu.memory_space<vmem>>, %arg7: memref<1x120xf32, #tpu.memory_space<vmem>>, %arg8: memref<120x32xbf16, #tpu.memory_space<vmem>>, %arg9: memref<3x32xf32, #tpu.memory_space<vmem>>, %arg10: memref<32x32xbf16, #tpu.memory_space<vmem>>, %arg11: memref<1x32xf32, #tpu.memory_space<vmem>>, %arg12: memref<12x32xf32, #tpu.memory_space<vmem>>) attributes {dimension_semantics = [#tpu.dimension_semantics<parallel>], iteration_bounds = array<i64: 1>, scalar_prefetch = 0 : i64, scratch_operands = 0 : i64, tpu.core_type = #tpu.core_type<tc>, window_params = [{transform_indices = @transform_0, window_bounds = array<i64: 12, 21>}, {transform_indices = @transform_1, window_bounds = array<i64: 12, 32>}, {pipeline_mode = #tpu.pipeline_mode<synchronous>, transform_indices = @transform_2, window_bounds = array<i64: 21, 6>}, {pipeline_mode = #tpu.pipeline_mode<synchronous>, transform_indices = @transform_3, window_bounds = array<i64: 6, 120>}, {pipeline_mode = #tpu.pipeline_mode<synchronous>, transform_indices = @transform_4, window_bounds = array<i64: 6, 3>}, {pipeline_mode = #tpu.pipeline_mode<synchronous>, transform_indices = @transform_5, window_bounds = array<i64: 1, 120>}, {pipeline_mode = #tpu.pipeline_mode<synchronous>, transform_indices = @transform_6, window_bounds = array<i64: 1, 120>}, {pipeline_mode = #tpu.pipeline_mode<synchronous>, transform_indices = @transform_7, window_bounds = array<i64: 120, 32>}, {pipeline_mode = #tpu.pipeline_mode<synchronous>, transform_indices = @transform_8, window_bounds = array<i64: 3, 32>}, {pipeline_mode = #tpu.pipeline_mode<synchronous>, transform_indices = @transform_9, window_bounds = array<i64: 32, 32>}, {pipeline_mode = #tpu.pipeline_mode<synchronous>, transform_indices = @transform_10, window_bounds = array<i64: 1, 32>}, {transform_indices = @transform_11, window_bounds = array<i64: 12, 32>}]} {
    %c0 = arith.constant 0 : index
    %c0_0 = arith.constant 0 : index
    %0 = vector.load %arg1[%c0, %c0_0] : memref<12x21xf32, #tpu.memory_space<vmem>>, vector<12x21xf32>
    %c0_1 = arith.constant 0 : index
    %c0_2 = arith.constant 0 : index
    %1 = vector.load %arg3[%c0_1, %c0_2] : memref<21x6xf32, #tpu.memory_space<vmem>>, vector<21x6xf32>
    %cst = arith.constant dense<0.000000e+00> : vector<12x6xf32>
    %2 = tpu.matmul %0, %1, %cst {dimension_numbers = #tpu.dot_dimension_numbers<[1], [0], [0], [1], [0, 0, 1, 1], [], []>} : vector<12x21xf32>, vector<21x6xf32>, vector<12x6xf32> -> vector<12x6xf32>
    %c0_3 = arith.constant 0 : index
    %c0_4 = arith.constant 0 : index
    %3 = vector.load %arg4[%c0_3, %c0_4] : memref<6x120xf32, #tpu.memory_space<vmem>>, vector<6x120xf32>
    %cst_5 = arith.constant dense<0.000000e+00> : vector<12x120xf32>
    %4 = tpu.matmul %2, %3, %cst_5 {dimension_numbers = #tpu.dot_dimension_numbers<[1], [0], [0], [1], [0, 0, 1, 1], [], []>} : vector<12x6xf32>, vector<6x120xf32>, vector<12x120xf32> -> vector<12x120xf32>
    %c0_6 = arith.constant 0 : index
    %c0_7 = arith.constant 0 : index
    %5 = vector.load %arg6[%c0_6, %c0_7] : memref<1x120xf32, #tpu.memory_space<vmem>>, vector<1x120xf32>
    %6 = vector.broadcast %5 : vector<1x120xf32> to vector<12x120xf32>
    %7 = arith.subf %4, %6 : vector<12x120xf32>
    %c0_8 = arith.constant 0 : index
    %c0_9 = arith.constant 0 : index
    %8 = vector.load %arg7[%c0_8, %c0_9] : memref<1x120xf32, #tpu.memory_space<vmem>>, vector<1x120xf32>
    %9 = vector.broadcast %8 : vector<1x120xf32> to vector<12x120xf32>
    %10 = arith.mulf %7, %9 : vector<12x120xf32>
    %11 = arith.mulf %10, %10 : vector<12x120xf32>
    %cst_10 = arith.constant 0.000000e+00 : f32
    %12 = vector.broadcast %cst_10 : f32 to vector<12x120xf32>
    %13 = arith.subf %12, %11 : vector<12x120xf32>
    %14 = math.exp %13 : vector<12x120xf32>
    %c0_11 = arith.constant 0 : index
    %c0_12 = arith.constant 0 : index
    %15 = vector.load %arg5[%c0_11, %c0_12] : memref<6x3xf32, #tpu.memory_space<vmem>>, vector<6x3xf32>
    %cst_13 = arith.constant dense<0.000000e+00> : vector<12x3xf32>
    %16 = tpu.matmul %2, %15, %cst_13 {dimension_numbers = #tpu.dot_dimension_numbers<[1], [0], [0], [1], [0, 0, 1, 1], [], []>} : vector<12x6xf32>, vector<6x3xf32>, vector<12x3xf32> -> vector<12x3xf32>
    %cst_14 = arith.constant 6.000000e+00 : f32
    %17 = vector.broadcast %cst_14 : f32 to vector<12x3xf32>
    %18 = arith.mulf %16, %17 : vector<12x3xf32>
    %cst_15 = arith.constant 3.000000e+00 : f32
    %19 = vector.broadcast %cst_15 : f32 to vector<12x3xf32>
    %20 = arith.subf %18, %19 : vector<12x3xf32>
    %cst_16 = arith.constant 0.000000e+00 : f32
    %21 = vector.broadcast %cst_16 : f32 to vector<12x3xf32>
    %22 = arith.subf %21, %20 : vector<12x3xf32>
    %23 = math.exp %22 : vector<12x3xf32>
    %cst_17 = arith.constant 1.000000e+00 : f32
    %24 = vector.broadcast %cst_17 : f32 to vector<12x3xf32>
    %25 = arith.addf %24, %23 : vector<12x3xf32>
    %cst_18 = arith.constant 1.000000e+00 : f32
    %26 = vector.broadcast %cst_18 : f32 to vector<12x3xf32>
    %27 = arith.divf %26, %25 : vector<12x3xf32>
    %c0_19 = arith.constant 0 : index
    %c0_20 = arith.constant 0 : index
    %28 = vector.load %arg8[%c0_19, %c0_20] : memref<120x32xbf16, #tpu.memory_space<vmem>>, vector<120x32xbf16>
    %29 = arith.truncf %14 : vector<12x120xf32> to vector<12x120xbf16>
    %cst_21 = arith.constant dense<0.000000e+00> : vector<12x32xf32>
    %30 = tpu.matmul %29, %28, %cst_21 {dimension_numbers = #tpu.dot_dimension_numbers<[1], [0], [0], [1], [0, 0, 1, 1], [], []>} : vector<12x120xbf16>, vector<120x32xbf16>, vector<12x32xf32> -> vector<12x32xf32>
    %c0_22 = arith.constant 0 : index
    %c0_23 = arith.constant 0 : index
    %31 = vector.load %arg9[%c0_22, %c0_23] : memref<3x32xf32, #tpu.memory_space<vmem>>, vector<3x32xf32>
    %cst_24 = arith.constant dense<0.000000e+00> : vector<12x32xf32>
    %32 = tpu.matmul %27, %31, %cst_24 {dimension_numbers = #tpu.dot_dimension_numbers<[1], [0], [0], [1], [0, 0, 1, 1], [], []>} : vector<12x3xf32>, vector<3x32xf32>, vector<12x32xf32> -> vector<12x32xf32>
    %33 = arith.addf %30, %32 : vector<12x32xf32>
    %c0_25 = arith.constant 0 : index
    %c0_26 = arith.constant 0 : index
    %34 = vector.load %arg2[%c0_25, %c0_26] : memref<12x32xf32, #tpu.memory_space<vmem>>, vector<12x32xf32>
    %c0_27 = arith.constant 0 : index
    %c0_28 = arith.constant 0 : index
    %35 = vector.load %arg10[%c0_27, %c0_28] : memref<32x32xbf16, #tpu.memory_space<vmem>>, vector<32x32xbf16>
    %36 = arith.truncf %34 : vector<12x32xf32> to vector<12x32xbf16>
    %cst_29 = arith.constant dense<0.000000e+00> : vector<12x32xf32>
    %37 = tpu.matmul %36, %35, %cst_29 {dimension_numbers = #tpu.dot_dimension_numbers<[1], [0], [0], [1], [0, 0, 1, 1], [], []>} : vector<12x32xbf16>, vector<32x32xbf16>, vector<12x32xf32> -> vector<12x32xf32>
    %38 = arith.addf %33, %37 : vector<12x32xf32>
    %c0_30 = arith.constant 0 : index
    %c0_31 = arith.constant 0 : index
    %39 = vector.load %arg11[%c0_30, %c0_31] : memref<1x32xf32, #tpu.memory_space<vmem>>, vector<1x32xf32>
    %40 = vector.broadcast %39 : vector<1x32xf32> to vector<12x32xf32>
    %41 = arith.addf %38, %40 : vector<12x32xf32>
    %c0_32 = arith.constant 0 : index
    %c0_33 = arith.constant 0 : index
    %42 = vector.load %arg12[%c0_32, %c0_33] : memref<12x32xf32, #tpu.memory_space<vmem>>, vector<12x32xf32>
    tpu.vector_store %arg12[%c0_32, %c0_33], %41 {strides = array<i32>} : memref<12x32xf32, #tpu.memory_space<vmem>>, vector<12x32xf32>,
    return
  }
  func.func @transform_0(%arg0: i32) -> (i32, i32) {
    %c0_i32 = arith.constant 0 : i32
    %c0_i32_0 = arith.constant 0 : i32
    return %arg0, %c0_i32 : i32, i32
  }
  func.func @transform_1(%arg0: i32) -> (i32, i32) {
    %c0_i32 = arith.constant 0 : i32
    %c0_i32_0 = arith.constant 0 : i32
    return %arg0, %c0_i32 : i32, i32
  }
  func.func @transform_2(%arg0: i32) -> (i32, i32) {
    %c0_i32 = arith.constant 0 : i32
    %c0_i32_0 = arith.constant 0 : i32
    %c0_i32_1 = arith.constant 0 : i32
    return %c0_i32, %c0_i32_0 : i32, i32
  }
  func.func @transform_3(%arg0: i32) -> (i32, i32) {
    %c0_i32 = arith.constant 0 : i32
    %c0_i32_0 = arith.constant 0 : i32
    %c0_i32_1 = arith.constant 0 : i32
    return %c0_i32, %c0_i32_0 : i32, i32
  }
  func.func @transform_4(%arg0: i32) -> (i32, i32) {
    %c0_i32 = arith.constant 0 : i32
    %c0_i32_0 = arith.constant 0 : i32
    %c0_i32_1 = arith.constant 0 : i32
    return %c0_i32, %c0_i32_0 : i32, i32
  }
  func.func @transform_5(%arg0: i32) -> (i32, i32) {
    %c0_i32 = arith.constant 0 : i32
    %c0_i32_0 = arith.constant 0 : i32
    %c0_i32_1 = arith.constant 0 : i32
    return %c0_i32, %c0_i32_0 : i32, i32
  }
  func.func @transform_6(%arg0: i32) -> (i32, i32) {
    %c0_i32 = arith.constant 0 : i32
    %c0_i32_0 = arith.constant 0 : i32
    %c0_i32_1 = arith.constant 0 : i32
    return %c0_i32, %c0_i32_0 : i32, i32
  }
  func.func @transform_7(%arg0: i32) -> (i32, i32) {
    %c0_i32 = arith.constant 0 : i32
    %c0_i32_0 = arith.constant 0 : i32
    %c0_i32_1 = arith.constant 0 : i32
    return %c0_i32, %c0_i32_0 : i32, i32
  }
  func.func @transform_8(%arg0: i32) -> (i32, i32) {
    %c0_i32 = arith.constant 0 : i32
    %c0_i32_0 = arith.constant 0 : i32
    %c0_i32_1 = arith.constant 0 : i32
    return %c0_i32, %c0_i32_0 : i32, i32
  }
  func.func @transform_9(%arg0: i32) -> (i32, i32) {
    %c0_i32 = arith.constant 0 : i32
    %c0_i32_0 = arith.constant 0 : i32
    %c0_i32_1 = arith.constant 0 : i32
    return %c0_i32, %c0_i32_0 : i32, i32
  }
  func.func @transform_10(%arg0: i32) -> (i32, i32) {
    %c0_i32 = arith.constant 0 : i32
    %c0_i32_0 = arith.constant 0 : i32
    %c0_i32_1 = arith.constant 0 : i32
    return %c0_i32, %c0_i32_0 : i32, i32
  }
  func.func @transform_11(%arg0: i32) -> (i32, i32) {
    %c0_i32 = arith.constant 0 : i32
    %c0_i32_0 = arith.constant 0 : i32
    return %arg0, %c0_i32 : i32, i32
  }
}

module attributes {stable_mosaic.version = 11 : i64} {
  func.func @_res_edge_kernel(%arg0: i32, %arg1: memref<48x32xbf16, #tpu.memory_space<vmem>>, %arg2: memref<48x32xbf16, #tpu.memory_space<vmem>>, %arg3: memref<48x32xbf16, #tpu.memory_space<vmem>>, %arg4: memref<32x32xbf16, #tpu.memory_space<vmem>>, %arg5: memref<32x32xbf16, #tpu.memory_space<vmem>>, %arg6: memref<32x32xbf16, #tpu.memory_space<vmem>>, %arg7: memref<32x32xbf16, #tpu.memory_space<vmem>>, %arg8: memref<32x4xbf16, #tpu.memory_space<vmem>>, %arg9: memref<48x32xbf16, #tpu.memory_space<vmem>>, %arg10: memref<48x4xf32, #tpu.memory_space<vmem>>) attributes {dimension_semantics = [#tpu.dimension_semantics<parallel>], iteration_bounds = array<i64: 2>, scalar_prefetch = 0 : i64, scratch_operands = 0 : i64, tpu.core_type = #tpu.core_type<tc>, window_params = [{transform_indices = @transform_0, window_bounds = array<i64: 48, 32>}, {transform_indices = @transform_1, window_bounds = array<i64: 48, 32>}, {transform_indices = @transform_2, window_bounds = array<i64: 48, 32>}, {pipeline_mode = #tpu.pipeline_mode<synchronous>, transform_indices = @transform_3, window_bounds = array<i64: 32, 32>}, {pipeline_mode = #tpu.pipeline_mode<synchronous>, transform_indices = @transform_4, window_bounds = array<i64: 32, 32>}, {pipeline_mode = #tpu.pipeline_mode<synchronous>, transform_indices = @transform_5, window_bounds = array<i64: 32, 32>}, {pipeline_mode = #tpu.pipeline_mode<synchronous>, transform_indices = @transform_6, window_bounds = array<i64: 32, 32>}, {pipeline_mode = #tpu.pipeline_mode<synchronous>, transform_indices = @transform_7, window_bounds = array<i64: 32, 4>}, {transform_indices = @transform_8, window_bounds = array<i64: 48, 32>}, {transform_indices = @transform_9, window_bounds = array<i64: 48, 4>}]} {
    %c0 = arith.constant 0 : index
    %c0_0 = arith.constant 0 : index
    %0 = vector.load %arg1[%c0, %c0_0] : memref<48x32xbf16, #tpu.memory_space<vmem>>, vector<48x32xbf16>
    %c0_1 = arith.constant 0 : index
    %c0_2 = arith.constant 0 : index
    %1 = vector.load %arg2[%c0_1, %c0_2] : memref<48x32xbf16, #tpu.memory_space<vmem>>, vector<48x32xbf16>
    %c0_3 = arith.constant 0 : index
    %c0_4 = arith.constant 0 : index
    %2 = vector.load %arg4[%c0_3, %c0_4] : memref<32x32xbf16, #tpu.memory_space<vmem>>, vector<32x32xbf16>
    %cst = arith.constant dense<0.000000e+00> : vector<48x32xf32>
    %3 = tpu.matmul %0, %2, %cst {dimension_numbers = #tpu.dot_dimension_numbers<[1], [0], [0], [1], [0, 0, 1, 1], [], []>} : vector<48x32xbf16>, vector<32x32xbf16>, vector<48x32xf32> -> vector<48x32xf32>
    %c0_5 = arith.constant 0 : index
    %c0_6 = arith.constant 0 : index
    %4 = vector.load %arg5[%c0_5, %c0_6] : memref<32x32xbf16, #tpu.memory_space<vmem>>, vector<32x32xbf16>
    %cst_7 = arith.constant dense<0.000000e+00> : vector<48x32xf32>
    %5 = tpu.matmul %1, %4, %cst_7 {dimension_numbers = #tpu.dot_dimension_numbers<[1], [0], [0], [1], [0, 0, 1, 1], [], []>} : vector<48x32xbf16>, vector<32x32xbf16>, vector<48x32xf32> -> vector<48x32xf32>
    %6 = arith.addf %3, %5 : vector<48x32xf32>
    %c0_8 = arith.constant 0 : index
    %c0_9 = arith.constant 0 : index
    %7 = vector.load %arg6[%c0_8, %c0_9] : memref<32x32xbf16, #tpu.memory_space<vmem>>, vector<32x32xbf16>
    %cst_10 = arith.constant dense<0.000000e+00> : vector<48x32xf32>
    %8 = tpu.matmul %0, %7, %cst_10 {dimension_numbers = #tpu.dot_dimension_numbers<[1], [0], [0], [1], [0, 0, 1, 1], [], []>} : vector<48x32xbf16>, vector<32x32xbf16>, vector<48x32xf32> -> vector<48x32xf32>
    %c0_11 = arith.constant 0 : index
    %c0_12 = arith.constant 0 : index
    %9 = vector.load %arg7[%c0_11, %c0_12] : memref<32x32xbf16, #tpu.memory_space<vmem>>, vector<32x32xbf16>
    %cst_13 = arith.constant dense<0.000000e+00> : vector<48x32xf32>
    %10 = tpu.matmul %1, %9, %cst_13 {dimension_numbers = #tpu.dot_dimension_numbers<[1], [0], [0], [1], [0, 0, 1, 1], [], []>} : vector<48x32xbf16>, vector<32x32xbf16>, vector<48x32xf32> -> vector<48x32xf32>
    %11 = arith.addf %8, %10 : vector<48x32xf32>
    %12 = arith.truncf %11 : vector<48x32xf32> to vector<48x32xbf16>
    %c0_14 = arith.constant 0 : index
    %c0_15 = arith.constant 0 : index
    %13 = vector.load %arg9[%c0_14, %c0_15] : memref<48x32xbf16, #tpu.memory_space<vmem>>, vector<48x32xbf16>
    tpu.vector_store %arg9[%c0_14, %c0_15], %12 {strides = array<i32>} : memref<48x32xbf16, #tpu.memory_space<vmem>>, vector<48x32xbf16>,
    %c0_16 = arith.constant 0 : index
    %c0_17 = arith.constant 0 : index
    %14 = vector.load %arg3[%c0_16, %c0_17] : memref<48x32xbf16, #tpu.memory_space<vmem>>, vector<48x32xbf16>
    %15 = arith.extf %14 : vector<48x32xbf16> to vector<48x32xf32>
    %16 = arith.mulf %15, %6 : vector<48x32xf32>
    %c0_18 = arith.constant 0 : index
    %c0_19 = arith.constant 0 : index
    %17 = vector.load %arg8[%c0_18, %c0_19] : memref<32x4xbf16, #tpu.memory_space<vmem>>, vector<32x4xbf16>
    %18 = arith.truncf %16 : vector<48x32xf32> to vector<48x32xbf16>
    %cst_20 = arith.constant dense<0.000000e+00> : vector<48x4xf32>
    %19 = tpu.matmul %18, %17, %cst_20 {dimension_numbers = #tpu.dot_dimension_numbers<[1], [0], [0], [1], [0, 0, 1, 1], [], []>} : vector<48x32xbf16>, vector<32x4xbf16>, vector<48x4xf32> -> vector<48x4xf32>
    %c0_21 = arith.constant 0 : index
    %c0_22 = arith.constant 0 : index
    %20 = vector.load %arg10[%c0_21, %c0_22] : memref<48x4xf32, #tpu.memory_space<vmem>>, vector<48x4xf32>
    tpu.vector_store %arg10[%c0_21, %c0_22], %19 {strides = array<i32>} : memref<48x4xf32, #tpu.memory_space<vmem>>, vector<48x4xf32>,
    return
  }
  func.func @transform_0(%arg0: i32) -> (i32, i32) {
    %c0_i32 = arith.constant 0 : i32
    %c0_i32_0 = arith.constant 0 : i32
    return %arg0, %c0_i32 : i32, i32
  }
  func.func @transform_1(%arg0: i32) -> (i32, i32) {
    %c0_i32 = arith.constant 0 : i32
    %c0_i32_0 = arith.constant 0 : i32
    return %arg0, %c0_i32 : i32, i32
  }
  func.func @transform_2(%arg0: i32) -> (i32, i32) {
    %c0_i32 = arith.constant 0 : i32
    %c0_i32_0 = arith.constant 0 : i32
    return %arg0, %c0_i32 : i32, i32
  }
  func.func @transform_3(%arg0: i32) -> (i32, i32) {
    %c0_i32 = arith.constant 0 : i32
    %c0_i32_0 = arith.constant 0 : i32
    %c0_i32_1 = arith.constant 0 : i32
    return %c0_i32, %c0_i32_0 : i32, i32
  }
  func.func @transform_4(%arg0: i32) -> (i32, i32) {
    %c0_i32 = arith.constant 0 : i32
    %c0_i32_0 = arith.constant 0 : i32
    %c0_i32_1 = arith.constant 0 : i32
    return %c0_i32, %c0_i32_0 : i32, i32
  }
  func.func @transform_5(%arg0: i32) -> (i32, i32) {
    %c0_i32 = arith.constant 0 : i32
    %c0_i32_0 = arith.constant 0 : i32
    %c0_i32_1 = arith.constant 0 : i32
    return %c0_i32, %c0_i32_0 : i32, i32
  }
  func.func @transform_6(%arg0: i32) -> (i32, i32) {
    %c0_i32 = arith.constant 0 : i32
    %c0_i32_0 = arith.constant 0 : i32
    %c0_i32_1 = arith.constant 0 : i32
    return %c0_i32, %c0_i32_0 : i32, i32
  }
  func.func @transform_7(%arg0: i32) -> (i32, i32) {
    %c0_i32 = arith.constant 0 : i32
    %c0_i32_0 = arith.constant 0 : i32
    %c0_i32_1 = arith.constant 0 : i32
    return %c0_i32, %c0_i32_0 : i32, i32
  }
  func.func @transform_8(%arg0: i32) -> (i32, i32) {
    %c0_i32 = arith.constant 0 : i32
    %c0_i32_0 = arith.constant 0 : i32
    return %arg0, %c0_i32 : i32, i32
  }
  func.func @transform_9(%arg0: i32) -> (i32, i32) {
    %c0_i32 = arith.constant 0 : i32
    %c0_i32_0 = arith.constant 0 : i32
    return %arg0, %c0_i32 : i32, i32
  }
}

module attributes {stable_mosaic.version = 11 : i64} {
  func.func @_linear_kernel(%arg0: i32, %arg1: memref<48x16xf32, #tpu.memory_space<vmem>>, %arg2: memref<16x32xbf16, #tpu.memory_space<vmem>>, %arg3: memref<1x32xf32, #tpu.memory_space<vmem>>, %arg4: memref<48x32xbf16, #tpu.memory_space<vmem>>) attributes {dimension_semantics = [#tpu.dimension_semantics<parallel>], iteration_bounds = array<i64: 2>, scalar_prefetch = 0 : i64, scratch_operands = 0 : i64, tpu.core_type = #tpu.core_type<tc>, window_params = [{transform_indices = @transform_0, window_bounds = array<i64: 48, 16>}, {pipeline_mode = #tpu.pipeline_mode<synchronous>, transform_indices = @transform_1, window_bounds = array<i64: 16, 32>}, {pipeline_mode = #tpu.pipeline_mode<synchronous>, transform_indices = @transform_2, window_bounds = array<i64: 1, 32>}, {transform_indices = @transform_3, window_bounds = array<i64: 48, 32>}]} {
    %c0 = arith.constant 0 : index
    %c0_0 = arith.constant 0 : index
    %0 = vector.load %arg1[%c0, %c0_0] : memref<48x16xf32, #tpu.memory_space<vmem>>, vector<48x16xf32>
    %c0_1 = arith.constant 0 : index
    %c0_2 = arith.constant 0 : index
    %1 = vector.load %arg2[%c0_1, %c0_2] : memref<16x32xbf16, #tpu.memory_space<vmem>>, vector<16x32xbf16>
    %2 = arith.truncf %0 : vector<48x16xf32> to vector<48x16xbf16>
    %cst = arith.constant dense<0.000000e+00> : vector<48x32xf32>
    %3 = tpu.matmul %2, %1, %cst {dimension_numbers = #tpu.dot_dimension_numbers<[1], [0], [0], [1], [0, 0, 1, 1], [], []>} : vector<48x16xbf16>, vector<16x32xbf16>, vector<48x32xf32> -> vector<48x32xf32>
    %c0_3 = arith.constant 0 : index
    %c0_4 = arith.constant 0 : index
    %4 = vector.load %arg3[%c0_3, %c0_4] : memref<1x32xf32, #tpu.memory_space<vmem>>, vector<1x32xf32>
    %5 = vector.broadcast %4 : vector<1x32xf32> to vector<48x32xf32>
    %6 = arith.addf %3, %5 : vector<48x32xf32>
    %7 = arith.truncf %6 : vector<48x32xf32> to vector<48x32xbf16>
    %c0_5 = arith.constant 0 : index
    %c0_6 = arith.constant 0 : index
    %8 = vector.load %arg4[%c0_5, %c0_6] : memref<48x32xbf16, #tpu.memory_space<vmem>>, vector<48x32xbf16>
    tpu.vector_store %arg4[%c0_5, %c0_6], %7 {strides = array<i32>} : memref<48x32xbf16, #tpu.memory_space<vmem>>, vector<48x32xbf16>,
    return
  }
  func.func @transform_0(%arg0: i32) -> (i32, i32) {
    %c0_i32 = arith.constant 0 : i32
    %c0_i32_0 = arith.constant 0 : i32
    return %arg0, %c0_i32 : i32, i32
  }
  func.func @transform_1(%arg0: i32) -> (i32, i32) {
    %c0_i32 = arith.constant 0 : i32
    %c0_i32_0 = arith.constant 0 : i32
    %c0_i32_1 = arith.constant 0 : i32
    return %c0_i32, %c0_i32_0 : i32, i32
  }
  func.func @transform_2(%arg0: i32) -> (i32, i32) {
    %c0_i32 = arith.constant 0 : i32
    %c0_i32_0 = arith.constant 0 : i32
    %c0_i32_1 = arith.constant 0 : i32
    return %c0_i32, %c0_i32_0 : i32, i32
  }
  func.func @transform_3(%arg0: i32) -> (i32, i32) {
    %c0_i32 = arith.constant 0 : i32
    %c0_i32_0 = arith.constant 0 : i32
    return %arg0, %c0_i32 : i32, i32
  }
}

module attributes {stable_mosaic.version = 11 : i64} {
  func.func @_trans_tail_kernel(%arg0: i32, %arg1: memref<14x32xf32, #tpu.memory_space<vmem>>, %arg2: memref<14x32xf32, #tpu.memory_space<vmem>>, %arg3: memref<32x32xbf16, #tpu.memory_space<vmem>>, %arg4: memref<1x32xf32, #tpu.memory_space<vmem>>, %arg5: memref<1x32xf32, #tpu.memory_space<vmem>>, %arg6: memref<32x32xbf16, #tpu.memory_space<vmem>>, %arg7: memref<1x32xf32, #tpu.memory_space<vmem>>, %arg8: memref<32x32xbf16, #tpu.memory_space<vmem>>, %arg9: memref<1x32xf32, #tpu.memory_space<vmem>>, %arg10: memref<14x32xf32, #tpu.memory_space<vmem>>) attributes {dimension_semantics = [#tpu.dimension_semantics<parallel>], iteration_bounds = array<i64: 1>, scalar_prefetch = 0 : i64, scratch_operands = 0 : i64, tpu.core_type = #tpu.core_type<tc>, window_params = [{transform_indices = @transform_0, window_bounds = array<i64: 14, 32>}, {transform_indices = @transform_1, window_bounds = array<i64: 14, 32>}, {pipeline_mode = #tpu.pipeline_mode<synchronous>, transform_indices = @transform_2, window_bounds = array<i64: 32, 32>}, {pipeline_mode = #tpu.pipeline_mode<synchronous>, transform_indices = @transform_3, window_bounds = array<i64: 1, 32>}, {pipeline_mode = #tpu.pipeline_mode<synchronous>, transform_indices = @transform_4, window_bounds = array<i64: 1, 32>}, {pipeline_mode = #tpu.pipeline_mode<synchronous>, transform_indices = @transform_5, window_bounds = array<i64: 32, 32>}, {pipeline_mode = #tpu.pipeline_mode<synchronous>, transform_indices = @transform_6, window_bounds = array<i64: 1, 32>}, {pipeline_mode = #tpu.pipeline_mode<synchronous>, transform_indices = @transform_7, window_bounds = array<i64: 32, 32>}, {pipeline_mode = #tpu.pipeline_mode<synchronous>, transform_indices = @transform_8, window_bounds = array<i64: 1, 32>}, {transform_indices = @transform_9, window_bounds = array<i64: 14, 32>}]} {
    %c0 = arith.constant 0 : index
    %c0_0 = arith.constant 0 : index
    %0 = vector.load %arg1[%c0, %c0_0] : memref<14x32xf32, #tpu.memory_space<vmem>>, vector<14x32xf32>
    %cst = arith.constant 0.000000e+00 : f32
    %1 = vector.broadcast %cst : f32 to vector<14x32xf32>
    %2 = arith.maximumf %0, %1 : vector<14x32xf32>
    %3 = math.absf %0 : vector<14x32xf32>
    %cst_1 = arith.constant 0.000000e+00 : f32
    %4 = vector.broadcast %cst_1 : f32 to vector<14x32xf32>
    %5 = arith.subf %4, %3 : vector<14x32xf32>
    %6 = math.exp %5 : vector<14x32xf32>
    %cst_2 = arith.constant 1.000000e+00 : f32
    %7 = vector.broadcast %cst_2 : f32 to vector<14x32xf32>
    %8 = arith.addf %7, %6 : vector<14x32xf32>
    %9 = math.log %8 : vector<14x32xf32>
    %10 = arith.addf %2, %9 : vector<14x32xf32>
    %cst_3 = arith.constant 0.693147182 : f32
    %11 = vector.broadcast %cst_3 : f32 to vector<14x32xf32>
    %12 = arith.subf %10, %11 : vector<14x32xf32>
    %c0_4 = arith.constant 0 : index
    %c0_5 = arith.constant 0 : index
    %13 = vector.load %arg3[%c0_4, %c0_5] : memref<32x32xbf16, #tpu.memory_space<vmem>>, vector<32x32xbf16>
    %14 = arith.truncf %12 : vector<14x32xf32> to vector<14x32xbf16>
    %cst_6 = arith.constant dense<0.000000e+00> : vector<14x32xf32>
    %15 = tpu.matmul %14, %13, %cst_6 {dimension_numbers = #tpu.dot_dimension_numbers<[1], [0], [0], [1], [0, 0, 1, 1], [], []>} : vector<14x32xbf16>, vector<32x32xbf16>, vector<14x32xf32> -> vector<14x32xf32>
    %c0_7 = arith.constant 0 : index
    %c0_8 = arith.constant 0 : index
    %16 = vector.load %arg2[%c0_7, %c0_8] : memref<14x32xf32, #tpu.memory_space<vmem>>, vector<14x32xf32>
    %17 = arith.addf %16, %15 : vector<14x32xf32>
    %c0_9 = arith.constant 0 : index
    %c0_10 = arith.constant 0 : index
    %18 = vector.load %arg4[%c0_9, %c0_10] : memref<1x32xf32, #tpu.memory_space<vmem>>, vector<1x32xf32>
    %c0_11 = arith.constant 0 : index
    %c0_12 = arith.constant 0 : index
    %19 = vector.load %arg5[%c0_11, %c0_12] : memref<1x32xf32, #tpu.memory_space<vmem>>, vector<1x32xf32>
    %cst_13 = arith.constant dense<0.000000e+00> : vector<14xf32>
    %20 = vector.multi_reduction <add>, %17, %cst_13 [1] : vector<14x32xf32> to vector<14xf32>
    %21 = vector.shape_cast %20 : vector<14xf32> to vector<14x1xf32>
    %cst_14 = arith.constant 3.200000e+01 : f32
    %22 = vector.broadcast %cst_14 : f32 to vector<14x1xf32>
    %23 = arith.divf %21, %22 : vector<14x1xf32>
    %24 = vector.broadcast %23 : vector<14x1xf32> to vector<14x32xf32>
    %25 = arith.subf %17, %24 : vector<14x32xf32>
    %26 = arith.mulf %25, %25 : vector<14x32xf32>
    %cst_15 = arith.constant dense<0.000000e+00> : vector<14xf32>
    %27 = vector.multi_reduction <add>, %26, %cst_15 [1] : vector<14x32xf32> to vector<14xf32>
    %28 = vector.shape_cast %27 : vector<14xf32> to vector<14x1xf32>
    %cst_16 = arith.constant 3.200000e+01 : f32
    %29 = vector.broadcast %cst_16 : f32 to vector<14x1xf32>
    %30 = arith.divf %28, %29 : vector<14x1xf32>
    %cst_17 = arith.constant 9.99999974E-6 : f32
    %31 = vector.broadcast %cst_17 : f32 to vector<14x1xf32>
    %32 = arith.addf %30, %31 : vector<14x1xf32>
    %33 = math.rsqrt %32 : vector<14x1xf32>
    %34 = vector.broadcast %33 : vector<14x1xf32> to vector<14x32xf32>
    %35 = arith.mulf %25, %34 : vector<14x32xf32>
    %36 = vector.broadcast %18 : vector<1x32xf32> to vector<14x32xf32>
    %37 = arith.mulf %35, %36 : vector<14x32xf32>
    %38 = vector.broadcast %19 : vector<1x32xf32> to vector<14x32xf32>
    %39 = arith.addf %37, %38 : vector<14x32xf32>
    %c0_18 = arith.constant 0 : index
    %c0_19 = arith.constant 0 : index
    %40 = vector.load %arg6[%c0_18, %c0_19] : memref<32x32xbf16, #tpu.memory_space<vmem>>, vector<32x32xbf16>
    %41 = arith.truncf %39 : vector<14x32xf32> to vector<14x32xbf16>
    %cst_20 = arith.constant dense<0.000000e+00> : vector<14x32xf32>
    %42 = tpu.matmul %41, %40, %cst_20 {dimension_numbers = #tpu.dot_dimension_numbers<[1], [0], [0], [1], [0, 0, 1, 1], [], []>} : vector<14x32xbf16>, vector<32x32xbf16>, vector<14x32xf32> -> vector<14x32xf32>
    %c0_21 = arith.constant 0 : index
    %c0_22 = arith.constant 0 : index
    %43 = vector.load %arg7[%c0_21, %c0_22] : memref<1x32xf32, #tpu.memory_space<vmem>>, vector<1x32xf32>
    %44 = vector.broadcast %43 : vector<1x32xf32> to vector<14x32xf32>
    %45 = arith.addf %42, %44 : vector<14x32xf32>
    %cst_23 = arith.constant 0.000000e+00 : f32
    %46 = vector.broadcast %cst_23 : f32 to vector<14x32xf32>
    %47 = arith.maximumf %45, %46 : vector<14x32xf32>
    %c0_24 = arith.constant 0 : index
    %c0_25 = arith.constant 0 : index
    %48 = vector.load %arg8[%c0_24, %c0_25] : memref<32x32xbf16, #tpu.memory_space<vmem>>, vector<32x32xbf16>
    %49 = arith.truncf %47 : vector<14x32xf32> to vector<14x32xbf16>
    %cst_26 = arith.constant dense<0.000000e+00> : vector<14x32xf32>
    %50 = tpu.matmul %49, %48, %cst_26 {dimension_numbers = #tpu.dot_dimension_numbers<[1], [0], [0], [1], [0, 0, 1, 1], [], []>} : vector<14x32xbf16>, vector<32x32xbf16>, vector<14x32xf32> -> vector<14x32xf32>
    %51 = arith.addf %17, %50 : vector<14x32xf32>
    %c0_27 = arith.constant 0 : index
    %c0_28 = arith.constant 0 : index
    %52 = vector.load %arg9[%c0_27, %c0_28] : memref<1x32xf32, #tpu.memory_space<vmem>>, vector<1x32xf32>
    %53 = vector.broadcast %52 : vector<1x32xf32> to vector<14x32xf32>
    %54 = arith.addf %51, %53 : vector<14x32xf32>
    %c0_29 = arith.constant 0 : index
    %c0_30 = arith.constant 0 : index
    %55 = vector.load %arg10[%c0_29, %c0_30] : memref<14x32xf32, #tpu.memory_space<vmem>>, vector<14x32xf32>
    tpu.vector_store %arg10[%c0_29, %c0_30], %54 {strides = array<i32>} : memref<14x32xf32, #tpu.memory_space<vmem>>, vector<14x32xf32>,
    return
  }
  func.func @transform_0(%arg0: i32) -> (i32, i32) {
    %c0_i32 = arith.constant 0 : i32
    %c0_i32_0 = arith.constant 0 : i32
    return %arg0, %c0_i32 : i32, i32
  }
  func.func @transform_1(%arg0: i32) -> (i32, i32) {
    %c0_i32 = arith.constant 0 : i32
    %c0_i32_0 = arith.constant 0 : i32
    return %arg0, %c0_i32 : i32, i32
  }
  func.func @transform_2(%arg0: i32) -> (i32, i32) {
    %c0_i32 = arith.constant 0 : i32
    %c0_i32_0 = arith.constant 0 : i32
    %c0_i32_1 = arith.constant 0 : i32
    return %c0_i32, %c0_i32_0 : i32, i32
  }
  func.func @transform_3(%arg0: i32) -> (i32, i32) {
    %c0_i32 = arith.constant 0 : i32
    %c0_i32_0 = arith.constant 0 : i32
    %c0_i32_1 = arith.constant 0 : i32
    return %c0_i32, %c0_i32_0 : i32, i32
  }
  func.func @transform_4(%arg0: i32) -> (i32, i32) {
    %c0_i32 = arith.constant 0 : i32
    %c0_i32_0 = arith.constant 0 : i32
    %c0_i32_1 = arith.constant 0 : i32
    return %c0_i32, %c0_i32_0 : i32, i32
  }
  func.func @transform_5(%arg0: i32) -> (i32, i32) {
    %c0_i32 = arith.constant 0 : i32
    %c0_i32_0 = arith.constant 0 : i32
    %c0_i32_1 = arith.constant 0 : i32
    return %c0_i32, %c0_i32_0 : i32, i32
  }
  func.func @transform_6(%arg0: i32) -> (i32, i32) {
    %c0_i32 = arith.constant 0 : i32
    %c0_i32_0 = arith.constant 0 : i32
    %c0_i32_1 = arith.constant 0 : i32
    return %c0_i32, %c0_i32_0 : i32, i32
  }
  func.func @transform_7(%arg0: i32) -> (i32, i32) {
    %c0_i32 = arith.constant 0 : i32
    %c0_i32_0 = arith.constant 0 : i32
    %c0_i32_1 = arith.constant 0 : i32
    return %c0_i32, %c0_i32_0 : i32, i32
  }
  func.func @transform_8(%arg0: i32) -> (i32, i32) {
    %c0_i32 = arith.constant 0 : i32
    %c0_i32_0 = arith.constant 0 : i32
    %c0_i32_1 = arith.constant 0 : i32
    return %c0_i32, %c0_i32_0 : i32, i32
  }
  func.func @transform_9(%arg0: i32) -> (i32, i32) {
    %c0_i32 = arith.constant 0 : i32
    %c0_i32_0 = arith.constant 0 : i32
    return %arg0, %c0_i32 : i32, i32
  }
}

module attributes {stable_mosaic.version = 11 : i64} {
  func.func @_mlp2_kernel(%arg0: i32, %arg1: memref<32x96xf32, #tpu.memory_space<vmem>>, %arg2: memref<96x32xbf16, #tpu.memory_space<vmem>>, %arg3: memref<1x32xf32, #tpu.memory_space<vmem>>, %arg4: memref<32x14xbf16, #tpu.memory_space<vmem>>, %arg5: memref<1x14xf32, #tpu.memory_space<vmem>>, %arg6: memref<32x14xf32, #tpu.memory_space<vmem>>) attributes {dimension_semantics = [#tpu.dimension_semantics<parallel>], iteration_bounds = array<i64: 2>, scalar_prefetch = 0 : i64, scratch_operands = 0 : i64, tpu.core_type = #tpu.core_type<tc>, window_params = [{transform_indices = @transform_0, window_bounds = array<i64: 32, 96>}, {pipeline_mode = #tpu.pipeline_mode<synchronous>, transform_indices = @transform_1, window_bounds = array<i64: 96, 32>}, {pipeline_mode = #tpu.pipeline_mode<synchronous>, transform_indices = @transform_2, window_bounds = array<i64: 1, 32>}, {pipeline_mode = #tpu.pipeline_mode<synchronous>, transform_indices = @transform_3, window_bounds = array<i64: 32, 14>}, {pipeline_mode = #tpu.pipeline_mode<synchronous>, transform_indices = @transform_4, window_bounds = array<i64: 1, 14>}, {transform_indices = @transform_5, window_bounds = array<i64: 32, 14>}]} {
    %c0 = arith.constant 0 : index
    %c0_0 = arith.constant 0 : index
    %0 = vector.load %arg1[%c0, %c0_0] : memref<32x96xf32, #tpu.memory_space<vmem>>, vector<32x96xf32>
    %c0_1 = arith.constant 0 : index
    %c0_2 = arith.constant 0 : index
    %1 = vector.load %arg2[%c0_1, %c0_2] : memref<96x32xbf16, #tpu.memory_space<vmem>>, vector<96x32xbf16>
    %2 = arith.truncf %0 : vector<32x96xf32> to vector<32x96xbf16>
    %cst = arith.constant dense<0.000000e+00> : vector<32x32xf32>
    %3 = tpu.matmul %2, %1, %cst {dimension_numbers = #tpu.dot_dimension_numbers<[1], [0], [0], [1], [0, 0, 1, 1], [], []>} : vector<32x96xbf16>, vector<96x32xbf16>, vector<32x32xf32> -> vector<32x32xf32>
    %c0_3 = arith.constant 0 : index
    %c0_4 = arith.constant 0 : index
    %4 = vector.load %arg3[%c0_3, %c0_4] : memref<1x32xf32, #tpu.memory_space<vmem>>, vector<1x32xf32>
    %5 = vector.broadcast %4 : vector<1x32xf32> to vector<32x32xf32>
    %6 = arith.addf %3, %5 : vector<32x32xf32>
    %cst_5 = arith.constant 0.000000e+00 : f32
    %7 = vector.broadcast %cst_5 : f32 to vector<32x32xf32>
    %8 = arith.maximumf %6, %7 : vector<32x32xf32>
    %c0_6 = arith.constant 0 : index
    %c0_7 = arith.constant 0 : index
    %9 = vector.load %arg4[%c0_6, %c0_7] : memref<32x14xbf16, #tpu.memory_space<vmem>>, vector<32x14xbf16>
    %10 = arith.truncf %8 : vector<32x32xf32> to vector<32x32xbf16>
    %cst_8 = arith.constant dense<0.000000e+00> : vector<32x14xf32>
    %11 = tpu.matmul %10, %9, %cst_8 {dimension_numbers = #tpu.dot_dimension_numbers<[1], [0], [0], [1], [0, 0, 1, 1], [], []>} : vector<32x32xbf16>, vector<32x14xbf16>, vector<32x14xf32> -> vector<32x14xf32>
    %c0_9 = arith.constant 0 : index
    %c0_10 = arith.constant 0 : index
    %12 = vector.load %arg5[%c0_9, %c0_10] : memref<1x14xf32, #tpu.memory_space<vmem>>, vector<1x14xf32>
    %13 = vector.broadcast %12 : vector<1x14xf32> to vector<32x14xf32>
    %14 = arith.addf %11, %13 : vector<32x14xf32>
    %c0_11 = arith.constant 0 : index
    %c0_12 = arith.constant 0 : index
    %15 = vector.load %arg6[%c0_11, %c0_12] : memref<32x14xf32, #tpu.memory_space<vmem>>, vector<32x14xf32>
    tpu.vector_store %arg6[%c0_11, %c0_12], %14 {strides = array<i32>} : memref<32x14xf32, #tpu.memory_space<vmem>>, vector<32x14xf32>,
    return
  }
  func.func @transform_0(%arg0: i32) -> (i32, i32) {
    %c0_i32 = arith.constant 0 : i32
    %c0_i32_0 = arith.constant 0 : i32
    return %arg0, %c0_i32 : i32, i32
  }
  func.func @transform_1(%arg0: i32) -> (i32, i32) {
    %c0_i32 = arith.constant 0 : i32
    %c0_i32_0 = arith.constant 0 : i32
    %c0_i32_1 = arith.constant 0 : i32
    return %c0_i32, %c0_i32_0 : i32, i32
  }
  func.func @transform_2(%arg0: i32) -> (i32, i32) {
    %c0_i32 = arith.constant 0 : i32
    %c0_i32_0 = arith.constant 0 : i32
    %c0_i32_1 = arith.constant 0 : i32
    return %c0_i32, %c0_i32_0 : i32, i32
  }
  func.func @transform_3(%arg0: i32) -> (i32, i32) {
    %c0_i32 = arith.constant 0 : i32
    %c0_i32_0 = arith.constant 0 : i32
    %c0_i32_1 = arith.constant 0 : i32
    return %c0_i32, %c0_i32_0 : i32, i32
  }
  func.func @transform_4(%arg0: i32) -> (i32, i32) {
    %c0_i32 = arith.constant 0 : i32
    %c0_i32_0 = arith.constant 0 : i32
    %c0_i32_1 = arith.constant 0 : i32
    return %c0_i32, %c0_i32_0 : i32, i32
  }
  func.func @transform_5(%arg0: i32) -> (i32, i32) {
    %c0_i32 = arith.constant 0 : i32
    %c0_i32_0 = arith.constant 0 : i32
    return %arg0, %c0_i32 : i32, i32
  }
}

module attributes {stable_mosaic.version = 11 : i64} {
  func.func @_mlp2_kernel(%arg0: i32, %arg1: memref<16x80xf32, #tpu.memory_space<vmem>>, %arg2: memref<80x32xbf16, #tpu.memory_space<vmem>>, %arg3: memref<1x32xf32, #tpu.memory_space<vmem>>, %arg4: memref<32x1xbf16, #tpu.memory_space<vmem>>, %arg5: memref<1x1xf32, #tpu.memory_space<vmem>>, %arg6: memref<16x1xf32, #tpu.memory_space<vmem>>) attributes {dimension_semantics = [#tpu.dimension_semantics<parallel>], iteration_bounds = array<i64: 2>, scalar_prefetch = 0 : i64, scratch_operands = 0 : i64, tpu.core_type = #tpu.core_type<tc>, window_params = [{transform_indices = @transform_0, window_bounds = array<i64: 16, 80>}, {pipeline_mode = #tpu.pipeline_mode<synchronous>, transform_indices = @transform_1, window_bounds = array<i64: 80, 32>}, {pipeline_mode = #tpu.pipeline_mode<synchronous>, transform_indices = @transform_2, window_bounds = array<i64: 1, 32>}, {pipeline_mode = #tpu.pipeline_mode<synchronous>, transform_indices = @transform_3, window_bounds = array<i64: 32, 1>}, {pipeline_mode = #tpu.pipeline_mode<synchronous>, transform_indices = @transform_4, window_bounds = array<i64: 1, 1>}, {transform_indices = @transform_5, window_bounds = array<i64: 16, 1>}]} {
    %c0 = arith.constant 0 : index
    %c0_0 = arith.constant 0 : index
    %0 = vector.load %arg1[%c0, %c0_0] : memref<16x80xf32, #tpu.memory_space<vmem>>, vector<16x80xf32>
    %c0_1 = arith.constant 0 : index
    %c0_2 = arith.constant 0 : index
    %1 = vector.load %arg2[%c0_1, %c0_2] : memref<80x32xbf16, #tpu.memory_space<vmem>>, vector<80x32xbf16>
    %2 = arith.truncf %0 : vector<16x80xf32> to vector<16x80xbf16>
    %cst = arith.constant dense<0.000000e+00> : vector<16x32xf32>
    %3 = tpu.matmul %2, %1, %cst {dimension_numbers = #tpu.dot_dimension_numbers<[1], [0], [0], [1], [0, 0, 1, 1], [], []>} : vector<16x80xbf16>, vector<80x32xbf16>, vector<16x32xf32> -> vector<16x32xf32>
    %c0_3 = arith.constant 0 : index
    %c0_4 = arith.constant 0 : index
    %4 = vector.load %arg3[%c0_3, %c0_4] : memref<1x32xf32, #tpu.memory_space<vmem>>, vector<1x32xf32>
    %5 = vector.broadcast %4 : vector<1x32xf32> to vector<16x32xf32>
    %6 = arith.addf %3, %5 : vector<16x32xf32>
    %cst_5 = arith.constant 0.000000e+00 : f32
    %7 = vector.broadcast %cst_5 : f32 to vector<16x32xf32>
    %8 = arith.maximumf %6, %7 : vector<16x32xf32>
    %c0_6 = arith.constant 0 : index
    %c0_7 = arith.constant 0 : index
    %9 = vector.load %arg4[%c0_6, %c0_7] : memref<32x1xbf16, #tpu.memory_space<vmem>>, vector<32x1xbf16>
    %10 = arith.truncf %8 : vector<16x32xf32> to vector<16x32xbf16>
    %cst_8 = arith.constant dense<0.000000e+00> : vector<16x1xf32>
    %11 = tpu.matmul %10, %9, %cst_8 {dimension_numbers = #tpu.dot_dimension_numbers<[1], [0], [0], [1], [0, 0, 1, 1], [], []>} : vector<16x32xbf16>, vector<32x1xbf16>, vector<16x1xf32> -> vector<16x1xf32>
    %c0_9 = arith.constant 0 : index
    %c0_10 = arith.constant 0 : index
    %12 = vector.load %arg5[%c0_9, %c0_10] : memref<1x1xf32, #tpu.memory_space<vmem>>, vector<1x1xf32>
    %13 = vector.broadcast %12 : vector<1x1xf32> to vector<16x1xf32>
    %14 = arith.addf %11, %13 : vector<16x1xf32>
    %c0_11 = arith.constant 0 : index
    %c0_12 = arith.constant 0 : index
    %15 = vector.load %arg6[%c0_11, %c0_12] : memref<16x1xf32, #tpu.memory_space<vmem>>, vector<16x1xf32>
    tpu.vector_store %arg6[%c0_11, %c0_12], %14 {strides = array<i32>} : memref<16x1xf32, #tpu.memory_space<vmem>>, vector<16x1xf32>,
    return
  }
  func.func @transform_0(%arg0: i32) -> (i32, i32) {
    %c0_i32 = arith.constant 0 : i32
    %c0_i32_0 = arith.constant 0 : i32
    return %arg0, %c0_i32 : i32, i32
  }
  func.func @transform_1(%arg0: i32) -> (i32, i32) {
    %c0_i32 = arith.constant 0 : i32
    %c0_i32_0 = arith.constant 0 : i32
    %c0_i32_1 = arith.constant 0 : i32
    return %c0_i32, %c0_i32_0 : i32, i32
  }
  func.func @transform_2(%arg0: i32) -> (i32, i32) {
    %c0_i32 = arith.constant 0 : i32
    %c0_i32_0 = arith.constant 0 : i32
    %c0_i32_1 = arith.constant 0 : i32
    return %c0_i32, %c0_i32_0 : i32, i32
  }
  func.func @transform_3(%arg0: i32) -> (i32, i32) {
    %c0_i32 = arith.constant 0 : i32
    %c0_i32_0 = arith.constant 0 : i32
    %c0_i32_1 = arith.constant 0 : i32
    return %c0_i32, %c0_i32_0 : i32, i32
  }
  func.func @transform_4(%arg0: i32) -> (i32, i32) {
    %c0_i32 = arith.constant 0 : i32
    %c0_i32_0 = arith.constant 0 : i32
    %c0_i32_1 = arith.constant 0 : i32
    return %c0_i32, %c0_i32_0 : i32, i32
  }
  func.func @transform_5(%arg0: i32) -> (i32, i32) {
    %c0_i32 = arith.constant 0 : i32
    %c0_i32_0 = arith.constant 0 : i32
    return %arg0, %c0_i32 : i32, i32
  }
}

</mosaic_0001>

<bundles_post_ra>
// kernel: _forward_core.18
= control target key start
LH: loop header
LB: loop body
LE: loop exit
PB: predicated region body
PF: predicated region fallthrough
CT: control target
= control target key end

     0   :  { %s506_s15 = smov 0   ;;  %s569_s0 = inlined_call_operand.vmem [shape: f32[58,32], index: 0, kind: input, shape index: {}]   ;;  %s570_s1 = inlined_call_operand.vmem [shape: f32[1,32], index: 1, kind: input, shape index: {}]   ;;  %s571_s2 = inlined_call_operand.vmem [shape: f32[1,32], index: 2, kind: input, shape index: {}]   ;;  %s572_s3 = inlined_call_operand.vmem [shape: bf16[32,96], index: 3, kind: input, shape index: {}]   ;;  %s573_s4 = inlined_call_operand.vmem [shape: bf16[58,96], index: 4, kind: output, shape index: {}]  }
   0x1 LB: > { %s426_s16 = sadd.s32 4294967295, %s478_s15   ;;  %p430_p0 = scmp.ge.s32.totalorder %s478_s15, 1  ;;  %s478_s15 = sphi %s506_s15, %s14_s15  }
   0x2   : > { %p163_p1 = scmp.lt.s32.totalorder %s478_s15, 3 }
   0x4   : > { %p164_p2 = pnand %p430_p0, %p163_p1 }
   0x5   : > { %s431_s17 = sshll.u32 (!%p164_p2), %s426_s16, 2 }
   0x6   : > { %167 = sbr.rel (%p164_p2) target bundleno = 431 (0x1af), region = 36  ;;  %p190_p3 = scmp.lt.s32.totalorder (!%p164_p2), %s431_s17, 7 }
   0xb   : > { %s575_s17 = smov (!%p190_p3, %s431_s17), 7  ;;  %vm208_vm0 = vcmask 261120   ;;  %v480_v8 = vmov 32.0   ;;  %v448_v35 = vld [vmem:[%s572_s3 + $0x8] sm:$0xff]  ;;  %v447_v40 = vld [vmem:[%s572_s3] sm:$0xff]  ;;  %vm365_vm14 = vcmask 781312  }
   0xc   : > { %s432_s18 = sshll.u32 %s575_s17, 3  ;;  %462 = vrcp.f32 %v480_v8  ;;  %348 = vmatpush.bf16.msra.mxu0 %v448_v35  ;;  %449 = vmatpush.bf16.msra.mxu1 %v448_v35  ;;  %s434_s30 = sshll.u32 %s575_s17, 2 }
   0xd   : > { %s193_s21 = scalar_lea.vmem %s569_s0, %s432_s18  ;;  %s199_s7 = scalar_lea.vmem %s573_s4, %s434_s30 }
   0xe   : > { %v204_v0 = vld [vmem:[%s193_s21 + $0x10] sm:$0xff]  ;;  %v202_v1 = vld [vmem:[%s193_s21] sm:$0xff]  ;;  %v205_v4 = vld [vmem:[%s193_s21 + $0x18] sm:$0xff] }
   0xf   : > { %v215_v2 = vsel %vm208_vm0, %v204_v0, 0.0  ;;  %v209_v3 = vsel %vm208_vm0, %v202_v1, 0.0  ;;  %v203_v5 = vld [vmem:[%s193_s21 + $0x8] sm:$0xff]  ;;  %v218_v6 = vsel %vm208_vm0, %v205_v4, 0.0 }
  0x10   : > { %216 = vadd.xlane.f32.xlu1 %v215_v2  ;;  %210 = vadd.xlane.f32.xlu0 %v209_v3  ;;  %v212_v7 = vsel %vm208_vm0, %v203_v5, 0.0 }
  0x11   : > { %349 = vmatpush.bf16.msra.mxu0 %v447_v40  ;;  %450 = vmatpush.bf16.msra.mxu1 %v447_v40 }
  0x12   : > { %v463_v9 = vpop.eup %462 }
  0x13   : > { %v222_v10 = vmul.f32 32.0, %v463_v9  ;;  %vm226_vm1 = vweird.f32 %v463_v9 }
  0x15   : > { %v223_v11 = vsub.f32 1.0, %v222_v10  ;;  %v460_v10 = vld [vmem:[%s570_s1] ss:$0 sm:$0xff] }
  0x17   : > { %v224_v12 = vmul.f32 %v463_v9, %v223_v11 }
  0x18   : > { %219 = vadd.xlane.f32.xlu1 %v218_v6  ;;  %213 = vadd.xlane.f32.xlu0 %v212_v7 }
  0x19   : > { %v225_v13 = vadd.f32 %v463_v9, %v224_v12 }
  0x1b   : > { %v227_v14 = vsel %vm226_vm1, %v463_v9, %v225_v13 }
  0x83   : > { %v217_v15 = vpop.xlane.xlu1 %216  ;;  %v211_v16 = vpop.xlane.xlu0 %210 }
  0x84   : > { %v230_v17 = vmul.f32 %v227_v14, %v217_v15  ;;  %v228_v18 = vmul.f32 %v227_v14, %v211_v16 }
  0x86   : > { %v524_v19 = vsub.f32 %v204_v0, %v230_v17  ;;  %v526_v20 = vsub.f32 %v202_v1, %v228_v18  ;;  %v461_v17 = vld [vmem:[%s571_s2] ss:$0 sm:$0xff] }
  0x88   : > { %v238_v21 = vmul.f32 %v524_v19, %v524_v19  ;;  %v236_v22 = vmul.f32 %v526_v20, %v526_v20 }
  0x8a   : > { %v246_v23 = vsel %vm208_vm0, %v238_v21, 0.0  ;;  %v240_v24 = vsel %vm208_vm0, %v236_v22, 0.0 }
  0x8b   : > { %v220_v25 = vpop.xlane.xlu1 %219  ;;  %247 = vadd.xlane.f32.xlu0 %v246_v23  ;;  %241 = vadd.xlane.f32.xlu2 %v240_v24  ;;  %v214_v26 = vpop.xlane.xlu0 %213 }
  0x8c   : > { %v231_v27 = vmul.f32 %v227_v14, %v220_v25  ;;  %v229_v28 = vmul.f32 %v227_v14, %v214_v26 }
  0x8e   : > { %v534_v29 = vsub.f32 %v205_v4, %v231_v27  ;;  %v536_v30 = vsub.f32 %v203_v5, %v229_v28 }
  0x90   : > { %v239_v31 = vmul.f32 %v534_v29, %v534_v29  ;;  %v237_v32 = vmul.f32 %v536_v30, %v536_v30 }
  0x92   : > { %v249_v33 = vsel %vm208_vm0, %v239_v31, 0.0  ;;  %v243_v34 = vsel %vm208_vm0, %v237_v32, 0.0 }
  0x93   : > { %250 = vadd.xlane.f32.xlu1 %v249_v33  ;;  %244 = vadd.xlane.f32.xlu2 %v243_v34 }
  0xfe   : > { %v242_v36 = vpop.xlane.xlu2 %241  ;;  %v248_v37 = vpop.xlane.xlu0 %247 }
  0xff   : > { %v252_v38 = vmul.f32 %v242_v36, %v227_v14  ;;  %v254_v39 = vmul.f32 %v248_v37, %v227_v14 }
 0x101   : > { %v256_v41 = vadd.f32 1e-05, %v252_v38  ;;  %v258_v42 = vadd.f32 1e-05, %v254_v39 }
 0x103   : > { %464 = vrsqrt.f32 %v256_v41  ;;  %vm286_vm4 = vweird.f32 %v258_v42  ;;  %vm266_vm5 = vweird.f32 %v256_v41 }
 0x104   : > { %466 = vrsqrt.f32 %v258_v42 }
 0x106   : > { %v251_v43 = vpop.xlane.xlu1 %250  ;;  %v245_v44 = vpop.xlane.xlu2 %244 }
 0x107   : > { %v255_v45 = vmul.f32 %v251_v43, %v227_v14  ;;  %v253_v46 = vmul.f32 %v245_v44, %v227_v14 }
 0x109   : > { %v465_v47 = vpop.eup %464  ;;  %v259_v48 = vadd.f32 1e-05, %v255_v45  ;;  %v257_v49 = vadd.f32 1e-05, %v253_v46 }
 0x10a   : > { %v467_v50 = vpop.eup %466  ;;  %v261_v51 = vmul.f32 %v465_v47, %v256_v41  ;;  %vm267_vm3 = vweird.f32 %v465_v47 }
 0x10b   : > { %v281_v52 = vmul.f32 %v467_v50, %v258_v42  ;;  %468 = vrsqrt.f32 %v259_v48  ;;  %vm287_vm2 = vweird.f32 %v467_v50  ;;  %vm268_vm7 = vmor %vm266_vm5, %vm267_vm3  ;;  %vm296_vm10 = vweird.f32 %v259_v48 }
 0x10c   : > { %v262_v53 = vmul.f32 %v465_v47, %v261_v51  ;;  %470 = vrsqrt.f32 %v257_v49  ;;  %vm288_vm6 = vmor %vm286_vm4, %vm287_vm2  ;;  %vm276_vm12 = vweird.f32 %v257_v49 }
 0x10d   : > { %v282_v54 = vmul.f32 %v467_v50, %v281_v52 }
 0x10e   : > { %v263_v55 = vmul.f32 0.5, %v262_v53 }
 0x10f   : > { %v283_v56 = vmul.f32 0.5, %v282_v54 }
 0x110   : > { %v264_v57 = vsub.f32 1.5, %v263_v55 }
 0x111   : > { %v469_v58 = vpop.eup %468  ;;  %v284_v59 = vsub.f32 1.5, %v283_v56 }
 0x112   : > { %v471_v60 = vpop.eup %470  ;;  %v291_v61 = vmul.f32 %v469_v58, %v259_v48  ;;  %v265_v62 = vmul.f32 %v465_v47, %v264_v57  ;;  %vm297_vm8 = vweird.f32 %v469_v58 }
 0x113   : > { %v285_v63 = vmul.f32 %v467_v50, %v284_v59  ;;  %v271_v0 = vmul.f32 %v471_v60, %v257_v49  ;;  %vm277_vm9 = vweird.f32 %v471_v60  ;;  %vm298_vm11 = vmor %vm296_vm10, %vm297_vm8 }
 0x114   : > { %v292_v1 = vmul.f32 %v469_v58, %v291_v61  ;;  %v269_v5 = vsel %vm268_vm7, %v465_v47, %v265_v62  ;;  %vm278_vm13 = vmor %vm276_vm12, %vm277_vm9 }
 0x115   : > { %v272_v2 = vmul.f32 %v471_v60, %v271_v0  ;;  %v289_v3 = vsel %vm288_vm6, %v467_v50, %v285_v63  ;;  %v300_v11 = vmul.f32 %v269_v5, %v526_v20 }
 0x116   : > { %v293_v4 = vmul.f32 0.5, %v292_v1  ;;  %v302_v8 = vmul.f32 %v289_v3, %v524_v19 }
 0x117   : > { %v273_v6 = vmul.f32 0.5, %v272_v2  ;;  %v307_v21 = vmul.f32 %v460_v10, %v300_v11 }
 0x118   : > { %v294_v7 = vsub.f32 1.5, %v293_v4  ;;  %v309_v18 = vmul.f32 %v460_v10, %v302_v8 }
 0x119   : > { %v274_v9 = vsub.f32 1.5, %v273_v6  ;;  %v314_v25 = vadd.f32 %v461_v17, %v307_v21 }
 0x11a   : > { %v295_v12 = vmul.f32 %v469_v58, %v294_v7  ;;  %v316_v23 = vadd.f32 %v461_v17, %v309_v18 }
 0x11b   : > { %v275_v13 = vmul.f32 %v471_v60, %v274_v9 }
 0x11c   : > { %v299_v14 = vsel %vm298_vm11, %v469_v58, %v295_v12 }
 0x11d   : > { %v303_v15 = vmul.f32 %v299_v14, %v534_v29  ;;  %v279_v16 = vsel %vm278_vm13, %v471_v60, %v275_v13 }
 0x11e   : > { %v301_v19 = vmul.f32 %v279_v16, %v536_v30 }
 0x11f   : > { %v310_v20 = vmul.f32 %v460_v10, %v303_v15 }
 0x120   : > { %v308_v22 = vmul.f32 %v460_v10, %v301_v19 }
 0x121   : > { %v317_v24 = vadd.f32 %v461_v17, %v310_v20 }
 0x122   : > { %v315_v26 = vadd.f32 %v461_v17, %v308_v22 }
 0x123   : > { %v323_v27 = vpack.c.bf16 %v317_v24, %v316_v23 }
 0x124   : > { %v322_v28 = vpack.c.bf16 %v315_v26, %v314_v25 }
 0x125   : > { %444 = vmatmul.msk.bf16.vlgmr.msra.gmra.mxu1 %vm208_vm0, %v323_v27 }
 0x126   : > { %443 = vmatmul.msk.bf16.vlgmr.msra.gmra.mxu0 %vm208_vm0, %v322_v28 }
 0x1a2   : > { %v356_v29 = vpop.f32.mrf.mxu1 }
 0x1a3   : > { %v351_v30 = vpop.f32.mrf.mxu0  ;;  %v363_v35 = vpack.c.bf16 %v356_v29, %v356_v29 }
 0x1a4   : > { %v361_v31 = vpack.c.bf16 %v351_v30, %v351_v30 }
 0x1a5   : > { %368 = vst.msk [vmem:[%s199_s7 + $0x8] sm:$0xf] %vm365_vm14, %v363_v35 }
 0x1a6   : > { %366 = vst.msk [vmem:[%s199_s7] sm:$0xf] %vm365_vm14, %v361_v31 }
 0x1aa   : > { %v358_v33 = vpop.f32.mrf.mxu1 }
 0x1ab   : > { %v353_v32 = vpop.f32.mrf.mxu0  ;;  %v364_v36 = vpack.c.bf16 %v358_v33, %v358_v33 }
 0x1ac   : > { %v362_v34 = vpack.c.bf16 %v353_v32, %v353_v32 }
 0x1ad   : > { %369 = vst.msk [vmem:[%s199_s7 + $0xc] sm:$0xf] %vm365_vm14, %v364_v36 }
 0x1ae   : > { %367 = vst.msk [vmem:[%s199_s7 + $0x4] sm:$0xf] %vm365_vm14, %v362_v34 }
 0x1af PF: > { %s14_s15 = sadd.s32 1, %s478_s15  }
 0x1b0   : > { %p11_p4 = scmp.ge.s32.totalorder %s14_s15, 4  }
 0x1b2   :  { %13 = sbr.rel (!%p11_p4) target bundleno = 1 (0x1), region = 66 }

// kernel: _forward_core.19
= control target key start
LH: loop header
LB: loop body
LE: loop exit
PB: predicated region body
PF: predicated region fallthrough
CT: control target
= control target key end

     0   :  { %s1711_s18 = smov 0   ;;  %s1713_s19 = smov 0   ;;  %s2191_s0 = inlined_call_operand.vmem [shape: f32[464,16], index: 0, kind: input, shape index: {}]   ;;  %s2192_s1 = inlined_call_operand.vmem [shape: bf16[16,16], index: 1, kind: input, shape index: {}]   ;;  %s2193_s2 = inlined_call_operand.vmem [shape: f32[1,16], index: 2, kind: input, shape index: {}]   ;;  %s2194_s3 = inlined_call_operand.vmem [shape: bf16[16,16], index: 3, kind: input, shape index: {}]   ;;  %s2195_s4 = inlined_call_operand.vmem [shape: f32[1,16], index: 4, kind: input, shape index: {}]   ;;  %s2196_s5 = inlined_call_operand.vmem [shape: bf16[464,16], index: 5, kind: output, shape index: {}]  }
   0x1   :  { %s1715_s20 = smov 0  }
   0x2 LB: > { %s1724_s21 = sadd.s32 4294967295, %s1647_s20   ;;  %s1726_s22 = sadd.s32 1, %s1647_s20   ;;  %s1647_s20 = sphi %s1715_s20, %s2205_s20   ;;  %s1643_s19 = sphi %s1713_s19, %s2204_s19   ;;  %s1639_s18 = sphi %s1711_s18, %s2203_s18  }
   0x3   : > { %s129_s23 = ssub.s32 %s1647_s20, %s1726_s22  ;;  %s132_s24 = sadd.s32 1, %s1643_s19 }
   0x4   : > { %p130_p0 = scmp.eq.s32.totalorder %s129_s23, 0  ;;  %p142_p1 = scmp.ne.s32.totalorder %s1643_s19, %s1639_s18 }
   0x5   : > { %p143_p2 = scmp.eq.s32.totalorder %s1724_s21, 1  ;;  %p1288_p3 = scmp.ge.s32.totalorder %s1647_s20, 1 }
   0x6   : > { %s1734_s25 = scalar_select %p130_p0, %s1643_s19, %s132_s24  }
   0x7   : > { %p1736_p4 = por %p143_p2, %p142_p1  ;;  %p196_p5 = scmp.lt.s32.totalorder %s1647_s20, 3 }
   0x9   : > { %p197_p6 = pnand %p1288_p3, %p196_p5 }
   0xa   : > { %s1744_s29 = smul.u32 (!%p197_p6), 30, %s1724_s21  ;;  %s224_s14 = sand.u32 (!%p197_p6), 1, %s1639_s18  }
   0xb   : > { %200 = sbr.rel (%p197_p6) target bundleno = 518 (0x206), region = 40 }
   0xc   : > { %p232_p7 = scmp.lt.s32.totalorder (!%p197_p6), %s1744_s29, 57  ;;  %s1375_s17 = smul.u32 (!%p197_p6), 120, %s224_s14 }
   0xe   : > { %s1966_s20 = scalar_lea.vmem (!%p197_p6), [#allocation2], %s1375_s17  }
  0x10   : > { %v1370_v0 = vld [vmem:[%s2192_s1] sm:$0xff]  ;;  %s233_s30 = scalar_select %p232_p7, %s1744_s29, 57  ;;  %vm304_vm0 = vcmask 130048   ;;  %vm920_vm1 = vcmask 125952  }
  0x11   : > { %357 = vmatpush.bf16.msra.mxu0 %v1370_v0  ;;  %1373 = vmatpush.bf16.msra.mxu2 %v1370_v0  ;;  %v1801_v46 = vld [vmem:[%s2193_s2] ss:$0 sm:$0xff]  ;;  %s959_s18 = ssub.s32 (%p1736_p4), 58, %s1744_s29  ;;  %s1372_s23 = smul.u32 (%p1736_p4), 120, %s1724_s21 }
  0x12   : > { %s1289_s6 = sshll.u32 %s233_s30, 3  ;;  %v1371_v53 = vld [vmem:[%s2194_s3] sm:$0xff]  ;;  %p960_p8 = scmp.lt.s32.totalorder (%p1736_p4), %s959_s18, 30 }
  0x13   : > { %s1751_s9 = scalar_lea.vmem %s2191_s0, %s1289_s6  ;;  %813 = vmatpush.bf16.msra.mxu1 %v1371_v53  ;;  %1374 = vmatpush.bf16.msra.mxu3 %v1371_v53  ;;  %s2064_s28 = scalar_lea.vmem (%p1736_p4), %s2196_s5, %s1372_s23  }
  0x14   : > { %v247_v1 = vld [vmem:[%s1751_s9] sm:$0xff]  ;;  %v248_v2 = vld [vmem:[%s1751_s9 + $0x8] sm:$0xff]  ;;  %v249_v7 = vld [vmem:[%s1751_s9 + $0x10] sm:$0xff] }
  0x15   : > { %v263_v3 = vld [vmem:[%s1751_s9 + $0x80] sm:$0xff]  ;;  %v279_v4 = vpack.c.bf16 %v248_v2, %v247_v1  ;;  %v264_v5 = vld [vmem:[%s1751_s9 + $0x88] sm:$0xff]  ;;  %v250_v8 = vld [vmem:[%s1751_s9 + $0x18] sm:$0xff] }
  0x16   : > { %v287_v6 = vpack.c.bf16 %v264_v5, %v263_v3  ;;  %v265_v9 = vld [vmem:[%s1751_s9 + $0x90] sm:$0xff]  ;;  %v266_v10 = vld [vmem:[%s1751_s9 + $0x98] sm:$0xff]  ;;  %v280_v11 = vpack.c.bf16 %v250_v8, %v249_v7  ;;  %v251_v13 = vld [vmem:[%s1751_s9 + $0x20] sm:$0xff] }
  0x17   : > { %1294 = vmatmul.msk.bf16.vlgmr.msra.gmra.mxu0 %vm304_vm0, %v279_v4  ;;  %v288_v12 = vpack.c.bf16 %v266_v10, %v265_v9  ;;  %v252_v14 = vld [vmem:[%s1751_s9 + $0x28] sm:$0xff]  ;;  %v267_v15 = vld [vmem:[%s1751_s9 + $0xa0] sm:$0xff]  ;;  %v253_v19 = vld [vmem:[%s1751_s9 + $0x30] sm:$0xff] }
  0x18   : > { %1302 = vmatmul.msk.bf16.vlgmr.msra.gmra.mxu2 %vm304_vm0, %v287_v6  ;;  %v268_v16 = vld [vmem:[%s1751_s9 + $0xa8] sm:$0xff]  ;;  %v281_v17 = vpack.c.bf16 %v252_v14, %v251_v13  ;;  %v254_v20 = vld [vmem:[%s1751_s9 + $0x38] sm:$0xff]  ;;  %v269_v21 = vld [vmem:[%s1751_s9 + $0xb0] sm:$0xff] }
  0x19   : > { %v289_v18 = vpack.c.bf16 %v268_v16, %v267_v15  ;;  %v270_v22 = vld [vmem:[%s1751_s9 + $0xb8] sm:$0xff]  ;;  %v282_v23 = vpack.c.bf16 %v254_v20, %v253_v19  ;;  %v255_v25 = vld [vmem:[%s1751_s9 + $0x40] sm:$0xff]  ;;  %v256_v26 = vld [vmem:[%s1751_s9 + $0x48] sm:$0xff] }
  0x1a   : > { %v290_v24 = vpack.c.bf16 %v270_v22, %v269_v21  ;;  %v271_v27 = vld [vmem:[%s1751_s9 + $0xc0] sm:$0xff]  ;;  %v272_v28 = vld [vmem:[%s1751_s9 + $0xc8] sm:$0xff]  ;;  %v283_v29 = vpack.c.bf16 %v256_v26, %v255_v25  ;;  %v257_v31 = vld [vmem:[%s1751_s9 + $0x50] sm:$0xff] }
  0x1b   : > { %v291_v30 = vpack.c.bf16 %v272_v28, %v271_v27  ;;  %v258_v32 = vld [vmem:[%s1751_s9 + $0x58] sm:$0xff]  ;;  %v273_v33 = vld [vmem:[%s1751_s9 + $0xd0] sm:$0xff]  ;;  %v259_v37 = vld [vmem:[%s1751_s9 + $0x60] sm:$0xff] }
  0x1c   : > { %v274_v34 = vld [vmem:[%s1751_s9 + $0xd8] sm:$0xff]  ;;  %v284_v35 = vpack.c.bf16 %v258_v32, %v257_v31  ;;  %v260_v38 = vld [vmem:[%s1751_s9 + $0x68] sm:$0xff]  ;;  %v275_v39 = vld [vmem:[%s1751_s9 + $0xe0] sm:$0xff] }
  0x1d   : > { %v292_v36 = vpack.c.bf16 %v274_v34, %v273_v33  ;;  %v276_v40 = vld [vmem:[%s1751_s9 + $0xe8] sm:$0xff]  ;;  %v285_v41 = vpack.c.bf16 %v260_v38, %v259_v37  ;;  %v261_v43 = vld [vmem:[%s1751_s9 + $0x70] sm:$0xff]  ;;  %v262_v44 = vld [vmem:[%s1751_s9 + $0x78] sm:$0xff] }
  0x1e   : > { %v293_v42 = vpack.c.bf16 %v276_v40, %v275_v39  ;;  %v286_v45 = vpack.c.bf16 %v262_v44, %v261_v43 }
  0x27   : > { %1295 = vmatmul.msk.bf16.gmra.mxu0 %vm304_vm0, %v280_v11 }
  0x28   : > { %1303 = vmatmul.msk.bf16.gmra.mxu2 %vm304_vm0, %v288_v12 }
  0x37   : > { %1296 = vmatmul.msk.bf16.gmra.mxu0 %vm304_vm0, %v281_v17 }
  0x38   : > { %1304 = vmatmul.msk.bf16.gmra.mxu2 %vm304_vm0, %v289_v18 }
  0x47   : > { %1297 = vmatmul.msk.bf16.gmra.mxu0 %vm304_vm0, %v282_v23 }
  0x48   : > { %1305 = vmatmul.msk.bf16.gmra.mxu2 %vm304_vm0, %v290_v24 }
  0x57   : > { %1298 = vmatmul.msk.bf16.gmra.mxu0 %vm304_vm0, %v283_v29 }
  0x58   : > { %1306 = vmatmul.msk.bf16.gmra.mxu2 %vm304_vm0, %v291_v30 }
  0x67   : > { %1299 = vmatmul.msk.bf16.gmra.mxu0 %vm304_vm0, %v284_v35 }
  0x68   : > { %1307 = vmatmul.msk.bf16.gmra.mxu2 %vm304_vm0, %v292_v36 }
  0x77   : > { %1300 = vmatmul.msk.bf16.gmra.mxu0 %vm304_vm0, %v285_v41 }
  0x78   : > { %1308 = vmatmul.msk.bf16.gmra.mxu2 %vm304_vm0, %v293_v42 }
  0x87   : > { %1301 = vmatmul.msk.bf16.gmra.mxu0 %vm304_vm0, %v286_v45 }
  0x94   : > { %v359_v47 = vpop.f32.mrf.mxu0 }
  0x95   : > { %v360_v48 = vadd.f32 %v1801_v46, %v359_v47 }
  0x97   : > { %v464_v49 = vand.u32 2147483647, %v360_v48  ;;  %v434_v26 = vmax.f32 %v360_v48, 0.0 }
  0x99   : > { %v494_v50 = vsub.f32 0.0, %v464_v49 }
  0x9b   : > { %v524_v51 = vmul.f32 1.442695, %v494_v50  ;;  %v399_v52 = vpop.f32.mrf.mxu2 }
  0x9c   : > { %v1808_v54 = vadd.f32 %v1801_v46, %v399_v52  ;;  %v361_v55 = vpop.f32.mrf.mxu0 }
  0x9d   : > { %1467 = vpow2.f32 %v524_v51  ;;  %v362_v56 = vadd.f32 %v1801_v46, %v361_v55 }
  0x9e   : > { %v480_v57 = vand.u32 2147483647, %v1808_v54  ;;  %v450_v51 = vmax.f32 %v1808_v54, 0.0 }
  0x9f   : > { %v465_v58 = vand.u32 2147483647, %v362_v56  ;;  %v435_v37 = vmax.f32 %v362_v56, 0.0 }
  0xa0   : > { %v510_v59 = vsub.f32 0.0, %v480_v57 }
  0xa1   : > { %v495_v60 = vsub.f32 0.0, %v465_v58 }
  0xa2   : > { %v556_v61 = vmul.f32 1.442695, %v510_v59 }
  0xa3   : > { %v1468_v62 = vpop.eup %1467  ;;  %v526_v63 = vmul.f32 1.442695, %v495_v60  ;;  %v401_v0 = vpop.f32.mrf.mxu2 }
  0xa4   : > { %v584_v1 = vadd.f32 1.0, %v1468_v62  ;;  %1469 = vpow2.f32 %v556_v61  ;;  %v1813_v2 = vadd.f32 %v1801_v46, %v401_v0  ;;  %v364_v3 = vpop.f32.mrf.mxu0 }
  0xa5   : > { %1471 = vpow2.f32 %v526_v63  ;;  %v1816_v4 = vadd.f32 %v1801_v46, %v364_v3 }
  0xa6   : > { %v481_v5 = vand.u32 2147483647, %v1813_v2  ;;  %1473 = vlog2.f32 %v584_v1  ;;  %v451_v53 = vmax.f32 %v1813_v2, 0.0 }
  0xa7   : > { %v466_v6 = vand.u32 2147483647, %v1816_v4 }
  0xa8   : > { %v511_v7 = vsub.f32 0.0, %v481_v5 }
  0xa9   : > { %v496_v8 = vsub.f32 0.0, %v466_v6 }
  0xaa   : > { %v1470_v9 = vpop.eup %1469  ;;  %v558_v10 = vmul.f32 1.442695, %v511_v7 }
  0xab   : > { %v1472_v11 = vpop.eup %1471  ;;  %v600_v12 = vadd.f32 1.0, %v1470_v9  ;;  %v528_v13 = vmul.f32 1.442695, %v496_v8  ;;  %v404_v14 = vpop.f32.mrf.mxu2 }
  0xac   : > { %v585_v15 = vadd.f32 1.0, %v1472_v11  ;;  %1475 = vpow2.f32 %v558_v10  ;;  %v1821_v16 = vadd.f32 %v1801_v46, %v404_v14  ;;  %v366_v17 = vpop.f32.mrf.mxu0  ;;  %v1474_v18 = vpop.eup %1473 }
  0xad   : > { %1477 = vlog2.f32 %v600_v12  ;;  %v1824_v19 = vadd.f32 %v1801_v46, %v366_v17  ;;  %v615_v22 = vmul.f32 0.6931472, %v1474_v18  ;;  %v436_v18 = vmax.f32 %v1816_v4, 0.0 }
  0xae   : > { %1479 = vlog2.f32 %v585_v15  ;;  %v482_v20 = vand.u32 2147483647, %v1821_v16 }
  0xaf   : > { %1481 = vpow2.f32 %v528_v13  ;;  %v467_v21 = vand.u32 2147483647, %v1824_v19  ;;  %v674_v33 = vadd.f32 %v615_v22, %v434_v26 }
  0xb0   : > { %v512_v23 = vsub.f32 0.0, %v482_v20 }
  0xb1   : > { %v497_v24 = vsub.f32 0.0, %v467_v21  ;;  %v1309_v44 = vadd.f32 -0.6931472, %v674_v33 }
  0xb2   : > { %v1476_v25 = vpop.eup %1475  ;;  %v560_v27 = vmul.f32 1.442695, %v512_v23 }
  0xb3   : > { %v1478_v28 = vpop.eup %1477  ;;  %v601_v29 = vadd.f32 1.0, %v1476_v25  ;;  %v530_v30 = vmul.f32 1.442695, %v497_v24  ;;  %v406_v31 = vpop.f32.mrf.mxu2 }
  0xb4   : > { %v1480_v32 = vpop.eup %1479  ;;  %1483 = vpow2.f32 %v560_v27  ;;  %v1829_v34 = vadd.f32 %v1801_v46, %v406_v31  ;;  %v369_v35 = vpop.f32.mrf.mxu0  ;;  %v647_v45 = vmul.f32 0.6931472, %v1478_v28  ;;  %v437_v27 = vmax.f32 %v1824_v19, 0.0 }
  0xb5   : > { %v1482_v36 = vpop.eup %1481  ;;  %v617_v38 = vmul.f32 0.6931472, %v1480_v32  ;;  %1485 = vlog2.f32 %v601_v29  ;;  %v1832_v39 = vadd.f32 %v1801_v46, %v369_v35 }
  0xb6   : > { %v586_v40 = vadd.f32 1.0, %v1482_v36  ;;  %1487 = vpow2.f32 %v530_v30  ;;  %v483_v42 = vand.u32 2147483647, %v1829_v34  ;;  %v690_v59 = vadd.f32 %v647_v45, %v450_v51 }
  0xb7   : > { %v675_v41 = vadd.f32 %v617_v38, %v435_v37  ;;  %v468_v43 = vand.u32 2147483647, %v1832_v39  ;;  %v452_v51 = vmax.f32 %v1821_v16, 0.0 }
  0xb8   : > { %1489 = vlog2.f32 %v586_v40  ;;  %v513_v48 = vsub.f32 0.0, %v483_v42  ;;  %v1325_v7 = vadd.f32 -0.6931472, %v690_v59 }
  0xb9   : > { %v1310_v47 = vadd.f32 -0.6931472, %v675_v41  ;;  %v498_v49 = vsub.f32 0.0, %v468_v43 }
  0xba   : > { %v1484_v50 = vpop.eup %1483  ;;  %v562_v55 = vmul.f32 1.442695, %v513_v48 }
  0xbb   : > { %v1486_v52 = vpop.eup %1485  ;;  %v409_v56 = vpop.f32.mrf.mxu2  ;;  %v736_v57 = vpack.c.bf16 %v1310_v47, %v1309_v44  ;;  %v532_v61 = vmul.f32 1.442695, %v498_v49  ;;  %v602_v3 = vadd.f32 1.0, %v1484_v50 }
  0xbc   : > { %v1488_v58 = vpop.eup %1487  ;;  %v649_v60 = vmul.f32 0.6931472, %v1486_v52  ;;  %v1839_v62 = vadd.f32 %v1801_v46, %v409_v56  ;;  %v371_v63 = vpop.f32.mrf.mxu0  ;;  %1491 = vpow2.f32 %v562_v55 }
  0xbd   : > { %v587_v0 = vadd.f32 1.0, %v1488_v58  ;;  %v1842_v1 = vadd.f32 %v1801_v46, %v371_v63  ;;  %1343 = vmatmul.msk.bf16.vlgmr.msra.gmra.mxu1 %vm304_vm0, %v736_v57 }
  0xbe   : > { %v691_v54 = vadd.f32 %v649_v60, %v451_v53  ;;  %v484_v2 = vand.u32 2147483647, %v1839_v62  ;;  %v1490_v5 = vpop.eup %1489  ;;  %v453_v53 = vmax.f32 %v1829_v34, 0.0 }
  0xbf   : > { %1493 = vlog2.f32 %v587_v0  ;;  %v469_v6 = vand.u32 2147483647, %v1842_v1  ;;  %v619_v11 = vmul.f32 0.6931472, %v1490_v5 }
  0xc0   : > { %v1326_v8 = vadd.f32 -0.6931472, %v691_v54  ;;  %1495 = vpow2.f32 %v532_v61  ;;  %v514_v9 = vsub.f32 0.0, %v484_v2 }
  0xc1   : > { %v499_v10 = vsub.f32 0.0, %v469_v6  ;;  %1497 = vlog2.f32 %v602_v3  ;;  %v676_v26 = vadd.f32 %v619_v11, %v436_v18  ;;  %v438_v3 = vmax.f32 %v1832_v39, 0.0 }
  0xc2   : > { %v564_v12 = vmul.f32 1.442695, %v514_v9  ;;  %v744_v13 = vpack.c.bf16 %v1326_v8, %v1325_v7  ;;  %v1492_v17 = vpop.eup %1491  ;;  %v439_v11 = vmax.f32 %v1842_v1, 0.0 }
  0xc3   : > { %v534_v14 = vmul.f32 1.442695, %v499_v10  ;;  %v411_v15 = vpop.f32.mrf.mxu2  ;;  %v603_v23 = vadd.f32 1.0, %v1492_v17  ;;  %v1311_v37 = vadd.f32 -0.6931472, %v676_v26 }
  0xc4   : > { %1499 = vpow2.f32 %v564_v12  ;;  %v1849_v20 = vadd.f32 %v1801_v46, %v411_v15  ;;  %1351 = vmatmul.msk.bf16.vlgmr.msra.gmra.mxu3 %vm304_vm0, %v744_v13  ;;  %v374_v21 = vpop.f32.mrf.mxu0 }
  0xc5   : > { %v1494_v22 = vpop.eup %1493  ;;  %1501 = vpow2.f32 %v534_v14  ;;  %v1853_v24 = vadd.f32 %v1801_v46, %v374_v21 }
  0xc6   : > { %v1496_v25 = vpop.eup %1495  ;;  %v621_v28 = vmul.f32 0.6931472, %v1494_v22  ;;  %v485_v4 = vand.u32 2147483647, %v1849_v20  ;;  %1503 = vlog2.f32 %v603_v23 }
  0xc7   : > { %v588_v29 = vadd.f32 1.0, %v1496_v25  ;;  %v470_v30 = vand.u32 2147483647, %v1853_v24  ;;  %v1498_v31 = vpop.eup %1497 }
  0xc8   : > { %v677_v32 = vadd.f32 %v621_v28, %v437_v27  ;;  %v515_v33 = vsub.f32 0.0, %v485_v4  ;;  %v651_v42 = vmul.f32 0.6931472, %v1498_v31 }
  0xc9   : > { %1505 = vlog2.f32 %v588_v29  ;;  %v500_v35 = vsub.f32 0.0, %v470_v30  ;;  %v454_v30 = vmax.f32 %v1839_v62, 0.0 }
  0xca   : > { %v1500_v36 = vpop.eup %1499  ;;  %v1312_v38 = vadd.f32 -0.6931472, %v677_v32  ;;  %v566_v40 = vmul.f32 1.442695, %v515_v33  ;;  %v692_v58 = vadd.f32 %v651_v42, %v452_v51 }
  0xcb   : > { %v1502_v41 = vpop.eup %1501  ;;  %v604_v43 = vadd.f32 1.0, %v1500_v36  ;;  %v536_v19 = vmul.f32 1.442695, %v500_v35  ;;  %v414_v44 = vpop.f32.mrf.mxu2  ;;  %v455_v36 = vmax.f32 %v1849_v20, 0.0 }
  0xcc   : > { %v589_v45 = vadd.f32 1.0, %v1502_v41  ;;  %1507 = vpow2.f32 %v566_v40  ;;  %v1859_v47 = vadd.f32 %v1801_v46, %v414_v44  ;;  %v376_v48 = vpop.f32.mrf.mxu0  ;;  %v737_v49 = vpack.c.bf16 %v1312_v38, %v1311_v37  ;;  %v1504_v50 = vpop.eup %1503 }
  0xcd   : > { %1509 = vlog2.f32 %v604_v43  ;;  %v1863_v52 = vadd.f32 %v1801_v46, %v376_v48  ;;  %v653_v55 = vmul.f32 0.6931472, %v1504_v50  ;;  %v1327_v5 = vadd.f32 -0.6931472, %v692_v58 }
  0xce   : > { %1511 = vlog2.f32 %v589_v45  ;;  %v486_v56 = vand.u32 2147483647, %v1859_v47  ;;  %1344 = vmatmul.msk.bf16.gmra.mxu1 %vm304_vm0, %v737_v49 }
  0xcf   : > { %v1506_v57 = vpop.eup %1505  ;;  %1513 = vpow2.f32 %v536_v19  ;;  %v471_v59 = vand.u32 2147483647, %v1863_v52  ;;  %v693_v60 = vadd.f32 %v653_v55, %v453_v53 }
  0xd0   : > { %v623_v61 = vmul.f32 0.6931472, %v1506_v57  ;;  %v516_v16 = vsub.f32 0.0, %v486_v56 }
  0xd1   : > { %v501_v63 = vsub.f32 0.0, %v471_v59  ;;  %v1328_v54 = vadd.f32 -0.6931472, %v693_v60 }
  0xd2   : > { %v1508_v0 = vpop.eup %1507  ;;  %v568_v34 = vmul.f32 1.442695, %v516_v16  ;;  %v678_v10 = vadd.f32 %v623_v61, %v438_v3  ;;  %v440_v61 = vmax.f32 %v1853_v24, 0.0 }
  0xd3   : > { %v1510_v2 = vpop.eup %1509  ;;  %v605_v6 = vadd.f32 1.0, %v1508_v0  ;;  %v538_v7 = vmul.f32 1.442695, %v501_v63  ;;  %v416_v8 = vpop.f32.mrf.mxu2  ;;  %v745_v17 = vpack.c.bf16 %v1328_v54, %v1327_v5  ;;  %v441_v5 = vmax.f32 %v1863_v52, 0.0 }
  0xd4   : > { %v1512_v9 = vpop.eup %1511  ;;  %1515 = vpow2.f32 %v568_v34  ;;  %v1872_v12 = vadd.f32 %v1801_v46, %v416_v8  ;;  %v379_v13 = vpop.f32.mrf.mxu0  ;;  %v1313_v23 = vadd.f32 -0.6931472, %v678_v10  ;;  %v655_v25 = vmul.f32 0.6931472, %v1510_v2 }
  0xd5   : > { %v1514_v14 = vpop.eup %1513  ;;  %v625_v15 = vmul.f32 0.6931472, %v1512_v9  ;;  %1517 = vlog2.f32 %v605_v6  ;;  %v1875_v39 = vadd.f32 %v1801_v46, %v379_v13  ;;  %1352 = vmatmul.msk.bf16.gmra.mxu3 %vm304_vm0, %v745_v17 }
  0xd6   : > { %v590_v18 = vadd.f32 1.0, %v1514_v14  ;;  %1519 = vpow2.f32 %v538_v7  ;;  %v487_v22 = vand.u32 2147483647, %v1872_v12  ;;  %v694_v42 = vadd.f32 %v655_v25, %v454_v30 }
  0xd7   : > { %v679_v21 = vadd.f32 %v625_v15, %v439_v11  ;;  %v472_v1 = vand.u32 2147483647, %v1875_v39 }
  0xd8   : > { %1521 = vlog2.f32 %v590_v18  ;;  %v517_v27 = vsub.f32 0.0, %v487_v22  ;;  %v1329_v51 = vadd.f32 -0.6931472, %v694_v42 }
  0xd9   : > { %v1314_v26 = vadd.f32 -0.6931472, %v679_v21  ;;  %v502_v28 = vsub.f32 0.0, %v472_v1 }
  0xda   : > { %v1516_v4 = vpop.eup %1515  ;;  %v570_v31 = vmul.f32 1.442695, %v517_v27 }
  0xdb   : > { %v1518_v29 = vpop.eup %1517  ;;  %v419_v32 = vpop.f32.mrf.mxu2  ;;  %v738_v33 = vpack.c.bf16 %v1314_v26, %v1313_v23  ;;  %v540_v38 = vmul.f32 1.442695, %v502_v28  ;;  %v606_v45 = vadd.f32 1.0, %v1516_v4 }
  0xdc   : > { %v1520_v35 = vpop.eup %1519  ;;  %v657_v37 = vmul.f32 0.6931472, %v1518_v29  ;;  %v1883_v40 = vadd.f32 %v1801_v46, %v419_v32  ;;  %v381_v41 = vpop.f32.mrf.mxu0  ;;  %1523 = vpow2.f32 %v570_v31  ;;  %v456_v29 = vmax.f32 %v1859_v47, 0.0 }
  0xdd   : > { %v591_v43 = vadd.f32 1.0, %v1520_v35  ;;  %v1886_v19 = vadd.f32 %v1801_v46, %v381_v41  ;;  %v457_v31 = vmax.f32 %v1872_v12, 0.0  ;;  %v442_v12 = vmax.f32 %v1875_v39, 0.0 }
  0xde   : > { %v695_v44 = vadd.f32 %v657_v37, %v455_v36  ;;  %v488_v62 = vand.u32 2147483647, %v1883_v40  ;;  %1345 = vmatmul.msk.bf16.gmra.mxu1 %vm304_vm0, %v738_v33  ;;  %v1522_v48 = vpop.eup %1521 }
  0xdf   : > { %1525 = vlog2.f32 %v591_v43  ;;  %v473_v20 = vand.u32 2147483647, %v1886_v19  ;;  %v627_v55 = vmul.f32 0.6931472, %v1522_v48 }
  0xe0   : > { %v1330_v49 = vadd.f32 -0.6931472, %v695_v44  ;;  %1527 = vpow2.f32 %v540_v38  ;;  %v518_v50 = vsub.f32 0.0, %v488_v62 }
  0xe1   : > { %v503_v53 = vsub.f32 0.0, %v473_v20  ;;  %1529 = vlog2.f32 %v606_v45  ;;  %v680_v2 = vadd.f32 %v627_v55, %v440_v61 }
  0xe2   : > { %v572_v56 = vmul.f32 1.442695, %v518_v50  ;;  %v746_v59 = vpack.c.bf16 %v1330_v49, %v1329_v51  ;;  %v1524_v60 = vpop.eup %1523 }
  0xe3   : > { %v542_v57 = vmul.f32 1.442695, %v503_v53  ;;  %v421_v58 = vpop.f32.mrf.mxu2  ;;  %v607_v54 = vadd.f32 1.0, %v1524_v60  ;;  %v1315_v15 = vadd.f32 -0.6931472, %v680_v2  ;;  %v443_v53 = vmax.f32 %v1886_v19, 0.0 }
  0xe4   : > { %1531 = vpow2.f32 %v572_v56  ;;  %v1893_v16 = vadd.f32 %v1801_v46, %v421_v58  ;;  %v384_v63 = vpop.f32.mrf.mxu0 }
  0xe5   : > { %v1526_v0 = vpop.eup %1525  ;;  %1533 = vpow2.f32 %v542_v57  ;;  %v1896_v3 = vadd.f32 %v1801_v46, %v384_v63  ;;  %1353 = vmatmul.msk.bf16.gmra.mxu3 %vm304_vm0, %v746_v59 }
  0xe6   : > { %v1528_v34 = vpop.eup %1527  ;;  %v629_v6 = vmul.f32 0.6931472, %v1526_v0  ;;  %v489_v7 = vand.u32 2147483647, %v1893_v16  ;;  %1535 = vlog2.f32 %v607_v54 }
  0xe7   : > { %v592_v24 = vadd.f32 1.0, %v1528_v34  ;;  %v474_v8 = vand.u32 2147483647, %v1896_v3  ;;  %v1530_v9 = vpop.eup %1529 }
  0xe8   : > { %v681_v10 = vadd.f32 %v629_v6, %v441_v5  ;;  %v519_v11 = vsub.f32 0.0, %v489_v7  ;;  %v659_v52 = vmul.f32 0.6931472, %v1530_v9 }
  0xe9   : > { %1537 = vlog2.f32 %v592_v24  ;;  %v504_v13 = vsub.f32 0.0, %v474_v8  ;;  %v458_v8 = vmax.f32 %v1883_v40, 0.0 }
  0xea   : > { %v1532_v14 = vpop.eup %1531  ;;  %v1316_v17 = vadd.f32 -0.6931472, %v681_v10  ;;  %v574_v18 = vmul.f32 1.442695, %v519_v11  ;;  %v696_v36 = vadd.f32 %v659_v52, %v456_v29 }
  0xeb   : > { %v1534_v21 = vpop.eup %1533  ;;  %v608_v22 = vadd.f32 1.0, %v1532_v14  ;;  %v544_v1 = vmul.f32 1.442695, %v504_v13  ;;  %v424_v23 = vpop.f32.mrf.mxu2  ;;  %v459_v14 = vmax.f32 %v1893_v16, 0.0 }
  0xec   : > { %v593_v25 = vadd.f32 1.0, %v1534_v21  ;;  %1539 = vpow2.f32 %v574_v18  ;;  %v1903_v26 = vadd.f32 %v1801_v46, %v424_v23  ;;  %v386_v27 = vpop.f32.mrf.mxu0  ;;  %v739_v28 = vpack.c.bf16 %v1316_v17, %v1315_v15  ;;  %v1536_v4 = vpop.eup %1535 }
  0xed   : > { %v1907_v30 = vadd.f32 %v1801_v46, %v386_v27  ;;  %v661_v32 = vmul.f32 0.6931472, %v1536_v4  ;;  %v1331_v62 = vadd.f32 -0.6931472, %v696_v36 }
  0xee   : > { %1541 = vlog2.f32 %v593_v25  ;;  %v490_v33 = vand.u32 2147483647, %v1903_v26  ;;  %1346 = vmatmul.msk.bf16.gmra.mxu1 %vm304_vm0, %v739_v28 }
  0xef   : > { %v1538_v35 = vpop.eup %1537  ;;  %1543 = vpow2.f32 %v544_v1  ;;  %v475_v37 = vand.u32 2147483647, %v1907_v30  ;;  %v697_v38 = vadd.f32 %v661_v32, %v457_v31 }
  0xf0   : > { %v631_v41 = vmul.f32 0.6931472, %v1538_v35  ;;  %1545 = vlog2.f32 %v608_v22  ;;  %v520_v47 = vsub.f32 0.0, %v490_v33  ;;  %v444_v35 = vmax.f32 %v1896_v3, 0.0 }
  0xf1   : > { %v505_v42 = vsub.f32 0.0, %v475_v37  ;;  %v1332_v44 = vadd.f32 -0.6931472, %v697_v38 }
  0xf2   : > { %v1540_v43 = vpop.eup %1539  ;;  %v576_v45 = vmul.f32 1.442695, %v520_v47  ;;  %v682_v51 = vadd.f32 %v631_v41, %v442_v12 }
  0xf3   : > { %v609_v48 = vadd.f32 1.0, %v1540_v43  ;;  %v546_v20 = vmul.f32 1.442695, %v505_v42  ;;  %v426_v49 = vpop.f32.mrf.mxu2  ;;  %v747_v59 = vpack.c.bf16 %v1332_v44, %v1331_v62 }
  0xf4   : > { %v1542_v50 = vpop.eup %1541  ;;  %1547 = vpow2.f32 %v576_v45  ;;  %v1916_v55 = vadd.f32 %v1801_v46, %v426_v49  ;;  %v389_v56 = vpop.f32.mrf.mxu0  ;;  %v1317_v54 = vadd.f32 -0.6931472, %v682_v51 }
  0xf5   : > { %v1544_v57 = vpop.eup %1543  ;;  %v633_v58 = vmul.f32 0.6931472, %v1542_v50  ;;  %1549 = vlog2.f32 %v609_v48  ;;  %v1919_v39 = vadd.f32 %v1801_v46, %v389_v56  ;;  %1354 = vmatmul.msk.bf16.gmra.mxu3 %vm304_vm0, %v747_v59  ;;  %v445_v48 = vmax.f32 %v1907_v30, 0.0 }
  0xf6   : > { %v1546_v60 = vpop.eup %1545  ;;  %v594_v61 = vadd.f32 1.0, %v1544_v57  ;;  %1551 = vpow2.f32 %v546_v20  ;;  %v491_v0 = vand.u32 2147483647, %v1916_v55 }
  0xf7   : > { %v683_v63 = vadd.f32 %v633_v58, %v443_v53  ;;  %v476_v19 = vand.u32 2147483647, %v1919_v39  ;;  %v663_v34 = vmul.f32 0.6931472, %v1546_v60 }
  0xf8   : > { %1553 = vlog2.f32 %v594_v61  ;;  %v521_v5 = vsub.f32 0.0, %v491_v0  ;;  %v460_v0 = vmax.f32 %v1903_v26, 0.0 }
  0xf9   : > { %v1318_v2 = vadd.f32 -0.6931472, %v683_v63  ;;  %v506_v6 = vsub.f32 0.0, %v476_v19  ;;  %v698_v52 = vadd.f32 %v663_v34, %v458_v8  ;;  %v461_v8 = vmax.f32 %v1916_v55, 0.0 }
  0xfa   : > { %v1548_v7 = vpop.eup %1547  ;;  %v578_v9 = vmul.f32 1.442695, %v521_v5 }
  0xfb   : > { %v1550_v24 = vpop.eup %1549  ;;  %v429_v10 = vpop.f32.mrf.mxu2  ;;  %v740_v11 = vpack.c.bf16 %v1318_v2, %v1317_v54  ;;  %v548_v17 = vmul.f32 1.442695, %v506_v6  ;;  %v610_v22 = vadd.f32 1.0, %v1548_v7  ;;  %v1333_v29 = vadd.f32 -0.6931472, %v698_v52 }
  0xfc   : > { %v1552_v13 = vpop.eup %1551  ;;  %v665_v15 = vmul.f32 0.6931472, %v1550_v24  ;;  %v1927_v18 = vadd.f32 %v1801_v46, %v429_v10  ;;  %v391_v21 = vpop.f32.mrf.mxu0  ;;  %1555 = vpow2.f32 %v578_v9  ;;  %v446_v52 = vmax.f32 %v1919_v39, 0.0 }
  0xfd   : > { %v595_v1 = vadd.f32 1.0, %v1552_v13  ;;  %v1930_v23 = vadd.f32 %v1801_v46, %v391_v21 }
  0xfe   : > { %v1554_v25 = vpop.eup %1553  ;;  %v699_v40 = vadd.f32 %v665_v15, %v459_v14  ;;  %v492_v27 = vand.u32 2147483647, %v1927_v18  ;;  %1347 = vmatmul.msk.bf16.gmra.mxu1 %vm304_vm0, %v740_v11 }
  0xff   : > { %1557 = vlog2.f32 %v595_v1  ;;  %v477_v16 = vand.u32 2147483647, %v1930_v23  ;;  %v635_v31 = vmul.f32 0.6931472, %v1554_v25 }
 0x100   : > { %v1334_v28 = vadd.f32 -0.6931472, %v699_v40  ;;  %1559 = vpow2.f32 %v548_v17  ;;  %v522_v4 = vsub.f32 0.0, %v492_v27  ;;  %v447_v27 = vmax.f32 %v1930_v23, 0.0 }
 0x101   : > { %1561 = vlog2.f32 %v610_v22  ;;  %v507_v32 = vsub.f32 0.0, %v477_v16  ;;  %v684_v44 = vadd.f32 %v635_v31, %v444_v35  ;;  %v462_v35 = vmax.f32 %v1927_v18, 0.0 }
 0x102   : > { %v580_v33 = vmul.f32 1.442695, %v522_v4  ;;  %v748_v38 = vpack.c.bf16 %v1334_v28, %v1333_v29  ;;  %v1556_v41 = vpop.eup %1555 }
 0x103   : > { %v550_v36 = vmul.f32 1.442695, %v507_v32  ;;  %v431_v37 = vpop.f32.mrf.mxu2  ;;  %v611_v12 = vadd.f32 1.0, %v1556_v41  ;;  %v1319_v57 = vadd.f32 -0.6931472, %v684_v44 }
 0x104   : > { %1563 = vpow2.f32 %v580_v33  ;;  %v1937_v47 = vadd.f32 %v1801_v46, %v431_v37  ;;  %v394_v42 = vpop.f32.mrf.mxu0 }
 0x105   : > { %v1558_v43 = vpop.eup %1557  ;;  %1565 = vpow2.f32 %v550_v36  ;;  %v1940_v45 = vadd.f32 %v1801_v46, %v394_v42  ;;  %1355 = vmatmul.msk.bf16.gmra.mxu3 %vm304_vm0, %v748_v38 }
 0x106   : > { %v1560_v62 = vpop.eup %1559  ;;  %v637_v3 = vmul.f32 0.6931472, %v1558_v43  ;;  %v493_v20 = vand.u32 2147483647, %v1937_v47  ;;  %1567 = vlog2.f32 %v611_v12  ;;  %v463_v38 = vmax.f32 %v1937_v47, 0.0 }
 0x107   : > { %v1562_v49 = vpop.eup %1561  ;;  %v596_v50 = vadd.f32 1.0, %v1560_v62  ;;  %v478_v51 = vand.u32 2147483647, %v1940_v45 }
 0x108   : > { %v685_v53 = vadd.f32 %v637_v3, %v445_v48  ;;  %v523_v56 = vsub.f32 0.0, %v493_v20  ;;  %v667_v60 = vmul.f32 0.6931472, %v1562_v49  ;;  %v448_v20 = vmax.f32 %v1940_v45, 0.0 }
 0x109   : > { %1569 = vlog2.f32 %v596_v50  ;;  %v508_v58 = vsub.f32 0.0, %v478_v51 }
 0x10a   : > { %v1564_v59 = vpop.eup %1563  ;;  %v1320_v61 = vadd.f32 -0.6931472, %v685_v53  ;;  %v582_v63 = vmul.f32 1.442695, %v523_v56  ;;  %v700_v24 = vadd.f32 %v667_v60, %v460_v0 }
 0x10b   : > { %v1566_v30 = vpop.eup %1565  ;;  %v552_v19 = vmul.f32 1.442695, %v508_v58  ;;  %v612_v54 = vadd.f32 1.0, %v1564_v59  ;;  %v1963_v58 = vld [vmem:[%s2195_s4] ss:$0 sm:$0xff] }
 0x10c   : > { %v597_v34 = vadd.f32 1.0, %v1566_v30  ;;  %1571 = vpow2.f32 %v582_v63  ;;  %v396_v2 = vpop.f32.mrf.mxu0  ;;  %v741_v5 = vpack.c.bf16 %v1320_v61, %v1319_v57  ;;  %v1568_v6 = vpop.eup %1567  ;;  %v1335_v17 = vadd.f32 -0.6931472, %v700_v24 }
 0x10d   : > { %v397_v7 = vadd.f32 %v1801_v46, %v396_v2  ;;  %v669_v9 = vmul.f32 0.6931472, %v1568_v6 }
 0x10e   : > { %1573 = vlog2.f32 %v597_v34  ;;  %1348 = vmatmul.msk.bf16.gmra.mxu1 %vm304_vm0, %v741_v5 }
 0x10f   : > { %v1570_v10 = vpop.eup %1569  ;;  %1575 = vpow2.f32 %v552_v19  ;;  %v479_v11 = vand.u32 2147483647, %v397_v7  ;;  %v701_v26 = vadd.f32 %v669_v9, %v461_v8  ;;  %v449_v50 = vmax.f32 %v397_v7, 0.0 }
 0x110   : > { %1577 = vlog2.f32 %v612_v54  ;;  %v639_v13 = vmul.f32 0.6931472, %v1570_v10 }
 0x111   : > { %v509_v14 = vsub.f32 0.0, %v479_v11  ;;  %v1336_v21 = vadd.f32 -0.6931472, %v701_v26 }
 0x112   : > { %v1572_v15 = vpop.eup %1571  ;;  %v686_v40 = vadd.f32 %v639_v13, %v446_v52 }
 0x113   : > { %v613_v46 = vadd.f32 1.0, %v1572_v15  ;;  %v554_v22 = vmul.f32 1.442695, %v509_v14  ;;  %v749_v55 = vpack.c.bf16 %v1336_v21, %v1335_v17 }
 0x114   : > { %v1574_v1 = vpop.eup %1573  ;;  %v1321_v31 = vadd.f32 -0.6931472, %v686_v40 }
 0x115   : > { %v1576_v25 = vpop.eup %1575  ;;  %v641_v16 = vmul.f32 0.6931472, %v1574_v1  ;;  %1579 = vlog2.f32 %v613_v46  ;;  %1356 = vmatmul.msk.bf16.gmra.mxu3 %vm304_vm0, %v749_v55 }
 0x116   : > { %v1578_v28 = vpop.eup %1577  ;;  %v598_v4 = vadd.f32 1.0, %v1576_v25  ;;  %1581 = vpow2.f32 %v554_v22 }
 0x117   : > { %v687_v29 = vadd.f32 %v641_v16, %v447_v27  ;;  %v671_v32 = vmul.f32 0.6931472, %v1578_v28 }
 0x118   : > { %1583 = vlog2.f32 %v598_v4 }
 0x119   : > { %v1322_v33 = vadd.f32 -0.6931472, %v687_v29  ;;  %v702_v41 = vadd.f32 %v671_v32, %v462_v35 }
 0x11b   : > { %v1580_v39 = vpop.eup %1579  ;;  %v742_v36 = vpack.c.bf16 %v1322_v33, %v1321_v31  ;;  %v1337_v62 = vadd.f32 -0.6931472, %v702_v41 }
 0x11c   : > { %v1582_v37 = vpop.eup %1581  ;;  %v673_v23 = vmul.f32 0.6931472, %v1580_v39 }
 0x11d   : > { %v599_v42 = vadd.f32 1.0, %v1582_v37 }
 0x11e   : > { %v703_v43 = vadd.f32 %v673_v23, %v463_v38  ;;  %1349 = vmatmul.msk.bf16.gmra.mxu1 %vm304_vm0, %v742_v36  ;;  %v1584_v44 = vpop.eup %1583 }
 0x11f   : > { %1585 = vlog2.f32 %v599_v42  ;;  %v643_v48 = vmul.f32 0.6931472, %v1584_v44 }
 0x120   : > { %v1338_v12 = vadd.f32 -0.6931472, %v703_v43 }
 0x121   : > { %v688_v49 = vadd.f32 %v643_v48, %v448_v20 }
 0x122   : > { %v750_v3 = vpack.c.bf16 %v1338_v12, %v1337_v62 }
 0x123   : > { %v1323_v53 = vadd.f32 -0.6931472, %v688_v49 }
 0x125   : > { %v1586_v18 = vpop.eup %1585  ;;  %1357 = vmatmul.msk.bf16.gmra.mxu3 %vm304_vm0, %v750_v3 }
 0x126   : > { %v645_v51 = vmul.f32 0.6931472, %v1586_v18 }
 0x128   : > { %v689_v47 = vadd.f32 %v645_v51, %v449_v50 }
 0x12a   : > { %v1324_v56 = vadd.f32 -0.6931472, %v689_v47 }
 0x12c   : > { %v743_v57 = vpack.c.bf16 %v1324_v56, %v1323_v53 }
 0x12e   : > { %1350 = vmatmul.msk.bf16.gmra.mxu1 %vm304_vm0, %v743_v57 }
 0x13a   : > { %v815_v45 = vpop.f32.mrf.mxu1 }
 0x13b   : > { %v816_v59 = vadd.f32 %v1963_v58, %v815_v45 }
 0x13d   : > { %v890_v60 = vpack.c.bf16 %v816_v59, %v816_v59 }
 0x13f   : > { %921 = vst.msk [vmem:[%s1966_s20] sm:$0xf] %vm920_vm1, %v890_v60 }
 0x142   : > { %v817_v61 = vpop.f32.mrf.mxu1 }
 0x143   : > { %v818_v63 = vadd.f32 %v1963_v58, %v817_v61 }
 0x145   : > { %v891_v30 = vpack.c.bf16 %v818_v63, %v818_v63 }
 0x147   : > { %922 = vst.msk [vmem:[%s1966_s20 + $0x4] sm:$0xf] %vm920_vm1, %v891_v30  ;;  %v855_v0 = vpop.f32.mrf.mxu3 }
 0x148   : > { %v856_v19 = vadd.f32 %v1963_v58, %v855_v0 }
 0x14a   : > { %v906_v54 = vpack.c.bf16 %v856_v19, %v856_v19 }
 0x14b   : > { %v820_v34 = vpop.f32.mrf.mxu1 }
 0x14c   : > { %937 = vst.msk [vmem:[%s1966_s20 + $0x40] sm:$0xf] %vm920_vm1, %v906_v54  ;;  %v821_v2 = vadd.f32 %v1963_v58, %v820_v34 }
 0x14e   : > { %v892_v5 = vpack.c.bf16 %v821_v2, %v821_v2 }
 0x14f   : > { %v857_v6 = vpop.f32.mrf.mxu3 }
 0x150   : > { %923 = vst.msk [vmem:[%s1966_s20 + $0x8] sm:$0xf] %vm920_vm1, %v892_v5  ;;  %v858_v7 = vadd.f32 %v1963_v58, %v857_v6 }
 0x152   : > { %v907_v24 = vpack.c.bf16 %v858_v7, %v858_v7 }
 0x153   : > { %v822_v8 = vpop.f32.mrf.mxu1 }
 0x154   : > { %938 = vst.msk [vmem:[%s1966_s20 + $0x44] sm:$0xf] %vm920_vm1, %v907_v24  ;;  %v823_v9 = vadd.f32 %v1963_v58, %v822_v8 }
 0x156   : > { %v893_v10 = vpack.c.bf16 %v823_v9, %v823_v9 }
 0x158   : > { %924 = vst.msk [vmem:[%s1966_s20 + $0xc] sm:$0xf] %vm920_vm1, %v893_v10  ;;  %v860_v11 = vpop.f32.mrf.mxu3 }
 0x159   : > { %v861_v26 = vadd.f32 %v1963_v58, %v860_v11 }
 0x15b   : > { %v825_v13 = vpop.f32.mrf.mxu1  ;;  %v908_v15 = vpack.c.bf16 %v861_v26, %v861_v26 }
 0x15c   : > { %v826_v14 = vadd.f32 %v1963_v58, %v825_v13 }
 0x15d   : > { %939 = vst.msk [vmem:[%s1966_s20 + $0x48] sm:$0xf] %vm920_vm1, %v908_v15 }
 0x15e   : > { %v894_v17 = vpack.c.bf16 %v826_v14, %v826_v14 }
 0x160   : > { %925 = vst.msk [vmem:[%s1966_s20 + $0x10] sm:$0xf] %vm920_vm1, %v894_v17  ;;  %v862_v21 = vpop.f32.mrf.mxu3 }
 0x161   : > { %v863_v52 = vadd.f32 %v1963_v58, %v862_v21 }
 0x163   : > { %v827_v46 = vpop.f32.mrf.mxu1  ;;  %v909_v1 = vpack.c.bf16 %v863_v52, %v863_v52 }
 0x164   : > { %v828_v22 = vadd.f32 %v1963_v58, %v827_v46 }
 0x165   : > { %940 = vst.msk [vmem:[%s1966_s20 + $0x4c] sm:$0xf] %vm920_vm1, %v909_v1 }
 0x166   : > { %v895_v55 = vpack.c.bf16 %v828_v22, %v828_v22 }
 0x168   : > { %926 = vst.msk [vmem:[%s1966_s20 + $0x14] sm:$0xf] %vm920_vm1, %v895_v55  ;;  %v865_v25 = vpop.f32.mrf.mxu3 }
 0x169   : > { %v866_v40 = vadd.f32 %v1963_v58, %v865_v25 }
 0x16b   : > { %v830_v27 = vpop.f32.mrf.mxu1  ;;  %v910_v28 = vpack.c.bf16 %v866_v40, %v866_v40 }
 0x16c   : > { %v831_v16 = vadd.f32 %v1963_v58, %v830_v27 }
 0x16d   : > { %941 = vst.msk [vmem:[%s1966_s20 + $0x50] sm:$0xf] %vm920_vm1, %v910_v28 }
 0x16e   : > { %v896_v4 = vpack.c.bf16 %v831_v16, %v831_v16 }
 0x170   : > { %927 = vst.msk [vmem:[%s1966_s20 + $0x18] sm:$0xf] %vm920_vm1, %v896_v4  ;;  %v867_v29 = vpop.f32.mrf.mxu3 }
 0x171   : > { %v868_v31 = vadd.f32 %v1963_v58, %v867_v29 }
 0x173   : > { %v832_v32 = vpop.f32.mrf.mxu1  ;;  %v911_v39 = vpack.c.bf16 %v868_v31, %v868_v31 }
 0x174   : > { %v833_v33 = vadd.f32 %v1963_v58, %v832_v32 }
 0x175   : > { %942 = vst.msk [vmem:[%s1966_s20 + $0x54] sm:$0xf] %vm920_vm1, %v911_v39 }
 0x176   : > { %v897_v35 = vpack.c.bf16 %v833_v33, %v833_v33 }
 0x178   : > { %928 = vst.msk [vmem:[%s1966_s20 + $0x1c] sm:$0xf] %vm920_vm1, %v897_v35  ;;  %v870_v36 = vpop.f32.mrf.mxu3 }
 0x179   : > { %v871_v37 = vadd.f32 %v1963_v58, %v870_v36 }
 0x17b   : > { %v835_v38 = vpop.f32.mrf.mxu1  ;;  %v912_v41 = vpack.c.bf16 %v871_v37, %v871_v37 }
 0x17c   : > { %v836_v23 = vadd.f32 %v1963_v58, %v835_v38 }
 0x17d   : > { %943 = vst.msk [vmem:[%s1966_s20 + $0x58] sm:$0xf] %vm920_vm1, %v912_v41 }
 0x17e   : > { %v898_v42 = vpack.c.bf16 %v836_v23, %v836_v23 }
 0x180   : > { %929 = vst.msk [vmem:[%s1966_s20 + $0x20] sm:$0xf] %vm920_vm1, %v898_v42  ;;  %v872_v43 = vpop.f32.mrf.mxu3 }
 0x181   : > { %v873_v44 = vadd.f32 %v1963_v58, %v872_v43 }
 0x183   : > { %v837_v12 = vpop.f32.mrf.mxu1  ;;  %v913_v48 = vpack.c.bf16 %v873_v44, %v873_v44 }
 0x184   : > { %v838_v62 = vadd.f32 %v1963_v58, %v837_v12 }
 0x185   : > { %944 = vst.msk [vmem:[%s1966_s20 + $0x5c] sm:$0xf] %vm920_vm1, %v913_v48 }
 0x186   : > { %v899_v3 = vpack.c.bf16 %v838_v62, %v838_v62 }
 0x188   : > { %930 = vst.msk [vmem:[%s1966_s20 + $0x24] sm:$0xf] %vm920_vm1, %v899_v3  ;;  %v875_v20 = vpop.f32.mrf.mxu3 }
 0x189   : > { %v876_v18 = vadd.f32 %v1963_v58, %v875_v20 }
 0x18b   : > { %v840_v49 = vpop.f32.mrf.mxu1  ;;  %v914_v51 = vpack.c.bf16 %v876_v18, %v876_v18 }
 0x18c   : > { %v841_v50 = vadd.f32 %v1963_v58, %v840_v49 }
 0x18d   : > { %945 = vst.msk [vmem:[%s1966_s20 + $0x60] sm:$0xf] %vm920_vm1, %v914_v51 }
 0x18e   : > { %v900_v47 = vpack.c.bf16 %v841_v50, %v841_v50 }
 0x190   : > { %931 = vst.msk [vmem:[%s1966_s20 + $0x28] sm:$0xf] %vm920_vm1, %v900_v47  ;;  %v877_v53 = vpop.f32.mrf.mxu3 }
 0x191   : > { %v878_v56 = vadd.f32 %v1963_v58, %v877_v53 }
 0x193   : > { %v842_v57 = vpop.f32.mrf.mxu1  ;;  %v915_v59 = vpack.c.bf16 %v878_v56, %v878_v56 }
 0x194   : > { %v843_v45 = vadd.f32 %v1963_v58, %v842_v57 }
 0x195   : > { %946 = vst.msk [vmem:[%s1966_s20 + $0x64] sm:$0xf] %vm920_vm1, %v915_v59 }
 0x196   : > { %v901_v60 = vpack.c.bf16 %v843_v45, %v843_v45 }
 0x198   : > { %932 = vst.msk [vmem:[%s1966_s20 + $0x2c] sm:$0xf] %vm920_vm1, %v901_v60  ;;  %v880_v61 = vpop.f32.mrf.mxu3 }
 0x199   : > { %v881_v63 = vadd.f32 %v1963_v58, %v880_v61 }
 0x19b   : > { %v845_v30 = vpop.f32.mrf.mxu1  ;;  %v916_v19 = vpack.c.bf16 %v881_v63, %v881_v63 }
 0x19c   : > { %v846_v0 = vadd.f32 %v1963_v58, %v845_v30 }
 0x19d   : > { %947 = vst.msk [vmem:[%s1966_s20 + $0x68] sm:$0xf] %vm920_vm1, %v916_v19 }
 0x19e   : > { %v902_v54 = vpack.c.bf16 %v846_v0, %v846_v0 }
 0x1a0   : > { %933 = vst.msk [vmem:[%s1966_s20 + $0x30] sm:$0xf] %vm920_vm1, %v902_v54  ;;  %v882_v34 = vpop.f32.mrf.mxu3 }
 0x1a1   : > { %v883_v2 = vadd.f32 %v1963_v58, %v882_v34 }
 0x1a3   : > { %v847_v5 = vpop.f32.mrf.mxu1  ;;  %v917_v7 = vpack.c.bf16 %v883_v2, %v883_v2 }
 0x1a4   : > { %v848_v6 = vadd.f32 %v1963_v58, %v847_v5 }
 0x1a5   : > { %948 = vst.msk [vmem:[%s1966_s20 + $0x6c] sm:$0xf] %vm920_vm1, %v917_v7 }
 0x1a6   : > { %v903_v24 = vpack.c.bf16 %v848_v6, %v848_v6 }
 0x1a8   : > { %934 = vst.msk [vmem:[%s1966_s20 + $0x34] sm:$0xf] %vm920_vm1, %v903_v24  ;;  %v885_v8 = vpop.f32.mrf.mxu3 }
 0x1a9   : > { %v886_v9 = vadd.f32 %v1963_v58, %v885_v8 }
 0x1ab   : > { %v850_v10 = vpop.f32.mrf.mxu1  ;;  %v918_v26 = vpack.c.bf16 %v886_v9, %v886_v9 }
 0x1ac   : > { %v851_v11 = vadd.f32 %v1963_v58, %v850_v10 }
 0x1ad   : > { %949 = vst.msk [vmem:[%s1966_s20 + $0x70] sm:$0xf] %vm920_vm1, %v918_v26 }
 0x1ae   : > { %v904_v13 = vpack.c.bf16 %v851_v11, %v851_v11 }
 0x1b0   : > { %935 = vst.msk [vmem:[%s1966_s20 + $0x38] sm:$0xf] %vm920_vm1, %v904_v13  ;;  %v887_v14 = vpop.f32.mrf.mxu3 }
 0x1b1   : > { %v888_v15 = vadd.f32 %v1963_v58, %v887_v14 }
 0x1b3   : > { %v852_v17 = vpop.f32.mrf.mxu1  ;;  %v919_v52 = vpack.c.bf16 %v888_v15, %v888_v15 }
 0x1b4   : > { %v853_v21 = vadd.f32 %v1963_v58, %v852_v17  ;;  %957 = sbr.rel (!%p1736_p4) target bundleno = 518 (0x206), region = 44 }
 0x1b5   : > { %950 = vst.msk [vmem:[%s1966_s20 + $0x74] sm:$0xf] %vm920_vm1, %v919_v52 }
 0x1b6   : > { %v905_v46 = vpack.c.bf16 %v853_v21, %v853_v21 }
 0x1b8   : > { %936 = vst.msk [vmem:[%s1966_s20 + $0x3c] sm:$0xf] %vm920_vm1, %v905_v46 }
 0x1b9   : > { %s2207_s18 = smov (!%p960_p8, %s959_s18), 30 }
 0x1ba   : > { %s1358_s30 = sshll.u32 %s2207_s18, 2 }
 0x1bb   : > { %p1361_p9 = scmp.eq.s32.totalorder %s1358_s30, 0 }
 0x1bc   : > { %1587 = sdivrem.u32 (!%p1361_p9), %s2207_s18, 30 }
 0x1bd   : > { %968 = sbr.rel (%p1361_p9) target bundleno = 518 (0x206), region = 48 }
 0x1c5   : > { %s2070_s26 = spop.drf %1587 }
 0x1c6   : > { %s1589_s6 = spop.drf %1587  ;;  %p1362_p10 = scmp.le.s32.totalorder %s2070_s26, 0 }
 0x1c7   : > { %s2198_s21 = smov (!%p1362_p10), %s2064_s28  ;;  %s2199_s29 = smov (!%p1362_p10), %s1966_s20 }
 0x1c8   : > { %1241 = sbr.rel (%p1362_p10) target bundleno = 492 (0x1ec), region = 120  ;;  %s2079_s7 = smov (!%p1362_p10), 0  }
 0x1c9   : > { %s2081_s8 = smov (!%p1362_p10), 0  }
 0x1cd LB: >> { %v986_v58 = vld [vmem:[%s1655_s29] sm:$0xf]  ;;  %v988_v22 = vld [vmem:[%s1655_s29 + $0x4] sm:$0xf]  ;;  %v990_v1 = vld [vmem:[%s1655_s29 + $0x8] sm:$0xf]  ;;  %s1663_s8 = sphi %s2081_s8, %s980_s8   ;;  %s1659_s7 = sphi %s2079_s7, %s2202_s7   ;;  %s1655_s29 = sphi %s2199_s29, %s2201_s29   ;;  %s1651_s21 = sphi %s2198_s21, %s2200_s21  }
 0x1ce   : >> { %987 = vst [vmem:[%s1651_s21] sm:$0xf] %v986_v58  ;;  %v992_v55 = vld [vmem:[%s1655_s29 + $0xc] sm:$0xf]  ;;  %v994_v25 = vld [vmem:[%s1655_s29 + $0x10] sm:$0xf]  ;;  %s1046_s9 = sadd.s32 1, %s1659_s7 }
 0x1cf   : >> { %989 = vst [vmem:[%s1651_s21 + $0x4] sm:$0xf] %v988_v22  ;;  %v996_v40 = vld [vmem:[%s1655_s29 + $0x14] sm:$0xf]  ;;  %v998_v27 = vld [vmem:[%s1655_s29 + $0x18] sm:$0xf]  ;;  %p1047_p11 = scmp.ge.s32.totalorder %s1046_s9, %s2070_s26 }
 0x1d0   : >> { %991 = vst [vmem:[%s1651_s21 + $0x8] sm:$0xf] %v990_v1  ;;  %v1000_v16 = vld [vmem:[%s1655_s29 + $0x1c] sm:$0xf]  ;;  %v1002_v28 = vld [vmem:[%s1655_s29 + $0x20] sm:$0xf] }
 0x1d1   : >> { %993 = vst [vmem:[%s1651_s21 + $0xc] sm:$0xf] %v992_v55  ;;  %v1004_v4 = vld [vmem:[%s1655_s29 + $0x24] sm:$0xf]  ;;  %v1006_v29 = vld [vmem:[%s1655_s29 + $0x28] sm:$0xf] }
 0x1d2   : >> { %995 = vst [vmem:[%s1651_s21 + $0x10] sm:$0xf] %v994_v25  ;;  %v1008_v31 = vld [vmem:[%s1655_s29 + $0x2c] sm:$0xf]  ;;  %v1010_v32 = vld [vmem:[%s1655_s29 + $0x30] sm:$0xf] }
 0x1d3   : >> { %997 = vst [vmem:[%s1651_s21 + $0x14] sm:$0xf] %v996_v40  ;;  %v1012_v33 = vld [vmem:[%s1655_s29 + $0x34] sm:$0xf]  ;;  %v1014_v39 = vld [vmem:[%s1655_s29 + $0x38] sm:$0xf] }
 0x1d4   : >> { %999 = vst [vmem:[%s1651_s21 + $0x18] sm:$0xf] %v998_v27  ;;  %v1016_v35 = vld [vmem:[%s1655_s29 + $0x3c] sm:$0xf]  ;;  %v1018_v36 = vld [vmem:[%s1655_s29 + $0x40] sm:$0xf] }
 0x1d5   : >> { %1001 = vst [vmem:[%s1651_s21 + $0x1c] sm:$0xf] %v1000_v16  ;;  %s2209_s9 = smov (%p1047_p11, %s1046_s9), 0  ;;  %v1020_v37 = vld [vmem:[%s1655_s29 + $0x44] sm:$0xf]  ;;  %s980_s8 = sadd.s32 1, %s1663_s8  }
 0x1d6   : >> { %1003 = vst [vmem:[%s1651_s21 + $0x20] sm:$0xf] %v1002_v28  ;;  %v1022_v38 = vld [vmem:[%s1655_s29 + $0x48] sm:$0xf]  ;;  %s1049_s10 = smul.u32 120, %s2209_s9  ;;  %p979_p12 = scmp.ge.s32.totalorder %s980_s8, %s2070_s26 }
 0x1d7   : >> { %1005 = vst [vmem:[%s1651_s21 + $0x24] sm:$0xf] %v1004_v4  ;;  %v1024_v23 = vld [vmem:[%s1655_s29 + $0x4c] sm:$0xf]  ;;  %v1026_v41 = vld [vmem:[%s1655_s29 + $0x50] sm:$0xf]  ;;  %s2202_s7 = smov %s2209_s9 }
 0x1d8   : >> { %1007 = vst [vmem:[%s1651_s21 + $0x28] sm:$0xf] %v1006_v29  ;;  %s1051_s11 = scalar_lea.vmem %s1966_s20, %s1049_s10 [#allocation2]   ;;  %s1052_s12 = scalar_lea.vmem %s2064_s28, %s1049_s10   ;;  %v1028_v42 = vld [vmem:[%s1655_s29 + $0x54] sm:$0xf]  ;;  %v1030_v43 = vld [vmem:[%s1655_s29 + $0x58] sm:$0xf] }
 0x1d9   : >> { %1009 = vst [vmem:[%s1651_s21 + $0x2c] sm:$0xf] %v1008_v31  ;;  %v1032_v44 = vld [vmem:[%s1655_s29 + $0x5c] sm:$0xf]  ;;  %v1034_v12 = vld [vmem:[%s1655_s29 + $0x60] sm:$0xf] }
 0x1da   : >> { %1011 = vst [vmem:[%s1651_s21 + $0x30] sm:$0xf] %v1010_v32  ;;  %v1036_v62 = vld [vmem:[%s1655_s29 + $0x64] sm:$0xf]  ;;  %v1038_v48 = vld [vmem:[%s1655_s29 + $0x68] sm:$0xf] }
 0x1db   : >> { %1013 = vst [vmem:[%s1651_s21 + $0x34] sm:$0xf] %v1012_v33  ;;  %v1040_v3 = vld [vmem:[%s1655_s29 + $0x6c] sm:$0xf]  ;;  %v1042_v20 = vld [vmem:[%s1655_s29 + $0x70] sm:$0xf] }
 0x1dc   : >> { %1015 = vst [vmem:[%s1651_s21 + $0x38] sm:$0xf] %v1014_v39  ;;  %v1044_v18 = vld [vmem:[%s1655_s29 + $0x74] sm:$0xf]  ;;  %s2201_s29 = smov %s1051_s11 }
 0x1dd   : >> { %1017 = vst [vmem:[%s1651_s21 + $0x3c] sm:$0xf] %v1016_v35 }
 0x1de   : >> { %1019 = vst [vmem:[%s1651_s21 + $0x40] sm:$0xf] %v1018_v36 }
 0x1df   : >> { %1021 = vst [vmem:[%s1651_s21 + $0x44] sm:$0xf] %v1020_v37 }
 0x1e0   : >> { %1023 = vst [vmem:[%s1651_s21 + $0x48] sm:$0xf] %v1022_v38 }
 0x1e1   : >> { %1025 = vst [vmem:[%s1651_s21 + $0x4c] sm:$0xf] %v1024_v23 }
 0x1e2   : >> { %1027 = vst [vmem:[%s1651_s21 + $0x50] sm:$0xf] %v1026_v41 }
 0x1e3   : >> { %1029 = vst [vmem:[%s1651_s21 + $0x54] sm:$0xf] %v1028_v42 }
 0x1e4   : >> { %1031 = vst [vmem:[%s1651_s21 + $0x58] sm:$0xf] %v1030_v43 }
 0x1e5   : >> { %1033 = vst [vmem:[%s1651_s21 + $0x5c] sm:$0xf] %v1032_v44 }
 0x1e6   : >> { %1035 = vst [vmem:[%s1651_s21 + $0x60] sm:$0xf] %v1034_v12 }
 0x1e7   : >> { %1037 = vst [vmem:[%s1651_s21 + $0x64] sm:$0xf] %v1036_v62  ;;  %982 = sbr.rel (!%p979_p12) target bundleno = 461 (0x1cd), region = 126 }
 0x1e8   : >> { %1039 = vst [vmem:[%s1651_s21 + $0x68] sm:$0xf] %v1038_v48 }
 0x1e9   : >> { %1041 = vst [vmem:[%s1651_s21 + $0x6c] sm:$0xf] %v1040_v3 }
 0x1ea   : >> { %1043 = vst [vmem:[%s1651_s21 + $0x70] sm:$0xf] %v1042_v20 }
 0x1eb   : >> { %1045 = vst [vmem:[%s1651_s21 + $0x74] sm:$0xf] %v1044_v18  ;;  %s2200_s21 = smov %s1052_s12 }
 0x1ec PF: > { %1590 = sdivrem.u32 %s2207_s18, 30 }
 0x1ed   : > { %s1363_s13 = smul.u32 120, %s2070_s26 }
 0x1ef   : > { %s2176_s14 = scalar_lea.vmem %s1966_s20, %s1363_s13 [#allocation2]   ;;  %s1059_s15 = scalar_lea.vmem %s2064_s28, %s1363_s13  }
 0x1f5   : > { %s1591_s16 = spop.drf %1590 }
 0x1f6   : > { %s1592_s17 = spop.drf %1590 }
 0x1f7   : > { %p1365_p13 = scmp.le.s32.totalorder %s1592_s17, 0 }
 0x1f8   : > { %s1665_s23 = smov (!%p1365_p13), %s1059_s15   ;;  %s1669_s24 = smov (!%p1365_p13), %s2176_s14  }
 0x1f9   : > { %1255 = sbr.rel (%p1365_p13) target bundleno = 518 (0x206), region = 131  ;;  %s1673_s27 = smov (!%p1365_p13), 0  }
 0x1fa   : > { %s1677_s30 = smov (!%p1365_p13), 0  }
 0x1fe LB: >> { %v1069_v49 = vld [vmem:[%s1671_s24] sm:$0xf]  ;;  %s1071_s20 = sadd.s32 1, %s1675_s27  ;;  %s1063_s30 = sadd.s32 1, %s1679_s30   ;;  %s1679_s30 = sphi %s1677_s30, %s1063_s30   ;;  %s1675_s27 = sphi %s1673_s27, %s1674_s27   ;;  %s1671_s24 = sphi %s1669_s24, %s1076_s24   ;;  %s1667_s23 = sphi %s1665_s23, %s1077_s23  }
 0x1ff   : >> { %1070 = vst [vmem:[%s1667_s23] sm:$0xf] %v1069_v49  ;;  %p1072_p0 = scmp.ge.s32.totalorder %s1071_s20, %s1592_s17  ;;  %p1062_p1 = scmp.ge.s32.totalorder %s1063_s30, %s1592_s17 }
 0x201   : >> { %s2211_s20 = smov (%p1072_p0, %s1071_s20), 0  ;;  %1065 = sbr.rel (!%p1062_p1) target bundleno = 510 (0x1fe), region = 137 }
 0x202   : >> { %s1366_s18 = sshll.u32 %s2211_s20, 2  ;;  %s1674_s27 = smov %s2211_s20  }
 0x203   : >> { %s1076_s24 = scalar_lea.vmem %s2176_s14, %s1366_s18 [#allocation2]   ;;  %s1077_s23 = scalar_lea.vmem %s1059_s15, %s1366_s18  }
 0x206 PF: > { %p12_p2 = scmp.ge.s32.totalorder %s1726_s22, 4   ;;  %s2203_s18 = smov %s1643_s19 }
 0x207   : > { %s2204_s19 = smov %s1734_s25  ;;  %s2205_s20 = smov %s1726_s22 }
 0x208   :  { %14 = sbr.rel (!%p12_p2) target bundleno = 2 (0x2), region = 148 }

// kernel: _forward_core.20
= control target key start
LH: loop header
LB: loop body
LE: loop exit
PB: predicated region body
PF: predicated region fallthrough
CT: control target
= control target key end

     0   :  { %s4010_s0 = inlined_call_operand.vmem [shape: bf16[464,32], index: 0, kind: input, shape index: {}]   ;;  %s4011_s1 = inlined_call_operand.vmem [shape: bf16[464,32], index: 1, kind: input, shape index: {}]   ;;  %s4012_s2 = inlined_call_operand.vmem [shape: bf16[464,32], index: 2, kind: input, shape index: {}]   ;;  %s4013_s3 = inlined_call_operand.vmem [shape: bf16[464,16], index: 3, kind: input, shape index: {}]   ;;  %s4014_s4 = inlined_call_operand.vmem [shape: bf16[16,32], index: 4, kind: input, shape index: {}]   ;;  %s4015_s5 = inlined_call_operand.vmem [shape: bf16[16,32], index: 5, kind: input, shape index: {}]   ;;  %s4016_s6 = inlined_call_operand.vmem [shape: bf16[32,32], index: 6, kind: input, shape index: {}]   ;;  %s4017_s7 = inlined_call_operand.vmem [shape: f32[1,32], index: 7, kind: input, shape index: {}]   ;;  %s4018_s8 = inlined_call_operand.vmem [shape: bf16[32,32], index: 8, kind: input, shape index: {}]   ;;  %s4019_s9 = inlined_call_operand.vmem [shape: f32[1,32], index: 9, kind: input, shape index: {}]   ;;  %s4020_s10 = inlined_call_operand.vmem [shape: bf16[32,4], index: 10, kind: input, shape index: {}]   ;;  %s4021_s11 = inlined_call_operand.vmem [shape: bf16[464,32], index: 11, kind: output, shape index: {0}]   ;;  %s4022_s12 = inlined_call_operand.vmem [shape: f32[464,4], index: 12, kind: output, shape index: {1}]  }
   0x1   :  { %4023 = sst [smem:[#allocation4_spill]] %s4010_s0 }
   0x2   :  { %4024 = sst [smem:[#allocation5_spill]] %s4011_s1 }
   0x3   :  { %4025 = sst [smem:[#allocation6_spill]] %s4012_s2 }
   0x4   :  { %4026 = sst [smem:[#allocation7_spill]] %s4013_s3 }
   0x5   :  { %4027 = sst [smem:[#allocation8_spill]] %s4014_s4 }
   0x6   :  { %s3275_s21 = smov 0   ;;  %s3277_s22 = smov 0  }
   0x7   :  { %s3279_s23 = smov 0  }
   0x8 LB: > { %s3288_s24 = sadd.s32 4294967295, %s3144_s23   ;;  %s3290_s25 = sadd.s32 1, %s3144_s23   ;;  %s3144_s23 = sphi %s3279_s23, %s4046_s23   ;;  %s3140_s22 = sphi %s3277_s22, %s4045_s22   ;;  %s3136_s21 = sphi %s3275_s21, %s4044_s21  }
   0x9   : > { %s278_s26 = ssub.s32 %s3144_s23, %s3290_s25  ;;  %s281_s27 = sadd.s32 1, %s3140_s22 }
   0xa   : > { %p279_p0 = scmp.eq.s32.totalorder %s278_s26, 0  ;;  %p291_p1 = scmp.ne.s32.totalorder %s3140_s22, %s3136_s21 }
   0xb   : > { %p292_p2 = scmp.eq.s32.totalorder %s3288_s24, 1  ;;  %p2444_p3 = scmp.ge.s32.totalorder %s3144_s23, 1 }
   0xc   : > { %s3298_s28 = scalar_select %p279_p0, %s3140_s22, %s281_s27  }
   0xd   : > { %p3300_p4 = por %p292_p2, %p291_p1  ;;  %p431_p5 = scmp.lt.s32.totalorder %s3144_s23, 3 }
   0xf   : > { %p432_p6 = pnand %p2444_p3, %p431_p5 }
  0x10   : > { %s4029_s4 = sld [smem:[#allocation8_spill]] (!%p432_p6)  ;;  %s3308_s14 = smul.u32 (!%p432_p6), 30, %s3288_s24 }
  0x11   : > { %435 = sbr.rel (%p432_p6) target bundleno = 835 (0x343), region = 64  ;;  %s4030_s3 = sld [smem:[#allocation7_spill]] (!%p432_p6) }
  0x12   : > { %p512_p7 = scmp.lt.s32.totalorder (!%p432_p6), %s3308_s14, 57  ;;  %s4031_s0 = sld [smem:[#allocation4_spill]] (!%p432_p6) }
  0x13   : > { %s4032_s1 = sld [smem:[#allocation5_spill]] (!%p432_p6) }
  0x14   : > { %s4033_s2 = sld [smem:[#allocation6_spill]] (!%p432_p6) }
  0x16   : > { %v2653_v0 = vld [vmem:[%s4029_s4] sm:$0xff]  ;;  %s513_s15 = scalar_select %p512_p7, %s3308_s14, 57  ;;  %vm687_vm0 = vcmask 130048   ;;  %v2656_v5 = vld [vmem:[%s4016_s6 + $0x8] sm:$0xff]  ;;  %vm1034_vm1 = vcmask 261120   ;;  %vm1729_vm2 = vcmask 257024  }
  0x17   : > { %740 = vmatpush.bf16.msra.mxu0 %v2653_v0  ;;  %2885 = vmatpush.bf16.msra.mxu1 %v2653_v0  ;;  %v2654_v6 = vld [vmem:[%s4015_s5] sm:$0xff]  ;;  %v2660_v56 = vld [vmem:[%s4018_s8 + $0x8] sm:$0xff]  ;;  %vm1414_vm3 = vcmask 31744   ;;  %s2661_s26 = smul.u32 (%p3300_p4), 120, %s3288_s24 }
  0x18   : > { %2886 = vmatpush.bf16.msra.mxu2 %v2653_v0  ;;  %2887 = vmatpush.bf16.msra.mxu3 %v2653_v0  ;;  %s3312_s16 = sshll.u32 %s513_s15, 2  ;;  %v2655_v10 = vld [vmem:[%s4016_s6] sm:$0xff] }
  0x19   : > { %s3318_s19 = scalar_lea.vmem %s4030_s3, %s3312_s16  ;;  %s3375_s18 = scalar_lea.vmem %s4031_s0, %s3312_s16 }
  0x1a   : > { %v2638_v1 = vld [vmem:[%s3318_s19] sm:$0xff]  ;;  %v2639_v2 = vld [vmem:[%s3318_s19 + $0x8] sm:$0xff]  ;;  %v2640_v7 = vld [vmem:[%s3318_s19 + $0x10] sm:$0xff]  ;;  %s3427_s13 = scalar_lea.vmem %s4032_s1, %s3312_s16  ;;  %s3470_s27 = scalar_lea.vmem %s4033_s2, %s3312_s16 }
  0x1b   : > { %2513 = vmatmul.msk.bf16.vlgmr.msra.gmra.mxu0 %vm687_vm0, %v2638_v1  ;;  %v2642_v3 = vld [vmem:[%s3318_s19 + $0x20] sm:$0xff]  ;;  %832 = vmatpush.bf16.msrb.mxu1 %v2654_v6  ;;  %v2643_v8 = vld [vmem:[%s3318_s19 + $0x28] sm:$0xff]  ;;  %v2641_v11 = vld [vmem:[%s3318_s19 + $0x18] sm:$0xff]  ;;  %s498_s16 = sand.u32 1, %s3136_s21   ;;  %s3756_s15 = scalar_lea.vmem (%p3300_p4), %s4021_s11, %s2661_s26  }
  0x1c   : > { %v3326_v4 = vld [vmem:[%s3318_s19 + $0x40] sm:$0xff]  ;;  %2517 = vmatmul.msk.bf16.vlgmr.msra.gmra.mxu1 %vm687_vm0, %v2642_v3  ;;  %1086 = vmatpush.bf16.msrb.mxu2 %v2656_v5  ;;  %v3340_v9 = vld [vmem:[%s3318_s19 + $0x48] sm:$0xff]  ;;  %v2644_v12 = vld [vmem:[%s3318_s19 + $0x30] sm:$0xff]  ;;  %s2889_s23 = smul.u32 240, %s498_s16 }
  0x1d   : > { %2521 = vmatmul.msk.bf16.vlgmr.msra.gmra.mxu2 %vm687_vm0, %v3326_v4  ;;  %v3352_v13 = vld [vmem:[%s3318_s19 + $0x50] sm:$0xff]  ;;  %v3359_v14 = vld [vmem:[%s3318_s19 + $0x38] sm:$0xff]  ;;  %v2664_v17 = vld [vmem:[%s3375_s18] sm:$0xff]   ;;  %1621 = vmatpush.bf16.msrb.mxu0 %v2660_v56 }
  0x1e   : > { %v3362_v15 = vld [vmem:[%s3318_s19 + $0x58] sm:$0xff]  ;;  %v2665_v18 = vunpack.c.l.bf16 %v2664_v17  ;;  %v2666_v19 = vunpack.c.h.bf16 %v2664_v17  ;;  %v3381_v25 = vld [vmem:[%s3318_s19 + $0x60] sm:$0xff]  ;;  %v2843_v26 = vld [vmem:[%s3375_s18 + $0x8] sm:$0xff]   ;;  %s3587_s21 = scalar_lea.vmem [#allocation3], %s2889_s23  }
  0x1f   : > { %2525 = vmatmul.msk.bf16.vlgmr.msra.gmra.mxu3 %vm687_vm0, %v3381_v25  ;;  %v2669_v27 = vunpack.c.l.bf16 %v2843_v26  ;;  %v2670_v28 = vunpack.c.h.bf16 %v2843_v26  ;;  %v3389_v34 = vld [vmem:[%s3318_s19 + $0x68] sm:$0xff]  ;;  %v2844_v37 = vld [vmem:[%s3375_s18 + $0x10] sm:$0xff]   ;;  %v2845_v48 = vld [vmem:[%s3375_s18 + $0x18] sm:$0xff]  }
  0x20   : > { %1087 = vmatpush.bf16.msrb.mxu2 %v2655_v10  ;;  %v2673_v38 = vunpack.c.l.bf16 %v2844_v37  ;;  %v2674_v39 = vunpack.c.h.bf16 %v2844_v37  ;;  %v3397_v45 = vld [vmem:[%s3318_s19 + $0x70] sm:$0xff]  ;;  %v2677_v49 = vunpack.c.l.bf16 %v2845_v48  ;;  %v2678_v50 = vunpack.c.h.bf16 %v2845_v48  ;;  %v2846_v57 = vld [vmem:[%s3375_s18 + $0x20] sm:$0xff]   ;;  %v2847_v5 = vld [vmem:[%s3375_s18 + $0x28] sm:$0xff]  }
  0x21   : > { %v2681_v60 = vunpack.c.l.bf16 %v2846_v57  ;;  %v2682_v61 = vunpack.c.h.bf16 %v2846_v57  ;;  %v2685_v6 = vunpack.c.l.bf16 %v2847_v5 }
  0x2b   : > { %2514 = vmatmul.msk.bf16.gmra.mxu0 %vm687_vm0, %v2639_v2 }
  0x2c   : > { %2518 = vmatmul.msk.bf16.gmra.mxu1 %vm687_vm0, %v2643_v8 }
  0x2d   : > { %2522 = vmatmul.msk.bf16.gmra.mxu2 %vm687_vm0, %v3340_v9 }
  0x2f   : > { %2526 = vmatmul.msk.bf16.gmra.mxu3 %vm687_vm0, %v3389_v34 }
  0x3b   : > { %2515 = vmatmul.msk.bf16.gmra.mxu0 %vm687_vm0, %v2640_v7 }
  0x3c   : > { %2519 = vmatmul.msk.bf16.gmra.mxu1 %vm687_vm0, %v2644_v12 }
  0x3d   : > { %2523 = vmatmul.msk.bf16.gmra.mxu2 %vm687_vm0, %v3352_v13 }
  0x3f   : > { %2527 = vmatmul.msk.bf16.gmra.mxu3 %vm687_vm0, %v3397_v45 }
  0x4b   : > { %2516 = vmatmul.msk.bf16.gmra.mxu0 %vm687_vm0, %v2641_v11 }
  0x4c   : > { %2520 = vmatmul.msk.bf16.gmra.mxu1 %vm687_vm0, %v3359_v14 }
  0x4d   : > { %2524 = vmatmul.msk.bf16.gmra.mxu2 %vm687_vm0, %v3362_v15 }
  0x5c   : > { %2532 = vmatmul.msk.bf16.vlgmr.msrb.gmra.mxu1 %vm687_vm0, %v2638_v1 }
  0x6c   : > { %2533 = vmatmul.msk.bf16.gmra.mxu1 %vm687_vm0, %v2639_v2 }
  0x7c   : > { %2534 = vmatmul.msk.bf16.gmra.mxu1 %vm687_vm0, %v2640_v7  ;;  %v2686_v7 = vunpack.c.h.bf16 %v2847_v5 }
  0x8c   : > { %2535 = vmatmul.msk.bf16.gmra.mxu1 %vm687_vm0, %v2641_v11 }
  0x98   : > { %v742_v16 = vpop.f32.mrf.mxu0 }
  0x99   : > { %v969_v21 = vmul.f32 %v2665_v18, %v742_v16  ;;  %v762_v30 = vpop.f32.mrf.mxu1  ;;  %v2659_v16 = vld [vmem:[%s4018_s8] sm:$0xff] }
  0x9a   : > { %v977_v62 = vmul.f32 %v2681_v60, %v762_v30  ;;  %v2784_v18 = vld [vmem:[%s3427_s13] sm:$0xff]   ;;  %1622 = vmatpush.bf16.msrb.mxu0 %v2659_v16 }
  0x9c   : > { %2536 = vmatmul.msk.bf16.gmra.mxu1 %vm687_vm0, %v2642_v3  ;;  %v2658_v3 = vld [vmem:[%s4020_s10 + $0x8] sm:$0xff] }
  0x9d   : > { %1336 = vmatpush.bf16.msrb.mxu3 %v2658_v3 }
  0xa0   : > { %v744_v20 = vpop.f32.mrf.mxu0  ;;  %v3408_v59 = vpop.f32.mrf.mxu2 }
  0xa1   : > { %v970_v22 = vmul.f32 %v2666_v19, %v744_v20  ;;  %v764_v36 = vpop.f32.mrf.mxu1  ;;  %v2848_v19 = vld [vmem:[%s3375_s18 + $0x30] sm:$0xff]  }
  0xa2   : > { %v978_v63 = vmul.f32 %v2682_v61, %v764_v36 }
  0xa3   : > { %v1003_v23 = vpack.c.bf16 %v970_v22, %v969_v21  ;;  %v2785_v21 = vunpack.c.l.bf16 %v2784_v18  ;;  %v2786_v22 = vunpack.c.h.bf16 %v2784_v18 }
  0xa4   : > { %v1007_v0 = vpack.c.bf16 %v978_v63, %v977_v62 }
  0xa5   : > { %2555 = vmatmul.msk.bf16.vlgmr.msrb.gmra.mxu2 %vm1034_vm1, %v1003_v23  ;;  %v2689_v23 = vunpack.c.l.bf16 %v2848_v19 }
  0xa8   : > { %v747_v24 = vpop.f32.mrf.mxu0  ;;  %v3412_v2 = vpop.f32.mrf.mxu2 }
  0xa9   : > { %v971_v31 = vmul.f32 %v2669_v27, %v747_v24  ;;  %v767_v41 = vpop.f32.mrf.mxu1  ;;  %v2690_v24 = vunpack.c.h.bf16 %v2848_v19 }
  0xaa   : > { %v979_v11 = vmul.f32 %v2685_v6, %v767_v41  ;;  %v2724_v6 = vld [vmem:[%s3470_s27] sm:$0xff]  }
  0xab   : > { %v2725_v16 = vunpack.c.l.bf16 %v2724_v6 }
  0xac   : > { %2537 = vmatmul.msk.bf16.gmra.mxu1 %vm687_vm0, %v2643_v8 }
  0xb0   : > { %v749_v29 = vpop.f32.mrf.mxu0  ;;  %v3421_v10 = vpop.f32.mrf.mxu2 }
  0xb1   : > { %v972_v32 = vmul.f32 %v2670_v28, %v749_v29  ;;  %v769_v47 = vpop.f32.mrf.mxu1 }
  0xb3   : > { %v1004_v33 = vpack.c.bf16 %v972_v32, %v971_v31 }
  0xb5   : > { %2556 = vmatmul.msk.bf16.gmra.mxu2 %vm1034_vm1, %v1004_v33 }
  0xb8   : > { %v752_v35 = vpop.f32.mrf.mxu0  ;;  %v3438_v20 = vpop.f32.mrf.mxu2 }
  0xb9   : > { %v973_v42 = vmul.f32 %v2673_v38, %v752_v35  ;;  %v772_v52 = vpop.f32.mrf.mxu1  ;;  %v2849_v35 = vld [vmem:[%s3375_s18 + $0x38] sm:$0xff]  }
  0xba   : > { %v981_v29 = vmul.f32 %v2689_v23, %v772_v52  ;;  %v2693_v36 = vunpack.c.l.bf16 %v2849_v35  ;;  %v2694_v37 = vunpack.c.h.bf16 %v2849_v35 }
  0xbc   : > { %2538 = vmatmul.msk.bf16.gmra.mxu1 %vm687_vm0, %v2644_v12  ;;  %v980_v12 = vmul.f32 %v2686_v7, %v769_v47 }
  0xc0   : > { %v754_v40 = vpop.f32.mrf.mxu0  ;;  %v3442_v32 = vpop.f32.mrf.mxu2 }
  0xc1   : > { %v974_v43 = vmul.f32 %v2674_v39, %v754_v40  ;;  %v774_v58 = vpop.f32.mrf.mxu1  ;;  %v2871_v40 = vld [vmem:[%s3427_s13 + $0x8] sm:$0xff]  }
  0xc2   : > { %v982_v30 = vmul.f32 %v2690_v24, %v774_v58 }
  0xc3   : > { %v1005_v44 = vpack.c.bf16 %v974_v43, %v973_v42  ;;  %v2789_v42 = vunpack.c.l.bf16 %v2871_v40 }
  0xc4   : > { %v1009_v33 = vpack.c.bf16 %v982_v30, %v981_v29 }
  0xc5   : > { %2557 = vmatmul.msk.bf16.gmra.mxu2 %vm1034_vm1, %v1005_v44 }
  0xc8   : > { %v757_v46 = vpop.f32.mrf.mxu0  ;;  %v3447_v39 = vpop.f32.mrf.mxu2 }
  0xc9   : > { %v975_v53 = vmul.f32 %v2677_v49, %v757_v46  ;;  %v777_v1 = vpop.f32.mrf.mxu1  ;;  %v2790_v46 = vunpack.c.h.bf16 %v2871_v40 }
  0xcc   : > { %2539 = vmatmul.msk.bf16.gmra.mxu1 %vm687_vm0, %v3359_v14  ;;  %v1008_v14 = vpack.c.bf16 %v980_v12, %v979_v11 }
  0xd0   : > { %v759_v51 = vpop.f32.mrf.mxu0  ;;  %v3453_v49 = vpop.f32.mrf.mxu2 }
  0xd1   : > { %v976_v54 = vmul.f32 %v2678_v50, %v759_v51  ;;  %v779_v8 = vpop.f32.mrf.mxu1  ;;  %v2850_v51 = vld [vmem:[%s3375_s18 + $0x40] sm:$0xff]  }
  0xd2   : > { %v984_v41 = vmul.f32 %v2694_v37, %v779_v8  ;;  %v2697_v52 = vunpack.c.l.bf16 %v2850_v51  ;;  %v2873_v8 = vld [vmem:[%s3427_s13 + $0x18] sm:$0xff]  }
  0xd3   : > { %v1006_v55 = vpack.c.bf16 %v976_v54, %v975_v53  ;;  %v2872_v54 = vld [vmem:[%s3427_s13 + $0x10] sm:$0xff]   ;;  %v2797_v18 = vunpack.c.l.bf16 %v2873_v8 }
  0xd4   : > { %v2793_v57 = vunpack.c.l.bf16 %v2872_v54  ;;  %v2794_v62 = vunpack.c.h.bf16 %v2872_v54  ;;  %v802_v54 = vpop.f32.mrf.mxu3 }
  0xd5   : > { %2558 = vmatmul.msk.bf16.gmra.mxu2 %vm1034_vm1, %v1006_v55  ;;  %v985_v55 = vmul.f32 %v2697_v52, %v3408_v59  ;;  %v2853_v52 = vld [vmem:[%s3375_s18 + $0x58] sm:$0xff]  }
  0xd8   : > { %v3462_v58 = vpop.f32.mrf.mxu2 }
  0xd9   : > { %v834_v17 = vpop.f32.mrf.mxu1 }
  0xda   : > { %v1505_v26 = vmul.f32 %v2785_v21, %v834_v17  ;;  %v2726_v17 = vunpack.c.h.bf16 %v2724_v6 }
  0xdc   : > { %2540 = vmatmul.msk.bf16.gmra.mxu1 %vm687_vm0, %v3326_v4  ;;  %v2657_v4 = vld [vmem:[%s4020_s10] sm:$0xff] }
  0xdd   : > { %1337 = vmatpush.bf16.msrb.mxu3 %v2657_v4 }
  0xe1   : > { %v836_v27 = vpop.f32.mrf.mxu1 }
  0xe2   : > { %v1506_v28 = vmul.f32 %v2786_v22, %v836_v27  ;;  %v2852_v27 = vld [vmem:[%s3375_s18 + $0x50] sm:$0xff]  }
  0xe3   : > { %v2705_v30 = vunpack.c.l.bf16 %v2852_v27 }
  0xe4   : > { %v1539_v31 = vpack.c.bf16 %v1506_v28, %v1505_v26 }
  0xe5   : > { %2559 = vmatmul.msk.bf16.gmra.mxu2 %vm1034_vm1, %v1007_v0  ;;  %v989_v37 = vmul.f32 %v2705_v30, %v3442_v32 }
  0xe6   : > { %2601 = vmatmul.msk.bf16.vlgmr.msrb.gmra.mxu0 %vm1034_vm1, %v1539_v31  ;;  %v2706_v31 = vunpack.c.h.bf16 %v2852_v27 }
  0xe9   : > { %v839_v38 = vpop.f32.mrf.mxu1 }
  0xea   : > { %v1507_v44 = vmul.f32 %v2789_v42, %v839_v38  ;;  %v990_v38 = vmul.f32 %v2706_v31, %v3447_v39 }
  0xec   : > { %2541 = vmatmul.msk.bf16.gmra.mxu1 %vm687_vm0, %v3340_v9  ;;  %v983_v9 = vmul.f32 %v2693_v36, %v777_v1  ;;  %v2851_v1 = vld [vmem:[%s3375_s18 + $0x48] sm:$0xff]   ;;  %v2874_v36 = vld [vmem:[%s3427_s13 + $0x20] sm:$0xff]  }
  0xed   : > { %v2702_v59 = vunpack.c.h.bf16 %v2851_v1  ;;  %v2801_v42 = vunpack.c.l.bf16 %v2874_v36 }
  0xee   : > { %v1010_v43 = vpack.c.bf16 %v984_v41, %v983_v9 }
  0xef   : > { %v988_v12 = vmul.f32 %v2702_v59, %v3438_v20 }
  0xf1   : > { %v841_v47 = vpop.f32.mrf.mxu1 }
  0xf2   : > { %v1508_v48 = vmul.f32 %v2790_v46, %v841_v47  ;;  %v1013_v46 = vpack.c.bf16 %v990_v38, %v989_v37 }
  0xf4   : > { %v1540_v50 = vpack.c.bf16 %v1508_v48, %v1507_v44 }
  0xf5   : > { %2560 = vmatmul.msk.bf16.gmra.mxu2 %vm1034_vm1, %v1008_v14 }
  0xf6   : > { %2602 = vmatmul.msk.bf16.gmra.mxu0 %vm1034_vm1, %v1540_v50 }
  0xf9   : > { %v844_v53 = vpop.f32.mrf.mxu1 }
  0xfa   : > { %v1509_v61 = vmul.f32 %v2793_v57, %v844_v53  ;;  %v2858_v57 = vld [vmem:[%s3470_s27 + $0x10] sm:$0xff]  }
  0xfc   : > { %2542 = vmatmul.msk.bf16.gmra.mxu1 %vm687_vm0, %v3352_v13  ;;  %v2698_v13 = vunpack.c.h.bf16 %v2850_v51 }
  0xfe   : > { %v986_v56 = vmul.f32 %v2698_v13, %v3412_v2  ;;  %v3476_v2 = vld [vmem:[%s4017_s7] ss:$0 sm:$0xff] }
 0x100   : > { %v1011_v60 = vpack.c.bf16 %v986_v56, %v985_v55  ;;  %v2709_v55 = vunpack.c.l.bf16 %v2853_v52  ;;  %v2710_v56 = vunpack.c.h.bf16 %v2853_v52 }
 0x101   : > { %v846_v63 = vpop.f32.mrf.mxu1 }
 0x102   : > { %v1510_v0 = vmul.f32 %v2794_v62, %v846_v63  ;;  %v991_v62 = vmul.f32 %v2709_v55, %v3453_v49  ;;  %v992_v63 = vmul.f32 %v2710_v56, %v3462_v58 }
 0x104   : > { %v1541_v3 = vpack.c.bf16 %v1510_v0, %v1509_v61  ;;  %v2875_v61 = vld [vmem:[%s3427_s13 + $0x28] sm:$0xff]   ;;  %v1014_v6 = vpack.c.bf16 %v992_v63, %v991_v62 }
 0x105   : > { %2561 = vmatmul.msk.bf16.gmra.mxu2 %vm1034_vm1, %v1009_v33  ;;  %v2857_v33 = vld [vmem:[%s3470_s27 + $0x8] sm:$0xff]  }
 0x106   : > { %2603 = vmatmul.msk.bf16.gmra.mxu0 %vm1034_vm1, %v1541_v3  ;;  %v2729_v9 = vunpack.c.l.bf16 %v2857_v33  ;;  %v2730_v41 = vunpack.c.h.bf16 %v2857_v33  ;;  %v2734_v3 = vunpack.c.h.bf16 %v2858_v57 }
 0x109   : > { %v849_v7 = vpop.f32.mrf.mxu1 }
 0x10a   : > { %v1511_v24 = vmul.f32 %v2797_v18, %v849_v7 }
 0x10c   : > { %2543 = vmatmul.msk.bf16.gmra.mxu1 %vm687_vm0, %v3362_v15  ;;  %v2701_v15 = vunpack.c.l.bf16 %v2851_v1  ;;  %v2733_v1 = vunpack.c.l.bf16 %v2858_v57 }
 0x10e   : > { %v987_v11 = vmul.f32 %v2701_v15, %v3421_v10 }
 0x110   : > { %v1012_v21 = vpack.c.bf16 %v988_v12, %v987_v11  ;;  %v804_v11 = vpop.f32.mrf.mxu3  ;;  %v2806_v12 = vunpack.c.h.bf16 %v2875_v61 }
 0x111   : > { %v851_v26 = vpop.f32.mrf.mxu1 }
 0x115   : > { %2562 = vmatmul.msk.bf16.gmra.mxu2 %vm1034_vm1, %v1010_v43 }
 0x119   : > { %v854_v35 = vpop.f32.mrf.mxu1 }
 0x11a   : > { %v1513_v50 = vmul.f32 %v2801_v42, %v854_v35 }
 0x11c   : > { %2544 = vmatmul.msk.bf16.gmra.mxu1 %vm687_vm0, %v3381_v25  ;;  %v2798_v25 = vunpack.c.h.bf16 %v2873_v8 }
 0x11e   : > { %v1512_v20 = vmul.f32 %v2798_v25, %v851_v26 }
 0x120   : > { %v1542_v28 = vpack.c.bf16 %v1512_v20, %v1511_v24  ;;  %v807_v24 = vpop.f32.mrf.mxu3 }
 0x121   : > { %v856_v51 = vpop.f32.mrf.mxu1 }
 0x122   : > { %2604 = vmatmul.msk.bf16.gmra.mxu0 %vm1034_vm1, %v1542_v28 }
 0x125   : > { %2563 = vmatmul.msk.bf16.gmra.mxu2 %vm1034_vm1, %v1011_v60 }
 0x128   : > { %v1089_v5 = vpop.f32.mrf.mxu2  ;;  %v809_v42 = vpop.f32.mrf.mxu3 }
 0x129   : > { %v1090_v14 = vadd.f32 %v3476_v2, %v1089_v5  ;;  %v859_v60 = vpop.f32.mrf.mxu1  ;;  %v2805_v5 = vunpack.c.l.bf16 %v2875_v61 }
 0x12b   : > { %v1224_v22 = vmul.f32 %v2725_v16, %v1090_v14  ;;  %v2854_v16 = vld [vmem:[%s3375_s18 + $0x60] sm:$0xff]  }
 0x12c   : > { %2545 = vmatmul.msk.bf16.gmra.mxu1 %vm687_vm0, %v3389_v34  ;;  %v2802_v34 = vunpack.c.h.bf16 %v2874_v36 }
 0x12e   : > { %v1514_v39 = vmul.f32 %v2802_v34, %v856_v51  ;;  %v2877_v34 = vld [vmem:[%s3427_s13 + $0x38] sm:$0xff]  }
 0x12f   : > { %v2814_v63 = vunpack.c.h.bf16 %v2877_v34 }
 0x130   : > { %v1091_v4 = vpop.f32.mrf.mxu2  ;;  %v1543_v13 = vpack.c.bf16 %v1514_v39, %v1513_v50  ;;  %v812_v55 = vpop.f32.mrf.mxu3 }
 0x131   : > { %v1092_v19 = vadd.f32 %v3476_v2, %v1091_v4  ;;  %v861_v49 = vpop.f32.mrf.mxu1  ;;  %v2713_v4 = vunpack.c.l.bf16 %v2854_v16 }
 0x132   : > { %2605 = vmatmul.msk.bf16.gmra.mxu0 %vm1034_vm1, %v1543_v13  ;;  %v1516_v14 = vmul.f32 %v2806_v12, %v861_v49  ;;  %v2878_v12 = vld [vmem:[%s3427_s13 + $0x40] sm:$0xff]  }
 0x133   : > { %v1225_v23 = vmul.f32 %v2726_v17, %v1092_v19  ;;  %v2714_v19 = vunpack.c.h.bf16 %v2854_v16  ;;  %v993_v25 = vmul.f32 %v2713_v4, %v802_v54 }
 0x135   : > { %v1258_v10 = vpack.c.bf16 %v1225_v23, %v1224_v22  ;;  %2564 = vmatmul.msk.bf16.gmra.mxu2 %vm1034_vm1, %v1012_v21  ;;  %v2859_v21 = vld [vmem:[%s3470_s27 + $0x18] sm:$0xff]   ;;  %v2876_v23 = vld [vmem:[%s3427_s13 + $0x30] sm:$0xff]   ;;  %v994_v26 = vmul.f32 %v2714_v19, %v804_v11  ;;  %v2861_v11 = vld [vmem:[%s3470_s27 + $0x28] sm:$0xff]  }
 0x136   : > { %v2737_v20 = vunpack.c.l.bf16 %v2859_v21  ;;  %v2738_v27 = vunpack.c.h.bf16 %v2859_v21  ;;  %v2809_v28 = vunpack.c.l.bf16 %v2876_v23  ;;  %v2810_v37 = vunpack.c.h.bf16 %v2876_v23 }
 0x137   : > { %2578 = vmatmul.msk.bf16.vlgmr.msrb.gmra.mxu3 %vm1034_vm1, %v1258_v10  ;;  %v1015_v31 = vpack.c.bf16 %v994_v26, %v993_v25  ;;  %v2745_v16 = vunpack.c.l.bf16 %v2861_v11  ;;  %v2818_v25 = vunpack.c.h.bf16 %v2878_v12  ;;  %v3540_v26 = vld [vmem:[%s4019_s9] ss:$0 sm:$0xff] }
 0x138   : > { %v1094_v29 = vpop.f32.mrf.mxu2 }
 0x139   : > { %v1095_v40 = vadd.f32 %v3476_v2, %v1094_v29  ;;  %v864_v22 = vpop.f32.mrf.mxu1 }
 0x13a   : > { %v1517_v36 = vmul.f32 %v2809_v28, %v864_v22 }
 0x13b   : > { %v1226_v47 = vmul.f32 %v2729_v9, %v1095_v40 }
 0x13c   : > { %2546 = vmatmul.msk.bf16.gmra.mxu1 %vm687_vm0, %v3397_v45  ;;  %v1515_v45 = vmul.f32 %v2805_v5, %v859_v60  ;;  %v2856_v5 = vld [vmem:[%s3375_s18 + $0x70] sm:$0xff]  }
 0x13e   : > { %v1544_v17 = vpack.c.bf16 %v1516_v14, %v1515_v45 }
 0x140   : > { %v1096_v43 = vpop.f32.mrf.mxu2 }
 0x141   : > { %v1097_v44 = vadd.f32 %v3476_v2, %v1096_v43  ;;  %v866_v38 = vpop.f32.mrf.mxu1 }
 0x142   : > { %2606 = vmatmul.msk.bf16.gmra.mxu0 %vm1034_vm1, %v1544_v17  ;;  %v1518_v9 = vmul.f32 %v2810_v37, %v866_v38  ;;  %v2746_v17 = vunpack.c.h.bf16 %v2861_v11  ;;  %v2879_v38 = vld [vmem:[%s3427_s13 + $0x48] sm:$0xff]  }
 0x143   : > { %v1227_v48 = vmul.f32 %v2730_v41, %v1097_v44  ;;  %v2855_v41 = vld [vmem:[%s3375_s18 + $0x68] sm:$0xff]   ;;  %s2888_s18 = smul.u32 120, %s498_s16 }
 0x144   : > { %v1545_v43 = vpack.c.bf16 %v1518_v9, %v1517_v36  ;;  %v2862_v36 = vld [vmem:[%s3470_s27 + $0x30] sm:$0xff]  }
 0x145   : > { %2565 = vmatmul.msk.bf16.gmra.mxu2 %vm1034_vm1, %v1013_v46  ;;  %v1259_v32 = vpack.c.bf16 %v1227_v48, %v1226_v47  ;;  %v2717_v46 = vunpack.c.l.bf16 %v2855_v41  ;;  %v2718_v47 = vunpack.c.h.bf16 %v2855_v41  ;;  %v2860_v48 = vld [vmem:[%s3470_s27 + $0x20] sm:$0xff]   ;;  %s3545_s20 = scalar_lea.vmem [#allocation2], %s2888_s18  }
 0x146   : > { %v2741_v52 = vunpack.c.l.bf16 %v2860_v48  ;;  %v2742_v13 = vunpack.c.h.bf16 %v2860_v48 }
 0x147   : > { %2579 = vmatmul.msk.bf16.gmra.mxu3 %vm1034_vm1, %v1259_v32  ;;  %v995_v51 = vmul.f32 %v2717_v46, %v807_v24  ;;  %v996_v32 = vmul.f32 %v2718_v47, %v809_v42  ;;  %v2749_v42 = vunpack.c.l.bf16 %v2862_v36 }
 0x148   : > { %v1099_v53 = vpop.f32.mrf.mxu2 }
 0x149   : > { %v1100_v0 = vadd.f32 %v3476_v2, %v1099_v53  ;;  %v869_v50 = vpop.f32.mrf.mxu1  ;;  %v2813_v53 = vunpack.c.l.bf16 %v2877_v34  ;;  %v1016_v57 = vpack.c.bf16 %v996_v32, %v995_v51  ;;  %v2822_v51 = vunpack.c.h.bf16 %v2879_v38 }
 0x14b   : > { %v1228_v7 = vmul.f32 %v2733_v1, %v1100_v0  ;;  %v1519_v62 = vmul.f32 %v2813_v53, %v869_v50 }
 0x150   : > { %v1101_v15 = vpop.f32.mrf.mxu2 }
 0x151   : > { %v1102_v59 = vadd.f32 %v3476_v2, %v1101_v15  ;;  %v871_v0 = vpop.f32.mrf.mxu1 }
 0x152   : > { %2607 = vmatmul.msk.bf16.gmra.mxu0 %vm1034_vm1, %v1545_v43  ;;  %v2750_v43 = vunpack.c.h.bf16 %v2862_v36 }
 0x153   : > { %v1229_v8 = vmul.f32 %v2734_v3, %v1102_v59  ;;  %v1520_v3 = vmul.f32 %v2814_v63, %v871_v0 }
 0x155   : > { %2566 = vmatmul.msk.bf16.gmra.mxu2 %vm1034_vm1, %v1014_v6  ;;  %v1260_v58 = vpack.c.bf16 %v1229_v8, %v1228_v7  ;;  %v1546_v15 = vpack.c.bf16 %v1520_v3, %v1519_v62  ;;  %v2721_v6 = vunpack.c.l.bf16 %v2856_v5  ;;  %v2722_v7 = vunpack.c.h.bf16 %v2856_v5  ;;  %v814_v8 = vpop.f32.mrf.mxu3 }
 0x157   : > { %2580 = vmatmul.msk.bf16.gmra.mxu3 %vm1034_vm1, %v1260_v58  ;;  %v997_v49 = vmul.f32 %v2721_v6, %v812_v55  ;;  %v998_v58 = vmul.f32 %v2722_v7, %v814_v8 }
 0x158   : > { %v1104_v18 = vpop.f32.mrf.mxu2 }
 0x159   : > { %v1105_v10 = vadd.f32 %v3476_v2, %v1104_v18  ;;  %v874_v45 = vpop.f32.mrf.mxu1  ;;  %v2817_v18 = vunpack.c.l.bf16 %v2878_v12  ;;  %v1017_v21 = vpack.c.bf16 %v998_v58, %v997_v49 }
 0x15b   : > { %v1230_v33 = vmul.f32 %v2737_v20, %v1105_v10  ;;  %v1521_v24 = vmul.f32 %v2817_v18, %v874_v45 }
 0x160   : > { %v1106_v29 = vpop.f32.mrf.mxu2 }
 0x161   : > { %v1107_v30 = vadd.f32 %v3476_v2, %v1106_v29  ;;  %v876_v20 = vpop.f32.mrf.mxu1 }
 0x162   : > { %2608 = vmatmul.msk.bf16.gmra.mxu0 %vm1034_vm1, %v1546_v15  ;;  %v1522_v28 = vmul.f32 %v2818_v25, %v876_v20 }
 0x163   : > { %v1231_v35 = vmul.f32 %v2738_v27, %v1107_v30  ;;  %v1624_v10 = vpop.f32.mrf.mxu0 }
 0x164   : > { %v1625_v29 = vadd.f32 %v3540_v26, %v1624_v10  ;;  %v1547_v30 = vpack.c.bf16 %v1522_v28, %v1521_v24 }
 0x165   : > { %2567 = vmatmul.msk.bf16.gmra.mxu2 %vm1034_vm1, %v1015_v31  ;;  %v1261_v40 = vpack.c.bf16 %v1231_v35, %v1230_v33 }
 0x166   : > { %v1699_v31 = vpack.c.bf16 %v1625_v29, %v1625_v29 }
 0x167   : > { %2581 = vmatmul.msk.bf16.gmra.mxu3 %vm1034_vm1, %v1261_v40 }
 0x168   : > { %v1109_v44 = vpop.f32.mrf.mxu2  ;;  %1730 = vst.msk [vmem:[%s3545_s20] sm:$0xf] %vm1729_vm2, %v1699_v31 }
 0x169   : > { %v1110_v39 = vadd.f32 %v3476_v2, %v1109_v44  ;;  %v879_v37 = vpop.f32.mrf.mxu1  ;;  %v2821_v44 = vunpack.c.l.bf16 %v2879_v38 }
 0x16b   : > { %v1232_v60 = vmul.f32 %v2741_v52, %v1110_v39  ;;  %v1626_v35 = vpop.f32.mrf.mxu0  ;;  %v1523_v34 = vmul.f32 %v2821_v44, %v879_v37 }
 0x16c   : > { %v1627_v40 = vadd.f32 %v3540_v26, %v1626_v35 }
 0x16e   : > { %v1700_v9 = vpack.c.bf16 %v1627_v40, %v1627_v40 }
 0x170   : > { %v1111_v54 = vpop.f32.mrf.mxu2  ;;  %1731 = vst.msk [vmem:[%s3545_s20 + $0x4] sm:$0xf] %vm1729_vm2, %v1700_v9 }
 0x171   : > { %v1112_v56 = vadd.f32 %v3476_v2, %v1111_v54  ;;  %v881_v32 = vpop.f32.mrf.mxu1 }
 0x172   : > { %2609 = vmatmul.msk.bf16.gmra.mxu0 %vm1034_vm1, %v1547_v30  ;;  %v1524_v52 = vmul.f32 %v2822_v51, %v881_v32 }
 0x173   : > { %v1233_v61 = vmul.f32 %v2742_v13, %v1112_v56  ;;  %v1629_v13 = vpop.f32.mrf.mxu0 }
 0x174   : > { %v1548_v53 = vpack.c.bf16 %v1524_v52, %v1523_v34  ;;  %v1630_v54 = vadd.f32 %v3540_v26, %v1629_v13 }
 0x175   : > { %2568 = vmatmul.msk.bf16.gmra.mxu2 %vm1034_vm1, %v1016_v57  ;;  %v1262_v1 = vpack.c.bf16 %v1233_v61, %v1232_v60  ;;  %v2863_v57 = vld [vmem:[%s3470_s27 + $0x38] sm:$0xff]   ;;  %v2880_v61 = vld [vmem:[%s3427_s13 + $0x50] sm:$0xff]  }
 0x176   : > { %v1701_v56 = vpack.c.bf16 %v1630_v54, %v1630_v54  ;;  %v2753_v62 = vunpack.c.l.bf16 %v2863_v57  ;;  %v2825_v3 = vunpack.c.l.bf16 %v2880_v61  ;;  %v2826_v45 = vunpack.c.h.bf16 %v2880_v61 }
 0x177   : > { %2582 = vmatmul.msk.bf16.gmra.mxu3 %vm1034_vm1, %v1262_v1  ;;  %v2754_v1 = vunpack.c.h.bf16 %v2863_v57 }
 0x178   : > { %v1114_v59 = vpop.f32.mrf.mxu2  ;;  %1732 = vst.msk [vmem:[%s3545_s20 + $0x8] sm:$0xf] %vm1729_vm2, %v1701_v56 }
 0x179   : > { %v1115_v14 = vadd.f32 %v3476_v2, %v1114_v59  ;;  %v884_v60 = vpop.f32.mrf.mxu1 }
 0x17a   : > { %v1525_v11 = vmul.f32 %v2825_v3, %v884_v60 }
 0x17b   : > { %v1234_v22 = vmul.f32 %v2745_v16, %v1115_v14  ;;  %v1631_v63 = vpop.f32.mrf.mxu0 }
 0x17c   : > { %v1632_v5 = vadd.f32 %v3540_v26, %v1631_v63 }
 0x17e   : > { %v1702_v6 = vpack.c.bf16 %v1632_v5, %v1632_v5 }
 0x180   : > { %v1116_v4 = vpop.f32.mrf.mxu2  ;;  %1733 = vst.msk [vmem:[%s3545_s20 + $0xc] sm:$0xf] %vm1729_vm2, %v1702_v6 }
 0x181   : > { %v1117_v19 = vadd.f32 %v3476_v2, %v1116_v4  ;;  %v886_v12 = vpop.f32.mrf.mxu1 }
 0x182   : > { %2610 = vmatmul.msk.bf16.gmra.mxu0 %vm1034_vm1, %v1548_v53  ;;  %v1526_v58 = vmul.f32 %v2826_v45, %v886_v12  ;;  %v2883_v45 = vld [vmem:[%s3427_s13 + $0x68] sm:$0xff]  }
 0x183   : > { %v1235_v23 = vmul.f32 %v2746_v17, %v1117_v19  ;;  %v1634_v14 = vpop.f32.mrf.mxu0  ;;  %v2864_v19 = vld [vmem:[%s3470_s27 + $0x40] sm:$0xff]  }
 0x184   : > { %v1549_v16 = vpack.c.bf16 %v1526_v58, %v1525_v11  ;;  %v1635_v17 = vadd.f32 %v3540_v26, %v1634_v14  ;;  %v2758_v10 = vunpack.c.h.bf16 %v2864_v19 }
 0x185   : > { %2569 = vmatmul.msk.bf16.gmra.mxu2 %vm1034_vm1, %v1017_v21  ;;  %v1263_v27 = vpack.c.bf16 %v1235_v23, %v1234_v22  ;;  %v2881_v22 = vld [vmem:[%s3427_s13 + $0x58] sm:$0xff]   ;;  %v2757_v23 = vunpack.c.l.bf16 %v2864_v19 }
 0x186   : > { %v1703_v4 = vpack.c.bf16 %v1635_v17, %v1635_v17  ;;  %v2829_v20 = vunpack.c.l.bf16 %v2881_v22  ;;  %v2830_v36 = vunpack.c.h.bf16 %v2881_v22 }
 0x187   : > { %2583 = vmatmul.msk.bf16.gmra.mxu3 %vm1034_vm1, %v1263_v27 }
 0x188   : > { %v1119_v33 = vpop.f32.mrf.mxu2  ;;  %1734 = vst.msk [vmem:[%s3545_s20 + $0x10] sm:$0xf] %vm1729_vm2, %v1703_v4 }
 0x189   : > { %v1120_v41 = vadd.f32 %v3476_v2, %v1119_v33  ;;  %v889_v21 = vpop.f32.mrf.mxu1 }
 0x18a   : > { %v1527_v35 = vmul.f32 %v2829_v20, %v889_v21 }
 0x18b   : > { %v1236_v48 = vmul.f32 %v2749_v42, %v1120_v41  ;;  %v1636_v24 = vpop.f32.mrf.mxu0 }
 0x18c   : > { %v1637_v27 = vadd.f32 %v3540_v26, %v1636_v24 }
 0x18e   : > { %v1704_v30 = vpack.c.bf16 %v1637_v27, %v1637_v27 }
 0x190   : > { %v1121_v46 = vpop.f32.mrf.mxu2  ;;  %1735 = vst.msk [vmem:[%s3545_s20 + $0x14] sm:$0xf] %vm1729_vm2, %v1704_v30 }
 0x191   : > { %v1122_v47 = vadd.f32 %v3476_v2, %v1121_v46  ;;  %v891_v37 = vpop.f32.mrf.mxu1 }
 0x192   : > { %2611 = vmatmul.msk.bf16.gmra.mxu0 %vm1034_vm1, %v1549_v16  ;;  %v1528_v40 = vmul.f32 %v2830_v36, %v891_v37  ;;  %v2837_v16 = vunpack.c.l.bf16 %v2883_v45  ;;  %v2867_v36 = vld [vmem:[%s3470_s27 + $0x58] sm:$0xff]  }
 0x193   : > { %v1237_v50 = vmul.f32 %v2750_v43, %v1122_v47  ;;  %v2865_v47 = vld [vmem:[%s3470_s27 + $0x48] sm:$0xff]  }
 0x194   : > { %v1550_v41 = vpack.c.bf16 %v1528_v40, %v1527_v35  ;;  %v2761_v34 = vunpack.c.l.bf16 %v2865_v47  ;;  %v2769_v40 = vunpack.c.l.bf16 %v2867_v36 }
 0x195   : > { %v1264_v39 = vpack.c.bf16 %v1237_v50, %v1236_v48  ;;  %v2882_v50 = vld [vmem:[%s3427_s13 + $0x60] sm:$0xff]  }
 0x196   : > { %v2833_v52 = vunpack.c.l.bf16 %v2882_v50 }
 0x197   : > { %2584 = vmatmul.msk.bf16.gmra.mxu3 %vm1034_vm1, %v1264_v39  ;;  %v2762_v39 = vunpack.c.h.bf16 %v2865_v47 }
 0x198   : > { %v1124_v55 = vpop.f32.mrf.mxu2 }
 0x199   : > { %v1125_v0 = vadd.f32 %v3476_v2, %v1124_v55  ;;  %v894_v48 = vpop.f32.mrf.mxu1 }
 0x19a   : > { %v1529_v61 = vmul.f32 %v2833_v52, %v894_v48 }
 0x19b   : > { %v1238_v7 = vmul.f32 %v2753_v62, %v1125_v0  ;;  %v2834_v62 = vunpack.c.h.bf16 %v2882_v50 }
 0x19f   : > { %v1639_v9 = vpop.f32.mrf.mxu0 }
 0x1a0   : > { %v1126_v15 = vpop.f32.mrf.mxu2  ;;  %v1640_v42 = vadd.f32 %v3540_v26, %v1639_v9 }
 0x1a1   : > { %v1127_v59 = vadd.f32 %v3476_v2, %v1126_v15  ;;  %v896_v63 = vpop.f32.mrf.mxu1 }
 0x1a2   : > { %v1705_v44 = vpack.c.bf16 %v1640_v42, %v1640_v42  ;;  %2612 = vmatmul.msk.bf16.gmra.mxu0 %vm1034_vm1, %v1550_v41  ;;  %v2770_v42 = vunpack.c.h.bf16 %v2867_v36  ;;  %v2870_v36 = vld [vmem:[%s3470_s27 + $0x70] sm:$0xff]  }
 0x1a3   : > { %v1239_v8 = vmul.f32 %v2754_v1, %v1127_v59  ;;  %v1530_v1 = vmul.f32 %v2834_v62, %v896_v63  ;;  %v2868_v62 = vld [vmem:[%s3470_s27 + $0x60] sm:$0xff]  }
 0x1a4   : > { %1736 = vst.msk [vmem:[%s3545_s20 + $0x18] sm:$0xf] %vm1729_vm2, %v1705_v44 }
 0x1a5   : > { %v1265_v49 = vpack.c.bf16 %v1239_v8, %v1238_v7  ;;  %v1551_v5 = vpack.c.bf16 %v1530_v1, %v1529_v61  ;;  %v2866_v8 = vld [vmem:[%s3470_s27 + $0x50] sm:$0xff]   ;;  %v2773_v1 = vunpack.c.l.bf16 %v2868_v62 }
 0x1a6   : > { %v2765_v12 = vunpack.c.l.bf16 %v2866_v8  ;;  %v2766_v14 = vunpack.c.h.bf16 %v2866_v8 }
 0x1a7   : > { %2585 = vmatmul.msk.bf16.gmra.mxu3 %vm1034_vm1, %v1265_v49  ;;  %v1641_v51 = vpop.f32.mrf.mxu0 }
 0x1a8   : > { %v1129_v18 = vpop.f32.mrf.mxu2  ;;  %v1642_v13 = vadd.f32 %v3540_v26, %v1641_v51 }
 0x1a9   : > { %v1130_v25 = vadd.f32 %v3476_v2, %v1129_v18  ;;  %v899_v11 = vpop.f32.mrf.mxu1 }
 0x1aa   : > { %v1706_v55 = vpack.c.bf16 %v1642_v13, %v1642_v13  ;;  %v1531_v24 = vmul.f32 %v2837_v16, %v899_v11 }
 0x1ab   : > { %v1240_v31 = vmul.f32 %v2757_v23, %v1130_v25  ;;  %v2838_v25 = vunpack.c.h.bf16 %v2883_v45 }
 0x1ac   : > { %1737 = vst.msk [vmem:[%s3545_s20 + $0x1c] sm:$0xf] %vm1729_vm2, %v1706_v55 }
 0x1af   : > { %v1644_v3 = vpop.f32.mrf.mxu0 }
 0x1b0   : > { %v1131_v28 = vpop.f32.mrf.mxu2  ;;  %v1645_v15 = vadd.f32 %v3540_v26, %v1644_v3  ;;  %v2774_v3 = vunpack.c.h.bf16 %v2868_v62 }
 0x1b1   : > { %v1132_v29 = vadd.f32 %v3476_v2, %v1131_v28 }
 0x1b2   : > { %v1707_v6 = vpack.c.bf16 %v1645_v15, %v1645_v15  ;;  %2613 = vmatmul.msk.bf16.gmra.mxu0 %vm1034_vm1, %v1551_v5 }
 0x1b3   : > { %v1241_v33 = vmul.f32 %v2758_v10, %v1132_v29  ;;  %v901_v10 = vpop.f32.mrf.mxu1 }
 0x1b4   : > { %1738 = vst.msk [vmem:[%s3545_s20 + $0x20] sm:$0xf] %vm1729_vm2, %v1707_v6  ;;  %v1532_v27 = vmul.f32 %v2838_v25, %v901_v10 }
 0x1b5   : > { %v1266_v38 = vpack.c.bf16 %v1241_v33, %v1240_v31 }
 0x1b6   : > { %v1552_v29 = vpack.c.bf16 %v1532_v27, %v1531_v24 }
 0x1b7   : > { %2586 = vmatmul.msk.bf16.gmra.mxu3 %vm1034_vm1, %v1266_v38  ;;  %v1646_v49 = vpop.f32.mrf.mxu0  ;;  %v2884_v38 = vld [vmem:[%s3427_s13 + $0x70] sm:$0xff]   ;;  %s1772_s13 = ssub.s32 (%p3300_p4), 58, %s3308_s14 }
 0x1b8   : > { %v1134_v43 = vpop.f32.mrf.mxu2  ;;  %v1647_v17 = vadd.f32 %v3540_v26, %v1646_v49  ;;  %p1773_p8 = scmp.lt.s32.totalorder (%p3300_p4), %s1772_s13, 30 }
 0x1b9   : > { %v1135_v32 = vadd.f32 %v3476_v2, %v1134_v43  ;;  %v2841_v43 = vunpack.c.l.bf16 %v2884_v38 }
 0x1ba   : > { %v1339_v46 = vpop.f32.mrf.mxu3  ;;  %v1708_v19 = vpack.c.bf16 %v1647_v17, %v1647_v17  ;;  %v2869_v17 = vld [vmem:[%s3470_s27 + $0x68] sm:$0xff]  }
 0x1bb   : > { %1415 = vst.msk [vmem:[%s3587_s21] sm:$0xff] %vm1414_vm3, %v1339_v46  ;;  %v1242_v57 = vmul.f32 %v2761_v34, %v1135_v32  ;;  %v904_v37 = vpop.f32.mrf.mxu1 }
 0x1bc   : > { %1739 = vst.msk [vmem:[%s3545_s20 + $0x24] sm:$0xf] %vm1729_vm2, %v1708_v19  ;;  %v1533_v32 = vmul.f32 %v2841_v43, %v904_v37  ;;  %v2777_v19 = vunpack.c.l.bf16 %v2869_v17 }
 0x1bf   : > { %v1649_v28 = vpop.f32.mrf.mxu0 }
 0x1c0   : > { %v1136_v53 = vpop.f32.mrf.mxu2  ;;  %v1650_v30 = vadd.f32 %v3540_v26, %v1649_v28 }
 0x1c1   : > { %v1137_v54 = vadd.f32 %v3476_v2, %v1136_v53 }
 0x1c2   : > { %v1341_v56 = vpop.f32.mrf.mxu3  ;;  %v1709_v33 = vpack.c.bf16 %v1650_v30, %v1650_v30  ;;  %2614 = vmatmul.msk.bf16.gmra.mxu0 %vm1034_vm1, %v1552_v29 }
 0x1c3   : > { %v1243_v60 = vmul.f32 %v2762_v39, %v1137_v54  ;;  %1416 = vst.msk [vmem:[%s3587_s21 + $0x8] sm:$0xff] %vm1414_vm3, %v1341_v56  ;;  %v2842_v39 = vunpack.c.h.bf16 %v2884_v38  ;;  %v906_v52 = vpop.f32.mrf.mxu1 }
 0x1c4   : > { %1740 = vst.msk [vmem:[%s3545_s20 + $0x28] sm:$0xf] %vm1729_vm2, %v1709_v33 }
 0x1c5   : > { %v1267_v0 = vpack.c.bf16 %v1243_v60, %v1242_v57  ;;  %v1534_v53 = vmul.f32 %v2842_v39, %v906_v52 }
 0x1c7   : > { %2587 = vmatmul.msk.bf16.gmra.mxu3 %vm1034_vm1, %v1267_v0  ;;  %v1651_v9 = vpop.f32.mrf.mxu0  ;;  %v1553_v55 = vpack.c.bf16 %v1534_v53, %v1533_v32 }
 0x1c8   : > { %v1139_v59 = vpop.f32.mrf.mxu2  ;;  %v1652_v44 = vadd.f32 %v3540_v26, %v1651_v9  ;;  %v2782_v9 = vunpack.c.h.bf16 %v2870_v36 }
 0x1c9   : > { %v1140_v58 = vadd.f32 %v3476_v2, %v1139_v59 }
 0x1ca   : > { %v1344_v7 = vpop.f32.mrf.mxu3  ;;  %v1710_v48 = vpack.c.bf16 %v1652_v44, %v1652_v44 }
 0x1cb   : > { %1417 = vst.msk [vmem:[%s3587_s21 + $0x10] sm:$0xff] %vm1414_vm3, %v1344_v7  ;;  %v1244_v22 = vmul.f32 %v2765_v12, %v1140_v58 }
 0x1cc   : > { %1741 = vst.msk [vmem:[%s3545_s20 + $0x2c] sm:$0xf] %vm1729_vm2, %v1710_v48 }
 0x1cf   : > { %v1654_v54 = vpop.f32.mrf.mxu0 }
 0x1d0   : > { %v1141_v18 = vpop.f32.mrf.mxu2  ;;  %v1655_v56 = vadd.f32 %v3540_v26, %v1654_v54 }
 0x1d1   : > { %v1142_v4 = vadd.f32 %v3476_v2, %v1141_v18 }
 0x1d2   : > { %v1346_v21 = vpop.f32.mrf.mxu3  ;;  %v1711_v60 = vpack.c.bf16 %v1655_v56, %v1655_v56  ;;  %2615 = vmatmul.msk.bf16.gmra.mxu0 %vm1034_vm1, %v1553_v55 }
 0x1d3   : > { %v1245_v23 = vmul.f32 %v2766_v14, %v1142_v4  ;;  %1418 = vst.msk [vmem:[%s3587_s21 + $0x18] sm:$0xff] %vm1414_vm3, %v1346_v21  ;;  %v2778_v21 = vunpack.c.h.bf16 %v2869_v17 }
 0x1d4   : > { %1742 = vst.msk [vmem:[%s3545_s20 + $0x30] sm:$0xf] %vm1729_vm2, %v1711_v60 }
 0x1d5   : > { %v1268_v20 = vpack.c.bf16 %v1245_v23, %v1244_v22 }
 0x1d7   : > { %2588 = vmatmul.msk.bf16.gmra.mxu3 %vm1034_vm1, %v1268_v20  ;;  %v1656_v63 = vpop.f32.mrf.mxu0 }
 0x1d8   : > { %v1144_v31 = vpop.f32.mrf.mxu2  ;;  %v1657_v5 = vadd.f32 %v3540_v26, %v1656_v63 }
 0x1d9   : > { %v1145_v41 = vadd.f32 %v3476_v2, %v1144_v31 }
 0x1da   : > { %v1349_v35 = vpop.f32.mrf.mxu3  ;;  %v1712_v6 = vpack.c.bf16 %v1657_v5, %v1657_v5 }
 0x1db   : > { %1419 = vst.msk [vmem:[%s3587_s21 + $0x20] sm:$0xff] %vm1414_vm3, %v1349_v35  ;;  %v1246_v34 = vmul.f32 %v2769_v40, %v1145_v41  ;;  %v2781_v40 = vunpack.c.l.bf16 %v2870_v36 }
 0x1dc   : > { %1743 = vst.msk [vmem:[%s3545_s20 + $0x34] sm:$0xf] %vm1729_vm2, %v1712_v6 }
 0x1df   : > { %v1659_v12 = vpop.f32.mrf.mxu0 }
 0x1e0   : > { %v1146_v46 = vpop.f32.mrf.mxu2  ;;  %v1660_v49 = vadd.f32 %v3540_v26, %v1659_v12 }
 0x1e1   : > { %v1147_v47 = vadd.f32 %v3476_v2, %v1146_v46 }
 0x1e2   : > { %v1351_v50 = vpop.f32.mrf.mxu3  ;;  %v1713_v14 = vpack.c.bf16 %v1660_v49, %v1660_v49 }
 0x1e3   : > { %v1247_v51 = vmul.f32 %v2770_v42, %v1147_v47  ;;  %1420 = vst.msk [vmem:[%s3587_s21 + $0x28] sm:$0xff] %vm1414_vm3, %v1351_v50 }
 0x1e4   : > { %1744 = vst.msk [vmem:[%s3545_s20 + $0x38] sm:$0xf] %vm1729_vm2, %v1713_v14 }
 0x1e5   : > { %v1269_v13 = vpack.c.bf16 %v1247_v51, %v1246_v34 }
 0x1e7   : > { %2589 = vmatmul.msk.bf16.gmra.mxu3 %vm1034_vm1, %v1269_v13  ;;  %v1661_v18 = vpop.f32.mrf.mxu0 }
 0x1e8   : > { %v1149_v57 = vpop.f32.mrf.mxu2  ;;  %v1662_v22 = vadd.f32 %v3540_v26, %v1661_v18 }
 0x1e9   : > { %v1150_v0 = vadd.f32 %v3476_v2, %v1149_v57 }
 0x1ea   : > { %v1354_v61 = vpop.f32.mrf.mxu3  ;;  %v1714_v25 = vpack.c.bf16 %v1662_v22, %v1662_v22 }
 0x1eb   : > { %1421 = vst.msk [vmem:[%s3587_s21 + $0x30] sm:$0xff] %vm1414_vm3, %v1354_v61  ;;  %v1248_v8 = vmul.f32 %v2773_v1, %v1150_v0 }
 0x1ec   : > { %1745 = vst.msk [vmem:[%s3545_s20 + $0x3c] sm:$0xf] %vm1729_vm2, %v1714_v25 }
 0x1ef   : > { %v1664_v29 = vpop.f32.mrf.mxu0 }
 0x1f0   : > { %v1151_v15 = vpop.f32.mrf.mxu2  ;;  %v1665_v30 = vadd.f32 %v3540_v26, %v1664_v29 }
 0x1f1   : > { %v1152_v59 = vadd.f32 %v3476_v2, %v1151_v15 }
 0x1f2   : > { %v1356_v7 = vpop.f32.mrf.mxu3  ;;  %v1715_v33 = vpack.c.bf16 %v1665_v30, %v1665_v30 }
 0x1f3   : > { %v1249_v11 = vmul.f32 %v2774_v3, %v1152_v59  ;;  %1422 = vst.msk [vmem:[%s3587_s21 + $0x38] sm:$0xff] %vm1414_vm3, %v1356_v7 }
 0x1f4   : > { %1746 = vst.msk [vmem:[%s3545_s20 + $0x40] sm:$0xf] %vm1729_vm2, %v1715_v33 }
 0x1f5   : > { %v1270_v45 = vpack.c.bf16 %v1249_v11, %v1248_v8 }
 0x1f7   : > { %2590 = vmatmul.msk.bf16.gmra.mxu3 %vm1034_vm1, %v1270_v45  ;;  %v1666_v37 = vpop.f32.mrf.mxu0 }
 0x1f8   : > { %v1154_v58 = vpop.f32.mrf.mxu2  ;;  %v1667_v41 = vadd.f32 %v3540_v26, %v1666_v37 }
 0x1f9   : > { %v1155_v4 = vadd.f32 %v3476_v2, %v1154_v58 }
 0x1fa   : > { %v1359_v16 = vpop.f32.mrf.mxu3  ;;  %v1716_v44 = vpack.c.bf16 %v1667_v41, %v1667_v41 }
 0x1fb   : > { %1423 = vst.msk [vmem:[%s3587_s21 + $0x40] sm:$0xff] %vm1414_vm3, %v1359_v16  ;;  %v1250_v20 = vmul.f32 %v2777_v19, %v1155_v4 }
 0x1fc   : > { %1747 = vst.msk [vmem:[%s3545_s20 + $0x44] sm:$0xf] %vm1729_vm2, %v1716_v44 }
 0x1ff   : > { %v1669_v34 = vpop.f32.mrf.mxu0 }
 0x200   : > { %v1156_v23 = vpop.f32.mrf.mxu2  ;;  %v1670_v51 = vadd.f32 %v3540_v26, %v1669_v34 }
 0x201   : > { %v1157_v24 = vadd.f32 %v3476_v2, %v1156_v23 }
 0x202   : > { %v1361_v10 = vpop.f32.mrf.mxu3  ;;  %v1717_v32 = vpack.c.bf16 %v1670_v51, %v1670_v51 }
 0x203   : > { %v1251_v27 = vmul.f32 %v2778_v21, %v1157_v24  ;;  %1424 = vst.msk [vmem:[%s3587_s21 + $0x48] sm:$0xff] %vm1414_vm3, %v1361_v10 }
 0x204   : > { %1748 = vst.msk [vmem:[%s3545_s20 + $0x48] sm:$0xf] %vm1729_vm2, %v1717_v32 }
 0x205   : > { %v1271_v28 = vpack.c.bf16 %v1251_v27, %v1250_v20 }
 0x207   : > { %2591 = vmatmul.msk.bf16.gmra.mxu3 %vm1034_vm1, %v1271_v28  ;;  %v1671_v39 = vpop.f32.mrf.mxu0 }
 0x208   : > { %v1159_v31 = vpop.f32.mrf.mxu2  ;;  %v1672_v52 = vadd.f32 %v3540_v26, %v1671_v39 }
 0x209   : > { %v1160_v38 = vadd.f32 %v3476_v2, %v1159_v31 }
 0x20a   : > { %v1364_v35 = vpop.f32.mrf.mxu3  ;;  %v1718_v13 = vpack.c.bf16 %v1672_v52, %v1672_v52 }
 0x20b   : > { %1425 = vst.msk [vmem:[%s3587_s21 + $0x50] sm:$0xff] %vm1414_vm3, %v1364_v35  ;;  %v1252_v47 = vmul.f32 %v2781_v40, %v1160_v38 }
 0x20c   : > { %1749 = vst.msk [vmem:[%s3545_s20 + $0x4c] sm:$0xf] %vm1729_vm2, %v1718_v13 }
 0x20f   : > { %v1674_v54 = vpop.f32.mrf.mxu0 }
 0x210   : > { %v1161_v42 = vpop.f32.mrf.mxu2  ;;  %v1675_v55 = vadd.f32 %v3540_v26, %v1674_v54 }
 0x211   : > { %v1162_v43 = vadd.f32 %v3476_v2, %v1161_v42 }
 0x212   : > { %v1366_v46 = vpop.f32.mrf.mxu3  ;;  %v1719_v56 = vpack.c.bf16 %v1675_v55, %v1675_v55 }
 0x213   : > { %v1253_v48 = vmul.f32 %v2782_v9, %v1162_v43  ;;  %1426 = vst.msk [vmem:[%s3587_s21 + $0x58] sm:$0xff] %vm1414_vm3, %v1366_v46 }
 0x214   : > { %1750 = vst.msk [vmem:[%s3545_s20 + $0x50] sm:$0xf] %vm1729_vm2, %v1719_v56 }
 0x215   : > { %v1272_v50 = vpack.c.bf16 %v1253_v48, %v1252_v47 }
 0x217   : > { %2592 = vmatmul.msk.bf16.gmra.mxu3 %vm1034_vm1, %v1272_v50  ;;  %v1676_v60 = vpop.f32.mrf.mxu0 }
 0x218   : > { %v1677_v61 = vadd.f32 %v3540_v26, %v1676_v60 }
 0x21a   : > { %v1369_v2 = vpop.f32.mrf.mxu3  ;;  %v1720_v62 = vpack.c.bf16 %v1677_v61, %v1677_v61 }
 0x21b   : > { %1427 = vst.msk [vmem:[%s3587_s21 + $0x60] sm:$0xff] %vm1414_vm3, %v1369_v2 }
 0x21c   : > { %1751 = vst.msk [vmem:[%s3545_s20 + $0x54] sm:$0xf] %vm1729_vm2, %v1720_v62 }
 0x21f   : > { %v1679_v0 = vpop.f32.mrf.mxu0 }
 0x220   : > { %v1680_v1 = vadd.f32 %v3540_v26, %v1679_v0 }
 0x222   : > { %v1371_v53 = vpop.f32.mrf.mxu3  ;;  %v1721_v3 = vpack.c.bf16 %v1680_v1, %v1680_v1 }
 0x223   : > { %1428 = vst.msk [vmem:[%s3587_s21 + $0x68] sm:$0xff] %vm1414_vm3, %v1371_v53 }
 0x224   : > { %1752 = vst.msk [vmem:[%s3545_s20 + $0x58] sm:$0xf] %vm1729_vm2, %v1721_v3 }
 0x227   : > { %v1681_v15 = vpop.f32.mrf.mxu0 }
 0x228   : > { %v1682_v59 = vadd.f32 %v3540_v26, %v1681_v15 }
 0x22a   : > { %v1374_v57 = vpop.f32.mrf.mxu3  ;;  %v1722_v6 = vpack.c.bf16 %v1682_v59, %v1682_v59 }
 0x22b   : > { %1429 = vst.msk [vmem:[%s3587_s21 + $0x70] sm:$0xff] %vm1414_vm3, %v1374_v57 }
 0x22c   : > { %1753 = vst.msk [vmem:[%s3545_s20 + $0x5c] sm:$0xf] %vm1729_vm2, %v1722_v6 }
 0x22f   : > { %v1684_v8 = vpop.f32.mrf.mxu0 }
 0x230   : > { %v1685_v11 = vadd.f32 %v3540_v26, %v1684_v8 }
 0x232   : > { %v1376_v63 = vpop.f32.mrf.mxu3  ;;  %v1723_v45 = vpack.c.bf16 %v1685_v11, %v1685_v11 }
 0x233   : > { %1430 = vst.msk [vmem:[%s3587_s21 + $0x78] sm:$0xff] %vm1414_vm3, %v1376_v63 }
 0x234   : > { %1754 = vst.msk [vmem:[%s3545_s20 + $0x60] sm:$0xf] %vm1729_vm2, %v1723_v45 }
 0x237   : > { %v1686_v49 = vpop.f32.mrf.mxu0 }
 0x238   : > { %v1687_v58 = vadd.f32 %v3540_v26, %v1686_v49 }
 0x23a   : > { %v1379_v5 = vpop.f32.mrf.mxu3  ;;  %v1724_v14 = vpack.c.bf16 %v1687_v58, %v1687_v58 }
 0x23b   : > { %1431 = vst.msk [vmem:[%s3587_s21 + $0x80] sm:$0xff] %vm1414_vm3, %v1379_v5 }
 0x23c   : > { %1755 = vst.msk [vmem:[%s3545_s20 + $0x64] sm:$0xf] %vm1729_vm2, %v1724_v14 }
 0x23f   : > { %v1689_v17 = vpop.f32.mrf.mxu0 }
 0x240   : > { %v1690_v18 = vadd.f32 %v3540_v26, %v1689_v17 }
 0x242   : > { %v1381_v7 = vpop.f32.mrf.mxu3  ;;  %v1725_v4 = vpack.c.bf16 %v1690_v18, %v1690_v18 }
 0x243   : > { %1432 = vst.msk [vmem:[%s3587_s21 + $0x88] sm:$0xff] %vm1414_vm3, %v1381_v7 }
 0x244   : > { %1756 = vst.msk [vmem:[%s3545_s20 + $0x68] sm:$0xf] %vm1729_vm2, %v1725_v4 }
 0x247   : > { %v1691_v21 = vpop.f32.mrf.mxu0 }
 0x248   : > { %v1692_v22 = vadd.f32 %v3540_v26, %v1691_v21 }
 0x24a   : > { %v1384_v12 = vpop.f32.mrf.mxu3  ;;  %v1726_v23 = vpack.c.bf16 %v1692_v22, %v1692_v22 }
 0x24b   : > { %1433 = vst.msk [vmem:[%s3587_s21 + $0x90] sm:$0xff] %vm1414_vm3, %v1384_v12 }
 0x24c   : > { %1757 = vst.msk [vmem:[%s3545_s20 + $0x6c] sm:$0xf] %vm1729_vm2, %v1726_v23 }
 0x24f   : > { %v1694_v25 = vpop.f32.mrf.mxu0 }
 0x250   : > { %v1695_v10 = vadd.f32 %v3540_v26, %v1694_v25 }
 0x252   : > { %v1386_v16 = vpop.f32.mrf.mxu3  ;;  %v1727_v20 = vpack.c.bf16 %v1695_v10, %v1695_v10 }
 0x253   : > { %1434 = vst.msk [vmem:[%s3587_s21 + $0x98] sm:$0xff] %vm1414_vm3, %v1386_v16 }
 0x254   : > { %1758 = vst.msk [vmem:[%s3545_s20 + $0x70] sm:$0xf] %vm1729_vm2, %v1727_v20 }
 0x257   : > { %v1696_v28 = vpop.f32.mrf.mxu0 }
 0x258   : > { %v1697_v29 = vadd.f32 %v3540_v26, %v1696_v28 }
 0x25a   : > { %v1389_v19 = vpop.f32.mrf.mxu3  ;;  %v1728_v30 = vpack.c.bf16 %v1697_v29, %v1697_v29 }
 0x25b   : > { %1435 = vst.msk [vmem:[%s3587_s21 + $0xa0] sm:$0xff] %vm1414_vm3, %v1389_v19 }
 0x25c   : > { %1759 = vst.msk [vmem:[%s3545_s20 + $0x74] sm:$0xf] %vm1729_vm2, %v1728_v30 }
 0x262   : > { %v1391_v24 = vpop.f32.mrf.mxu3 }
 0x263   : > { %1436 = vst.msk [vmem:[%s3587_s21 + $0xa8] sm:$0xff] %vm1414_vm3, %v1391_v24 }
 0x26a   : > { %v1394_v27 = vpop.f32.mrf.mxu3 }
 0x26b   : > { %1437 = vst.msk [vmem:[%s3587_s21 + $0xb0] sm:$0xff] %vm1414_vm3, %v1394_v27 }
 0x272   : > { %v1396_v31 = vpop.f32.mrf.mxu3 }
 0x273   : > { %1438 = vst.msk [vmem:[%s3587_s21 + $0xb8] sm:$0xff] %vm1414_vm3, %v1396_v31 }
 0x27a   : > { %v1399_v33 = vpop.f32.mrf.mxu3 }
 0x27b   : > { %1439 = vst.msk [vmem:[%s3587_s21 + $0xc0] sm:$0xff] %vm1414_vm3, %v1399_v33 }
 0x282   : > { %v1401_v35 = vpop.f32.mrf.mxu3 }
 0x283   : > { %1440 = vst.msk [vmem:[%s3587_s21 + $0xc8] sm:$0xff] %vm1414_vm3, %v1401_v35 }
 0x28a   : > { %v1404_v36 = vpop.f32.mrf.mxu3 }
 0x28b   : > { %1441 = vst.msk [vmem:[%s3587_s21 + $0xd0] sm:$0xff] %vm1414_vm3, %v1404_v36 }
 0x292   : > { %v1406_v37 = vpop.f32.mrf.mxu3 }
 0x293   : > { %1442 = vst.msk [vmem:[%s3587_s21 + $0xd8] sm:$0xff] %vm1414_vm3, %v1406_v37 }
 0x29a   : > { %v1409_v26 = vpop.f32.mrf.mxu3 }
 0x29b   : > { %1443 = vst.msk [vmem:[%s3587_s21 + $0xe0] sm:$0xff] %vm1414_vm3, %v1409_v26 }
 0x29f   : > { %1770 = sbr.rel (!%p3300_p4) target bundleno = 753 (0x2f1), region = 68 }
 0x2a2   : > { %v1411_v38 = vpop.f32.mrf.mxu3 }
 0x2a3   : > { %1444 = vst.msk [vmem:[%s3587_s21 + $0xe8] sm:$0xff] %vm1414_vm3, %v1411_v38 }
 0x2a4   : > { %s4048_s13 = smov (!%p1773_p8, %s1772_s13), 30 }
 0x2a5   : > { %s2616_s16 = sshll.u32 %s4048_s13, 2 }
 0x2a6   : > { %p2619_p9 = scmp.eq.s32.totalorder %s2616_s16, 0 }
 0x2a7   : > { %3046 = sdivrem.u32 (!%p2619_p9), %s4048_s13, 30 }
 0x2a8   : > { %1781 = sbr.rel (%p2619_p9) target bundleno = 753 (0x2f1), region = 72 }
 0x2b0   : > { %s3762_s18 = spop.drf %3046 }
 0x2b1   : > { %s3048_s17 = spop.drf %3046  ;;  %p2620_p10 = scmp.le.s32.totalorder %s3762_s18, 0 }
 0x2b2   : > { %s4034_s19 = smov (!%p2620_p10), %s3756_s15  ;;  %s4035_s23 = smov (!%p2620_p10), %s3545_s20 }
 0x2b3   : > { %2342 = sbr.rel (%p2620_p10) target bundleno = 727 (0x2d7), region = 225  ;;  %s3771_s26 = smov (!%p2620_p10), 0  }
 0x2b4   : > { %s3773_s27 = smov (!%p2620_p10), 0  }
 0x2b8 LB: >> { %v1799_v40 = vld [vmem:[%s3152_s23] sm:$0xf]  ;;  %v1801_v9 = vld [vmem:[%s3152_s23 + $0x4] sm:$0xf]  ;;  %v1803_v41 = vld [vmem:[%s3152_s23 + $0x8] sm:$0xf]  ;;  %s3160_s27 = sphi %s3773_s27, %s1793_s27   ;;  %s3156_s26 = sphi %s3771_s26, %s4038_s26   ;;  %s3152_s23 = sphi %s4035_s23, %s4037_s23   ;;  %s3148_s19 = sphi %s4034_s19, %s4036_s19  }
 0x2b9   : >> { %1800 = vst [vmem:[%s3148_s19] sm:$0xf] %v1799_v40  ;;  %v1805_v42 = vld [vmem:[%s3152_s23 + $0xc] sm:$0xf]  ;;  %v1807_v43 = vld [vmem:[%s3152_s23 + $0x10] sm:$0xf]  ;;  %s1859_s30 = sadd.s32 1, %s3156_s26 }
 0x2ba   : >> { %1802 = vst [vmem:[%s3148_s19 + $0x4] sm:$0xf] %v1801_v9  ;;  %v1809_v44 = vld [vmem:[%s3152_s23 + $0x14] sm:$0xf]  ;;  %v1811_v46 = vld [vmem:[%s3152_s23 + $0x18] sm:$0xf]  ;;  %p1860_p11 = scmp.ge.s32.totalorder %s1859_s30, %s3762_s18 }
 0x2bb   : >> { %1804 = vst [vmem:[%s3148_s19 + $0x8] sm:$0xf] %v1803_v41  ;;  %v1813_v47 = vld [vmem:[%s3152_s23 + $0x1c] sm:$0xf]  ;;  %v1815_v48 = vld [vmem:[%s3152_s23 + $0x20] sm:$0xf] }
 0x2bc   : >> { %1806 = vst [vmem:[%s3148_s19 + $0xc] sm:$0xf] %v1805_v42  ;;  %v1817_v50 = vld [vmem:[%s3152_s23 + $0x24] sm:$0xf]  ;;  %v1819_v34 = vld [vmem:[%s3152_s23 + $0x28] sm:$0xf] }
 0x2bd   : >> { %1808 = vst [vmem:[%s3148_s19 + $0x10] sm:$0xf] %v1807_v43  ;;  %v1821_v51 = vld [vmem:[%s3152_s23 + $0x2c] sm:$0xf]  ;;  %v1823_v32 = vld [vmem:[%s3152_s23 + $0x30] sm:$0xf] }
 0x2be   : >> { %1810 = vst [vmem:[%s3148_s19 + $0x14] sm:$0xf] %v1809_v44  ;;  %v1825_v2 = vld [vmem:[%s3152_s23 + $0x34] sm:$0xf]  ;;  %v1827_v39 = vld [vmem:[%s3152_s23 + $0x38] sm:$0xf] }
 0x2bf   : >> { %1812 = vst [vmem:[%s3148_s19 + $0x18] sm:$0xf] %v1811_v46  ;;  %v1829_v52 = vld [vmem:[%s3152_s23 + $0x3c] sm:$0xf]  ;;  %v1831_v13 = vld [vmem:[%s3152_s23 + $0x40] sm:$0xf] }
 0x2c0   : >> { %1814 = vst [vmem:[%s3148_s19 + $0x1c] sm:$0xf] %v1813_v47  ;;  %s4050_s30 = smov (%p1860_p11, %s1859_s30), 0  ;;  %v1833_v53 = vld [vmem:[%s3152_s23 + $0x44] sm:$0xf]  ;;  %s1793_s27 = sadd.s32 1, %s3160_s27  }
 0x2c1   : >> { %1816 = vst [vmem:[%s3148_s19 + $0x20] sm:$0xf] %v1815_v48  ;;  %v1835_v54 = vld [vmem:[%s3152_s23 + $0x48] sm:$0xf]  ;;  %s1862_s16 = smul.u32 120, %s4050_s30  ;;  %p1792_p12 = scmp.ge.s32.totalorder %s1793_s27, %s3762_s18 }
 0x2c2   : >> { %1818 = vst [vmem:[%s3148_s19 + $0x24] sm:$0xf] %v1817_v50  ;;  %v1837_v55 = vld [vmem:[%s3152_s23 + $0x4c] sm:$0xf]  ;;  %v1839_v56 = vld [vmem:[%s3152_s23 + $0x50] sm:$0xf] }
 0x2c3   : >> { %1820 = vst [vmem:[%s3148_s19 + $0x28] sm:$0xf] %v1819_v34  ;;  %s1864_s17 = scalar_lea.vmem %s3545_s20, %s1862_s16 [#allocation2]   ;;  %s1865_s26 = scalar_lea.vmem %s3756_s15, %s1862_s16   ;;  %v1841_v57 = vld [vmem:[%s3152_s23 + $0x54] sm:$0xf]  ;;  %v1843_v60 = vld [vmem:[%s3152_s23 + $0x58] sm:$0xf] }
 0x2c4   : >> { %1822 = vst [vmem:[%s3148_s19 + $0x2c] sm:$0xf] %v1821_v51  ;;  %v1845_v61 = vld [vmem:[%s3152_s23 + $0x5c] sm:$0xf]  ;;  %v1847_v62 = vld [vmem:[%s3152_s23 + $0x60] sm:$0xf] }
 0x2c5   : >> { %1824 = vst [vmem:[%s3148_s19 + $0x30] sm:$0xf] %v1823_v32  ;;  %v1849_v63 = vld [vmem:[%s3152_s23 + $0x64] sm:$0xf]  ;;  %v1851_v0 = vld [vmem:[%s3152_s23 + $0x68] sm:$0xf] }
 0x2c6   : >> { %1826 = vst [vmem:[%s3148_s19 + $0x34] sm:$0xf] %v1825_v2  ;;  %v1853_v1 = vld [vmem:[%s3152_s23 + $0x6c] sm:$0xf]  ;;  %v1855_v3 = vld [vmem:[%s3152_s23 + $0x70] sm:$0xf] }
 0x2c7   : >> { %1828 = vst [vmem:[%s3148_s19 + $0x38] sm:$0xf] %v1827_v39  ;;  %v1857_v5 = vld [vmem:[%s3152_s23 + $0x74] sm:$0xf]  ;;  %s4037_s23 = smov %s1864_s17 }
 0x2c8   : >> { %1830 = vst [vmem:[%s3148_s19 + $0x3c] sm:$0xf] %v1829_v52 }
 0x2c9   : >> { %1832 = vst [vmem:[%s3148_s19 + $0x40] sm:$0xf] %v1831_v13 }
 0x2ca   : >> { %1834 = vst [vmem:[%s3148_s19 + $0x44] sm:$0xf] %v1833_v53 }
 0x2cb   : >> { %1836 = vst [vmem:[%s3148_s19 + $0x48] sm:$0xf] %v1835_v54 }
 0x2cc   : >> { %1838 = vst [vmem:[%s3148_s19 + $0x4c] sm:$0xf] %v1837_v55 }
 0x2cd   : >> { %1840 = vst [vmem:[%s3148_s19 + $0x50] sm:$0xf] %v1839_v56 }
 0x2ce   : >> { %1842 = vst [vmem:[%s3148_s19 + $0x54] sm:$0xf] %v1841_v57 }
 0x2cf   : >> { %1844 = vst [vmem:[%s3148_s19 + $0x58] sm:$0xf] %v1843_v60 }
 0x2d0   : >> { %1846 = vst [vmem:[%s3148_s19 + $0x5c] sm:$0xf] %v1845_v61 }
 0x2d1   : >> { %1848 = vst [vmem:[%s3148_s19 + $0x60] sm:$0xf] %v1847_v62 }
 0x2d2   : >> { %1850 = vst [vmem:[%s3148_s19 + $0x64] sm:$0xf] %v1849_v63  ;;  %1795 = sbr.rel (!%p1792_p12) target bundleno = 696 (0x2b8), region = 231 }
 0x2d3   : >> { %1852 = vst [vmem:[%s3148_s19 + $0x68] sm:$0xf] %v1851_v0 }
 0x2d4   : >> { %1854 = vst [vmem:[%s3148_s19 + $0x6c] sm:$0xf] %v1853_v1 }
 0x2d5   : >> { %1856 = vst [vmem:[%s3148_s19 + $0x70] sm:$0xf] %v1855_v3 }
 0x2d6   : >> { %1858 = vst [vmem:[%s3148_s19 + $0x74] sm:$0xf] %v1857_v5  ;;  %s4036_s19 = smov %s1865_s26  ;;  %s4038_s26 = smov %s4050_s30 }
 0x2d7 PF: > { %3049 = sdivrem.u32 %s4048_s13, 30 }
 0x2d8   : > { %s2621_s16 = smul.u32 120, %s3762_s18 }
 0x2da   : > { %s3868_s0 = scalar_lea.vmem %s3545_s20, %s2621_s16 [#allocation2]   ;;  %s1872_s1 = scalar_lea.vmem %s3756_s15, %s2621_s16  }
 0x2e0   : > { %s3050_s2 = spop.drf %3049 }
 0x2e1   : > { %s3051_s3 = spop.drf %3049 }
 0x2e2   : > { %p2623_p13 = scmp.le.s32.totalorder %s3051_s3, 0 }
 0x2e3   : > { %s3162_s17 = smov (!%p2623_p13), %s1872_s1   ;;  %s3166_s30 = smov (!%p2623_p13), %s3868_s0  }
 0x2e4   : > { %2356 = sbr.rel (%p2623_p13) target bundleno = 753 (0x2f1), region = 236  ;;  %s3170_s4 = smov (!%p2623_p13), 0  }
 0x2e5   : > { %s3174_s27 = smov (!%p2623_p13), 0  }
 0x2e9 LB: >> { %v1882_v15 = vld [vmem:[%s3168_s30] sm:$0xf]  ;;  %s1884_s20 = sadd.s32 1, %s3172_s4  ;;  %s1876_s27 = sadd.s32 1, %s3176_s27   ;;  %s3176_s27 = sphi %s3174_s27, %s1876_s27   ;;  %s3172_s4 = sphi %s3170_s4, %s3171_s4   ;;  %s3168_s30 = sphi %s3166_s30, %s1889_s30   ;;  %s3164_s17 = sphi %s3162_s17, %s1890_s17  }
 0x2ea   : >> { %1883 = vst [vmem:[%s3164_s17] sm:$0xf] %v1882_v15  ;;  %p1885_p0 = scmp.ge.s32.totalorder %s1884_s20, %s3051_s3  ;;  %p1875_p1 = scmp.ge.s32.totalorder %s1876_s27, %s3051_s3 }
 0x2ec   : >> { %s4052_s20 = smov (%p1885_p0, %s1884_s20), 0  ;;  %1878 = sbr.rel (!%p1875_p1) target bundleno = 745 (0x2e9), region = 242 }
 0x2ed   : >> { %s2624_s2 = sshll.u32 %s4052_s20, 2  ;;  %s3171_s4 = smov %s4052_s20  }
 0x2ee   : >> { %s1889_s30 = scalar_lea.vmem %s3868_s0, %s2624_s2 [#allocation2]   ;;  %s1890_s17 = scalar_lea.vmem %s1872_s1, %s2624_s2  }
 0x2f1 PF: > { %2001 = sbr.rel (!%p3300_p4) target bundleno = 835 (0x343), region = 116  ;;  %s2003_s4 = ssub.s32 (%p3300_p4), 58, %s3308_s14 }
 0x2f2   : > { %s2662_s13 = smul.u32 (%p3300_p4), 240, %s3288_s24  ;;  %p2004_p2 = scmp.lt.s32.totalorder (%p3300_p4), %s2003_s4, 30 }
 0x2f4   : > { %s3880_s19 = scalar_lea.vmem (%p3300_p4), %s4022_s12, %s2662_s13  }
 0x2f6   : > { %s4054_s4 = smov (!%p2004_p2, %s2003_s4), 30 }
 0x2f7   : > { %s2626_s23 = sshll.u32 %s4054_s4, 3 }
 0x2f8   : > { %p2629_p3 = scmp.eq.s32.totalorder %s2626_s23, 0 }
 0x2f9   : > { %3052 = sdivrem.u32 (!%p2629_p3), %s4054_s4, 30 }
 0x2fa   : > { %2012 = sbr.rel (%p2629_p3) target bundleno = 835 (0x343), region = 120 }
 0x302   : > { %s3886_s0 = spop.drf %3052 }
 0x303   : > { %s3054_s1 = spop.drf %3052  ;;  %p2630_p4 = scmp.le.s32.totalorder %s3886_s0, 0 }
 0x304   : > { %s4039_s3 = smov (!%p2630_p4), %s3880_s19  ;;  %s4040_s24 = smov (!%p2630_p4), %s3587_s21 }
 0x305   : > { %2370 = sbr.rel (%p2630_p4) target bundleno = 809 (0x329), region = 247  ;;  %s3895_s29 = smov (!%p2630_p4), 0  }
 0x306   : > { %s3897_s14 = smov (!%p2630_p4), 0  }
 0x30a LB: >> { %v2135_v59 = vld [vmem:[%s3184_s24] sm:$0xff]  ;;  %v2137_v6 = vld [vmem:[%s3184_s24 + $0x8] sm:$0xff]  ;;  %v2139_v7 = vld [vmem:[%s3184_s24 + $0x10] sm:$0xff]  ;;  %s2195_s26 = sadd.s32 1, %s3188_s29  ;;  %s2129_s14 = sadd.s32 1, %s3192_s14   ;;  %s3192_s14 = sphi %s3897_s14, %s2129_s14   ;;  %s3188_s29 = sphi %s3895_s29, %s4043_s29   ;;  %s3184_s24 = sphi %s4040_s24, %s4042_s24   ;;  %s3180_s3 = sphi %s4039_s3, %s4041_s3  }
 0x30b   : >> { %2136 = vst [vmem:[%s3180_s3] sm:$0xff] %v2135_v59  ;;  %v2141_v8 = vld [vmem:[%s3184_s24 + $0x18] sm:$0xff]  ;;  %p2196_p5 = scmp.ge.s32.totalorder %s2195_s26, %s3886_s0  ;;  %v2143_v11 = vld [vmem:[%s3184_s24 + $0x20] sm:$0xff]  ;;  %v2145_v45 = vld [vmem:[%s3184_s24 + $0x28] sm:$0xff]  ;;  %p2128_p6 = scmp.ge.s32.totalorder %s2129_s14, %s3886_s0 }
 0x30c   : >> { %2138 = vst [vmem:[%s3180_s3 + $0x8] sm:$0xff] %v2137_v6  ;;  %v2147_v12 = vld [vmem:[%s3184_s24 + $0x30] sm:$0xff]  ;;  %v2149_v49 = vld [vmem:[%s3184_s24 + $0x38] sm:$0xff]  ;;  %v2151_v58 = vld [vmem:[%s3184_s24 + $0x40] sm:$0xff] }
 0x30d   : >> { %2140 = vst [vmem:[%s3180_s3 + $0x10] sm:$0xff] %v2139_v7  ;;  %s4056_s26 = smov (%p2196_p5, %s2195_s26), 0  ;;  %v2153_v14 = vld [vmem:[%s3184_s24 + $0x48] sm:$0xff]  ;;  %v2155_v16 = vld [vmem:[%s3184_s24 + $0x50] sm:$0xff]  ;;  %v2157_v17 = vld [vmem:[%s3184_s24 + $0x58] sm:$0xff] }
 0x30e   : >> { %2142 = vst [vmem:[%s3180_s3 + $0x18] sm:$0xff] %v2141_v8  ;;  %s2198_s16 = smul.u32 240, %s4056_s26  ;;  %v2159_v18 = vld [vmem:[%s3184_s24 + $0x60] sm:$0xff]  ;;  %v2161_v4 = vld [vmem:[%s3184_s24 + $0x68] sm:$0xff]  ;;  %v2163_v19 = vld [vmem:[%s3184_s24 + $0x70] sm:$0xff]  ;;  %s4043_s29 = smov %s4056_s26 }
 0x30f   : >> { %2144 = vst [vmem:[%s3180_s3 + $0x20] sm:$0xff] %v2143_v11  ;;  %v2165_v21 = vld [vmem:[%s3184_s24 + $0x78] sm:$0xff]  ;;  %v2167_v22 = vld [vmem:[%s3184_s24 + $0x80] sm:$0xff]  ;;  %v2169_v23 = vld [vmem:[%s3184_s24 + $0x88] sm:$0xff] }
 0x310   : >> { %2146 = vst [vmem:[%s3180_s3 + $0x28] sm:$0xff] %v2145_v45  ;;  %s3931_s17 = scalar_lea.vmem %s3587_s21, %s2198_s16 [#allocation3]   ;;  %s3934_s30 = scalar_lea.vmem %s3880_s19, %s2198_s16   ;;  %v2171_v24 = vld [vmem:[%s3184_s24 + $0x90] sm:$0xff]  ;;  %v2173_v25 = vld [vmem:[%s3184_s24 + $0x98] sm:$0xff]  ;;  %v2175_v10 = vld [vmem:[%s3184_s24 + $0xa0] sm:$0xff] }
 0x311   : >> { %2148 = vst [vmem:[%s3180_s3 + $0x30] sm:$0xff] %v2147_v12  ;;  %v2177_v20 = vld [vmem:[%s3184_s24 + $0xa8] sm:$0xff]  ;;  %v2179_v27 = vld [vmem:[%s3184_s24 + $0xb0] sm:$0xff]  ;;  %v2181_v28 = vld [vmem:[%s3184_s24 + $0xb8] sm:$0xff] }
 0x312   : >> { %2150 = vst [vmem:[%s3180_s3 + $0x38] sm:$0xff] %v2149_v49  ;;  %v2183_v29 = vld [vmem:[%s3184_s24 + $0xc0] sm:$0xff]  ;;  %v2185_v30 = vld [vmem:[%s3184_s24 + $0xc8] sm:$0xff]  ;;  %v2187_v31 = vld [vmem:[%s3184_s24 + $0xd0] sm:$0xff] }
 0x313   : >> { %2152 = vst [vmem:[%s3180_s3 + $0x40] sm:$0xff] %v2151_v58  ;;  %v2189_v33 = vld [vmem:[%s3184_s24 + $0xd8] sm:$0xff]  ;;  %v2191_v35 = vld [vmem:[%s3184_s24 + $0xe0] sm:$0xff]  ;;  %v2193_v36 = vld [vmem:[%s3184_s24 + $0xe8] sm:$0xff]  ;;  %s4042_s24 = smov %s3931_s17 }
 0x314   : >> { %2154 = vst [vmem:[%s3180_s3 + $0x48] sm:$0xff] %v2153_v14 }
 0x315   : >> { %2156 = vst [vmem:[%s3180_s3 + $0x50] sm:$0xff] %v2155_v16 }
 0x316   : >> { %2158 = vst [vmem:[%s3180_s3 + $0x58] sm:$0xff] %v2157_v17 }
 0x317   : >> { %2160 = vst [vmem:[%s3180_s3 + $0x60] sm:$0xff] %v2159_v18 }
 0x318   : >> { %2162 = vst [vmem:[%s3180_s3 + $0x68] sm:$0xff] %v2161_v4 }
 0x319   : >> { %2164 = vst [vmem:[%s3180_s3 + $0x70] sm:$0xff] %v2163_v19 }
 0x31a   : >> { %2166 = vst [vmem:[%s3180_s3 + $0x78] sm:$0xff] %v2165_v21 }
 0x31b   : >> { %2168 = vst [vmem:[%s3180_s3 + $0x80] sm:$0xff] %v2167_v22 }
 0x31c   : >> { %2170 = vst [vmem:[%s3180_s3 + $0x88] sm:$0xff] %v2169_v23 }
 0x31d   : >> { %2172 = vst [vmem:[%s3180_s3 + $0x90] sm:$0xff] %v2171_v24 }
 0x31e   : >> { %2174 = vst [vmem:[%s3180_s3 + $0x98] sm:$0xff] %v2173_v25 }
 0x31f   : >> { %2176 = vst [vmem:[%s3180_s3 + $0xa0] sm:$0xff] %v2175_v10 }
 0x320   : >> { %2178 = vst [vmem:[%s3180_s3 + $0xa8] sm:$0xff] %v2177_v20 }
 0x321   : >> { %2180 = vst [vmem:[%s3180_s3 + $0xb0] sm:$0xff] %v2179_v27 }
 0x322   : >> { %2182 = vst [vmem:[%s3180_s3 + $0xb8] sm:$0xff] %v2181_v28 }
 0x323   : >> { %2184 = vst [vmem:[%s3180_s3 + $0xc0] sm:$0xff] %v2183_v29 }
 0x324   : >> { %2186 = vst [vmem:[%s3180_s3 + $0xc8] sm:$0xff] %v2185_v30  ;;  %2131 = sbr.rel (!%p2128_p6) target bundleno = 778 (0x30a), region = 253 }
 0x325   : >> { %2188 = vst [vmem:[%s3180_s3 + $0xd0] sm:$0xff] %v2187_v31 }
 0x326   : >> { %2190 = vst [vmem:[%s3180_s3 + $0xd8] sm:$0xff] %v2189_v33 }
 0x327   : >> { %2192 = vst [vmem:[%s3180_s3 + $0xe0] sm:$0xff] %v2191_v35 }
 0x328   : >> { %2194 = vst [vmem:[%s3180_s3 + $0xe8] sm:$0xff] %v2193_v36  ;;  %s4041_s3 = smov %s3934_s30 }
 0x329 PF: > { %3055 = sdivrem.u32 %s4054_s4, 30 }
 0x32a   : > { %s2631_s27 = smul.u32 240, %s3886_s0 }
 0x32c   : > { %s3995_s20 = scalar_lea.vmem %s3587_s21, %s2631_s27 [#allocation3]   ;;  %s2208_s2 = scalar_lea.vmem %s3880_s19, %s2631_s27  }
 0x332   : > { %s3056_s13 = spop.drf %3055 }
 0x333   : > { %s3057_s15 = spop.drf %3055 }
 0x334   : > { %p2633_p7 = scmp.le.s32.totalorder %s3057_s15, 0 }
 0x335   : > { %s3194_s18 = smov (!%p2633_p7), %s2208_s2   ;;  %s3198_s23 = smov (!%p2633_p7), %s3995_s20  }
 0x336   : > { %2384 = sbr.rel (%p2633_p7) target bundleno = 835 (0x343), region = 258  ;;  %s3202_s1 = smov (!%p2633_p7), 0  }
 0x337   : > { %s3206_s14 = smov (!%p2633_p7), 0  }
 0x33b LB: >> { %v2218_v37 = vld [vmem:[%s3200_s23] sm:$0xff]  ;;  %s2220_s21 = sadd.s32 1, %s3204_s1  ;;  %s2212_s14 = sadd.s32 1, %s3208_s14   ;;  %s3208_s14 = sphi %s3206_s14, %s2212_s14   ;;  %s3204_s1 = sphi %s3202_s1, %s3203_s1   ;;  %s3200_s23 = sphi %s3198_s23, %s2225_s23   ;;  %s3196_s18 = sphi %s3194_s18, %s2226_s18  }
 0x33c   : >> { %2219 = vst [vmem:[%s3196_s18] sm:$0xff] %v2218_v37  ;;  %p2221_p8 = scmp.ge.s32.totalorder %s2220_s21, %s3057_s15  ;;  %p2211_p9 = scmp.ge.s32.totalorder %s2212_s14, %s3057_s15 }
 0x33e   : >> { %s4058_s21 = smov (%p2221_p8, %s2220_s21), 0  ;;  %2214 = sbr.rel (!%p2211_p9) target bundleno = 827 (0x33b), region = 264 }
 0x33f   : >> { %s2634_s4 = sshll.u32 %s4058_s21, 3  ;;  %s3203_s1 = smov %s4058_s21  }
 0x340   : >> { %s2225_s23 = scalar_lea.vmem %s3995_s20, %s2634_s4 [#allocation3]   ;;  %s2226_s18 = scalar_lea.vmem %s2208_s2, %s2634_s4  }
 0x343 PF: > { %p20_p10 = scmp.ge.s32.totalorder %s3290_s25, 4   ;;  %s4044_s21 = smov %s3140_s22 }
 0x344   : > { %s4045_s22 = smov %s3298_s28  ;;  %s4046_s23 = smov %s3290_s25 }
 0x345   :  { %22 = sbr.rel (!%p20_p10) target bundleno = 8 (0x8), region = 275 }

// kernel: _forward_core.21
= control target key start
LH: loop header
LB: loop body
LE: loop exit
PB: predicated region body
PF: predicated region fallthrough
CT: control target
= control target key end

     0   :  { %s678_s21 = smov 0   ;;  %s772_s0 = inlined_call_operand.vmem [shape: f32[58,32], index: 0, kind: input, shape index: {}]   ;;  %s773_s1 = inlined_call_operand.vmem [shape: f32[58,32], index: 1, kind: input, shape index: {}]   ;;  %s774_s2 = inlined_call_operand.vmem [shape: f32[1,32], index: 2, kind: input, shape index: {}]   ;;  %s775_s3 = inlined_call_operand.vmem [shape: f32[1,32], index: 3, kind: input, shape index: {}]   ;;  %s776_s4 = inlined_call_operand.vmem [shape: bf16[32,32], index: 4, kind: input, shape index: {}]   ;;  %s777_s5 = inlined_call_operand.vmem [shape: f32[1,32], index: 5, kind: input, shape index: {}]   ;;  %s778_s6 = inlined_call_operand.vmem [shape: f32[58,32], index: 6, kind: output, shape index: {}]  }
   0x1 LB: > { %s565_s22 = sadd.s32 4294967295, %s640_s21   ;;  %p569_p0 = scmp.ge.s32.totalorder %s640_s21, 1  ;;  %s640_s21 = sphi %s678_s21, %s16_s21  }
   0x2   : > { %p224_p1 = scmp.lt.s32.totalorder %s640_s21, 3 }
   0x4   : > { %p225_p2 = pnand %p569_p0, %p224_p1 }
   0x5   : > { %s570_s23 = sshll.u32 (!%p225_p2), %s565_s22, 2 }
   0x6   : > { %228 = sbr.rel (%p225_p2) target bundleno = 464 (0x1d0), region = 44  ;;  %p260_p3 = scmp.lt.s32.totalorder (!%p225_p2), %s570_s23, 7 }
   0xb   : > { %s780_s23 = smov (!%p260_p3, %s570_s23), 7  ;;  %vm292_vm0 = vcmask 261120   ;;  %v642_v16 = vmov 32.0   ;;  %v593_v47 = vld [vmem:[%s776_s4 + $0x8] sm:$0xff]  ;;  %v592_v50 = vld [vmem:[%s776_s4] sm:$0xff] }
   0xc   : > { %s686_s24 = sshll.u32 %s780_s23, 3  ;;  %608 = vrcp.f32 %v642_v16  ;;  %476 = vmatpush.bf16.msra.mxu0 %v593_v47  ;;  %594 = vmatpush.bf16.msra.mxu1 %v593_v47 }
   0xd   : > { %s263_s27 = scalar_lea.vmem %s772_s0, %s686_s24  ;;  %s269_s30 = scalar_lea.vmem %s773_s1, %s686_s24 }
   0xe   : > { %v280_v0 = vld [vmem:[%s263_s27 + $0x10] sm:$0xff]  ;;  %v278_v2 = vld [vmem:[%s263_s27] sm:$0xff]  ;;  %v281_v6 = vld [vmem:[%s263_s27 + $0x18] sm:$0xff]  ;;  %s275_s19 = scalar_lea.vmem %s778_s6, %s686_s24 }
   0xf   : > { %v284_v1 = vld [vmem:[%s269_s30 + $0x10] sm:$0xff]  ;;  %v282_v4 = vld [vmem:[%s269_s30] sm:$0xff]  ;;  %v285_v7 = vld [vmem:[%s269_s30 + $0x18] sm:$0xff] }
  0x10   : > { %v696_v3 = vadd.f32 %v284_v1, %v280_v0  ;;  %v698_v5 = vadd.f32 %v282_v4, %v278_v2  ;;  %v279_v9 = vld [vmem:[%s263_s27 + $0x8] sm:$0xff]  ;;  %v704_v12 = vadd.f32 %v285_v7, %v281_v6  ;;  %477 = vmatpush.bf16.msra.mxu0 %v592_v50  ;;  %595 = vmatpush.bf16.msra.mxu1 %v592_v50 }
  0x11   : > { %v283_v10 = vld [vmem:[%s269_s30 + $0x8] sm:$0xff] }
  0x12   : > { %v299_v8 = vsel %vm292_vm0, %v696_v3, 0.0  ;;  %v293_v11 = vsel %vm292_vm0, %v698_v5, 0.0  ;;  %v706_v13 = vadd.f32 %v283_v10, %v279_v9  ;;  %v302_v14 = vsel %vm292_vm0, %v704_v12, 0.0  ;;  %v609_v17 = vpop.eup %608  ;;  %v605_v9 = vld [vmem:[%s774_s2] ss:$0 sm:$0xff] }
  0x13   : > { %300 = vadd.xlane.f32.xlu1 %v299_v8  ;;  %294 = vadd.xlane.f32.xlu0 %v293_v11  ;;  %v306_v18 = vmul.f32 32.0, %v609_v17  ;;  %vm310_vm1 = vweird.f32 %v609_v17 }
  0x14   : > { %v296_v15 = vsel %vm292_vm0, %v706_v13, 0.0 }
  0x15   : > { %v307_v19 = vsub.f32 1.0, %v306_v18 }
  0x17   : > { %v308_v20 = vmul.f32 %v609_v17, %v307_v19  ;;  %v606_v19 = vld [vmem:[%s775_s3] ss:$0 sm:$0xff] }
  0x19   : > { %v309_v21 = vadd.f32 %v609_v17, %v308_v20 }
  0x1b   : > { %303 = vadd.xlane.f32.xlu1 %v302_v14  ;;  %297 = vadd.xlane.f32.xlu0 %v296_v15  ;;  %v311_v22 = vsel %vm310_vm1, %v609_v17, %v309_v21 }
  0x86   : > { %v301_v23 = vpop.xlane.xlu1 %300  ;;  %v295_v25 = vpop.xlane.xlu0 %294 }
  0x87   : > { %v314_v24 = vmul.f32 %v311_v22, %v301_v23  ;;  %v312_v26 = vmul.f32 %v311_v22, %v295_v25 }
  0x89   : > { %v713_v27 = vsub.f32 %v696_v3, %v314_v24  ;;  %v716_v28 = vsub.f32 %v698_v5, %v312_v26 }
  0x8b   : > { %v322_v29 = vmul.f32 %v713_v27, %v713_v27  ;;  %v320_v30 = vmul.f32 %v716_v28, %v716_v28 }
  0x8d   : > { %v330_v31 = vsel %vm292_vm0, %v322_v29, 0.0  ;;  %v324_v33 = vsel %vm292_vm0, %v320_v30, 0.0 }
  0x8e   : > { %v304_v32 = vpop.xlane.xlu1 %303  ;;  %331 = vadd.xlane.f32.xlu0 %v330_v31  ;;  %325 = vadd.xlane.f32.xlu2 %v324_v33  ;;  %v298_v35 = vpop.xlane.xlu0 %297 }
  0x8f   : > { %v315_v34 = vmul.f32 %v311_v22, %v304_v32  ;;  %v313_v36 = vmul.f32 %v311_v22, %v298_v35 }
  0x91   : > { %v725_v37 = vsub.f32 %v704_v12, %v315_v34  ;;  %v728_v38 = vsub.f32 %v706_v13, %v313_v36 }
  0x93   : > { %v323_v39 = vmul.f32 %v725_v37, %v725_v37  ;;  %v321_v40 = vmul.f32 %v728_v38, %v728_v38 }
  0x95   : > { %v333_v41 = vsel %vm292_vm0, %v323_v39, 0.0  ;;  %v327_v42 = vsel %vm292_vm0, %v321_v40, 0.0 }
  0x96   : > { %334 = vadd.xlane.f32.xlu1 %v333_v41  ;;  %328 = vadd.xlane.f32.xlu2 %v327_v42 }
 0x101   : > { %v332_v43 = vpop.xlane.xlu0 %331  ;;  %v326_v44 = vpop.xlane.xlu2 %325 }
 0x102   : > { %v338_v45 = vmul.f32 %v332_v43, %v311_v22  ;;  %v336_v46 = vmul.f32 %v326_v44, %v311_v22 }
 0x104   : > { %v342_v48 = vadd.f32 1e-05, %v338_v45  ;;  %v340_v49 = vadd.f32 1e-05, %v336_v46 }
 0x106   : > { %610 = vrsqrt.f32 %v342_v48  ;;  %vm370_vm4 = vweird.f32 %v342_v48  ;;  %vm350_vm5 = vweird.f32 %v340_v49 }
 0x107   : > { %612 = vrsqrt.f32 %v340_v49 }
 0x109   : > { %v335_v51 = vpop.xlane.xlu1 %334  ;;  %v329_v53 = vpop.xlane.xlu2 %328 }
 0x10a   : > { %v339_v52 = vmul.f32 %v335_v51, %v311_v22  ;;  %v337_v54 = vmul.f32 %v329_v53, %v311_v22 }
 0x10c   : > { %v611_v55 = vpop.eup %610  ;;  %v343_v56 = vadd.f32 1e-05, %v339_v52  ;;  %v341_v59 = vadd.f32 1e-05, %v337_v54 }
 0x10d   : > { %v613_v57 = vpop.eup %612  ;;  %v365_v58 = vmul.f32 %v611_v55, %v342_v48  ;;  %vm371_vm2 = vweird.f32 %v611_v55 }
 0x10e   : > { %v345_v60 = vmul.f32 %v613_v57, %v340_v49  ;;  %614 = vrsqrt.f32 %v343_v56  ;;  %vm351_vm3 = vweird.f32 %v613_v57  ;;  %vm372_vm6 = vmor %vm370_vm4, %vm371_vm2  ;;  %vm380_vm10 = vweird.f32 %v343_v56 }
 0x10f   : > { %v366_v61 = vmul.f32 %v611_v55, %v365_v58  ;;  %616 = vrsqrt.f32 %v341_v59  ;;  %vm352_vm7 = vmor %vm350_vm5, %vm351_vm3  ;;  %vm360_vm12 = vweird.f32 %v341_v59 }
 0x110   : > { %v346_v62 = vmul.f32 %v613_v57, %v345_v60 }
 0x111   : > { %v367_v63 = vmul.f32 0.5, %v366_v61 }
 0x112   : > { %v347_v0 = vmul.f32 0.5, %v346_v62 }
 0x113   : > { %v368_v1 = vsub.f32 1.5, %v367_v63 }
 0x114   : > { %v615_v2 = vpop.eup %614  ;;  %v348_v4 = vsub.f32 1.5, %v347_v0 }
 0x115   : > { %v617_v6 = vpop.eup %616  ;;  %v369_v7 = vmul.f32 %v611_v55, %v368_v1  ;;  %v375_v8 = vmul.f32 %v615_v2, %v343_v56  ;;  %vm381_vm8 = vweird.f32 %v615_v2 }
 0x116   : > { %v349_v10 = vmul.f32 %v613_v57, %v348_v4  ;;  %v355_v11 = vmul.f32 %v617_v6, %v341_v59  ;;  %vm361_vm9 = vweird.f32 %v617_v6  ;;  %vm382_vm11 = vmor %vm380_vm10, %vm381_vm8 }
 0x117   : > { %v373_v14 = vsel %vm372_vm6, %v611_v55, %v369_v7  ;;  %v376_v15 = vmul.f32 %v615_v2, %v375_v8  ;;  %vm362_vm13 = vmor %vm360_vm12, %vm361_vm9 }
 0x118   : > { %v353_v16 = vsel %vm352_vm7, %v613_v57, %v349_v10  ;;  %v386_v17 = vmul.f32 %v373_v14, %v713_v27  ;;  %v356_v18 = vmul.f32 %v617_v6, %v355_v11 }
 0x119   : > { %v384_v20 = vmul.f32 %v353_v16, %v716_v28  ;;  %v377_v21 = vmul.f32 0.5, %v376_v15 }
 0x11a   : > { %v393_v22 = vmul.f32 %v605_v9, %v386_v17  ;;  %v357_v23 = vmul.f32 0.5, %v356_v18 }
 0x11b   : > { %v391_v24 = vmul.f32 %v605_v9, %v384_v20  ;;  %v378_v25 = vsub.f32 1.5, %v377_v21  ;;  %v607_v21 = vld [vmem:[%s777_s5] ss:$0 sm:$0xff] }
 0x11c   : > { %v358_v26 = vsub.f32 1.5, %v357_v23  ;;  %v400_v29 = vadd.f32 %v606_v19, %v393_v22 }
 0x11d   : > { %v379_v30 = vmul.f32 %v615_v2, %v378_v25  ;;  %v398_v31 = vadd.f32 %v606_v19, %v391_v24 }
 0x11e   : > { %v359_v27 = vmul.f32 %v617_v6, %v358_v26  ;;  %v408_v32 = vand.u32 2147483647, %v400_v29  ;;  %v404_v63 = vmax.f32 %v400_v29, 0.0 }
 0x11f   : > { %v383_v33 = vsel %vm382_vm11, %v615_v2, %v379_v30  ;;  %v406_v34 = vand.u32 2147483647, %v398_v31  ;;  %v402_v1 = vmax.f32 %v398_v31, 0.0 }
 0x120   : > { %v387_v28 = vmul.f32 %v383_v33, %v725_v37  ;;  %v363_v35 = vsel %vm362_vm13, %v617_v6, %v359_v27  ;;  %v412_v36 = vsub.f32 0.0, %v408_v32 }
 0x121   : > { %v385_v39 = vmul.f32 %v363_v35, %v728_v38  ;;  %v410_v40 = vsub.f32 0.0, %v406_v34 }
 0x122   : > { %v394_v41 = vmul.f32 %v605_v9, %v387_v28  ;;  %v418_v42 = vmul.f32 1.442695, %v412_v36 }
 0x123   : > { %v392_v43 = vmul.f32 %v605_v9, %v385_v39  ;;  %v414_v44 = vmul.f32 1.442695, %v410_v40 }
 0x124   : > { %v401_v45 = vadd.f32 %v606_v19, %v394_v41  ;;  %618 = vpow2.f32 %v418_v42 }
 0x125   : > { %v399_v46 = vadd.f32 %v606_v19, %v392_v43  ;;  %620 = vpow2.f32 %v414_v44 }
 0x126   : > { %v409_v47 = vand.u32 2147483647, %v401_v45  ;;  %v405_v4 = vmax.f32 %v401_v45, 0.0 }
 0x127   : > { %v407_v48 = vand.u32 2147483647, %v399_v46  ;;  %v403_v8 = vmax.f32 %v399_v46, 0.0 }
 0x128   : > { %v413_v49 = vsub.f32 0.0, %v409_v47 }
 0x129   : > { %v411_v50 = vsub.f32 0.0, %v407_v48 }
 0x12a   : > { %v619_v51 = vpop.eup %618  ;;  %v420_v52 = vmul.f32 1.442695, %v413_v49 }
 0x12b   : > { %v621_v37 = vpop.eup %620  ;;  %v416_v53 = vmul.f32 1.442695, %v411_v50  ;;  %v424_v54 = vadd.f32 1.0, %v619_v51 }
 0x12c   : > { %v422_v55 = vadd.f32 1.0, %v621_v37  ;;  %622 = vpow2.f32 %v420_v52 }
 0x12d   : > { %624 = vpow2.f32 %v416_v53 }
 0x12e   : > { %626 = vlog2.f32 %v424_v54 }
 0x12f   : > { %628 = vlog2.f32 %v422_v55 }
 0x132   : > { %v623_v38 = vpop.eup %622 }
 0x133   : > { %v625_v56 = vpop.eup %624  ;;  %v425_v57 = vadd.f32 1.0, %v623_v38 }
 0x134   : > { %v423_v58 = vadd.f32 1.0, %v625_v56  ;;  %v627_v59 = vpop.eup %626 }
 0x135   : > { %630 = vlog2.f32 %v425_v57  ;;  %v629_v60 = vpop.eup %628  ;;  %v431_v61 = vmul.f32 0.6931472, %v627_v59 }
 0x136   : > { %632 = vlog2.f32 %v423_v58  ;;  %v427_v62 = vmul.f32 0.6931472, %v629_v60 }
 0x137   : > { %v436_v7 = vadd.f32 %v431_v61, %v404_v63 }
 0x138   : > { %v434_v10 = vadd.f32 %v427_v62, %v402_v1 }
 0x139   : > { %v578_v15 = vadd.f32 -0.6931472, %v436_v7 }
 0x13a   : > { %v576_v17 = vadd.f32 -0.6931472, %v434_v10 }
 0x13b   : > { %v631_v0 = vpop.eup %630 }
 0x13c   : > { %v633_v2 = vpop.eup %632  ;;  %v433_v6 = vmul.f32 0.6931472, %v631_v0 }
 0x13d   : > { %v429_v9 = vmul.f32 0.6931472, %v633_v2 }
 0x13e   : > { %v437_v11 = vadd.f32 %v433_v6, %v405_v4 }
 0x13f   : > { %v435_v14 = vadd.f32 %v429_v9, %v403_v8 }
 0x140   : > { %v579_v16 = vadd.f32 -0.6931472, %v437_v11 }
 0x141   : > { %v577_v18 = vadd.f32 -0.6931472, %v435_v14 }
 0x142   : > { %v447_v19 = vpack.c.bf16 %v579_v16, %v578_v15 }
 0x143   : > { %v446_v20 = vpack.c.bf16 %v577_v18, %v576_v17 }
 0x144   : > { %589 = vmatmul.msk.bf16.vlgmr.msra.gmra.mxu1 %vm292_vm0, %v447_v19 }
 0x145   : > { %588 = vmatmul.msk.bf16.vlgmr.msra.gmra.mxu0 %vm292_vm0, %v446_v20 }
 0x1c1   : > { %v484_v22 = vpop.f32.mrf.mxu1 }
 0x1c2   : > { %v479_v23 = vpop.f32.mrf.mxu0  ;;  %v485_v29 = vadd.f32 %v607_v21, %v484_v22 }
 0x1c3   : > { %v480_v24 = vadd.f32 %v607_v21, %v479_v23 }
 0x1c4   : > { %v491_v33 = vadd.f32 %v485_v29, %v696_v3 }
 0x1c5   : > { %v489_v25 = vadd.f32 %v480_v24, %v698_v5 }
 0x1c6   : > { %495 = vst.msk [vmem:[%s275_s19 + $0x10] sm:$0xff] %vm292_vm0, %v491_v33 }
 0x1c7   : > { %493 = vst.msk [vmem:[%s275_s19] sm:$0xff] %vm292_vm0, %v489_v25 }
 0x1c9   : > { %v486_v26 = vpop.f32.mrf.mxu1 }
 0x1ca   : > { %v481_v30 = vpop.f32.mrf.mxu0  ;;  %v487_v27 = vadd.f32 %v607_v21, %v486_v26 }
 0x1cb   : > { %v482_v31 = vadd.f32 %v607_v21, %v481_v30 }
 0x1cc   : > { %v492_v34 = vadd.f32 %v487_v27, %v704_v12 }
 0x1cd   : > { %v490_v32 = vadd.f32 %v482_v31, %v706_v13 }
 0x1ce   : > { %496 = vst.msk [vmem:[%s275_s19 + $0x18] sm:$0xff] %vm292_vm0, %v492_v34 }
 0x1cf   : > { %494 = vst.msk [vmem:[%s275_s19 + $0x8] sm:$0xff] %vm292_vm0, %v490_v32 }
 0x1d0 PF: > { %s16_s21 = sadd.s32 1, %s640_s21  }
 0x1d1   : > { %p13_p4 = scmp.ge.s32.totalorder %s16_s21, 4  }
 0x1d3   :  { %15 = sbr.rel (!%p13_p4) target bundleno = 1 (0x1), region = 77 }

// kernel: _forward_core.28
= control target key start
LH: loop header
LB: loop body
LE: loop exit
PB: predicated region body
PF: predicated region fallthrough
CT: control target
= control target key end

     0   :  { %vm24_vm0 = vcmask 261120   ;;  %vm28_vm1 = vcmask 259072   ;;  %v163_v4 = vmov 32.0   ;;  %vm89_vm8 = vcmask 257024   ;;  %s231_s0 = inlined_call_operand.vmem [shape: f32[14,32], index: 0, kind: input, shape index: {}]   ;;  %s232_s1 = inlined_call_operand.vmem [shape: f32[1,32], index: 1, kind: input, shape index: {}]   ;;  %s233_s2 = inlined_call_operand.vmem [shape: f32[1,32], index: 2, kind: input, shape index: {}]   ;;  %s234_s3 = inlined_call_operand.vmem [shape: bf16[32,32], index: 3, kind: input, shape index: {}]   ;;  %s235_s4 = inlined_call_operand.vmem [shape: bf16[14,32], index: 4, kind: output, shape index: {0}]   ;;  %s236_s5 = inlined_call_operand.vmem [shape: bf16[14,32], index: 5, kind: output, shape index: {1}]  }
   0x1   :  { %v20_v0 = vld [vmem:[%s231_s0] sm:$0xff]  ;;  %v21_v2 = vld [vmem:[%s231_s0 + $0x8] sm:$0x3f]  ;;  %157 = vrcp.f32 %v163_v4  ;;  %vm91_vm10 = vcmask 256000  }
   0x2   :  { %v25_v1 = vsel %vm24_vm0, %v20_v0, 0.0  ;;  %v29_v3 = vsel %vm28_vm1, %v21_v2, 0.0  ;;  %v153_v21 = vld [vmem:[%s234_s3 + $0x8] sm:$0xff]  ;;  %v152_v24 = vld [vmem:[%s234_s3] sm:$0xff] }
   0x3   :  { %26 = vadd.xlane.f32.xlu0 %v25_v1  ;;  %123 = vmatpush.bf16.msra.mxu0 %v153_v21  ;;  %v155_v37 = vld [vmem:[%s232_s1] ss:$0 sm:$0xff] }
   0x4   :  { %v156_v41 = vld [vmem:[%s233_s2] ss:$0 sm:$0xff] }
   0x7   :  { %v158_v5 = vpop.eup %157  ;;  %124 = vmatpush.bf16.msra.mxu0 %v152_v24 }
   0x8   :  { %v33_v6 = vmul.f32 32.0, %v158_v5  ;;  %vm37_vm2 = vweird.f32 %v158_v5 }
   0xa   :  { %v34_v7 = vsub.f32 1.0, %v33_v6 }
   0xb   :  { %30 = vadd.xlane.f32.xlu0 %v29_v3 }
   0xc   :  { %v35_v8 = vmul.f32 %v158_v5, %v34_v7 }
   0xe   :  { %v36_v9 = vadd.f32 %v158_v5, %v35_v8 }
  0x10   :  { %v38_v10 = vsel %vm37_vm2, %v158_v5, %v36_v9 }
  0x76   :  { %v27_v11 = vpop.xlane.xlu0 %26 }
  0x77   :  { %v39_v12 = vmul.f32 %v38_v10, %v27_v11 }
  0x79   :  { %v41_v13 = vsub.f32 %v20_v0, %v39_v12 }
  0x7b   :  { %v43_v14 = vmul.f32 %v41_v13, %v41_v13 }
  0x7d   :  { %v45_v15 = vsel %vm24_vm0, %v43_v14, 0.0 }
  0x7e   :  { %46 = vadd.xlane.f32.xlu1 %v45_v15  ;;  %v31_v16 = vpop.xlane.xlu0 %30 }
  0x7f   :  { %v40_v17 = vmul.f32 %v38_v10, %v31_v16 }
  0x81   :  { %v42_v18 = vsub.f32 %v21_v2, %v40_v17 }
  0x83   :  { %v44_v19 = vmul.f32 %v42_v18, %v42_v18 }
  0x85   :  { %v48_v20 = vsel %vm28_vm1, %v44_v19, 0.0 }
  0x86   :  { %49 = vadd.xlane.f32.xlu1 %v48_v20 }
  0xf1   :  { %v47_v22 = vpop.xlane.xlu1 %46 }
  0xf2   :  { %v51_v23 = vmul.f32 %v47_v22, %v38_v10 }
  0xf4   :  { %v53_v25 = vadd.f32 1e-05, %v51_v23 }
  0xf6   :  { %159 = vrsqrt.f32 %v53_v25  ;;  %vm61_vm4 = vweird.f32 %v53_v25 }
  0xf9   :  { %v50_v26 = vpop.xlane.xlu1 %49 }
  0xfa   :  { %v52_v27 = vmul.f32 %v50_v26, %v38_v10 }
  0xfc   :  { %v160_v28 = vpop.eup %159  ;;  %v54_v29 = vadd.f32 1e-05, %v52_v27 }
  0xfd   :  { %v56_v30 = vmul.f32 %v160_v28, %v53_v25  ;;  %vm62_vm3 = vweird.f32 %v160_v28 }
  0xfe   :  { %161 = vrsqrt.f32 %v54_v29  ;;  %vm63_vm5 = vmor %vm61_vm4, %vm62_vm3  ;;  %vm71_vm7 = vweird.f32 %v54_v29 }
  0xff   :  { %v57_v31 = vmul.f32 %v160_v28, %v56_v30 }
 0x101   :  { %v58_v32 = vmul.f32 0.5, %v57_v31 }
 0x103   :  { %v59_v33 = vsub.f32 1.5, %v58_v32 }
 0x104   :  { %v162_v34 = vpop.eup %161 }
 0x105   :  { %v60_v35 = vmul.f32 %v160_v28, %v59_v33  ;;  %v66_v36 = vmul.f32 %v162_v34, %v54_v29  ;;  %vm72_vm6 = vweird.f32 %v162_v34 }
 0x106   :  { %vm73_vm9 = vmor %vm71_vm7, %vm72_vm6 }
 0x107   :  { %v64_v38 = vsel %vm63_vm5, %v160_v28, %v60_v35  ;;  %v67_v39 = vmul.f32 %v162_v34, %v66_v36 }
 0x108   :  { %v75_v40 = vmul.f32 %v64_v38, %v41_v13 }
 0x109   :  { %v68_v42 = vmul.f32 0.5, %v67_v39 }
 0x10a   :  { %v80_v43 = vmul.f32 %v155_v37, %v75_v40 }
 0x10b   :  { %v69_v44 = vsub.f32 1.5, %v68_v42 }
 0x10c   :  { %v85_v45 = vadd.f32 %v156_v41, %v80_v43 }
 0x10d   :  { %v70_v46 = vmul.f32 %v162_v34, %v69_v44 }
 0x10e   :  { %v87_v47 = vpack.c.bf16 %v85_v45, %v85_v45 }
 0x10f   :  { %v74_v48 = vsel %vm73_vm9, %v162_v34, %v70_v46 }
 0x110   :  { %v76_v49 = vmul.f32 %v74_v48, %v42_v18  ;;  %90 = vst.msk [vmem:[%s235_s4] sm:$0xf] %vm89_vm8, %v87_v47  ;;  %v99_v53 = vunpack.c.l.b16 %v87_v47 }
 0x112   :  { %v81_v50 = vmul.f32 %v155_v37, %v76_v49 }
 0x114   :  { %v86_v51 = vadd.f32 %v156_v41, %v81_v50 }
 0x116   :  { %v88_v52 = vpack.c.bf16 %v86_v51, %v86_v51 }
 0x118   :  { %v100_v54 = vunpack.c.l.b16 %v88_v52  ;;  %92 = vst.msk [vmem:[%s235_s4 + $0x4] sm:$0x7] %vm91_vm10, %v88_v52 }
 0x11a   :  { %v101_v55 = vpack.c.b16 %v100_v54, %v99_v53 }
 0x11c   :  { %151 = vmatmul.msk.bf16.vlgmr.msra.gmra.mxu0 %vm24_vm0, %v101_v55 }
 0x199   :  { %v126_v56 = vpop.f32.mrf.mxu0 }
 0x19a   :  { %v131_v57 = vpack.c.bf16 %v126_v56, %v126_v56 }
 0x19c   :  { %133 = vst.msk [vmem:[%s236_s5] sm:$0xf] %vm89_vm8, %v131_v57 }
 0x1a1   :  { %v128_v58 = vpop.f32.mrf.mxu0 }
 0x1a2   :  { %v132_v59 = vpack.c.bf16 %v128_v58, %v128_v58 }
 0x1a4   :  { %134 = vst.msk [vmem:[%s236_s5 + $0x4] sm:$0x7] %vm91_vm10, %v132_v59 }

// kernel: _forward_core.26
= control target key start
LH: loop header
LB: loop body
LE: loop exit
PB: predicated region body
PF: predicated region fallthrough
CT: control target
= control target key end

     0   :  { %vm51_vm0 = vcmask 1044480   ;;  %vm44_vm1 = vcmask 171008   ;;  %vm86_vm2 = vcmask 1045504   ;;  %vm302_vm3 = vcmask 1043456   ;;  %s587_s2 = inlined_call_operand.vmem [shape: f32[21,6], index: 2, kind: input, shape index: {}]   ;;  %s588_s0 = inlined_call_operand.vmem [shape: f32[12,21], index: 0, kind: input, shape index: {}]   ;;  %s589_s5 = inlined_call_operand.vmem [shape: f32[1,120], index: 5, kind: input, shape index: {}]   ;;  %s590_s6 = inlined_call_operand.vmem [shape: f32[1,120], index: 6, kind: input, shape index: {}]   ;;  %s591_s3 = inlined_call_operand.vmem [shape: f32[6,120], index: 3, kind: input, shape index: {}]   ;;  %s592_s4 = inlined_call_operand.vmem [shape: f32[6,3], index: 4, kind: input, shape index: {}]   ;;  %s593_s7 = inlined_call_operand.vmem [shape: bf16[120,32], index: 7, kind: input, shape index: {}]   ;;  %s594_s9 = inlined_call_operand.vmem [shape: bf16[32,32], index: 9, kind: input, shape index: {}]   ;;  %s595_s8 = inlined_call_operand.vmem [shape: f32[3,32], index: 8, kind: input, shape index: {}]   ;;  %s596_s1 = inlined_call_operand.vmem [shape: f32[12,32], index: 1, kind: input, shape index: {}]   ;;  %s597_s10 = inlined_call_operand.vmem [shape: f32[1,32], index: 10, kind: input, shape index: {}]   ;;  %s598_s11 = inlined_call_operand.vmem [shape: f32[12,32], index: 11, kind: output, shape index: {}]  }
   0x1   :  { %v43_v0 = vld [vmem:[%s587_s2 + $0x10] sm:$0x1f]  ;;  %v42_v1 = vld [vmem:[%s587_s2 + $0x8] sm:$0xff]  ;;  %v41_v2 = vld [vmem:[%s587_s2] sm:$0xff]  ;;  %vm79_vm4 = vcmask 48128   ;;  %vm226_vm5 = vcmask 1042432  }
   0x2   :  { %372 = vmatpush.msk.msra.mxu0 %vm51_vm0, %v43_v0  ;;  %v39_v3 = vld [vmem:[%s588_s0] sm:$0xff]  ;;  %v40_v4 = vld [vmem:[%s588_s0 + $0x8] sm:$0xf]  ;;  %v216_v7 = vld [vmem:[%s593_s7 + $0x38] sm:$0xf]  ;;  %vm339_vm6 = vcmask 261120  }
   0x3   :  { %v78_v5 = vld [vmem:[%s591_s3] sm:$0x3f]  ;;  %v282_v8 = vunpack.c.l.b16 %v216_v7  ;;  %v430_v13 = vld [vmem:[%s593_s7 + $0x30] sm:$0xff]  ;;  %v429_v14 = vld [vmem:[%s593_s7 + $0x28] sm:$0xff]  ;;  %vm298_vm7 = vcmask 982016   ;;  %vm219_vm11 = vcmask 23552  }
   0x4   :  { %69 = vmatpush.msra.mxu0 %v42_v1  ;;  %v133_v6 = vld [vmem:[%s592_s4] sm:$0x3f]  ;;  %375 = vmatpush.msk.msra.mxu3 %vm86_vm2, %v78_v5  ;;  %v427_v16 = vld [vmem:[%s593_s7 + $0x18] sm:$0xff]  ;;  %v426_v17 = vld [vmem:[%s593_s7 + $0x10] sm:$0xff] }
   0x5   :  { %378 = vmatpush.msk.msra.mxu2 %vm86_vm2, %v133_v6  ;;  %v290_v9 = vpack.c.b16 %v282_v8, %v282_v8  ;;  %v428_v15 = vld [vmem:[%s593_s7 + $0x20] sm:$0xff]  ;;  %v425_v18 = vld [vmem:[%s593_s7 + $0x8] sm:$0xff] }
   0x6   :  { %70 = vmatpush.msra.mxu0 %v41_v2  ;;  %v432_v19 = vld [vmem:[%s594_s9 + $0x8] sm:$0xff]  ;;  %v424_v20 = vld [vmem:[%s593_s7] sm:$0xff] }
   0x7   :  { %373 = vmatmul.msk.f32.vlgmr.msra.gmra.mxu0 %vm44_vm1, %v39_v3  ;;  %v304_v10 = vsel %vm302_vm3, %v290_v9, 0  ;;  %349 = vmatpush.bf16.msrb.mxu2 %v432_v19  ;;  %v431_v21 = vld [vmem:[%s594_s9] sm:$0xff]  ;;  %v321_v24 = vld [vmem:[%s596_s1 + $0x8] sm:$0xf] }
   0x8   :  { %306 = vmatpush.bf16.msra.mxu1 %v304_v10  ;;  %v218_v22 = vld [vmem:[%s595_s8] sm:$0x7] }
   0x9   :  { %v320_v23 = vld [vmem:[%s596_s1] sm:$0xff]  ;;  %383 = vmatpush.msk.msrb.mxu3 %vm226_vm5, %v218_v22 }
   0xa   :  { %v326_v25 = vpack.c.bf16 %v321_v24, %v320_v23  ;;  %v433_v26 = vld [vmem:[%s589_s5] ss:$0 sm:$0xff] }
   0xb   :  { %350 = vmatpush.bf16.msrb.mxu2 %v431_v21  ;;  %v434_v27 = vld [vmem:[%s590_s6] ss:$0 sm:$0xff] }
   0xc   :  { %307 = vmatpush.bf16.msra.mxu1 %v430_v13 }
   0xf   :  { %374 = vmatmul.msk.f32.gmra.mxu0 %vm44_vm1, %v40_v4  ;;  %vm366_vm1 = vcmask 257024  }
  0x10   :  { %308 = vmatpush.bf16.msra.mxu1 %v429_v14 }
  0x14   :  { %309 = vmatpush.bf16.msra.mxu1 %v428_v15 }
  0x18   :  { %310 = vmatpush.bf16.msra.mxu1 %v427_v16 }
  0x1c   :  { %311 = vmatpush.bf16.msra.mxu1 %v426_v17  ;;  %v435_v17 = vld [vmem:[%s597_s10] ss:$0 sm:$0xff] }
  0x20   :  { %312 = vmatpush.bf16.msra.mxu1 %v425_v18 }
  0x24   :  { %313 = vmatpush.bf16.msra.mxu1 %v424_v20 }
  0x84   :  { %v72_v11 = vpop.f32.mrf.mxu0 }
  0x85   :  { %376 = vmatmul.msk.f32.vlgmr.msra.gmra.mxu3 %vm79_vm4, %v72_v11  ;;  %379 = vmatmul.msk.f32.vlgmr.msra.gmra.mxu2 %vm79_vm4, %v72_v11 }
  0x8c   :  { %v75_v12 = vpop.f32.mrf.mxu0 }
  0x8d   :  { %377 = vmatmul.msk.f32.gmra.mxu3 %vm79_vm4, %v75_v12  ;;  %380 = vmatmul.msk.f32.gmra.mxu2 %vm79_vm4, %v75_v12 }
  0x95   :  { %423 = vmatmul.msk.bf16.vlgmr.msrb.gmra.mxu2 %vm339_vm6, %v326_v25 }
 0x108   :  { %v107_v28 = vpop.f32.mrf.mxu3  ;;  %v154_v29 = vpop.f32.mrf.mxu2 }
 0x109   :  { %v117_v30 = vsub.f32 %v107_v28, %v433_v26  ;;  %v160_v31 = vmul.f32 6.0, %v154_v29 }
 0x10b   :  { %v123_v32 = vmul.f32 %v434_v27, %v117_v30  ;;  %v381_v33 = vadd.f32 -3.0, %v160_v31 }
 0x10d   :  { %v125_v34 = vmul.f32 %v123_v32, %v123_v32  ;;  %v164_v35 = vsub.f32 0.0, %v381_v33 }
 0x10f   :  { %v166_v36 = vmul.f32 1.442695, %v164_v35  ;;  %v127_v37 = vsub.f32 0.0, %v125_v34 }
 0x110   :  { %v110_v38 = vpop.f32.mrf.mxu3  ;;  %v157_v39 = vpop.f32.mrf.mxu2 }
 0x111   :  { %436 = vpow2.f32 %v166_v36  ;;  %v118_v40 = vsub.f32 %v110_v38, %v433_v26  ;;  %v161_v41 = vmul.f32 6.0, %v157_v39  ;;  %v129_v44 = vmul.f32 1.442695, %v127_v37 }
 0x113   :  { %v124_v42 = vmul.f32 %v434_v27, %v118_v40  ;;  %v382_v43 = vadd.f32 -3.0, %v161_v41  ;;  %438 = vpow2.f32 %v129_v44 }
 0x115   :  { %v126_v45 = vmul.f32 %v124_v42, %v124_v42  ;;  %v165_v46 = vsub.f32 0.0, %v382_v43 }
 0x117   :  { %v437_v47 = vpop.eup %436  ;;  %v128_v48 = vsub.f32 0.0, %v126_v45  ;;  %v168_v49 = vmul.f32 1.442695, %v165_v46 }
 0x118   :  { %v170_v50 = vadd.f32 1.0, %v437_v47  ;;  %v352_v14 = vpop.f32.mrf.mxu2 }
 0x119   :  { %v131_v51 = vmul.f32 1.442695, %v128_v48  ;;  %440 = vpow2.f32 %v168_v49  ;;  %v439_v52 = vpop.eup %438 }
 0x11a   :  { %442 = vrcp.f32 %v170_v50  ;;  %v183_v60 = vand.u32 2147483648, %v170_v50  ;;  %v181_v62 = vand.u32 2147483647, %v170_v50  ;;  %vm177_vm9 = vweird.f32 %v170_v50 }
 0x11b   :  { %444 = vpow2.f32 %v131_v51 }
 0x11c   :  { %v184_v1 = vor.u32 1.1754944e-38, %v183_v60  ;;  %vm182_vm12 = vcmp.eq.f32.partialorder %v181_v62, 8.507059e+37 }
 0x11f   :  { %v441_v53 = vpop.eup %440 }
 0x120   :  { %v443_v54 = vpop.eup %442  ;;  %v171_v55 = vadd.f32 1.0, %v441_v53  ;;  %v354_v23 = vpop.f32.mrf.mxu2 }
 0x121   :  { %v445_v56 = vpop.eup %444  ;;  %v173_v57 = vmul.f32 %v443_v54, %v170_v50  ;;  %vm178_vm8 = vweird.f32 %v443_v54 }
 0x122   :  { %446 = vrcp.f32 %v171_v55  ;;  %v217_v58 = vpack.c.bf16 %v445_v56, %v439_v52  ;;  %vm179_vm10 = vmor %vm177_vm9, %vm178_vm8  ;;  %v198_v6 = vand.u32 2147483648, %v171_v55  ;;  %v196_v8 = vand.u32 2147483647, %v171_v55 }
 0x123   :  { %v174_v59 = vsub.f32 1.0, %v173_v57  ;;  %vm192_vm14 = vweird.f32 %v171_v55 }
 0x124   :  { %414 = vmatmul.msk.bf16.vlgmr.msra.gmra.mxu1 %vm298_vm7, %v217_v58  ;;  %v199_v10 = vor.u32 1.1754944e-38, %v198_v6  ;;  %vm197_vm0 = vcmp.eq.f32.partialorder %v196_v8, 8.507059e+37 }
 0x125   :  { %v175_v61 = vmul.f32 %v443_v54, %v174_v59 }
 0x127   :  { %v176_v63 = vadd.f32 %v443_v54, %v175_v61 }
 0x128   :  { %v447_v0 = vpop.eup %446 }
 0x129   :  { %v180_v2 = vsel %vm179_vm10, %v443_v54, %v176_v63  ;;  %v188_v3 = vmul.f32 %v447_v0, %v171_v55  ;;  %vm193_vm13 = vweird.f32 %v447_v0 }
 0x12a   :  { %v185_v4 = vsel %vm182_vm12, %v184_v1, %v180_v2  ;;  %vm194_vm15 = vmor %vm192_vm14, %vm193_vm13 }
 0x12b   :  { %384 = vmatmul.msk.f32.vlgmr.msrb.gmra.mxu3 %vm219_vm11, %v185_v4  ;;  %v189_v5 = vsub.f32 1.0, %v188_v3 }
 0x12d   :  { %v190_v7 = vmul.f32 %v447_v0, %v189_v5 }
 0x12f   :  { %v191_v9 = vadd.f32 %v447_v0, %v190_v7 }
 0x131   :  { %v195_v11 = vsel %vm194_vm15, %v447_v0, %v191_v9 }
 0x132   :  { %v200_v12 = vsel %vm197_vm0, %v199_v10, %v195_v11 }
 0x133   :  { %385 = vmatmul.msk.f32.gmra.mxu3 %vm219_vm11, %v200_v12 }
 0x1a1   :  { %v315_v13 = vpop.f32.mrf.mxu1 }
 0x1a9   :  { %v317_v20 = vpop.f32.mrf.mxu1 }
 0x1ae   :  { %v247_v15 = vpop.f32.mrf.mxu3 }
 0x1af   :  { %v316_v16 = vadd.f32 %v315_v13, %v247_v15 }
 0x1b1   :  { %v357_v18 = vadd.f32 %v352_v14, %v316_v16 }
 0x1b3   :  { %v363_v19 = vadd.f32 %v435_v17, %v357_v18 }
 0x1b5   :  { %365 = vst.msk [vmem:[%s598_s11] sm:$0xff] %vm339_vm6, %v363_v19 }
 0x1b6   :  { %v250_v21 = vpop.f32.mrf.mxu3 }
 0x1b7   :  { %v318_v22 = vadd.f32 %v317_v20, %v250_v21 }
 0x1b9   :  { %v358_v24 = vadd.f32 %v354_v23, %v318_v22 }
 0x1bb   :  { %v364_v25 = vadd.f32 %v435_v17, %v358_v24 }
 0x1bd   :  { %367 = vst.msk [vmem:[%s598_s11 + $0x8] sm:$0xf] %vm366_vm1, %v364_v25 }

// kernel: _forward_core.27
= control target key start
LH: loop header
LB: loop body
LE: loop exit
PB: predicated region body
PF: predicated region fallthrough
CT: control target
= control target key end

     0   :  { %s732_s12 = smov 0   ;;  %s734_s13 = smov 0   ;;  %s850_s0 = inlined_call_operand.vmem [shape: f32[68,16], index: 0, kind: input, shape index: {}]   ;;  %s851_s1 = inlined_call_operand.vmem [shape: bf16[16,32], index: 1, kind: input, shape index: {}]   ;;  %s852_s2 = inlined_call_operand.vmem [shape: f32[1,32], index: 2, kind: input, shape index: {}]   ;;  %s853_s3 = inlined_call_operand.vmem [shape: bf16[68,32], index: 3, kind: output, shape index: {}]  }
   0x1   :  { %s736_s14 = smov 0  }
   0x2 LB: > { %s745_s15 = sadd.s32 4294967295, %s678_s14   ;;  %s747_s16 = sadd.s32 1, %s678_s14   ;;  %s678_s14 = sphi %s736_s14, %s860_s14   ;;  %s674_s13 = sphi %s734_s13, %s859_s13   ;;  %s670_s12 = sphi %s732_s12, %s858_s12  }
   0x3   : > { %s85_s17 = ssub.s32 %s678_s14, %s747_s16  ;;  %s88_s18 = sadd.s32 1, %s674_s13 }
   0x4   : > { %p86_p0 = scmp.eq.s32.totalorder %s85_s17, 0  ;;  %p98_p1 = scmp.ne.s32.totalorder %s674_s13, %s670_s12 }
   0x5   : > { %p99_p2 = scmp.eq.s32.totalorder %s745_s15, 1  ;;  %p502_p3 = scmp.ge.s32.totalorder %s678_s14, 1 }
   0x6   : > { %s755_s19 = scalar_select %p86_p0, %s674_s13, %s88_s18  }
   0x7   : > { %p757_p4 = por %p99_p2, %p98_p1  ;;  %p146_p5 = scmp.lt.s32.totalorder %s678_s14, 3 }
   0x9   : > { %p147_p6 = pnand %p502_p3, %p146_p5 }
   0xa   : > { %s765_s23 = smul.u32 (!%p147_p6), 6, %s745_s15  ;;  %s170_s29 = sand.u32 (!%p147_p6), 1, %s670_s12  }
   0xb   : > { %150 = sbr.rel (%p147_p6) target bundleno = 226 (0xe2), region = 32 }
   0xc   : > { %p178_p7 = scmp.lt.s32.totalorder (!%p147_p6), %s765_s23, 8  ;;  %s527_s5 = smul.u32 (!%p147_p6), 24, %s170_s29 }
   0xe   : > { %s776_s6 = scalar_lea.vmem (!%p147_p6), [#allocation2], %s527_s5  }
  0x10   : > { %v523_v0 = vld [vmem:[%s851_s1] sm:$0xff]  ;;  %s179_s24 = scalar_select %p178_p7, %s765_s23, 8  ;;  %vm214_vm0 = vcmask 130048   ;;  %vm254_vm1 = vcmask 257024  }
  0x11   : > { %231 = vmatpush.bf16.msra.mxu0 %v523_v0  ;;  %525 = vmatpush.bf16.msra.mxu1 %v523_v0  ;;  %v617_v10 = vld [vmem:[%s852_s2] ss:$0 sm:$0xff]  ;;  %s269_s7 = ssub.s32 (%p757_p4), 9, %s765_s23  ;;  %s524_s8 = smul.u32 (%p757_p4), 24, %s745_s15 }
  0x12   : > { %526 = vmatpush.bf16.msra.mxu2 %v523_v0  ;;  %s503_s25 = sshll.u32 %s179_s24, 3  ;;  %p270_p8 = scmp.lt.s32.totalorder (%p757_p4), %s269_s7, 6 }
  0x13   : > { %s181_s28 = scalar_lea.vmem %s850_s0, %s503_s25  ;;  %s797_s11 = scalar_lea.vmem (%p757_p4), %s853_s3, %s524_s8  }
  0x14   : > { %v193_v1 = vld [vmem:[%s181_s28] sm:$0xff]  ;;  %v194_v2 = vld [vmem:[%s181_s28 + $0x8] sm:$0xff]  ;;  %v195_v3 = vld [vmem:[%s181_s28 + $0x10] sm:$0xff] }
  0x15   : > { %v201_v4 = vpack.c.bf16 %v194_v2, %v193_v1  ;;  %v196_v5 = vld [vmem:[%s181_s28 + $0x18] sm:$0xff]  ;;  %v197_v6 = vld [vmem:[%s181_s28 + $0x20] sm:$0xff]  ;;  %v198_v7 = vld [vmem:[%s181_s28 + $0x28] sm:$0xff] }
  0x16   : > { %v202_v8 = vpack.c.bf16 %v196_v5, %v195_v3  ;;  %v203_v9 = vpack.c.bf16 %v198_v7, %v197_v6 }
  0x17   : > { %508 = vmatmul.msk.bf16.vlgmr.msra.gmra.mxu0 %vm214_vm0, %v201_v4 }
  0x18   : > { %509 = vmatmul.msk.bf16.vlgmr.msra.gmra.mxu1 %vm214_vm0, %v202_v8  ;;  %510 = vmatmul.msk.bf16.vlgmr.msra.gmra.mxu2 %vm214_vm0, %v203_v9 }
  0x94   : > { %v233_v11 = vpop.f32.mrf.mxu0 }
  0x95   : > { %v234_v12 = vadd.f32 %v617_v10, %v233_v11  ;;  %v238_v13 = vpop.f32.mrf.mxu1 }
  0x96   : > { %v239_v14 = vadd.f32 %v617_v10, %v238_v13 }
  0x97   : > { %v248_v15 = vpack.c.bf16 %v234_v12, %v234_v12 }
  0x98   : > { %v250_v16 = vpack.c.bf16 %v239_v14, %v239_v14 }
  0x99   : > { %255 = vst.msk [vmem:[%s776_s6] sm:$0xf] %vm254_vm1, %v248_v15 }
  0x9a   : > { %257 = vst.msk [vmem:[%s776_s6 + $0x8] sm:$0xf] %vm254_vm1, %v250_v16 }
  0x9b   : > { %v243_v17 = vpop.f32.mrf.mxu2 }
  0x9c   : > { %v244_v18 = vadd.f32 %v617_v10, %v243_v17  ;;  %v235_v19 = vpop.f32.mrf.mxu0 }
  0x9d   : > { %v236_v20 = vadd.f32 %v617_v10, %v235_v19  ;;  %v240_v21 = vpop.f32.mrf.mxu1 }
  0x9e   : > { %v252_v22 = vpack.c.bf16 %v244_v18, %v244_v18  ;;  %v241_v23 = vadd.f32 %v617_v10, %v240_v21 }
  0x9f   : > { %v249_v24 = vpack.c.bf16 %v236_v20, %v236_v20 }
  0xa0   : > { %259 = vst.msk [vmem:[%s776_s6 + $0x10] sm:$0xf] %vm254_vm1, %v252_v22  ;;  %v251_v25 = vpack.c.bf16 %v241_v23, %v241_v23 }
  0xa1   : > { %256 = vst.msk [vmem:[%s776_s6 + $0x4] sm:$0xf] %vm254_vm1, %v249_v24 }
  0xa2   : > { %258 = vst.msk [vmem:[%s776_s6 + $0xc] sm:$0xf] %vm254_vm1, %v251_v25 }
  0xa3   : > { %v245_v26 = vpop.f32.mrf.mxu2 }
  0xa4   : > { %v246_v27 = vadd.f32 %v617_v10, %v245_v26  ;;  %267 = sbr.rel (!%p757_p4) target bundleno = 226 (0xe2), region = 36 }
  0xa6   : > { %v253_v28 = vpack.c.bf16 %v246_v27, %v246_v27 }
  0xa8   : > { %260 = vst.msk [vmem:[%s776_s6 + $0x14] sm:$0xf] %vm254_vm1, %v253_v28 }
  0xa9   : > { %s862_s7 = smov (!%p270_p8, %s269_s7), 6 }
  0xaa   : > { %s511_s12 = sshll.u32 %s862_s7, 2 }
  0xab   : > { %p514_p9 = scmp.eq.s32.totalorder %s511_s12, 0 }
  0xac   : > { %618 = sdivrem.u32 (!%p514_p9), %s862_s7, 6 }
  0xad   : > { %278 = sbr.rel (%p514_p9) target bundleno = 226 (0xe2), region = 40 }
  0xb5   : > { %s803_s14 = spop.drf %618 }
  0xb6   : > { %s620_s17 = spop.drf %618  ;;  %p515_p10 = scmp.le.s32.totalorder %s803_s14, 0 }
  0xb7   : > { %s855_s15 = smov (!%p515_p10), %s797_s11  ;;  %s856_s18 = smov (!%p515_p10), %s776_s6 }
  0xb8   : > { %455 = sbr.rel (%p515_p10) target bundleno = 200 (0xc8), region = 112  ;;  %s812_s20 = smov (!%p515_p10), 0  }
  0xb9   : > { %s814_s21 = smov (!%p515_p10), 0  }
  0xbd LB: >> { %v296_v29 = vld [vmem:[%s686_s18] sm:$0xf]  ;;  %v298_v30 = vld [vmem:[%s686_s18 + $0x4] sm:$0xf]  ;;  %v300_v31 = vld [vmem:[%s686_s18 + $0x8] sm:$0xf]  ;;  %s694_s21 = sphi %s814_s21, %s290_s21   ;;  %s690_s20 = sphi %s812_s20, %s857_s20   ;;  %s686_s18 = sphi %s856_s18, %s313_s18   ;;  %s682_s15 = sphi %s855_s15, %s314_s15  }
  0xbe   : >> { %297 = vst [vmem:[%s682_s15] sm:$0xf] %v296_v29  ;;  %v302_v32 = vld [vmem:[%s686_s18 + $0xc] sm:$0xf]  ;;  %s308_s22 = sadd.s32 1, %s690_s20  ;;  %v304_v33 = vld [vmem:[%s686_s18 + $0x10] sm:$0xf] }
  0xbf   : >> { %299 = vst [vmem:[%s682_s15 + $0x4] sm:$0xf] %v298_v30  ;;  %p309_p11 = scmp.ge.s32.totalorder %s308_s22, %s803_s14  ;;  %v306_v34 = vld [vmem:[%s686_s18 + $0x14] sm:$0xf]  ;;  %s290_s21 = sadd.s32 1, %s694_s21  }
  0xc0   : >> { %301 = vst [vmem:[%s682_s15 + $0x8] sm:$0xf] %v300_v31  ;;  %p289_p12 = scmp.ge.s32.totalorder %s290_s21, %s803_s14 }
  0xc1   : >> { %303 = vst [vmem:[%s682_s15 + $0xc] sm:$0xf] %v302_v32  ;;  %s864_s22 = smov (%p309_p11, %s308_s22), 0 }
  0xc2   : >> { %305 = vst [vmem:[%s682_s15 + $0x10] sm:$0xf] %v304_v33  ;;  %s311_s23 = smul.u32 24, %s864_s22  ;;  %s857_s20 = smov %s864_s22 }
  0xc3   : >> { %307 = vst [vmem:[%s682_s15 + $0x14] sm:$0xf] %v306_v34  ;;  %292 = sbr.rel (!%p289_p12) target bundleno = 189 (0xbd), region = 118 }
  0xc4   : >> { %s313_s18 = scalar_lea.vmem %s776_s6, %s311_s23 [#allocation2]   ;;  %s314_s15 = scalar_lea.vmem %s797_s11, %s311_s23  }
  0xc8 PF: > { %621 = sdivrem.u32 %s862_s7, 6 }
  0xc9   : > { %s516_s24 = smul.u32 24, %s803_s14 }
  0xcb   : > { %s835_s25 = scalar_lea.vmem %s776_s6, %s516_s24 [#allocation2]   ;;  %s321_s26 = scalar_lea.vmem %s797_s11, %s516_s24  }
  0xd1   : > { %s622_s27 = spop.drf %621 }
  0xd2   : > { %s623_s28 = spop.drf %621 }
  0xd3   : > { %p518_p13 = scmp.le.s32.totalorder %s623_s28, 0 }
  0xd4   : > { %s696_s29 = smov (!%p518_p13), %s321_s26   ;;  %s700_s30 = smov (!%p518_p13), %s835_s25  }
  0xd5   : > { %469 = sbr.rel (%p518_p13) target bundleno = 226 (0xe2), region = 123  ;;  %s704_s4 = smov (!%p518_p13), 0  }
  0xd6   : > { %s708_s5 = smov (!%p518_p13), 0  }
  0xda LB: >> { %v331_v35 = vld [vmem:[%s702_s30] sm:$0xf]  ;;  %s333_s6 = sadd.s32 1, %s706_s4  ;;  %s325_s5 = sadd.s32 1, %s710_s5   ;;  %s710_s5 = sphi %s708_s5, %s325_s5   ;;  %s706_s4 = sphi %s704_s4, %s705_s4   ;;  %s702_s30 = sphi %s700_s30, %s338_s30   ;;  %s698_s29 = sphi %s696_s29, %s339_s29  }
  0xdb   : >> { %332 = vst [vmem:[%s698_s29] sm:$0xf] %v331_v35  ;;  %p334_p0 = scmp.ge.s32.totalorder %s333_s6, %s623_s28  ;;  %p324_p1 = scmp.ge.s32.totalorder %s325_s5, %s623_s28 }
  0xdd   : >> { %s866_s6 = smov (%p334_p0, %s333_s6), 0  ;;  %327 = sbr.rel (!%p324_p1) target bundleno = 218 (0xda), region = 129 }
  0xde   : >> { %s519_s7 = sshll.u32 %s866_s6, 2  ;;  %s705_s4 = smov %s866_s6  }
  0xdf   : >> { %s338_s30 = scalar_lea.vmem %s835_s25, %s519_s7 [#allocation2]   ;;  %s339_s29 = scalar_lea.vmem %s321_s26, %s519_s7  }
  0xe2 PF: > { %p10_p2 = scmp.ge.s32.totalorder %s747_s16, 4   ;;  %s858_s12 = smov %s674_s13 }
  0xe3   : > { %s859_s13 = smov %s755_s19  ;;  %s860_s14 = smov %s747_s16 }
  0xe4   :  { %12 = sbr.rel (!%p10_p2) target bundleno = 2 (0x2), region = 140 }

// kernel: _forward_core.29
= control target key start
LH: loop header
LB: loop body
LE: loop exit
PB: predicated region body
PF: predicated region fallthrough
CT: control target
= control target key end

     0   :  { %s1979_s0 = inlined_call_operand.vmem [shape: bf16[68,32], index: 0, kind: input, shape index: {}]   ;;  %s1980_s1 = inlined_call_operand.vmem [shape: bf16[68,32], index: 1, kind: input, shape index: {}]   ;;  %s1981_s2 = inlined_call_operand.vmem [shape: bf16[68,32], index: 2, kind: input, shape index: {}]   ;;  %s1982_s3 = inlined_call_operand.vmem [shape: bf16[32,32], index: 3, kind: input, shape index: {}]   ;;  %s1983_s4 = inlined_call_operand.vmem [shape: bf16[32,32], index: 4, kind: input, shape index: {}]   ;;  %s1984_s5 = inlined_call_operand.vmem [shape: bf16[32,32], index: 5, kind: input, shape index: {}]   ;;  %s1985_s6 = inlined_call_operand.vmem [shape: bf16[32,32], index: 6, kind: input, shape index: {}]   ;;  %s1986_s7 = inlined_call_operand.vmem [shape: bf16[32,4], index: 7, kind: input, shape index: {}]   ;;  %s1987_s8 = inlined_call_operand.vmem [shape: bf16[68,32], index: 8, kind: output, shape index: {0}]   ;;  %s1988_s9 = inlined_call_operand.vmem [shape: f32[68,4], index: 9, kind: output, shape index: {1}]  }
   0x1   :  { %1989 = sst [smem:[#allocation4_spill]] %s1979_s0 }
   0x2   :  { %1990 = sst [smem:[#allocation5_spill]] %s1980_s1 }
   0x3   :  { %s1753_s30 = smov 0   ;;  %s1755_s10 = smov 0  }
   0x4   :  { %s1757_s11 = smov 0  }
   0x5 LB: > { %s1766_s12 = sadd.s32 4294967295, %s1637_s11   ;;  %s1768_s13 = sadd.s32 1, %s1637_s11   ;;  %s1637_s11 = sphi %s1757_s11, %s2002_s11   ;;  %s1633_s10 = sphi %s1755_s10, %s2001_s10   ;;  %s1629_s30 = sphi %s1753_s30, %s2000_s30  }
   0x6   : > { %s207_s14 = ssub.s32 %s1637_s11, %s1768_s13  ;;  %s210_s15 = sadd.s32 1, %s1633_s10 }
   0x7   : > { %p208_p0 = scmp.eq.s32.totalorder %s207_s14, 0  ;;  %p220_p1 = scmp.ne.s32.totalorder %s1633_s10, %s1629_s30 }
   0x8   : > { %p221_p2 = scmp.eq.s32.totalorder %s1766_s12, 1  ;;  %p1242_p3 = scmp.ge.s32.totalorder %s1637_s11, 1 }
   0x9   : > { %s1776_s16 = scalar_select %p208_p0, %s1633_s10, %s210_s15  }
   0xa   : > { %p1778_p4 = por %p221_p2, %p220_p1  ;;  %p337_p5 = scmp.lt.s32.totalorder %s1637_s11, 3 }
   0xc   : > { %p338_p6 = pnand %p1242_p3, %p337_p5 }
   0xd   : > { %s1786_s20 = smul.u32 (!%p338_p6), 6, %s1766_s12  ;;  %s1992_s1 = sld [smem:[#allocation5_spill]] (!%p338_p6) }
   0xe   : > { %341 = sbr.rel (%p338_p6) target bundleno = 466 (0x1d2), region = 52  ;;  %s1993_s0 = sld [smem:[#allocation4_spill]] (!%p338_p6) }
   0xf   : > { %p403_p7 = scmp.lt.s32.totalorder (!%p338_p6), %s1786_s20, 8 }
  0x13   : > { %v1356_v0 = vld [vmem:[%s1983_s4 + $0x8] sm:$0xff]  ;;  %v1355_v1 = vld [vmem:[%s1983_s4] sm:$0xff]  ;;  %s404_s25 = scalar_select %p403_p7, %s1786_s20, 8  ;;  %vm498_vm0 = vcmask 261120   ;;  %vm678_vm1 = vcmask 257024   ;;  %vm755_vm2 = vcmask 31744  }
  0x14   : > { %1379 = vmatpush.bf16.msra.mxu1 %v1356_v0  ;;  %514 = vmatpush.bf16.msra.mxu0 %v1356_v0  ;;  %v1354_v2 = vld [vmem:[%s1982_s3 + $0x8] sm:$0xff]  ;;  %v1353_v3 = vld [vmem:[%s1982_s3] sm:$0xff]  ;;  %s774_s27 = ssub.s32 (%p1778_p4), 9, %s1786_s20  ;;  %s1363_s28 = smul.u32 (%p1778_p4), 24, %s1766_s12 }
  0x15   : > { %1380 = vmatpush.bf16.msra.mxu2 %v1356_v0  ;;  %s1796_s26 = sshll.u32 %s404_s25, 2  ;;  %v1360_v10 = vld [vmem:[%s1985_s6 + $0x8] sm:$0xff]  ;;  %v1359_v12 = vld [vmem:[%s1985_s6] sm:$0xff]  ;;  %p775_p8 = scmp.lt.s32.totalorder (%p1778_p4), %s774_s27, 6 }
  0x16   : > { %s420_s29 = scalar_lea.vmem %s1992_s1, %s1796_s26  ;;  %s406_s19 = scalar_lea.vmem %s1993_s0, %s1796_s26  ;;  %v1358_v11 = vld [vmem:[%s1984_s5 + $0x8] sm:$0xff]  ;;  %v1357_v13 = vld [vmem:[%s1984_s5] sm:$0xff] }
  0x17   : > { %v1351_v4 = vld [vmem:[%s420_s29 + $0x8] sm:$0xff]  ;;  %v1350_v5 = vld [vmem:[%s420_s29] sm:$0xff]  ;;  %v1352_v6 = vld [vmem:[%s420_s29 + $0x10] sm:$0xff]  ;;  %654 = vmatpush.bf16.msra.mxu3 %v1358_v11  ;;  %s434_s22 = scalar_lea.vmem %s1981_s2, %s1796_s26  ;;  %s389_s26 = sand.u32 1, %s1629_s30  }
  0x18   : > { %1381 = vmatpush.bf16.msra.mxu1 %v1355_v1  ;;  %515 = vmatpush.bf16.msra.mxu0 %v1355_v1  ;;  %v1347_v7 = vld [vmem:[%s406_s19] sm:$0xff]  ;;  %v1348_v8 = vld [vmem:[%s406_s19 + $0x8] sm:$0xff]  ;;  %v1349_v9 = vld [vmem:[%s406_s19 + $0x10] sm:$0xff]  ;;  %s1383_s23 = smul.u32 24, %s389_s26  ;;  %s1876_s14 = scalar_lea.vmem (%p1778_p4), %s1987_s8, %s1363_s28  }
  0x19   : > { %1382 = vmatpush.bf16.msra.mxu2 %v1355_v1  ;;  %v1362_v14 = vld [vmem:[%s1986_s7 + $0x8] sm:$0xff]  ;;  %v1361_v15 = vld [vmem:[%s1986_s7] sm:$0xff]  ;;  %v1378_v42 = vld [vmem:[%s434_s22 + $0x10] sm:$0xff]   ;;  %s1384_s30 = smul.u32 48, %s389_s26 }
  0x1a   : > { %v1366_v20 = vld [vmem:[%s434_s22] sm:$0xff]   ;;  %v1377_v31 = vld [vmem:[%s434_s22 + $0x8] sm:$0xff]   ;;  %v1375_v44 = vunpack.c.l.bf16 %v1378_v42  ;;  %v1376_v45 = vunpack.c.h.bf16 %v1378_v42  ;;  %s1847_s24 = scalar_lea.vmem [#allocation2], %s1383_s23  }
  0x1b   : > { %1267 = vmatmul.msk.bf16.vlgmr.msra.gmra.mxu1 %vm498_vm0, %v1351_v4  ;;  %1266 = vmatmul.msk.bf16.vlgmr.msra.gmra.mxu0 %vm498_vm0, %v1350_v5  ;;  %v1367_v22 = vunpack.c.l.bf16 %v1366_v20  ;;  %v1368_v23 = vunpack.c.h.bf16 %v1366_v20  ;;  %v1371_v33 = vunpack.c.l.bf16 %v1377_v31  ;;  %v1372_v34 = vunpack.c.h.bf16 %v1377_v31  ;;  %s1859_s25 = scalar_lea.vmem [#allocation3], %s1384_s30  }
  0x1c   : > { %574 = vmatpush.bf16.msrb.mxu1 %v1354_v2  ;;  %1268 = vmatmul.msk.bf16.vlgmr.msra.gmra.mxu2 %vm498_vm0, %v1352_v6 }
  0x1d   : > { %618 = vmatpush.bf16.msrb.mxu2 %v1360_v10  ;;  %655 = vmatpush.bf16.msra.mxu3 %v1357_v13 }
  0x1e   : > { %737 = vmatpush.bf16.msrb.mxu0 %v1362_v14 }
  0x20   : > { %575 = vmatpush.bf16.msrb.mxu1 %v1353_v3  ;;  %1311 = vmatmul.msk.bf16.vlgmr.msra.gmra.mxu3 %vm498_vm0, %v1347_v7 }
  0x21   : > { %619 = vmatpush.bf16.msrb.mxu2 %v1359_v12 }
  0x22   : > { %738 = vmatpush.bf16.msrb.mxu0 %v1361_v15 }
  0x2b   : > { %1289 = vmatmul.msk.bf16.vlgmr.msrb.gmra.mxu1 %vm498_vm0, %v1347_v7 }
  0x2c   : > { %1300 = vmatmul.msk.bf16.vlgmr.msrb.gmra.mxu2 %vm498_vm0, %v1350_v5 }
  0x30   : > { %1312 = vmatmul.msk.bf16.gmra.mxu3 %vm498_vm0, %v1348_v8 }
  0x3b   : > { %1290 = vmatmul.msk.bf16.gmra.mxu1 %vm498_vm0, %v1348_v8 }
  0x3c   : > { %1301 = vmatmul.msk.bf16.gmra.mxu2 %vm498_vm0, %v1351_v4 }
  0x40   : > { %1313 = vmatmul.msk.bf16.gmra.mxu3 %vm498_vm0, %v1349_v9 }
  0x4b   : > { %1291 = vmatmul.msk.bf16.gmra.mxu1 %vm498_vm0, %v1349_v9 }
  0x4c   : > { %1302 = vmatmul.msk.bf16.gmra.mxu2 %vm498_vm0, %v1352_v6 }
  0x98   : > { %v522_v16 = vpop.f32.mrf.mxu1  ;;  %v517_v18 = vpop.f32.mrf.mxu0 }
  0x9f   : > { %v527_v40 = vpop.f32.mrf.mxu2 }
  0xa0   : > { %v524_v17 = vpop.f32.mrf.mxu1  ;;  %v519_v24 = vpop.f32.mrf.mxu0 }
  0xa3   : > { %v657_v53 = vpop.f32.mrf.mxu3 }
  0xa7   : > { %v529_v46 = vpop.f32.mrf.mxu2 }
  0xa8   : > { %v577_v19 = vpop.f32.mrf.mxu1 }
  0xa9   : > { %v578_v21 = vadd.f32 %v577_v19, %v517_v18 }
  0xab   : > { %v697_v27 = vmul.f32 %v1367_v22, %v578_v21  ;;  %v659_v57 = vpop.f32.mrf.mxu3 }
  0xaf   : > { %v621_v52 = vpop.f32.mrf.mxu2 }
  0xb0   : > { %v579_v25 = vpop.f32.mrf.mxu1  ;;  %v658_v54 = vadd.f32 %v657_v53, %v621_v52 }
  0xb1   : > { %v580_v26 = vadd.f32 %v579_v25, %v519_v24 }
  0xb2   : > { %v672_v55 = vpack.c.bf16 %v658_v54, %v658_v54 }
  0xb3   : > { %v698_v28 = vmul.f32 %v1368_v23, %v580_v26  ;;  %v662_v61 = vpop.f32.mrf.mxu3 }
  0xb4   : > { %679 = vst.msk [vmem:[%s1847_s24] sm:$0xf] %vm678_vm1, %v672_v55 }
  0xb5   : > { %v707_v29 = vpack.c.bf16 %v698_v28, %v697_v27 }
  0xb7   : > { %1322 = vmatmul.msk.bf16.vlgmr.msrb.gmra.mxu0 %vm498_vm0, %v707_v29  ;;  %v623_v56 = vpop.f32.mrf.mxu2 }
  0xb8   : > { %v582_v30 = vpop.f32.mrf.mxu1  ;;  %v660_v58 = vadd.f32 %v659_v57, %v623_v56 }
  0xb9   : > { %v583_v32 = vadd.f32 %v582_v30, %v522_v16 }
  0xba   : > { %v673_v59 = vpack.c.bf16 %v660_v58, %v660_v58 }
  0xbb   : > { %v699_v37 = vmul.f32 %v1371_v33, %v583_v32  ;;  %v664_v1 = vpop.f32.mrf.mxu3 }
  0xbc   : > { %680 = vst.msk [vmem:[%s1847_s24 + $0x4] sm:$0xf] %vm678_vm1, %v673_v59 }
  0xbf   : > { %v626_v60 = vpop.f32.mrf.mxu2 }
  0xc0   : > { %v584_v35 = vpop.f32.mrf.mxu1  ;;  %v663_v62 = vadd.f32 %v662_v61, %v626_v60 }
  0xc1   : > { %v585_v36 = vadd.f32 %v584_v35, %v524_v17 }
  0xc2   : > { %v674_v63 = vpack.c.bf16 %v663_v62, %v663_v62 }
  0xc3   : > { %v700_v38 = vmul.f32 %v1372_v34, %v585_v36  ;;  %v667_v5 = vpop.f32.mrf.mxu3 }
  0xc4   : > { %681 = vst.msk [vmem:[%s1847_s24 + $0x8] sm:$0xf] %vm678_vm1, %v674_v63 }
  0xc5   : > { %v708_v39 = vpack.c.bf16 %v700_v38, %v699_v37 }
  0xc7   : > { %1323 = vmatmul.msk.bf16.gmra.mxu0 %vm498_vm0, %v708_v39  ;;  %v628_v0 = vpop.f32.mrf.mxu2 }
  0xc8   : > { %v587_v41 = vpop.f32.mrf.mxu1  ;;  %v665_v2 = vadd.f32 %v664_v1, %v628_v0 }
  0xc9   : > { %v588_v43 = vadd.f32 %v587_v41, %v527_v40 }
  0xca   : > { %v675_v3 = vpack.c.bf16 %v665_v2, %v665_v2 }
  0xcb   : > { %v701_v49 = vmul.f32 %v1375_v44, %v588_v43  ;;  %v669_v9 = vpop.f32.mrf.mxu3 }
  0xcc   : > { %682 = vst.msk [vmem:[%s1847_s24 + $0xc] sm:$0xf] %vm678_vm1, %v675_v3 }
  0xcf   : > { %v631_v4 = vpop.f32.mrf.mxu2 }
  0xd0   : > { %v589_v47 = vpop.f32.mrf.mxu1  ;;  %v668_v6 = vadd.f32 %v667_v5, %v631_v4 }
  0xd1   : > { %v590_v48 = vadd.f32 %v589_v47, %v529_v46 }
  0xd2   : > { %v676_v7 = vpack.c.bf16 %v668_v6, %v668_v6 }
  0xd3   : > { %v702_v50 = vmul.f32 %v1376_v45, %v590_v48 }
  0xd4   : > { %683 = vst.msk [vmem:[%s1847_s24 + $0x10] sm:$0xf] %vm678_vm1, %v676_v7 }
  0xd5   : > { %v709_v51 = vpack.c.bf16 %v702_v50, %v701_v49 }
  0xd7   : > { %1324 = vmatmul.msk.bf16.gmra.mxu0 %vm498_vm0, %v709_v51  ;;  %v633_v8 = vpop.f32.mrf.mxu2 }
  0xd8   : > { %v670_v10 = vadd.f32 %v669_v9, %v633_v8 }
  0xda   : > { %v677_v11 = vpack.c.bf16 %v670_v10, %v670_v10 }
  0xdc   : > { %684 = vst.msk [vmem:[%s1847_s24 + $0x14] sm:$0xf] %vm678_vm1, %v677_v11 }
 0x134   : > { %v740_v12 = vpop.f32.mrf.mxu0 }
 0x135   : > { %756 = vst.msk [vmem:[%s1859_s25] sm:$0xff] %vm755_vm2, %v740_v12 }
 0x13c   : > { %v742_v13 = vpop.f32.mrf.mxu0 }
 0x13d   : > { %757 = vst.msk [vmem:[%s1859_s25 + $0x8] sm:$0xff] %vm755_vm2, %v742_v13 }
 0x144   : > { %v745_v14 = vpop.f32.mrf.mxu0 }
 0x145   : > { %758 = vst.msk [vmem:[%s1859_s25 + $0x10] sm:$0xff] %vm755_vm2, %v745_v14 }
 0x14c   : > { %v747_v15 = vpop.f32.mrf.mxu0 }
 0x14d   : > { %759 = vst.msk [vmem:[%s1859_s25 + $0x18] sm:$0xff] %vm755_vm2, %v747_v15 }
 0x154   : > { %v750_v16 = vpop.f32.mrf.mxu0 }
 0x155   : > { %760 = vst.msk [vmem:[%s1859_s25 + $0x20] sm:$0xff] %vm755_vm2, %v750_v16 }
 0x159   : > { %772 = sbr.rel (!%p1778_p4) target bundleno = 407 (0x197), region = 56 }
 0x15c   : > { %v752_v17 = vpop.f32.mrf.mxu0 }
 0x15d   : > { %761 = vst.msk [vmem:[%s1859_s25 + $0x28] sm:$0xff] %vm755_vm2, %v752_v17 }
 0x15e   : > { %s2004_s27 = smov (!%p775_p8, %s774_s27), 6 }
 0x15f   : > { %s1325_s15 = sshll.u32 %s2004_s27, 2 }
 0x160   : > { %p1328_p9 = scmp.eq.s32.totalorder %s1325_s15, 0 }
 0x161   : > { %1539 = sdivrem.u32 (!%p1328_p9), %s2004_s27, 6 }
 0x162   : > { %783 = sbr.rel (%p1328_p9) target bundleno = 407 (0x197), region = 60 }
 0x16a   : > { %s1882_s18 = spop.drf %1539 }
 0x16b   : > { %s1541_s19 = spop.drf %1539  ;;  %p1329_p10 = scmp.le.s32.totalorder %s1882_s18, 0 }
 0x16c   : > { %s1994_s21 = smov (!%p1329_p10), %s1876_s14  ;;  %s1995_s22 = smov (!%p1329_p10), %s1847_s24 }
 0x16d   : > { %1146 = sbr.rel (%p1329_p10) target bundleno = 381 (0x17d), region = 210  ;;  %s1891_s26 = smov (!%p1329_p10), 0  }
 0x16e   : > { %s1893_s23 = smov (!%p1329_p10), 0  }
 0x172 LB: >> { %v801_v18 = vld [vmem:[%s1645_s22] sm:$0xf]  ;;  %v803_v19 = vld [vmem:[%s1645_s22 + $0x4] sm:$0xf]  ;;  %v805_v20 = vld [vmem:[%s1645_s22 + $0x8] sm:$0xf]  ;;  %s1653_s23 = sphi %s1893_s23, %s795_s23   ;;  %s1649_s26 = sphi %s1891_s26, %s1996_s26   ;;  %s1645_s22 = sphi %s1995_s22, %s818_s22   ;;  %s1641_s21 = sphi %s1994_s21, %s819_s21  }
 0x173   : >> { %802 = vst [vmem:[%s1641_s21] sm:$0xf] %v801_v18  ;;  %v807_v21 = vld [vmem:[%s1645_s22 + $0xc] sm:$0xf]  ;;  %s813_s30 = sadd.s32 1, %s1649_s26  ;;  %v809_v22 = vld [vmem:[%s1645_s22 + $0x10] sm:$0xf] }
 0x174   : >> { %804 = vst [vmem:[%s1641_s21 + $0x4] sm:$0xf] %v803_v19  ;;  %p814_p11 = scmp.ge.s32.totalorder %s813_s30, %s1882_s18  ;;  %v811_v23 = vld [vmem:[%s1645_s22 + $0x14] sm:$0xf]  ;;  %s795_s23 = sadd.s32 1, %s1653_s23  }
 0x175   : >> { %806 = vst [vmem:[%s1641_s21 + $0x8] sm:$0xf] %v805_v20  ;;  %p794_p12 = scmp.ge.s32.totalorder %s795_s23, %s1882_s18 }
 0x176   : >> { %808 = vst [vmem:[%s1641_s21 + $0xc] sm:$0xf] %v807_v21  ;;  %s2006_s30 = smov (%p814_p11, %s813_s30), 0 }
 0x177   : >> { %810 = vst [vmem:[%s1641_s21 + $0x10] sm:$0xf] %v809_v22  ;;  %s816_s28 = smul.u32 24, %s2006_s30  ;;  %s1996_s26 = smov %s2006_s30 }
 0x178   : >> { %812 = vst [vmem:[%s1641_s21 + $0x14] sm:$0xf] %v811_v23  ;;  %797 = sbr.rel (!%p794_p12) target bundleno = 370 (0x172), region = 216 }
 0x179   : >> { %s818_s22 = scalar_lea.vmem %s1847_s24, %s816_s28 [#allocation2]   ;;  %s819_s21 = scalar_lea.vmem %s1876_s14, %s816_s28  }
 0x17d PF: > { %1542 = sdivrem.u32 %s2004_s27, 6 }
 0x17e   : > { %s1330_s29 = smul.u32 24, %s1882_s18 }
 0x180   : > { %s1914_s11 = scalar_lea.vmem %s1847_s24, %s1330_s29 [#allocation2]   ;;  %s826_s15 = scalar_lea.vmem %s1876_s14, %s1330_s29  }
 0x186   : > { %s1543_s19 = spop.drf %1542 }
 0x187   : > { %s1544_s28 = spop.drf %1542 }
 0x188   : > { %p1332_p13 = scmp.le.s32.totalorder %s1544_s28, 0 }
 0x189   : > { %s1655_s0 = smov (!%p1332_p13), %s826_s15   ;;  %s1659_s30 = smov (!%p1332_p13), %s1914_s11  }
 0x18a   : > { %1160 = sbr.rel (%p1332_p13) target bundleno = 407 (0x197), region = 221  ;;  %s1663_s1 = smov (!%p1332_p13), 0  }
 0x18b   : > { %s1667_s23 = smov (!%p1332_p13), 0  }
 0x18f LB: >> { %v836_v24 = vld [vmem:[%s1661_s30] sm:$0xf]  ;;  %s838_s24 = sadd.s32 1, %s1665_s1  ;;  %s830_s23 = sadd.s32 1, %s1669_s23   ;;  %s1669_s23 = sphi %s1667_s23, %s830_s23   ;;  %s1665_s1 = sphi %s1663_s1, %s1664_s1   ;;  %s1661_s30 = sphi %s1659_s30, %s843_s30   ;;  %s1657_s0 = sphi %s1655_s0, %s844_s0  }
 0x190   : >> { %837 = vst [vmem:[%s1657_s0] sm:$0xf] %v836_v24  ;;  %p839_p0 = scmp.ge.s32.totalorder %s838_s24, %s1544_s28  ;;  %p829_p1 = scmp.ge.s32.totalorder %s830_s23, %s1544_s28 }
 0x192   : >> { %s2008_s24 = smov (%p839_p0, %s838_s24), 0  ;;  %832 = sbr.rel (!%p829_p1) target bundleno = 399 (0x18f), region = 227 }
 0x193   : >> { %s1333_s27 = sshll.u32 %s2008_s24, 2  ;;  %s1664_s1 = smov %s2008_s24  }
 0x194   : >> { %s843_s30 = scalar_lea.vmem %s1914_s11, %s1333_s27 [#allocation2]   ;;  %s844_s0 = scalar_lea.vmem %s826_s15, %s1333_s27  }
 0x197 PF: > { %907 = sbr.rel (!%p1778_p4) target bundleno = 466 (0x1d2), region = 104  ;;  %s909_s1 = ssub.s32 (%p1778_p4), 9, %s1786_s20 }
 0x198   : > { %s1364_s14 = smul.u32 (%p1778_p4), 48, %s1766_s12  ;;  %p910_p2 = scmp.lt.s32.totalorder (%p1778_p4), %s909_s1, 6 }
 0x19a   : > { %s1926_s22 = scalar_lea.vmem (%p1778_p4), %s1988_s9, %s1364_s14  }
 0x19c   : > { %s2010_s1 = smov (!%p910_p2, %s909_s1), 6 }
 0x19d   : > { %s1335_s0 = sshll.u32 %s2010_s1, 3 }
 0x19e   : > { %p1338_p3 = scmp.eq.s32.totalorder %s1335_s0, 0 }
 0x19f   : > { %1545 = sdivrem.u32 (!%p1338_p3), %s2010_s1, 6 }
 0x1a0   : > { %918 = sbr.rel (%p1338_p3) target bundleno = 466 (0x1d2), region = 108 }
 0x1a8   : > { %s1932_s17 = spop.drf %1545 }
 0x1a9   : > { %s1547_s26 = spop.drf %1545  ;;  %p1339_p4 = scmp.le.s32.totalorder %s1932_s17, 0 }
 0x1aa   : > { %s1997_s12 = smov (!%p1339_p4), %s1926_s22  ;;  %s1998_s20 = smov (!%p1339_p4), %s1859_s25 }
 0x1ab   : > { %1174 = sbr.rel (%p1339_p4) target bundleno = 440 (0x1b8), region = 232  ;;  %s1941_s29 = smov (!%p1339_p4), 0  }
 0x1ac   : > { %s1943_s11 = smov (!%p1339_p4), 0  }
 0x1b0 LB: >> { %v993_v25 = vld [vmem:[%s1677_s20] sm:$0xff]  ;;  %v995_v26 = vld [vmem:[%s1677_s20 + $0x8] sm:$0xff]  ;;  %v997_v27 = vld [vmem:[%s1677_s20 + $0x10] sm:$0xff]  ;;  %s1005_s15 = sadd.s32 1, %s1681_s29  ;;  %s987_s11 = sadd.s32 1, %s1685_s11   ;;  %s1685_s11 = sphi %s1943_s11, %s987_s11   ;;  %s1681_s29 = sphi %s1941_s29, %s1999_s29   ;;  %s1677_s20 = sphi %s1998_s20, %s1010_s20   ;;  %s1673_s12 = sphi %s1997_s12, %s1011_s12  }
 0x1b1   : >> { %994 = vst [vmem:[%s1673_s12] sm:$0xff] %v993_v25  ;;  %v999_v28 = vld [vmem:[%s1677_s20 + $0x18] sm:$0xff]  ;;  %p1006_p5 = scmp.ge.s32.totalorder %s1005_s15, %s1932_s17  ;;  %v1001_v29 = vld [vmem:[%s1677_s20 + $0x20] sm:$0xff]  ;;  %v1003_v30 = vld [vmem:[%s1677_s20 + $0x28] sm:$0xff]  ;;  %p986_p6 = scmp.ge.s32.totalorder %s987_s11, %s1932_s17 }
 0x1b2   : >> { %996 = vst [vmem:[%s1673_s12 + $0x8] sm:$0xff] %v995_v26 }
 0x1b3   : >> { %998 = vst [vmem:[%s1673_s12 + $0x10] sm:$0xff] %v997_v27  ;;  %s2012_s15 = smov (%p1006_p5, %s1005_s15), 0  ;;  %989 = sbr.rel (!%p986_p6) target bundleno = 432 (0x1b0), region = 238 }
 0x1b4   : >> { %1000 = vst [vmem:[%s1673_s12 + $0x18] sm:$0xff] %v999_v28  ;;  %s1008_s19 = smul.u32 48, %s2012_s15  ;;  %s1999_s29 = smov %s2012_s15 }
 0x1b5   : >> { %1002 = vst [vmem:[%s1673_s12 + $0x20] sm:$0xff] %v1001_v29 }
 0x1b6   : >> { %1004 = vst [vmem:[%s1673_s12 + $0x28] sm:$0xff] %v1003_v30  ;;  %s1010_s20 = scalar_lea.vmem %s1859_s25, %s1008_s19 [#allocation3]   ;;  %s1011_s12 = scalar_lea.vmem %s1926_s22, %s1008_s19  }
 0x1b8 PF: > { %1548 = sdivrem.u32 %s2010_s1, 6 }
 0x1b9   : > { %s1340_s28 = smul.u32 48, %s1932_s17 }
 0x1bb   : > { %s1964_s30 = scalar_lea.vmem %s1859_s25, %s1340_s28 [#allocation3]   ;;  %s1018_s23 = scalar_lea.vmem %s1926_s22, %s1340_s28  }
 0x1c1   : > { %s1549_s24 = spop.drf %1548 }
 0x1c2   : > { %s1550_s27 = spop.drf %1548 }
 0x1c3   : > { %p1342_p7 = scmp.le.s32.totalorder %s1550_s27, 0 }
 0x1c4   : > { %s1687_s14 = smov (!%p1342_p7), %s1018_s23   ;;  %s1691_s18 = smov (!%p1342_p7), %s1964_s30  }
 0x1c5   : > { %1188 = sbr.rel (%p1342_p7) target bundleno = 466 (0x1d2), region = 243  ;;  %s1695_s21 = smov (!%p1342_p7), 0  }
 0x1c6   : > { %s1699_s0 = smov (!%p1342_p7), 0  }
 0x1ca LB: >> { %v1028_v31 = vld [vmem:[%s1693_s18] sm:$0xff]  ;;  %s1030_s25 = sadd.s32 1, %s1697_s21  ;;  %s1022_s0 = sadd.s32 1, %s1701_s0   ;;  %s1701_s0 = sphi %s1699_s0, %s1022_s0   ;;  %s1697_s21 = sphi %s1695_s21, %s1696_s21   ;;  %s1693_s18 = sphi %s1691_s18, %s1035_s18   ;;  %s1689_s14 = sphi %s1687_s14, %s1036_s14  }
 0x1cb   : >> { %1029 = vst [vmem:[%s1689_s14] sm:$0xff] %v1028_v31  ;;  %p1031_p8 = scmp.ge.s32.totalorder %s1030_s25, %s1550_s27  ;;  %p1021_p9 = scmp.ge.s32.totalorder %s1022_s0, %s1550_s27 }
 0x1cd   : >> { %s2014_s25 = smov (%p1031_p8, %s1030_s25), 0  ;;  %1024 = sbr.rel (!%p1021_p9) target bundleno = 458 (0x1ca), region = 249 }
 0x1ce   : >> { %s1343_s1 = sshll.u32 %s2014_s25, 3  ;;  %s1696_s21 = smov %s2014_s25  }
 0x1cf   : >> { %s1035_s18 = scalar_lea.vmem %s1964_s30, %s1343_s1 [#allocation3]   ;;  %s1036_s14 = scalar_lea.vmem %s1018_s23, %s1343_s1  }
 0x1d2 PF: > { %p17_p10 = scmp.ge.s32.totalorder %s1768_s13, 4   ;;  %s2000_s30 = smov %s1633_s10 }
 0x1d3   : > { %s2001_s10 = smov %s1776_s16  ;;  %s2002_s11 = smov %s1768_s13 }
 0x1d4   :  { %19 = sbr.rel (!%p17_p10) target bundleno = 5 (0x5), region = 260 }

// kernel: _forward_core.30
= control target key start
LH: loop header
LB: loop body
LE: loop exit
PB: predicated region body
PF: predicated region fallthrough
CT: control target
= control target key end

     0   :  { %vm72_vm0 = vcmask 261120   ;;  %vm99_vm1 = vcmask 259072   ;;  %v300_v33 = vmov 32.0   ;;  %s418_s2 = inlined_call_operand.vmem [shape: bf16[32,32], index: 2, kind: input, shape index: {}]   ;;  %s419_s0 = inlined_call_operand.vmem [shape: f32[14,32], index: 0, kind: input, shape index: {}]   ;;  %s420_s1 = inlined_call_operand.vmem [shape: f32[14,32], index: 1, kind: input, shape index: {}]   ;;  %s421_s3 = inlined_call_operand.vmem [shape: f32[1,32], index: 3, kind: input, shape index: {}]   ;;  %s422_s4 = inlined_call_operand.vmem [shape: f32[1,32], index: 4, kind: input, shape index: {}]   ;;  %s423_s6 = inlined_call_operand.vmem [shape: f32[1,32], index: 6, kind: input, shape index: {}]   ;;  %s424_s5 = inlined_call_operand.vmem [shape: bf16[32,32], index: 5, kind: input, shape index: {}]   ;;  %s425_s8 = inlined_call_operand.vmem [shape: f32[1,32], index: 8, kind: input, shape index: {}]   ;;  %s426_s7 = inlined_call_operand.vmem [shape: bf16[32,32], index: 7, kind: input, shape index: {}]   ;;  %s427_s9 = inlined_call_operand.vmem [shape: f32[14,32], index: 9, kind: output, shape index: {}]  }
   0x1   :  { %v276_v0 = vld [vmem:[%s418_s2 + $0x8] sm:$0xff]  ;;  %v33_v1 = vld [vmem:[%s419_s0] sm:$0xff] }
   0x2   :  { %v34_v2 = vld [vmem:[%s419_s0 + $0x8] sm:$0x3f]  ;;  %v37_v3 = vand.u32 2147483647, %v33_v1  ;;  %82 = vmatpush.bf16.msra.mxu0 %v276_v0  ;;  %v275_v4 = vld [vmem:[%s418_s2] sm:$0xff]  ;;  %v35_v14 = vmax.f32 %v33_v1, 0.0 }
   0x3   :  { %v38_v5 = vand.u32 2147483647, %v34_v2  ;;  %v36_v16 = vmax.f32 %v34_v2, 0.0  ;;  %v90_v25 = vld [vmem:[%s420_s1] sm:$0xff]  ;;  %v91_v29 = vld [vmem:[%s420_s1 + $0x8] sm:$0x3f] }
   0x4   :  { %v39_v6 = vsub.f32 0.0, %v37_v3  ;;  %v278_v50 = vld [vmem:[%s424_s5 + $0x8] sm:$0xff]  ;;  %v277_v52 = vld [vmem:[%s424_s5] sm:$0xff] }
   0x5   :  { %v40_v7 = vsub.f32 0.0, %v38_v5  ;;  %188 = vmatpush.bf16.msra.mxu1 %v278_v50 }
   0x6   :  { %v41_v8 = vmul.f32 1.442695, %v39_v6  ;;  %83 = vmatpush.bf16.msra.mxu0 %v275_v4 }
   0x7   :  { %v43_v9 = vmul.f32 1.442695, %v40_v7  ;;  %v282_v7 = vld [vmem:[%s421_s3] ss:$0 sm:$0xff] }
   0x8   :  { %286 = vpow2.f32 %v41_v8 }
   0x9   :  { %288 = vpow2.f32 %v43_v9  ;;  %189 = vmatpush.bf16.msra.mxu1 %v277_v52 }
   0xe   :  { %v287_v10 = vpop.eup %286 }
   0xf   :  { %v289_v11 = vpop.eup %288  ;;  %v45_v12 = vadd.f32 1.0, %v287_v10 }
  0x10   :  { %v46_v13 = vadd.f32 1.0, %v289_v11 }
  0x11   :  { %290 = vlog2.f32 %v45_v12  ;;  %v283_v12 = vld [vmem:[%s422_s4] ss:$0 sm:$0xff] }
  0x12   :  { %292 = vlog2.f32 %v46_v13 }
  0x13   :  { %294 = vrcp.f32 %v300_v33 }
  0x17   :  { %v291_v15 = vpop.eup %290 }
  0x18   :  { %v293_v17 = vpop.eup %292  ;;  %v48_v18 = vmul.f32 0.6931472, %v291_v15 }
  0x19   :  { %v50_v19 = vmul.f32 0.6931472, %v293_v17  ;;  %v295_v34 = vpop.eup %294  ;;  %v280_v17 = vld [vmem:[%s426_s7 + $0x8] sm:$0xff] }
  0x1a   :  { %v51_v20 = vadd.f32 %v48_v18, %v35_v14  ;;  %v104_v35 = vmul.f32 32.0, %v295_v34  ;;  %vm108_vm2 = vweird.f32 %v295_v34  ;;  %224 = vmatpush.bf16.msra.mxu2 %v280_v17  ;;  %v279_v18 = vld [vmem:[%s426_s7] sm:$0xff] }
  0x1b   :  { %v52_v21 = vadd.f32 %v50_v19, %v36_v16 }
  0x1c   :  { %v246_v22 = vadd.f32 -0.6931472, %v51_v20  ;;  %v105_v36 = vsub.f32 1.0, %v104_v35  ;;  %v284_v20 = vld [vmem:[%s423_s6] ss:$0 sm:$0xff] }
  0x1d   :  { %v247_v23 = vadd.f32 -0.6931472, %v52_v21 }
  0x1e   :  { %v106_v37 = vmul.f32 %v295_v34, %v105_v36  ;;  %225 = vmatpush.bf16.msra.mxu2 %v279_v18 }
  0x1f   :  { %v59_v24 = vpack.c.bf16 %v247_v23, %v246_v22 }
  0x20   :  { %v107_v38 = vadd.f32 %v295_v34, %v106_v37 }
  0x21   :  { %256 = vmatmul.msk.bf16.vlgmr.msra.gmra.mxu0 %vm72_vm0, %v59_v24 }
  0x22   :  { %v109_v39 = vsel %vm108_vm2, %v295_v34, %v107_v38 }
  0x9e   :  { %v85_v26 = vpop.f32.mrf.mxu0 }
  0x9f   :  { %v367_v27 = vadd.f32 %v90_v25, %v85_v26 }
  0xa1   :  { %v96_v28 = vsel %vm72_vm0, %v367_v27, 0.0 }
  0xa2   :  { %97 = vadd.xlane.f32.xlu0 %v96_v28  ;;  %v285_v28 = vld [vmem:[%s425_s8] ss:$0 sm:$0xff] }
  0xa6   :  { %v87_v30 = vpop.f32.mrf.mxu0 }
  0xa7   :  { %v374_v31 = vadd.f32 %v91_v29, %v87_v30 }
  0xa9   :  { %v100_v32 = vsel %vm99_vm1, %v374_v31, 0.0 }
  0xaa   :  { %101 = vadd.xlane.f32.xlu0 %v100_v32 }
 0x115   :  { %v98_v40 = vpop.xlane.xlu0 %97 }
 0x116   :  { %v110_v41 = vmul.f32 %v109_v39, %v98_v40 }
 0x118   :  { %v112_v42 = vsub.f32 %v367_v27, %v110_v41 }
 0x11a   :  { %v114_v43 = vmul.f32 %v112_v42, %v112_v42 }
 0x11c   :  { %v116_v44 = vsel %vm72_vm0, %v114_v43, 0.0 }
 0x11d   :  { %117 = vadd.xlane.f32.xlu1 %v116_v44  ;;  %v102_v45 = vpop.xlane.xlu0 %101 }
 0x11e   :  { %v111_v46 = vmul.f32 %v109_v39, %v102_v45 }
 0x120   :  { %v113_v47 = vsub.f32 %v374_v31, %v111_v46 }
 0x122   :  { %v115_v48 = vmul.f32 %v113_v47, %v113_v47 }
 0x124   :  { %v119_v49 = vsel %vm99_vm1, %v115_v48, 0.0 }
 0x125   :  { %120 = vadd.xlane.f32.xlu1 %v119_v49 }
 0x190   :  { %v118_v51 = vpop.xlane.xlu1 %117 }
 0x191   :  { %v122_v53 = vmul.f32 %v118_v51, %v109_v39 }
 0x193   :  { %v124_v54 = vadd.f32 1e-05, %v122_v53 }
 0x195   :  { %296 = vrsqrt.f32 %v124_v54  ;;  %vm132_vm4 = vweird.f32 %v124_v54 }
 0x198   :  { %v121_v55 = vpop.xlane.xlu1 %120 }
 0x199   :  { %v123_v56 = vmul.f32 %v121_v55, %v109_v39 }
 0x19b   :  { %v297_v57 = vpop.eup %296  ;;  %v125_v58 = vadd.f32 1e-05, %v123_v56 }
 0x19c   :  { %v127_v59 = vmul.f32 %v297_v57, %v124_v54  ;;  %vm133_vm3 = vweird.f32 %v297_v57 }
 0x19d   :  { %298 = vrsqrt.f32 %v125_v58  ;;  %vm134_vm5 = vmor %vm132_vm4, %vm133_vm3  ;;  %vm142_vm7 = vweird.f32 %v125_v58 }
 0x19e   :  { %v128_v60 = vmul.f32 %v297_v57, %v127_v59 }
 0x1a0   :  { %v129_v61 = vmul.f32 0.5, %v128_v60 }
 0x1a2   :  { %v130_v62 = vsub.f32 1.5, %v129_v61 }
 0x1a3   :  { %v299_v63 = vpop.eup %298 }
 0x1a4   :  { %v131_v0 = vmul.f32 %v297_v57, %v130_v62  ;;  %v137_v1 = vmul.f32 %v299_v63, %v125_v58  ;;  %vm143_vm6 = vweird.f32 %v299_v63 }
 0x1a5   :  { %vm144_vm8 = vmor %vm142_vm7, %vm143_vm6 }
 0x1a6   :  { %v138_v2 = vmul.f32 %v299_v63, %v137_v1  ;;  %v135_v3 = vsel %vm134_vm5, %v297_v57, %v131_v0 }
 0x1a7   :  { %v146_v6 = vmul.f32 %v135_v3, %v112_v42 }
 0x1a8   :  { %v139_v4 = vmul.f32 0.5, %v138_v2 }
 0x1a9   :  { %v151_v11 = vmul.f32 %v282_v7, %v146_v6 }
 0x1aa   :  { %v140_v5 = vsub.f32 1.5, %v139_v4 }
 0x1ab   :  { %v156_v14 = vadd.f32 %v283_v12, %v151_v11 }
 0x1ac   :  { %v141_v8 = vmul.f32 %v299_v63, %v140_v5 }
 0x1ae   :  { %v145_v9 = vsel %vm144_vm8, %v299_v63, %v141_v8 }
 0x1af   :  { %v147_v10 = vmul.f32 %v145_v9, %v113_v47 }
 0x1b1   :  { %v152_v13 = vmul.f32 %v282_v7, %v147_v10 }
 0x1b3   :  { %v157_v15 = vadd.f32 %v283_v12, %v152_v13 }
 0x1b5   :  { %v162_v16 = vpack.c.bf16 %v157_v15, %v156_v14 }
 0x1b7   :  { %265 = vmatmul.msk.bf16.vlgmr.msra.gmra.mxu1 %vm72_vm0, %v162_v16 }
 0x234   :  { %v191_v19 = vpop.f32.mrf.mxu1 }
 0x235   :  { %v192_v21 = vadd.f32 %v284_v20, %v191_v19 }
 0x237   :  { %v196_v24 = vmax.f32 %v192_v21, 0.0 }
 0x23c   :  { %v193_v22 = vpop.f32.mrf.mxu1 }
 0x23d   :  { %v194_v23 = vadd.f32 %v284_v20, %v193_v22 }
 0x23f   :  { %v197_v25 = vmax.f32 %v194_v23, 0.0 }
 0x241   :  { %v202_v26 = vpack.c.bf16 %v197_v25, %v196_v24 }
 0x243   :  { %274 = vmatmul.msk.bf16.vlgmr.msra.gmra.mxu2 %vm72_vm0, %v202_v26 }
 0x2c6   :  { %v227_v29 = vpop.f32.mrf.mxu2 }
 0x2c7   :  { %v232_v30 = vadd.f32 %v227_v29, %v367_v27 }
 0x2c9   :  { %v238_v32 = vadd.f32 %v285_v28, %v232_v30 }
 0x2cb   :  { %240 = vst.msk [vmem:[%s427_s9] sm:$0xff] %vm72_vm0, %v238_v32 }
 0x2ce   :  { %v229_v33 = vpop.f32.mrf.mxu2 }
 0x2cf   :  { %v233_v34 = vadd.f32 %v229_v33, %v374_v31 }
 0x2d1   :  { %v239_v35 = vadd.f32 %v285_v28, %v233_v34 }
 0x2d3   :  { %241 = vst.msk [vmem:[%s427_s9 + $0x8] sm:$0x3f] %vm99_vm1, %v239_v35 }

// kernel: _forward_core.34
= control target key start
LH: loop header
LB: loop body
LE: loop exit
PB: predicated region body
PF: predicated region fallthrough
CT: control target
= control target key end

     0   :  { %s535_s18 = smov 0   ;;  %s589_s0 = inlined_call_operand.vmem [shape: f32[60,96], index: 0, kind: input, shape index: {}]   ;;  %s590_s1 = inlined_call_operand.vmem [shape: bf16[96,32], index: 1, kind: input, shape index: {}]   ;;  %s591_s2 = inlined_call_operand.vmem [shape: f32[1,32], index: 2, kind: input, shape index: {}]   ;;  %s592_s3 = inlined_call_operand.vmem [shape: bf16[32,14], index: 3, kind: input, shape index: {}]   ;;  %s593_s4 = inlined_call_operand.vmem [shape: f32[1,14], index: 4, kind: input, shape index: {}]   ;;  %s594_s5 = inlined_call_operand.vmem [shape: f32[60,14], index: 5, kind: output, shape index: {}]  }
   0x1 LB: > { %s426_s19 = sadd.s32 4294967295, %s503_s18   ;;  %p430_p0 = scmp.ge.s32.totalorder %s503_s18, 1  ;;  %s503_s18 = sphi %s535_s18, %s15_s18  }
   0x2   : > { %p188_p1 = scmp.lt.s32.totalorder %s503_s18, 3 }
   0x4   : > { %p189_p2 = pnand %p430_p0, %p188_p1 }
   0x5   : > { %s431_s22 = sshll.u32 (!%p189_p2), %s426_s19, 2 }
   0x6   : > { %192 = sbr.rel (%p189_p2) target bundleno = 328 (0x148), region = 40  ;;  %p217_p3 = scmp.lt.s32.totalorder (!%p189_p2), %s431_s22, 7 }
   0xb   : > { %v478_v0 = vld [vmem:[%s590_s1 + $0x28] sm:$0xff]  ;;  %v477_v1 = vld [vmem:[%s590_s1 + $0x20] sm:$0xff]  ;;  %v476_v2 = vld [vmem:[%s590_s1 + $0x18] sm:$0xff]  ;;  %s596_s22 = smov (!%p217_p3, %s431_s22), 7  ;;  %vm287_vm0 = vcmask 785408   ;;  %vm339_vm1 = vcmask 261120  }
   0xc   : > { %296 = vmatpush.bf16.msra.mxu0 %v478_v0  ;;  %481 = vmatpush.bf16.msra.mxu2 %v478_v0  ;;  %v475_v3 = vld [vmem:[%s590_s1 + $0x10] sm:$0xff]  ;;  %s432_s29 = sshll.u32 %s596_s22, 3  ;;  %v474_v4 = vld [vmem:[%s590_s1 + $0x8] sm:$0xff]  ;;  %v473_v5 = vld [vmem:[%s590_s1] sm:$0xff]  ;;  %vm365_vm2 = vcmask 113664  }
   0xd   : > { %s220_s9 = scalar_lea.vmem %s589_s0, %s432_s29  ;;  %v480_v12 = vld [vmem:[%s592_s3 + $0x8] sm:$0xff]  ;;  %v479_v13 = vld [vmem:[%s592_s3] sm:$0xff]  ;;  %s226_s24 = scalar_lea.vmem %s594_s5, %s432_s29 }
   0xe   : > { %v229_v6 = vld [vmem:[%s220_s9] sm:$0xff]  ;;  %v230_v7 = vld [vmem:[%s220_s9 + $0x8] sm:$0xff]  ;;  %v231_v8 = vld [vmem:[%s220_s9 + $0x10] sm:$0xff]  ;;  %352 = vmatpush.bf16.msra.mxu1 %v480_v12 }
   0xf   : > { %v232_v9 = vld [vmem:[%s220_s9 + $0x18] sm:$0xff]  ;;  %v245_v10 = vpack.c.bf16 %v230_v7, %v229_v6  ;;  %v495_v15 = vld [vmem:[%s591_s2] ss:$0 sm:$0xff] }
  0x10   : > { %297 = vmatpush.bf16.msra.mxu0 %v477_v1  ;;  %482 = vmatpush.bf16.msra.mxu2 %v477_v1  ;;  %v246_v11 = vpack.c.bf16 %v232_v9, %v231_v8  ;;  %v496_v29 = vld [vmem:[%s593_s4] ss:$0 sm:$0xff] }
  0x12   : > { %353 = vmatpush.bf16.msra.mxu1 %v479_v13 }
  0x14   : > { %298 = vmatpush.bf16.msra.mxu0 %v476_v2  ;;  %483 = vmatpush.bf16.msra.mxu2 %v476_v2 }
  0x18   : > { %299 = vmatpush.bf16.msra.mxu0 %v475_v3  ;;  %484 = vmatpush.bf16.msra.mxu2 %v475_v3 }
  0x1c   : > { %300 = vmatpush.bf16.msra.mxu0 %v474_v4  ;;  %485 = vmatpush.bf16.msra.mxu2 %v474_v4 }
  0x20   : > { %301 = vmatpush.bf16.msra.mxu0 %v473_v5  ;;  %486 = vmatpush.bf16.msra.mxu2 %v473_v5 }
  0x23   : > { %459 = vmatmul.msk.bf16.vlgmr.msra.gmra.mxu0 %vm287_vm0, %v245_v10  ;;  %460 = vmatmul.msk.bf16.vlgmr.msra.gmra.mxu2 %vm287_vm0, %v246_v11 }
  0xa0   : > { %v303_v14 = vpop.f32.mrf.mxu0 }
  0xa1   : > { %v304_v16 = vadd.f32 %v495_v15, %v303_v14 }
  0xa3   : > { %v313_v20 = vmax.f32 %v304_v16, 0.0 }
  0xa6   : > { %v308_v18 = vpop.f32.mrf.mxu2 }
  0xa7   : > { %v309_v24 = vadd.f32 %v495_v15, %v308_v18 }
  0xa8   : > { %v305_v17 = vpop.f32.mrf.mxu0 }
  0xa9   : > { %v306_v19 = vadd.f32 %v495_v15, %v305_v17  ;;  %v315_v26 = vmax.f32 %v309_v24, 0.0 }
  0xab   : > { %v314_v21 = vmax.f32 %v306_v19, 0.0 }
  0xad   : > { %v321_v22 = vpack.c.bf16 %v314_v21, %v313_v20 }
  0xae   : > { %v310_v23 = vpop.f32.mrf.mxu2 }
  0xaf   : > { %469 = vmatmul.msk.bf16.vlgmr.msra.gmra.mxu1 %vm339_vm1, %v321_v22  ;;  %v311_v25 = vadd.f32 %v495_v15, %v310_v23 }
  0xb1   : > { %v316_v27 = vmax.f32 %v311_v25, 0.0 }
  0xb3   : > { %v322_v28 = vpack.c.bf16 %v316_v27, %v315_v26 }
  0xbf   : > { %470 = vmatmul.msk.bf16.gmra.mxu1 %vm339_vm1, %v322_v28 }
 0x12c   : > { %v355_v30 = vpop.f32.mrf.mxu1 }
 0x12d   : > { %v356_v31 = vadd.f32 %v496_v29, %v355_v30 }
 0x12f   : > { %366 = vst.msk [vmem:[%s226_s24] sm:$0xff] %vm365_vm2, %v356_v31 }
 0x134   : > { %v357_v32 = vpop.f32.mrf.mxu1 }
 0x135   : > { %v358_v33 = vadd.f32 %v496_v29, %v357_v32 }
 0x137   : > { %367 = vst.msk [vmem:[%s226_s24 + $0x8] sm:$0xff] %vm365_vm2, %v358_v33 }
 0x13c   : > { %v360_v34 = vpop.f32.mrf.mxu1 }
 0x13d   : > { %v361_v35 = vadd.f32 %v496_v29, %v360_v34 }
 0x13f   : > { %368 = vst.msk [vmem:[%s226_s24 + $0x10] sm:$0xff] %vm365_vm2, %v361_v35 }
 0x144   : > { %v362_v36 = vpop.f32.mrf.mxu1 }
 0x145   : > { %v363_v37 = vadd.f32 %v496_v29, %v362_v36 }
 0x147   : > { %369 = vst.msk [vmem:[%s226_s24 + $0x18] sm:$0xff] %vm365_vm2, %v363_v37 }
 0x148 PF: > { %s15_s18 = sadd.s32 1, %s503_s18  }
 0x149   : > { %p12_p4 = scmp.ge.s32.totalorder %s15_s18, 4  }
 0x14b   :  { %14 = sbr.rel (!%p12_p4) target bundleno = 1 (0x1), region = 70 }

// kernel: _forward_core.35
= control target key start
LH: loop header
LB: loop body
LE: loop exit
PB: predicated region body
PF: predicated region fallthrough
CT: control target
= control target key end

     0   :  { %s960_s0 = inlined_call_operand.vmem [shape: f32[20,80], index: 0, kind: input, shape index: {}]   ;;  %s961_s1 = inlined_call_operand.vmem [shape: bf16[80,32], index: 1, kind: input, shape index: {}]   ;;  %s962_s2 = inlined_call_operand.vmem [shape: f32[1,32], index: 2, kind: input, shape index: {}]   ;;  %s963_s3 = inlined_call_operand.vmem [shape: bf16[32,1], index: 3, kind: input, shape index: {}]   ;;  %s964_s4 = inlined_call_operand.<no memory space> [shape: f32[1,1], index: 4, kind: input, shape index: {}]   ;;  %s965_s5 = inlined_call_operand.vmem [shape: f32[20,1], index: 5, kind: output, shape index: {}]  }
   0x1   :  { %v10_v0 = vstv %s964_s4 }
   0x2   :  { %11 = vst [vmem:[#allocation2] sm:$0x1] %v10_v0 }
   0x3   :  { %s853_s20 = smov 0   ;;  %s855_s21 = smov 0  }
   0x4   :  { %s857_s22 = smov 0  }
   0x5 LB: > { %s866_s4 = sadd.s32 4294967295, %s786_s22   ;;  %s868_s23 = sadd.s32 1, %s786_s22   ;;  %s786_s22 = sphi %s857_s22, %s969_s22   ;;  %s782_s21 = sphi %s855_s21, %s968_s21   ;;  %s778_s20 = sphi %s853_s20, %s967_s20  }
   0x6   : > { %s131_s24 = ssub.s32 %s786_s22, %s868_s23  ;;  %s134_s25 = sadd.s32 1, %s782_s21 }
   0x7   : > { %p132_p0 = scmp.eq.s32.totalorder %s131_s24, 0  ;;  %p144_p1 = scmp.ne.s32.totalorder %s782_s21, %s778_s20 }
   0x8   : > { %p145_p2 = scmp.eq.s32.totalorder %s866_s4, 1  ;;  %p581_p3 = scmp.ge.s32.totalorder %s786_s22, 1 }
   0x9   : > { %s876_s26 = scalar_select %p132_p0, %s782_s21, %s134_s25  }
   0xa   : > { %p878_p4 = por %p145_p2, %p144_p1  ;;  %p198_p5 = scmp.lt.s32.totalorder %s786_s22, 3 }
   0xc   : > { %p199_p6 = pnand %p581_p3, %p198_p5 }
   0xd   : > { %s886_s30 = sshll.u32 (!%p199_p6), %s866_s4, 1  ;;  %s226_s6 = sand.u32 (!%p199_p6), 1, %s778_s20  }
   0xe   : > { %202 = sbr.rel (%p199_p6) target bundleno = 355 (0x163), region = 40  ;;  %p234_p7 = scmp.lt.s32.totalorder (!%p199_p6), %s886_s30, 2 }
   0xf   : > { %s582_s7 = sshll.u32 (!%p199_p6), %s226_s6, 4 }
  0x13   : > { %v636_v1 = vld [vmem:[%s961_s1 + $0x20] sm:$0xff]  ;;  %v635_v2 = vld [vmem:[%s961_s1 + $0x18] sm:$0xff]  ;;  %s235_s8 = scalar_select %p234_p7, %s886_s30, 2  ;;  %v634_v3 = vld [vmem:[%s961_s1 + $0x10] sm:$0xff]  ;;  %vm296_vm0 = vcmask 654336   ;;  %vm337_vm1 = vcmask 261120  }
  0x14   : > { %303 = vmatpush.bf16.msra.mxu0 %v636_v1  ;;  %v633_v4 = vld [vmem:[%s961_s1 + $0x8] sm:$0xff]  ;;  %v632_v5 = vld [vmem:[%s961_s1] sm:$0xff]  ;;  %vm355_vm2 = vcmask 7168   ;;  %s366_s9 = ssub.s32 (%p878_p4), 3, %s886_s30  ;;  %s639_s20 = sshll.u32 (%p878_p4), %s866_s4, 4 }
  0x15   : > { %s584_s11 = sshll.u32 %s235_s8, 3  ;;  %v638_v9 = vld [vmem:[%s963_s3 + $0x8] sm:$0xff]  ;;  %v637_v10 = vld [vmem:[%s963_s3] sm:$0xff]  ;;  %s915_s8 = scalar_lea.vmem [#allocation3], %s582_s7  }
  0x16   : > { %s237_s16 = scalar_lea.vmem %s960_s0, %s584_s11  ;;  %347 = vmatpush.bf16.msra.mxu1 %v638_v9  ;;  %v730_v12 = vld [vmem:[%s962_s2] ss:$0 sm:$0xff]  ;;  %p367_p8 = scmp.lt.s32.totalorder (%p878_p4), %s366_s9, 2 }
  0x17   : > { %v249_v6 = vld [vmem:[%s237_s16] sm:$0xff]  ;;  %v250_v7 = vld [vmem:[%s237_s16 + $0x8] sm:$0xff]  ;;  %s926_s12 = scalar_lea.vmem (%p878_p4), %s965_s5, %s639_s20  }
  0x18   : > { %304 = vmatpush.bf16.msra.mxu0 %v635_v2  ;;  %v261_v8 = vpack.c.bf16 %v250_v7, %v249_v6  ;;  %v731_v19 = vld [vmem:[#allocation2] ss:$0 sm:$0xff] }
  0x1a   : > { %348 = vmatpush.bf16.msra.mxu1 %v637_v10 }
  0x1c   : > { %305 = vmatpush.bf16.msra.mxu0 %v634_v3 }
  0x20   : > { %306 = vmatpush.bf16.msra.mxu0 %v633_v4 }
  0x24   : > { %307 = vmatpush.bf16.msra.mxu0 %v632_v5 }
  0x27   : > { %605 = vmatmul.msk.bf16.vlgmr.msra.gmra.mxu0 %vm296_vm0, %v261_v8 }
  0xa4   : > { %v309_v11 = vpop.f32.mrf.mxu0 }
  0xa5   : > { %v310_v13 = vadd.f32 %v730_v12, %v309_v11 }
  0xa7   : > { %v314_v16 = vmax.f32 %v310_v13, 0.0 }
  0xac   : > { %v311_v14 = vpop.f32.mrf.mxu0 }
  0xad   : > { %v312_v15 = vadd.f32 %v730_v12, %v311_v14 }
  0xaf   : > { %v315_v17 = vmax.f32 %v312_v15, 0.0 }
  0xb1   : > { %v320_v18 = vpack.c.bf16 %v315_v17, %v314_v16 }
  0xb3   : > { %614 = vmatmul.msk.bf16.vlgmr.msra.gmra.mxu1 %vm337_vm1, %v320_v18 }
 0x130   : > { %v350_v20 = vpop.f32.mrf.mxu1 }
 0x131   : > { %v351_v21 = vadd.f32 %v731_v19, %v350_v20 }
 0x133   : > { %356 = vst.msk [vmem:[%s915_s8] sm:$0xff] %vm355_vm2, %v351_v21 }
 0x137   : > { %364 = sbr.rel (!%p878_p4) target bundleno = 355 (0x163), region = 44 }
 0x138   : > { %v352_v22 = vpop.f32.mrf.mxu1 }
 0x139   : > { %v353_v23 = vadd.f32 %v731_v19, %v352_v22 }
 0x13b   : > { %357 = vst.msk [vmem:[%s915_s8 + $0x8] sm:$0xff] %vm355_vm2, %v353_v23 }
 0x13c   : > { %s971_s9 = smov (!%p367_p8, %s366_s9), 2 }
 0x13d   : > { %s617_s13 = sshll.u32 %s971_s9, 3 }
 0x13e   : > { %p620_p9 = scmp.eq.s32.totalorder %s617_s13, 0 }
 0x13f   : > { %s932_s14 = sshrl.u32 (!%p620_p9), %s971_s9, 1 }
 0x140   : > { %375 = sbr.rel (%p620_p9) target bundleno = 355 (0x163), region = 48  ;;  %p621_p10 = scmp.le.s32.totalorder (!%p620_p9), %s932_s14, 0 }
 0x145   : > { %534 = sbr.rel (%p621_p10) target bundleno = 338 (0x152), region = 124  ;;  %s788_s4 = smov (!%p621_p10), %s926_s12  }
 0x146   : > { %s792_s27 = smov (!%p621_p10), %s915_s8   ;;  %s796_s30 = smov (!%p621_p10), 0  }
 0x147   : > { %s800_s15 = smov (!%p621_p10), 0  }
 0x14a LB: >> { %v440_v24 = vld [vmem:[%s794_s27] sm:$0xff]  ;;  %v442_v25 = vld [vmem:[%s794_s27 + $0x8] sm:$0xff]  ;;  %s444_s16 = sadd.s32 1, %s798_s30  ;;  %s434_s15 = sadd.s32 1, %s802_s15   ;;  %s802_s15 = sphi %s800_s15, %s434_s15   ;;  %s798_s30 = sphi %s796_s30, %s797_s30   ;;  %s794_s27 = sphi %s792_s27, %s449_s27   ;;  %s790_s4 = sphi %s788_s4, %s450_s4  }
 0x14b   : >> { %441 = vst [vmem:[%s790_s4] sm:$0xff] %v440_v24  ;;  %p445_p11 = scmp.ge.s32.totalorder %s444_s16, %s932_s14  ;;  %p433_p12 = scmp.ge.s32.totalorder %s434_s15, %s932_s14 }
 0x14c   : >> { %443 = vst [vmem:[%s790_s4 + $0x8] sm:$0xff] %v442_v25 }
 0x14d   : >> { %s973_s16 = smov (%p445_p11, %s444_s16), 0  ;;  %436 = sbr.rel (!%p433_p12) target bundleno = 330 (0x14a), region = 130 }
 0x14e   : >> { %s622_s17 = sshll.u32 %s973_s16, 4  ;;  %s797_s30 = smov %s973_s16  }
 0x14f   : >> { %s449_s27 = scalar_lea.vmem %s915_s8, %s622_s17 [#allocation3]   ;;  %s450_s4 = scalar_lea.vmem %s926_s12, %s622_s17  }
 0x152 PF: > { %s942_s18 = sand.u32 1, %s971_s9   ;;  %s640_s19 = sshll.u32 %s932_s14, 4 }
 0x153   : > { %s455_s22 = scalar_lea.vmem %s915_s8, %s640_s19 [#allocation3]   ;;  %s457_s24 = scalar_lea.vmem %s926_s12, %s640_s19  }
 0x154   : > { %p627_p13 = scmp.le.s32.totalorder %s942_s18, 0 }
 0x155   : > { %s804_s25 = smov (!%p627_p13), %s457_s24   ;;  %s808_s28 = smov (!%p627_p13), %s455_s22  }
 0x156   : > { %548 = sbr.rel (%p627_p13) target bundleno = 355 (0x163), region = 135  ;;  %s812_s29 = smov (!%p627_p13), 0  }
 0x157   : > { %s816_s6 = smov (!%p627_p13), 0  }
 0x15b LB: >> { %v467_v26 = vld [vmem:[%s810_s28] sm:$0xff]  ;;  %s469_s7 = sadd.s32 1, %s814_s29  ;;  %s461_s6 = sadd.s32 1, %s818_s6   ;;  %s818_s6 = sphi %s816_s6, %s461_s6   ;;  %s814_s29 = sphi %s812_s29, %s813_s29   ;;  %s810_s28 = sphi %s808_s28, %s474_s28   ;;  %s806_s25 = sphi %s804_s25, %s475_s25  }
 0x15c   : >> { %468 = vst [vmem:[%s806_s25] sm:$0xff] %v467_v26  ;;  %p470_p0 = scmp.ge.s32.totalorder %s469_s7, %s942_s18  ;;  %p460_p1 = scmp.ge.s32.totalorder %s461_s6, %s942_s18 }
 0x15e   : >> { %s975_s7 = smov (%p470_p0, %s469_s7), 0  ;;  %463 = sbr.rel (!%p460_p1) target bundleno = 347 (0x15b), region = 141 }
 0x15f   : >> { %s628_s8 = sshll.u32 %s975_s7, 3  ;;  %s813_s29 = smov %s975_s7  }
 0x160   : >> { %s474_s28 = scalar_lea.vmem %s455_s22, %s628_s8 [#allocation3]   ;;  %s475_s25 = scalar_lea.vmem %s457_s24, %s628_s8  }
 0x163 PF: > { %p14_p2 = scmp.ge.s32.totalorder %s868_s23, 4   ;;  %s967_s20 = smov %s782_s21 }
 0x164   : > { %s968_s21 = smov %s876_s26  ;;  %s969_s22 = smov %s868_s23 }
 0x165   :  { %16 = sbr.rel (!%p14_p2) target bundleno = 5 (0x5), region = 152 }

</bundles_post_ra>
